<compile_context>
chip_gen: v5e
topology: v5e:2x2
jax: 0.10.0
libtpu: 0.0.40
codegen_flags: <defaults>
</compile_context>

<pallas_src>
import jax
import jax.numpy as jnp
from jax.experimental import pallas as pl
from jax.experimental.pallas import tpu as pltpu

_VMEM_LIMIT_BYTES = 32 * 1024 * 1024  # safe on v5e (128 MiB), v6e (128), v7x (64)


# ----------------------------------------------------------------------------
# Kernel 1: fused  y = ReLU( (x @ W + b) * scale + shift )
#   scale = gamma / sqrt(running_var + eps),  shift = beta - mean * scale
# Grid = (N/tn parallel, K/tk reduction).  The output block is resident across
# the K axis and serves as the f32 accumulator; bias/BN/ReLU run on the last
# K step, in place.
# ----------------------------------------------------------------------------
def _linear_bn_relu_kernel(x_ref, w_ref, b_ref, scale_ref, shift_ref, o_ref):
    k = pl.program_id(1)

    @pl.when(k == 0)
    def _():
        o_ref[...] = jnp.zeros_like(o_ref)

    o_ref[...] += jnp.dot(x_ref[...], w_ref[...],
                          preferred_element_type=jnp.float32)

    @pl.when(k == pl.num_programs(1) - 1)
    def _():
        y = o_ref[...] + b_ref[...]
        y = y * scale_ref[...] + shift_ref[...]
        o_ref[...] = jnp.maximum(y, 0.0)


def linear_bn_relu(x, w_t, b, scale, shift, *, tk=1024, tn=1024):
    B, K = x.shape
    _, N = w_t.shape
    assert K % tk == 0 and N % tn == 0
    grid = (N // tn, K // tk)
    return pl.pallas_call(
        _linear_bn_relu_kernel,
        out_shape=jax.ShapeDtypeStruct((B, N), jnp.float32),
        grid_spec=pltpu.PrefetchScalarGridSpec(
            num_scalar_prefetch=0,
            grid=grid,
            in_specs=[
                pl.BlockSpec((B, tk), lambda j, k: (0, k)),
                pl.BlockSpec((tk, tn), lambda j, k: (k, j)),
                pl.BlockSpec((1, tn), lambda j, k: (0, j)),
                pl.BlockSpec((1, tn), lambda j, k: (0, j)),
                pl.BlockSpec((1, tn), lambda j, k: (0, j)),
            ],
            out_specs=pl.BlockSpec((B, tn), lambda j, k: (0, j)),
        ),
        compiler_params=pltpu.CompilerParams(
            dimension_semantics=("parallel", "arbitrary"),
            vmem_limit_bytes=_VMEM_LIMIT_BYTES),
    )(x, w_t, b, scale, shift)


# ----------------------------------------------------------------------------
# Kernel 2: fused  out = softmax( ReLU((x@W2 + b2)*scale + shift) @ W3 + b3 )
# Grid iterates only the W2 contraction axis; the (B, 1024) hidden is kept in
# a VMEM scratch accumulator.  W3 (1024x40, 160 KiB) is loaded with a
# constant-index BlockSpec and the tiny linear3 + numerically-stable softmax
# run in the last-step epilogue, so no h2 HBM round trip and no third launch.
# ----------------------------------------------------------------------------
def _linear_bn_relu_linear_softmax_kernel(x_ref, w2_ref, b2_ref, scale_ref,
                                          shift_ref, w3_ref, b3_ref,
                                          o_ref, h_acc):
    k = pl.program_id(0)

    @pl.when(k == 0)
    def _():
        h_acc[...] = jnp.zeros_like(h_acc)

    h_acc[...] += jnp.dot(x_ref[...], w2_ref[...],
                          preferred_element_type=jnp.float32)

    @pl.when(k == pl.num_programs(0) - 1)
    def _():
        h = h_acc[...] + b2_ref[...]
        h = h * scale_ref[...] + shift_ref[...]
        h = jnp.maximum(h, 0.0)
        logits = jnp.dot(h, w3_ref[...],
                         preferred_element_type=jnp.float32) + b3_ref[...]
        m = jnp.max(logits, axis=-1, keepdims=True)
        e = jnp.exp(logits - m)
        o_ref[...] = (e / jnp.sum(e, axis=-1, keepdims=True)).astype(o_ref.dtype)


def linear_bn_relu_linear_softmax(x, w2_t, b2, scale, shift, w3_t, b3, *,
                                  tk=1024):
    B, K = x.shape
    _, H = w2_t.shape
    _, N = w3_t.shape
    assert K % tk == 0
    grid = (K // tk,)
    return pl.pallas_call(
        _linear_bn_relu_linear_softmax_kernel,
        out_shape=jax.ShapeDtypeStruct((B, N), jnp.float32),
        grid_spec=pltpu.PrefetchScalarGridSpec(
            num_scalar_prefetch=0,
            grid=grid,
            in_specs=[
                pl.BlockSpec((B, tk), lambda k: (0, k)),
                pl.BlockSpec((tk, H), lambda k: (k, 0)),
                pl.BlockSpec((1, H), lambda k: (0, 0)),
                pl.BlockSpec((1, H), lambda k: (0, 0)),
                pl.BlockSpec((1, H), lambda k: (0, 0)),
                pl.BlockSpec((H, N), lambda k: (0, 0)),
                pl.BlockSpec((1, N), lambda k: (0, 0)),
            ],
            out_specs=pl.BlockSpec((B, N), lambda k: (0, 0)),
            scratch_shapes=[pltpu.VMEM((B, H), jnp.float32)],
        ),
        compiler_params=pltpu.CompilerParams(
            dimension_semantics=("arbitrary",),
            vmem_limit_bytes=_VMEM_LIMIT_BYTES),
    )(x, w2_t, b2, scale, shift, w3_t, b3)


# ----------------------------------------------------------------------------
# Parameter setup (deterministic, in-script) + full forward
# ----------------------------------------------------------------------------
def init_params(key):
    ks = jax.random.split(key, 14)
    eps = 1e-5

    def lin(kw, kb, fan_in, fan_out):
        bound = 1.0 / jnp.sqrt(fan_in)
        w = jax.random.uniform(kw, (fan_out, fan_in), jnp.float32, -bound, bound)
        b = jax.random.uniform(kb, (fan_out,), jnp.float32, -bound, bound)
        return w, b

    def bn(kg, kb, km, kv, n):
        gamma = 1.0 + 0.1 * jax.random.normal(kg, (n,), jnp.float32)
        beta = 0.1 * jax.random.normal(kb, (n,), jnp.float32)
        mean = 0.1 * jax.random.normal(km, (n,), jnp.float32)
        var = jax.random.uniform(kv, (n,), jnp.float32, 0.5, 1.5)
        scale = gamma / jnp.sqrt(var + eps)
        shift = beta - mean * scale
        return scale, shift

    w1, b1 = lin(ks[0], ks[1], 4096, 2048)
    w2, b2 = lin(ks[2], ks[3], 2048, 1024)
    w3, b3 = lin(ks[4], ks[5], 1024, 40)
    s1, sh1 = bn(ks[6], ks[7], ks[8], ks[9], 2048)
    s2, sh2 = bn(ks[10], ks[11], ks[12], ks[13], 1024)

    return dict(
        w1t=w1.T, b1=b1[None, :], scale1=s1[None, :], shift1=sh1[None, :],
        w2t=w2.T, b2=b2[None, :], scale2=s2[None, :], shift2=sh2[None, :],
        w3t=w3.T, b3=b3[None, :],
    )


@jax.jit
def torchnn_forward(params, x):
    # linear1 -> BN1 -> ReLU   (dropout in eval mode = identity)
    h1 = linear_bn_relu(x, params["w1t"], params["b1"],
                        params["scale1"], params["shift1"], tk=1024, tn=1024)
    # linear2 -> BN2 -> ReLU -> (identity dropout) -> linear3 -> softmax
    return linear_bn_relu_linear_softmax(
        h1, params["w2t"], params["b2"], params["scale2"], params["shift2"],
        params["w3t"], params["b3"], tk=1024)


def _reference(params, x):
    h1 = jnp.maximum((x @ params["w1t"] + params["b1"]) * params["scale1"]
                     + params["shift1"], 0.0)
    h2 = jnp.maximum((h1 @ params["w2t"] + params["b2"]) * params["scale2"]
                     + params["shift2"], 0.0)
    return jax.nn.softmax(h2 @ params["w3t"] + params["b3"], axis=-1)


if __name__ == "__main__":
    key = jax.random.PRNGKey(0)
    kp, kx = jax.random.split(key)
    params = init_params(kp)

    B = 8                      # small batch; features fixed by the module (4096)
    x = jax.random.normal(kx, (B, 4096), jnp.float32)

    out = torchnn_forward(params, x)
    out = jax.block_until_ready(out)

    ref = _reference(params, x)
    assert out.shape == (B, 40)
    assert jnp.allclose(jnp.sum(out, axis=-1), 1.0, atol=1e-4)
    assert jnp.allclose(out, ref, atol=1e-4, rtol=1e-4)

    print("KERNEL_OK")
</pallas_src>

<mosaic_0001>
module attributes {stable_mosaic.version = 11 : i64} {
  func.func @_linear_bn_relu_kernel(%arg0: i32, %arg1: i32, %arg2: memref<8x1024xf32, #tpu.memory_space<vmem>>, %arg3: memref<1024x1024xf32, #tpu.memory_space<vmem>>, %arg4: memref<1x1024xf32, #tpu.memory_space<vmem>>, %arg5: memref<1x1024xf32, #tpu.memory_space<vmem>>, %arg6: memref<1x1024xf32, #tpu.memory_space<vmem>>, %arg7: memref<8x1024xf32, #tpu.memory_space<vmem>>) attributes {dimension_semantics = [#tpu.dimension_semantics<parallel>, #tpu.dimension_semantics<arbitrary>], iteration_bounds = array<i64: 2, 4>, scalar_prefetch = 0 : i64, scratch_operands = 0 : i64, tpu.core_type = #tpu.core_type<tc>, window_params = [{transform_indices = @transform_0, window_bounds = array<i64: 8, 1024>}, {transform_indices = @transform_1, window_bounds = array<i64: 1024, 1024>}, {transform_indices = @transform_2, window_bounds = array<i64: 1, 1024>}, {transform_indices = @transform_3, window_bounds = array<i64: 1, 1024>}, {transform_indices = @transform_4, window_bounds = array<i64: 1, 1024>}, {transform_indices = @transform_5, window_bounds = array<i64: 8, 1024>}]} {
    %c0_i32 = arith.constant 0 : i32
    %0 = arith.cmpi eq, %arg1, %c0_i32 : i32
    %1 = arith.extui %0 : i1 to i32
    %c0_i32_0 = arith.constant 0 : i32
    %2 = arith.cmpi ne, %1, %c0_i32_0 : i32
    scf.if %2 {
      %cst_9 = arith.constant 0.000000e+00 : f32
      %12 = vector.broadcast %cst_9 : f32 to vector<8x1024xf32>
      %c0_10 = arith.constant 0 : index
      %c0_11 = arith.constant 0 : index
      %13 = vector.load %arg7[%c0_10, %c0_11] : memref<8x1024xf32, #tpu.memory_space<vmem>>, vector<8x1024xf32>
      tpu.vector_store %arg7[%c0_10, %c0_11], %12 {strides = array<i32>} : memref<8x1024xf32, #tpu.memory_space<vmem>>, vector<8x1024xf32>,
    } else {
    }
    %c0 = arith.constant 0 : index
    %c0_1 = arith.constant 0 : index
    %3 = vector.load %arg7[%c0, %c0_1] : memref<8x1024xf32, #tpu.memory_space<vmem>>, vector<8x1024xf32>
    %c0_2 = arith.constant 0 : index
    %c0_3 = arith.constant 0 : index
    %4 = vector.load %arg2[%c0_2, %c0_3] : memref<8x1024xf32, #tpu.memory_space<vmem>>, vector<8x1024xf32>
    %c0_4 = arith.constant 0 : index
    %c0_5 = arith.constant 0 : index
    %5 = vector.load %arg3[%c0_4, %c0_5] : memref<1024x1024xf32, #tpu.memory_space<vmem>>, vector<1024x1024xf32>
    %cst = arith.constant dense<0.000000e+00> : vector<8x1024xf32>
    %6 = tpu.matmul %4, %5, %cst {dimension_numbers = #tpu.dot_dimension_numbers<[1], [0], [0], [1], [0, 0, 1, 1], [], []>} : vector<8x1024xf32>, vector<1024x1024xf32>, vector<8x1024xf32> -> vector<8x1024xf32>
    %7 = arith.addf %3, %6 : vector<8x1024xf32>
    %c0_6 = arith.constant 0 : index
    %c0_7 = arith.constant 0 : index
    %8 = vector.load %arg7[%c0_6, %c0_7] : memref<8x1024xf32, #tpu.memory_space<vmem>>, vector<8x1024xf32>
    tpu.vector_store %arg7[%c0_6, %c0_7], %7 {strides = array<i32>} : memref<8x1024xf32, #tpu.memory_space<vmem>>, vector<8x1024xf32>,
    %c3_i32 = arith.constant 3 : i32
    %9 = arith.cmpi eq, %arg1, %c3_i32 : i32
    %10 = arith.extui %9 : i1 to i32
    %c0_i32_8 = arith.constant 0 : i32
    %11 = arith.cmpi ne, %10, %c0_i32_8 : i32
    scf.if %11 {
      %c0_9 = arith.constant 0 : index
      %c0_10 = arith.constant 0 : index
      %12 = vector.load %arg7[%c0_9, %c0_10] : memref<8x1024xf32, #tpu.memory_space<vmem>>, vector<8x1024xf32>
      %c0_11 = arith.constant 0 : index
      %c0_12 = arith.constant 0 : index
      %13 = vector.load %arg4[%c0_11, %c0_12] : memref<1x1024xf32, #tpu.memory_space<vmem>>, vector<1x1024xf32>
      %14 = vector.broadcast %13 : vector<1x1024xf32> to vector<8x1024xf32>
      %15 = arith.addf %12, %14 : vector<8x1024xf32>
      %c0_13 = arith.constant 0 : index
      %c0_14 = arith.constant 0 : index
      %16 = vector.load %arg5[%c0_13, %c0_14] : memref<1x1024xf32, #tpu.memory_space<vmem>>, vector<1x1024xf32>
      %17 = vector.broadcast %16 : vector<1x1024xf32> to vector<8x1024xf32>
      %18 = arith.mulf %15, %17 : vector<8x1024xf32>
      %c0_15 = arith.constant 0 : index
      %c0_16 = arith.constant 0 : index
      %19 = vector.load %arg6[%c0_15, %c0_16] : memref<1x1024xf32, #tpu.memory_space<vmem>>, vector<1x1024xf32>
      %20 = vector.broadcast %19 : vector<1x1024xf32> to vector<8x1024xf32>
      %21 = arith.addf %18, %20 : vector<8x1024xf32>
      %cst_17 = arith.constant 0.000000e+00 : f32
      %22 = vector.broadcast %cst_17 : f32 to vector<8x1024xf32>
      %23 = arith.maximumf %21, %22 : vector<8x1024xf32>
      %c0_18 = arith.constant 0 : index
      %c0_19 = arith.constant 0 : index
      %24 = vector.load %arg7[%c0_18, %c0_19] : memref<8x1024xf32, #tpu.memory_space<vmem>>, vector<8x1024xf32>
      tpu.vector_store %arg7[%c0_18, %c0_19], %23 {strides = array<i32>} : memref<8x1024xf32, #tpu.memory_space<vmem>>, vector<8x1024xf32>,
    } else {
    }
    return
  }
  func.func @transform_0(%arg0: i32, %arg1: i32) -> (i32, i32) {
    %c0_i32 = arith.constant 0 : i32
    %c0_i32_0 = arith.constant 0 : i32
    return %c0_i32, %arg1 : i32, i32
  }
  func.func @transform_1(%arg0: i32, %arg1: i32) -> (i32, i32) {
    %c0_i32 = arith.constant 0 : i32
    return %arg1, %arg0 : i32, i32
  }
  func.func @transform_2(%arg0: i32, %arg1: i32) -> (i32, i32) {
    %c0_i32 = arith.constant 0 : i32
    %c0_i32_0 = arith.constant 0 : i32
    return %c0_i32, %arg0 : i32, i32
  }
  func.func @transform_3(%arg0: i32, %arg1: i32) -> (i32, i32) {
    %c0_i32 = arith.constant 0 : i32
    %c0_i32_0 = arith.constant 0 : i32
    return %c0_i32, %arg0 : i32, i32
  }
  func.func @transform_4(%arg0: i32, %arg1: i32) -> (i32, i32) {
    %c0_i32 = arith.constant 0 : i32
    %c0_i32_0 = arith.constant 0 : i32
    return %c0_i32, %arg0 : i32, i32
  }
  func.func @transform_5(%arg0: i32, %arg1: i32) -> (i32, i32) {
    %c0_i32 = arith.constant 0 : i32
    %c0_i32_0 = arith.constant 0 : i32
    return %c0_i32, %arg0 : i32, i32
  }
}

module attributes {stable_mosaic.version = 11 : i64} {
  func.func @_linear_bn_relu_linear_softmax_kernel(%arg0: i32, %arg1: memref<8x1024xf32, #tpu.memory_space<vmem>>, %arg2: memref<1024x1024xf32, #tpu.memory_space<vmem>>, %arg3: memref<1x1024xf32, #tpu.memory_space<vmem>>, %arg4: memref<1x1024xf32, #tpu.memory_space<vmem>>, %arg5: memref<1x1024xf32, #tpu.memory_space<vmem>>, %arg6: memref<1024x40xf32, #tpu.memory_space<vmem>>, %arg7: memref<1x40xf32, #tpu.memory_space<vmem>>, %arg8: memref<8x40xf32, #tpu.memory_space<vmem>>, %arg9: memref<8x1024xf32, #tpu.memory_space<vmem>>) attributes {dimension_semantics = [#tpu.dimension_semantics<arbitrary>], iteration_bounds = array<i64: 2>, scalar_prefetch = 0 : i64, scratch_operands = 1 : i64, tpu.core_type = #tpu.core_type<tc>, window_params = [{transform_indices = @transform_0, window_bounds = array<i64: 8, 1024>}, {transform_indices = @transform_1, window_bounds = array<i64: 1024, 1024>}, {pipeline_mode = #tpu.pipeline_mode<synchronous>, transform_indices = @transform_2, window_bounds = array<i64: 1, 1024>}, {pipeline_mode = #tpu.pipeline_mode<synchronous>, transform_indices = @transform_3, window_bounds = array<i64: 1, 1024>}, {pipeline_mode = #tpu.pipeline_mode<synchronous>, transform_indices = @transform_4, window_bounds = array<i64: 1, 1024>}, {pipeline_mode = #tpu.pipeline_mode<synchronous>, transform_indices = @transform_5, window_bounds = array<i64: 1024, 40>}, {pipeline_mode = #tpu.pipeline_mode<synchronous>, transform_indices = @transform_6, window_bounds = array<i64: 1, 40>}, {pipeline_mode = #tpu.pipeline_mode<synchronous>, transform_indices = @transform_7, window_bounds = array<i64: 8, 40>}]} {
    %c0_i32 = arith.constant 0 : i32
    %0 = arith.cmpi eq, %arg0, %c0_i32 : i32
    %1 = arith.extui %0 : i1 to i32
    %c0_i32_0 = arith.constant 0 : i32
    %2 = arith.cmpi ne, %1, %c0_i32_0 : i32
    scf.if %2 {
      %cst_9 = arith.constant 0.000000e+00 : f32
      %12 = vector.broadcast %cst_9 : f32 to vector<8x1024xf32>
      %c0_10 = arith.constant 0 : index
      %c0_11 = arith.constant 0 : index
      %13 = vector.load %arg9[%c0_10, %c0_11] : memref<8x1024xf32, #tpu.memory_space<vmem>>, vector<8x1024xf32>
      tpu.vector_store %arg9[%c0_10, %c0_11], %12 {strides = array<i32>} : memref<8x1024xf32, #tpu.memory_space<vmem>>, vector<8x1024xf32>,
    } else {
    }
    %c0 = arith.constant 0 : index
    %c0_1 = arith.constant 0 : index
    %3 = vector.load %arg9[%c0, %c0_1] : memref<8x1024xf32, #tpu.memory_space<vmem>>, vector<8x1024xf32>
    %c0_2 = arith.constant 0 : index
    %c0_3 = arith.constant 0 : index
    %4 = vector.load %arg1[%c0_2, %c0_3] : memref<8x1024xf32, #tpu.memory_space<vmem>>, vector<8x1024xf32>
    %c0_4 = arith.constant 0 : index
    %c0_5 = arith.constant 0 : index
    %5 = vector.load %arg2[%c0_4, %c0_5] : memref<1024x1024xf32, #tpu.memory_space<vmem>>, vector<1024x1024xf32>
    %cst = arith.constant dense<0.000000e+00> : vector<8x1024xf32>
    %6 = tpu.matmul %4, %5, %cst {dimension_numbers = #tpu.dot_dimension_numbers<[1], [0], [0], [1], [0, 0, 1, 1], [], []>} : vector<8x1024xf32>, vector<1024x1024xf32>, vector<8x1024xf32> -> vector<8x1024xf32>
    %7 = arith.addf %3, %6 : vector<8x1024xf32>
    %c0_6 = arith.constant 0 : index
    %c0_7 = arith.constant 0 : index
    %8 = vector.load %arg9[%c0_6, %c0_7] : memref<8x1024xf32, #tpu.memory_space<vmem>>, vector<8x1024xf32>
    tpu.vector_store %arg9[%c0_6, %c0_7], %7 {strides = array<i32>} : memref<8x1024xf32, #tpu.memory_space<vmem>>, vector<8x1024xf32>,
    %c1_i32 = arith.constant 1 : i32
    %9 = arith.cmpi eq, %arg0, %c1_i32 : i32
    %10 = arith.extui %9 : i1 to i32
    %c0_i32_8 = arith.constant 0 : i32
    %11 = arith.cmpi ne, %10, %c0_i32_8 : i32
    scf.if %11 {
      %c0_9 = arith.constant 0 : index
      %c0_10 = arith.constant 0 : index
      %12 = vector.load %arg9[%c0_9, %c0_10] : memref<8x1024xf32, #tpu.memory_space<vmem>>, vector<8x1024xf32>
      %c0_11 = arith.constant 0 : index
      %c0_12 = arith.constant 0 : index
      %13 = vector.load %arg3[%c0_11, %c0_12] : memref<1x1024xf32, #tpu.memory_space<vmem>>, vector<1x1024xf32>
      %14 = vector.broadcast %13 : vector<1x1024xf32> to vector<8x1024xf32>
      %15 = arith.addf %12, %14 : vector<8x1024xf32>
      %c0_13 = arith.constant 0 : index
      %c0_14 = arith.constant 0 : index
      %16 = vector.load %arg4[%c0_13, %c0_14] : memref<1x1024xf32, #tpu.memory_space<vmem>>, vector<1x1024xf32>
      %17 = vector.broadcast %16 : vector<1x1024xf32> to vector<8x1024xf32>
      %18 = arith.mulf %15, %17 : vector<8x1024xf32>
      %c0_15 = arith.constant 0 : index
      %c0_16 = arith.constant 0 : index
      %19 = vector.load %arg5[%c0_15, %c0_16] : memref<1x1024xf32, #tpu.memory_space<vmem>>, vector<1x1024xf32>
      %20 = vector.broadcast %19 : vector<1x1024xf32> to vector<8x1024xf32>
      %21 = arith.addf %18, %20 : vector<8x1024xf32>
      %cst_17 = arith.constant 0.000000e+00 : f32
      %22 = vector.broadcast %cst_17 : f32 to vector<8x1024xf32>
      %23 = arith.maximumf %21, %22 : vector<8x1024xf32>
      %c0_18 = arith.constant 0 : index
      %c0_19 = arith.constant 0 : index
      %24 = vector.load %arg6[%c0_18, %c0_19] : memref<1024x40xf32, #tpu.memory_space<vmem>>, vector<1024x40xf32>
      %cst_20 = arith.constant dense<0.000000e+00> : vector<8x40xf32>
      %25 = tpu.matmul %23, %24, %cst_20 {dimension_numbers = #tpu.dot_dimension_numbers<[1], [0], [0], [1], [0, 0, 1, 1], [], []>} : vector<8x1024xf32>, vector<1024x40xf32>, vector<8x40xf32> -> vector<8x40xf32>
      %c0_21 = arith.constant 0 : index
      %c0_22 = arith.constant 0 : index
      %26 = vector.load %arg7[%c0_21, %c0_22] : memref<1x40xf32, #tpu.memory_space<vmem>>, vector<1x40xf32>
      %27 = vector.broadcast %26 : vector<1x40xf32> to vector<8x40xf32>
      %28 = arith.addf %25, %27 : vector<8x40xf32>
      %cst_23 = arith.constant dense<0xFF800000> : vector<8xf32>
      %29 = vector.multi_reduction <maximumf>, %28, %cst_23 [1] : vector<8x40xf32> to vector<8xf32>
      %30 = vector.shape_cast %29 : vector<8xf32> to vector<8x1xf32>
      %31 = vector.broadcast %30 : vector<8x1xf32> to vector<8x40xf32>
      %32 = arith.subf %28, %31 : vector<8x40xf32>
      %33 = math.exp %32 : vector<8x40xf32>
      %cst_24 = arith.constant dense<0.000000e+00> : vector<8xf32>
      %34 = vector.multi_reduction <add>, %33, %cst_24 [1] : vector<8x40xf32> to vector<8xf32>
      %35 = vector.shape_cast %34 : vector<8xf32> to vector<8x1xf32>
      %36 = vector.broadcast %35 : vector<8x1xf32> to vector<8x40xf32>
      %37 = arith.divf %33, %36 : vector<8x40xf32>
      %c0_25 = arith.constant 0 : index
      %c0_26 = arith.constant 0 : index
      %38 = vector.load %arg8[%c0_25, %c0_26] : memref<8x40xf32, #tpu.memory_space<vmem>>, vector<8x40xf32>
      tpu.vector_store %arg8[%c0_25, %c0_26], %37 {strides = array<i32>} : memref<8x40xf32, #tpu.memory_space<vmem>>, vector<8x40xf32>,
    } else {
    }
    return
  }
  func.func @transform_0(%arg0: i32) -> (i32, i32) {
    %c0_i32 = arith.constant 0 : i32
    %c0_i32_0 = arith.constant 0 : i32
    return %c0_i32, %arg0 : i32, i32
  }
  func.func @transform_1(%arg0: i32) -> (i32, i32) {
    %c0_i32 = arith.constant 0 : i32
    %c0_i32_0 = arith.constant 0 : i32
    return %arg0, %c0_i32 : i32, i32
  }
  func.func @transform_2(%arg0: i32) -> (i32, i32) {
    %c0_i32 = arith.constant 0 : i32
    %c0_i32_0 = arith.constant 0 : i32
    %c0_i32_1 = arith.constant 0 : i32
    return %c0_i32, %c0_i32_0 : i32, i32
  }
  func.func @transform_3(%arg0: i32) -> (i32, i32) {
    %c0_i32 = arith.constant 0 : i32
    %c0_i32_0 = arith.constant 0 : i32
    %c0_i32_1 = arith.constant 0 : i32
    return %c0_i32, %c0_i32_0 : i32, i32
  }
  func.func @transform_4(%arg0: i32) -> (i32, i32) {
    %c0_i32 = arith.constant 0 : i32
    %c0_i32_0 = arith.constant 0 : i32
    %c0_i32_1 = arith.constant 0 : i32
    return %c0_i32, %c0_i32_0 : i32, i32
  }
  func.func @transform_5(%arg0: i32) -> (i32, i32) {
    %c0_i32 = arith.constant 0 : i32
    %c0_i32_0 = arith.constant 0 : i32
    %c0_i32_1 = arith.constant 0 : i32
    return %c0_i32, %c0_i32_0 : i32, i32
  }
  func.func @transform_6(%arg0: i32) -> (i32, i32) {
    %c0_i32 = arith.constant 0 : i32
    %c0_i32_0 = arith.constant 0 : i32
    %c0_i32_1 = arith.constant 0 : i32
    return %c0_i32, %c0_i32_0 : i32, i32
  }
  func.func @transform_7(%arg0: i32) -> (i32, i32) {
    %c0_i32 = arith.constant 0 : i32
    %c0_i32_0 = arith.constant 0 : i32
    %c0_i32_1 = arith.constant 0 : i32
    return %c0_i32, %c0_i32_0 : i32, i32
  }
}

</mosaic_0001>

<bundles_post_ra>
// kernel: torchnn_forward.2
= control target key start
LH: loop header
LB: loop body
LE: loop exit
PB: predicated region body
PF: predicated region fallthrough
CT: control target
= control target key end

     0   :  { %s5123_s0 = inlined_call_operand.hbm [shape: f32[8,4096], index: 0, kind: input, shape index: {}]   ;;  %s5124_s1 = inlined_call_operand.hbm [shape: f32[4096,2048], index: 1, kind: input, shape index: {}]   ;;  %s5125_s2 = inlined_call_operand.hbm [shape: f32[1,2048], index: 2, kind: input, shape index: {}]   ;;  %s5126_s3 = inlined_call_operand.hbm [shape: f32[1,2048], index: 3, kind: input, shape index: {}]   ;;  %s5127_s4 = inlined_call_operand.hbm [shape: f32[1,2048], index: 4, kind: input, shape index: {}]   ;;  %s5128_s5 = inlined_call_operand.vmem [shape: f32[8,2048], index: 5, kind: output, shape index: {}]  }
   0x1   :  { %5141 = sst [smem:[#allocation26_spill]] %s5123_s0 }
   0x2   :  { %5142 = sst [smem:[#allocation27_spill]] %s5124_s1 }
   0x3   :  { %5143 = sst [smem:[#allocation28_spill]] %s5126_s3 }
   0x4   :  { %5144 = sst [smem:[#allocation29_spill]] %s5128_s5 }
   0x5   :  { %10 = vsyncpa [#allocation3], 0 }
   0x6   :  { %12 = vsyncpa [#allocation3 + $0x1], 0 }
   0x7   :  { %13 = vsyncpa [#allocation5], 0 }
   0x8   :  { %15 = vsyncpa [#allocation5 + $0x1], 0 }
   0x9   :  { %16 = vsyncpa [#allocation8], 0 }
   0xa   :  { %18 = vsyncpa [#allocation8 + $0x1], 0  ;;  %s3555_s18 = smov 0   ;;  %s3557_s19 = smov 0  }
   0xb   :  { %s3559_s20 = smov 0   ;;  %s3561_s21 = smov 0  }
   0xc   :  { %s3563_s22 = smov 0   ;;  %s3565_s23 = smov 0  }
   0xd   :  { %s3567_s24 = smov 0   ;;  %s3569_s25 = smov 0  }
   0xe   :  { %s3571_s26 = smov 0   ;;  %s3573_s27 = smov 0  }
   0xf   :  { %s3575_s28 = smov 0   ;;  %s3577_s29 = smov 0  }
  0x10   :  { %s3579_s30 = smov 0   ;;  %s3581_s6 = smov 0  }
  0x11 LB: > { %5145 = sst [smem:[#allocation14_spill]] %s3471_s19  ;;  %s5129_s7 = sadd.s32 1, %s3511_s29  ;;  %s3519_s6 = sphi %s3581_s6, %s24_s6   ;;  %s3515_s30 = sphi %s3579_s30, %s5189_s30   ;;  %s3511_s29 = sphi %s3577_s29, %s5196_s29   ;;  %s3507_s28 = sphi %s3575_s28, %s5187_s28   ;;  %s3503_s27 = sphi %s3573_s27, %s5186_s27   ;;  %s3499_s26 = sphi %s3571_s26, %s5195_s26   ;;  %s3495_s25 = sphi %s3569_s25, %s5194_s25   ;;  %s3491_s24 = sphi %s3567_s24, %s5193_s24   ;;  %s3487_s23 = sphi %s3565_s23, %s5192_s23   ;;  %s3483_s22 = sphi %s3563_s22, %s5191_s22   ;;  %s3479_s21 = sphi %s3561_s21, %s5190_s21   ;;  %s3475_s20 = sphi %s3559_s20, %s5184_s20   ;;  %s3471_s19 = sphi %s3557_s19, %s5183_s19   ;;  %s3467_s18 = sphi %s3555_s18, %s5182_s18  }
  0x12   : > { %5146 = sst [smem:[#allocation15_spill]] %s3475_s20  ;;  %p3629_p0 = scmp.ge.s32.totalorder %s5129_s7, 4 }
  0x13   : > { %5147 = sst [smem:[#allocation16_spill]] %s3503_s27  ;;  %p51_p1 = scmp.eq.s32.totalorder %s3519_s6, 0 }
  0x14   : > { %5148 = sst [smem:[#allocation17_spill]] %s3507_s28  ;;  %p78_p2 = scmp.ne.s32.totalorder %s3487_s23, %s3483_s22 }
  0x15   : > { %5149 = sst [smem:[#allocation18_spill]] %s3511_s29  ;;  %p84_p3 = scmp.ne.s32.totalorder %s3483_s22, %s3479_s21 }
  0x16   : > { %5150 = sst [smem:[#allocation19_spill]] %s3515_s30  ;;  %p80_p4 = por %p78_p2, %p51_p1 }
  0x17   : > { %p3102_p5 = scmp.lt.s32.totalorder %s3519_s6, 8  ;;  %s234_s12 = sand.u32 1, %s3487_s23  }
  0x18   : > { %s3051_s13 = sshll.u32 %s234_s12, 13  ;;  %s3645_s14 = sshll.u32 %s3515_s30, 3 }
  0x19   : > { %s3075_s15 = sshll.u32 %s3511_s29, 11  ;;  %s236_s16 = scalar_lea.vmem [#allocation4], %s3051_s13 }
  0x1a   : > { %s247_s17 = sshll.u32 %s236_s16, 4  ;;  %s242_s7 = sadd.s32 %s3075_s15, %s3645_s14  ;;  %s248_s17 = int_to_ptr.vmem [resolvable:$true] %s247_s17 }
  0x1b   : > { %s3055_s10 = sshll.u32 %s242_s7, 3  ;;  %p3090_p6 = pnand %p3102_p5, %p80_p4 }
  0x1c   : > { %s5152_s1 = sld [smem:[#allocation27_spill]]  ;;  %p3062_p7 = scmp.ge.s32.totalorder %s3519_s6, 1 }
  0x1d   : > { %s5153_s13 = sand.u32 1, %s3519_s6   ;;  %s3521_s7 = smov 2048  }
  0x1e   : > { %s3657_s15 = scalar_lea.sflag [#allocation5], %s5153_s13  ;;  %s3522_s16 = smov 1024  }
  0x1f   : > { %s3523_s5 = smov 64   ;;  %p312_p8 = scmp.lt.s32.totalorder %s3519_s6, 9 }
  0x20   : > { %s5155_s12 = sadd.s32 1, %s3515_s30  ;;  %p104_p11 = scmp.ne.s32.totalorder %s3475_s20, %s3471_s19 }
  0x21   : > { %p3661_p9 = pnand %p3062_p7, %p312_p8  ;;  %s5198_s12 = smov (!%p3629_p0, %s5155_s12), %s3515_s30 }
  0x22   : > { %s244_s11 = scalar_lea.hbm %s5152_s1, %s3055_s10  ;;  %s5130_s10 = sadd.s32 4294967295, %s3519_s6  }
  0x23   : > { %s245_s27 = sshll.u32 %s244_s11, 4  ;;  %s97_s11 = sadd.s32 1, %s3475_s20  ;;  %s246_s27 = int_to_ptr.hbm [resolvable:$true] %s245_s27 }
  0x24   : > { %3092 = dma.hbm_to_vmem [thread:$0]  (!%p3090_p6), %s246_s27, 131072, %s248_s17, %s3657_s15, %s3521_s7, %s3522_s16, %s3523_s5  }
  0x25   : > { %p3674_p10 = scmp.eq.s32.totalorder %s5130_s10, 0  ;;  %p38_p12 = scmp.ge.s32.totalorder %s5198_s12, 2 }
  0x26   : > { %p110_p13 = scmp.ne.s32.totalorder %s3471_s19, %s3467_s18  ;;  %p106_p4 = por %p104_p11, %p51_p1 }
  0x27   : > { %p3687_p2 = por %p84_p3, %p3674_p10  ;;  %s5200_s12 = smov (%p38_p12, %s5198_s12), 0 }
  0x28   : > { %5159 = sst [smem:[#allocation21_spill]] %s5200_s12  ;;  %p3697_p6 = por %p110_p13, %p3674_p10 }
  0x29   : > { %s5157_s5 = scalar_select %p3687_p2, 1, 0 }
  0x2a   : > { %s5160_s27 = scalar_select %p3697_p6, 1, 0 }
  0x2b   : > { %5158 = sst [smem:[#allocation20_spill]] %s5157_s5  ;;  %s259_s18 = sand.u32 1, %s3475_s20  }
  0x2c   : > { %5161 = sst [smem:[#allocation22_spill]] %s5160_s27  ;;  %s67_s21 = ssub.s32 %s3515_s30, %s5200_s12 }
  0x2d   : > { %s3704_s17 = sshll.u32 %s259_s18, 3  ;;  %p95_p3 = scmp.eq.s32.totalorder %s67_s21, 0 }
  0x2e   : > { %p3708_p7 = pnand %p3102_p5, %p106_p4  ;;  %s5164_s3 = sld [smem:[#allocation28_spill]] }
  0x2f   : > { %s3713_s16 = scalar_select %p95_p3, %s3475_s20, %s97_s11  }
  0x30   : > { %s280_s30 = scalar_lea.vmem [#allocation7], %s3704_s17  ;;  %s5165_s27 = sand.u32 1, %s3519_s6  }
  0x31   : > { %5163 = sst [smem:[#allocation23_spill]] %s3713_s16  ;;  %s288_s28 = sshll.u32 %s280_s30, 4  ;;  %s289_s28 = int_to_ptr.vmem [resolvable:$true] %s288_s28 }
  0x32   : > { %s3722_s19 = scalar_lea.sflag [#allocation8], %s5165_s27  ;;  %s5166_s11 = sadd.s32 1, %s3511_s29 }
  0x33   : > { %s5202_s11 = smov (%p3629_p0, %s5166_s11), 0  ;;  %s43_s1 = sadd.s32 1, %s3499_s26 }
  0x34   : > { %s284_s12 = scalar_lea.hbm %s5164_s3, %s3645_s14  ;;  %5167 = sst [smem:[#allocation24_spill]] %s5202_s11 }
  0x35   : > { %s286_s18 = sshll.u32 %s284_s12, 4  ;;  %p50_p8 = scmp.ne.s32.totalorder %s3499_s26, %s3495_s25  ;;  %s287_s18 = int_to_ptr.hbm [resolvable:$true] %s286_s18 }
  0x36   : > { %3098 = dma.hbm_to_vmem [thread:$0]  (!%p3708_p7), %s287_s18, 128, %s289_s28, %s3722_s19  }
  0x37   : > { %s40_s30 = ssub.s32 %s3511_s29, %s5202_s11  ;;  %p56_p11 = scmp.ne.s32.totalorder %s3495_s25, %s3491_s24 }
  0x38   : > { %p41_p12 = scmp.eq.s32.totalorder %s40_s30, 0  ;;  %p3742_p13 = por %p51_p1, %p50_p8 }
  0x39   : > { %p3748_p4 = por %p3674_p10, %p56_p11  ;;  %s68_s9 = sor.u32 %s67_s21, %s40_s30 }
  0x3a   : > { %s3753_s12 = scalar_select %p41_p12, %s3499_s26, %s43_s1  }
  0x3b   : > { %p69_p0 = scmp.eq.s32.totalorder %s68_s9, 0  ;;  %s212_s27 = sand.u32 1, %s3499_s26  }
  0x3c   : > { %5170 = sst [smem:[#allocation25_spill]] %s3753_s12  ;;  %s3048_s24 = sshll.u32 %s212_s27, 6 }
  0x3d   : > { %s5171_s18 = sadd.s32 1, %s3487_s23  ;;  %s3074_s11 = sshll.u32 %s3511_s29, 6 }
  0x3e   : > { %s3759_s3 = scalar_select %p69_p0, %s3487_s23, %s5171_s18  }
  0x3f   : > { %s5172_s0 = sld [smem:[#allocation26_spill]]  ;;  %s216_s5 = scalar_lea.vmem [#allocation2], %s3048_s24 }
  0x40   : > { %s225_s21 = sshll.u32 %s216_s5, 4  ;;  %p3087_p1 = pnand %p3102_p5, %p3742_p13  ;;  %s226_s21 = int_to_ptr.vmem [resolvable:$true] %s225_s21 }
  0x41   : > { %s265_s18 = scalar_lea.hbm %s5125_s2, %s3645_s14  ;;  %s213_s16 = scalar_lea.sflag [#allocation3], %s212_s27 }
  0x42   : > { %s267_s20 = sshll.u32 %s265_s18, 4  ;;  %s303_s10 = scalar_lea.hbm %s5127_s4, %s3645_s14  ;;  %s268_s20 = int_to_ptr.hbm [resolvable:$true] %s267_s20 }
  0x43   : > { %s305_s12 = sshll.u32 %s303_s10, 4  ;;  %s318_s27 = sand.u32 (!%p3661_p9), 1, %s3495_s25   ;;  %s306_s12 = int_to_ptr.hbm [resolvable:$true] %s305_s12 }
  0x45   : > { %s221_s13 = scalar_lea.hbm %s5172_s0, %s3074_s11  ;;  %s261_s11 = scalar_lea.vmem [#allocation6], %s3704_s17 }
  0x46   : > { %s223_s1 = sshll.u32 %s221_s13, 4  ;;  %s269_s24 = sshll.u32 %s261_s11, 4  ;;  %s224_s1 = int_to_ptr.hbm [resolvable:$true] %s223_s1  ;;  %s270_s24 = int_to_ptr.vmem [resolvable:$true] %s269_s24 }
  0x47   : > { %3089 = dma.hbm_to_vmem [thread:$0]  (!%p3087_p1), %s224_s1, 1024, %s226_s21, %s213_s16  }
  0x48   : > { %3095 = dma.hbm_to_vmem [thread:$0]  (!%p3708_p7), %s268_s20, 128, %s270_s24, %s3657_s15  }
  0x49   : > { %s299_s0 = scalar_lea.vmem [#allocation9], %s3704_s17  ;;  %316 = sbr.rel (%p3661_p9) target bundleno = 986 (0x3da), region = 40 }
  0x4a   : > { %s307_s29 = sshll.u32 %s299_s0, 4  ;;  %s3063_s21 = sshll.u32 (!%p3661_p9), %s318_s27, 6  ;;  %s308_s29 = int_to_ptr.vmem [resolvable:$true] %s307_s29 }
  0x4b   : > { %3101 = dma.hbm_to_vmem [thread:$0]  (!%p3708_p7), %s306_s12, 128, %s308_s29, %s3722_s19  }
  0x4c   : > { %s319_s1 = scalar_lea.sflag (!%p3661_p9), [#allocation3], %s318_s27  ;;  %s3788_s15 = scalar_lea.vmem (!%p3661_p9), [#allocation2], %s3063_s21 }
  0x4e   : > { %3450 = dma.done.wait (%p3748_p4), %s319_s1, 1024  }
  0x4f   : > { %3452 = vsyncadd (%p3748_p4), %s319_s1, 4294966272  ;;  %s5173_s0 = sadd.s32 4294967295, %s3519_s6   ;;  %s330_s29 = sand.u32 1, %s3483_s22  }
  0x50   : > { %s328_s19 = sand.u32 1, %s5173_s0   ;;  %s3064_s8 = sshll.u32 %s330_s29, 13 }
  0x51   : > { %s329_s17 = scalar_lea.sflag [#allocation5], %s328_s19  ;;  %s3797_s7 = scalar_lea.vmem [#allocation4], %s3064_s8 }
  0x52   : > { %3454 = dma.done.wait (%p3687_p2), %s329_s17, 131072  }
  0x53   : > { %3456 = vsyncadd (%p3687_p2), %s329_s17, 4294836224  ;;  %s5175_s12 = sld [smem:[#allocation14_spill]] }
  0x59   : > { %s340_s9 = sand.u32 1, %s5175_s12  }
  0x5a   : > { %s3804_s28 = sshll.u32 %s340_s9, 3 }
  0x5b   : > { %s342_s18 = scalar_lea.vmem [#allocation6], %s3804_s28 }
  0x5c   : > { %3458 = dma.done.wait (%p3697_p6), %s329_s17, 128  }
  0x5d   : > { %3460 = vsyncadd (%p3697_p6), %s329_s17, 4294967168  ;;  %s349_s20 = scalar_lea.sflag [#allocation8], %s328_s19  ;;  %s352_s16 = scalar_lea.vmem [#allocation7], %s3804_s28 }
  0x5e   : > { %3462 = dma.done.wait (%p3697_p6), %s349_s20, 256  }
  0x5f   : > { %3464 = vsyncadd (%p3697_p6), %s349_s20, 4294967040  ;;  %s5177_s11 = sld [smem:[#allocation17_spill]]  ;;  %s362_s1 = scalar_lea.vmem [#allocation9], %s3804_s28 }
  0x60   : > { %s5178_s27 = sld [smem:[#allocation29_spill]] }
  0x61   : > { %s5179_s0 = sld [smem:[#allocation16_spill]] }
  0x65   : > { %s3068_s24 = sshll.u32 %s5177_s11, 3 }
  0x66   : > { %p417_p5 = scmp.lt.s32.totalorder %s3068_s24, 15 }
  0x67   : > { %p3070_p9 = scmp.ne.s32.totalorder %s5179_s0, 0 }
  0x68   : > { %s5204_s24 = smov (!%p417_p5, %s3068_s24), 15 }
  0x69   : > { %s3069_s5 = sshll.u32 %s5204_s24, 3  ;;  %425 = sbr.rel (%p3070_p9) target bundleno = 119 (0x77), region = 64 }
  0x6a   : > { %s3820_s21 = scalar_lea.vmem %s5178_s27, %s3069_s5 }
  0x6e   : > { %v3524_v0 = vmov 0.0  }
  0x6f   : > { %426 = vst [vmem:[%s3820_s21] sm:$0xff] %v3524_v0 }
  0x70   : > { %427 = vst [vmem:[%s3820_s21 + $0x8] sm:$0xff] %v3524_v0 }
  0x71   : > { %428 = vst [vmem:[%s3820_s21 + $0x10] sm:$0xff] %v3524_v0 }
  0x72   : > { %429 = vst [vmem:[%s3820_s21 + $0x18] sm:$0xff] %v3524_v0 }
  0x73   : > { %430 = vst [vmem:[%s3820_s21 + $0x20] sm:$0xff] %v3524_v0 }
  0x74   : > { %431 = vst [vmem:[%s3820_s21 + $0x28] sm:$0xff] %v3524_v0 }
  0x75   : > { %432 = vst [vmem:[%s3820_s21 + $0x30] sm:$0xff] %v3524_v0 }
  0x76   : > { %433 = vst [vmem:[%s3820_s21 + $0x38] sm:$0xff] %v3524_v0 }
  0x77 PF: > { %v570_v1 = vld [vmem:[%s3797_s7 + $0x3c0] sm:$0xff] }
  0x78   : > { %v826_v2 = vld [vmem:[%s3797_s7 + $0xbc0] sm:$0xff]  ;;  %1474 = vmatpush.msra.mxu0 %v570_v1 }
  0x79   : > { %v562_v3 = vld [vmem:[%s3797_s7 + $0x380] sm:$0xff]  ;;  %1514 = vmatpush.msra.mxu2 %v826_v2 }
  0x7a   : > { %v698_v4 = vld [vmem:[%s3797_s7 + $0x7c0] sm:$0xff]  ;;  %1475 = vmatpush.msra.mxu0 %v562_v3 }
  0x7b   : > { %v818_v5 = vld [vmem:[%s3797_s7 + $0xb80] sm:$0xff]  ;;  %1494 = vmatpush.msra.mxu1 %v698_v4 }
  0x7c   : > { %v954_v6 = vld [vmem:[%s3797_s7 + $0xfc0] sm:$0xff]  ;;  %1515 = vmatpush.msra.mxu2 %v818_v5 }
  0x7d   : > { %1534 = vmatpush.msra.mxu3 %v954_v6  ;;  %v554_v7 = vld [vmem:[%s3797_s7 + $0x340] sm:$0xff] }
  0x7e   : > { %v690_v8 = vld [vmem:[%s3797_s7 + $0x780] sm:$0xff]  ;;  %1476 = vmatpush.msra.mxu0 %v554_v7 }
  0x7f   : > { %v810_v9 = vld [vmem:[%s3797_s7 + $0xb40] sm:$0xff]  ;;  %1495 = vmatpush.msra.mxu1 %v690_v8 }
  0x80   : > { %v946_v10 = vld [vmem:[%s3797_s7 + $0xf80] sm:$0xff]  ;;  %1516 = vmatpush.msra.mxu2 %v810_v9 }
  0x81   : > { %v682_v11 = vld [vmem:[%s3797_s7 + $0x740] sm:$0xff]  ;;  %1535 = vmatpush.msra.mxu3 %v946_v10 }
  0x82   : > { %v546_v12 = vld [vmem:[%s3797_s7 + $0x300] sm:$0xff]  ;;  %1496 = vmatpush.msra.mxu1 %v682_v11 }
  0x83   : > { %v802_v13 = vld [vmem:[%s3797_s7 + $0xb00] sm:$0xff]  ;;  %1477 = vmatpush.msra.mxu0 %v546_v12 }
  0x84   : > { %v938_v14 = vld [vmem:[%s3797_s7 + $0xf40] sm:$0xff]  ;;  %1517 = vmatpush.msra.mxu2 %v802_v13 }
  0x85   : > { %v674_v15 = vld [vmem:[%s3797_s7 + $0x700] sm:$0xff]  ;;  %1536 = vmatpush.msra.mxu3 %v938_v14 }
  0x86   : > { %v930_v16 = vld [vmem:[%s3797_s7 + $0xf00] sm:$0xff]  ;;  %1497 = vmatpush.msra.mxu1 %v674_v15 }
  0x87   : > { %v538_v17 = vld [vmem:[%s3797_s7 + $0x2c0] sm:$0xff]  ;;  %1537 = vmatpush.msra.mxu3 %v930_v16 }
  0x88   : > { %v794_v18 = vld [vmem:[%s3797_s7 + $0xac0] sm:$0xff]  ;;  %1478 = vmatpush.msra.mxu0 %v538_v17 }
  0x89   : > { %v666_v19 = vld [vmem:[%s3797_s7 + $0x6c0] sm:$0xff]  ;;  %1518 = vmatpush.msra.mxu2 %v794_v18 }
  0x8a   : > { %v922_v20 = vld [vmem:[%s3797_s7 + $0xec0] sm:$0xff]  ;;  %1498 = vmatpush.msra.mxu1 %v666_v19 }
  0x8b   : > { %v530_v21 = vld [vmem:[%s3797_s7 + $0x280] sm:$0xff]  ;;  %1538 = vmatpush.msra.mxu3 %v922_v20 }
  0x8c   : > { %v786_v22 = vld [vmem:[%s3797_s7 + $0xa80] sm:$0xff]  ;;  %1479 = vmatpush.msra.mxu0 %v530_v21 }
  0x8d   : > { %v658_v23 = vld [vmem:[%s3797_s7 + $0x680] sm:$0xff]  ;;  %1519 = vmatpush.msra.mxu2 %v786_v22 }
  0x8e   : > { %v914_v24 = vld [vmem:[%s3797_s7 + $0xe80] sm:$0xff]  ;;  %1499 = vmatpush.msra.mxu1 %v658_v23 }
  0x8f   : > { %v522_v25 = vld [vmem:[%s3797_s7 + $0x240] sm:$0xff]  ;;  %1539 = vmatpush.msra.mxu3 %v914_v24 }
  0x90   : > { %v778_v26 = vld [vmem:[%s3797_s7 + $0xa40] sm:$0xff]  ;;  %1480 = vmatpush.msra.mxu0 %v522_v25 }
  0x91   : > { %v650_v27 = vld [vmem:[%s3797_s7 + $0x640] sm:$0xff]  ;;  %1520 = vmatpush.msra.mxu2 %v778_v26 }
  0x92   : > { %v906_v28 = vld [vmem:[%s3797_s7 + $0xe40] sm:$0xff]  ;;  %1500 = vmatpush.msra.mxu1 %v650_v27 }
  0x93   : > { %v514_v29 = vld [vmem:[%s3797_s7 + $0x200] sm:$0xff]  ;;  %1540 = vmatpush.msra.mxu3 %v906_v28 }
  0x94   : > { %v770_v30 = vld [vmem:[%s3797_s7 + $0xa00] sm:$0xff]  ;;  %1481 = vmatpush.msra.mxu0 %v514_v29 }
  0x95   : > { %v642_v31 = vld [vmem:[%s3797_s7 + $0x600] sm:$0xff]  ;;  %1521 = vmatpush.msra.mxu2 %v770_v30 }
  0x96   : > { %v898_v32 = vld [vmem:[%s3797_s7 + $0xe00] sm:$0xff]  ;;  %1501 = vmatpush.msra.mxu1 %v642_v31 }
  0x97   : > { %v506_v33 = vld [vmem:[%s3797_s7 + $0x1c0] sm:$0xff]  ;;  %1541 = vmatpush.msra.mxu3 %v898_v32 }
  0x98   : > { %v762_v34 = vld [vmem:[%s3797_s7 + $0x9c0] sm:$0xff]  ;;  %1482 = vmatpush.msra.mxu0 %v506_v33 }
  0x99   : > { %v634_v35 = vld [vmem:[%s3797_s7 + $0x5c0] sm:$0xff]  ;;  %1522 = vmatpush.msra.mxu2 %v762_v34 }
  0x9a   : > { %v890_v36 = vld [vmem:[%s3797_s7 + $0xdc0] sm:$0xff]  ;;  %1502 = vmatpush.msra.mxu1 %v634_v35 }
  0x9b   : > { %v498_v37 = vld [vmem:[%s3797_s7 + $0x180] sm:$0xff]  ;;  %1542 = vmatpush.msra.mxu3 %v890_v36 }
  0x9c   : > { %v754_v38 = vld [vmem:[%s3797_s7 + $0x980] sm:$0xff]  ;;  %1483 = vmatpush.msra.mxu0 %v498_v37 }
  0x9d   : > { %v626_v39 = vld [vmem:[%s3797_s7 + $0x580] sm:$0xff]  ;;  %1523 = vmatpush.msra.mxu2 %v754_v38 }
  0x9e   : > { %v882_v40 = vld [vmem:[%s3797_s7 + $0xd80] sm:$0xff]  ;;  %1503 = vmatpush.msra.mxu1 %v626_v39 }
  0x9f   : > { %v490_v41 = vld [vmem:[%s3797_s7 + $0x140] sm:$0xff]  ;;  %1543 = vmatpush.msra.mxu3 %v882_v40 }
  0xa0   : > { %v746_v42 = vld [vmem:[%s3797_s7 + $0x940] sm:$0xff]  ;;  %1484 = vmatpush.msra.mxu0 %v490_v41 }
  0xa1   : > { %v618_v43 = vld [vmem:[%s3797_s7 + $0x540] sm:$0xff]  ;;  %1524 = vmatpush.msra.mxu2 %v746_v42 }
  0xa2   : > { %v874_v44 = vld [vmem:[%s3797_s7 + $0xd40] sm:$0xff]  ;;  %1504 = vmatpush.msra.mxu1 %v618_v43 }
  0xa3   : > { %v482_v45 = vld [vmem:[%s3797_s7 + $0x100] sm:$0xff]  ;;  %1544 = vmatpush.msra.mxu3 %v874_v44 }
  0xa4   : > { %v738_v46 = vld [vmem:[%s3797_s7 + $0x900] sm:$0xff]  ;;  %1485 = vmatpush.msra.mxu0 %v482_v45 }
  0xa5   : > { %v610_v47 = vld [vmem:[%s3797_s7 + $0x500] sm:$0xff]  ;;  %1525 = vmatpush.msra.mxu2 %v738_v46 }
  0xa6   : > { %v866_v48 = vld [vmem:[%s3797_s7 + $0xd00] sm:$0xff]  ;;  %1505 = vmatpush.msra.mxu1 %v610_v47 }
  0xa7   : > { %v474_v49 = vld [vmem:[%s3797_s7 + $0xc0] sm:$0xff]  ;;  %1545 = vmatpush.msra.mxu3 %v866_v48 }
  0xa8   : > { %v730_v50 = vld [vmem:[%s3797_s7 + $0x8c0] sm:$0xff]  ;;  %1486 = vmatpush.msra.mxu0 %v474_v49 }
  0xa9   : > { %v602_v51 = vld [vmem:[%s3797_s7 + $0x4c0] sm:$0xff]  ;;  %1526 = vmatpush.msra.mxu2 %v730_v50 }
  0xaa   : > { %v858_v52 = vld [vmem:[%s3797_s7 + $0xcc0] sm:$0xff]  ;;  %1506 = vmatpush.msra.mxu1 %v602_v51 }
  0xab   : > { %v466_v53 = vld [vmem:[%s3797_s7 + $0x80] sm:$0xff]  ;;  %1546 = vmatpush.msra.mxu3 %v858_v52 }
  0xac   : > { %v722_v54 = vld [vmem:[%s3797_s7 + $0x880] sm:$0xff]  ;;  %1487 = vmatpush.msra.mxu0 %v466_v53 }
  0xad   : > { %v594_v55 = vld [vmem:[%s3797_s7 + $0x480] sm:$0xff]  ;;  %1527 = vmatpush.msra.mxu2 %v722_v54 }
  0xae   : > { %v850_v56 = vld [vmem:[%s3797_s7 + $0xc80] sm:$0xff]  ;;  %1507 = vmatpush.msra.mxu1 %v594_v55 }
  0xaf   : > { %v458_v57 = vld [vmem:[%s3797_s7 + $0x40] sm:$0xff]  ;;  %1547 = vmatpush.msra.mxu3 %v850_v56 }
  0xb0   : > { %v714_v58 = vld [vmem:[%s3797_s7 + $0x840] sm:$0xff]  ;;  %1488 = vmatpush.msra.mxu0 %v458_v57 }
  0xb1   : > { %v586_v59 = vld [vmem:[%s3797_s7 + $0x440] sm:$0xff]  ;;  %1528 = vmatpush.msra.mxu2 %v714_v58 }
  0xb2   : > { %v842_v60 = vld [vmem:[%s3797_s7 + $0xc40] sm:$0xff]  ;;  %1508 = vmatpush.msra.mxu1 %v586_v59  ;;  %v3955_v59 = vld [vmem:[%s3788_s15 + $0x10] sm:$0xff] }
  0xb3   : > { %v450_v61 = vld [vmem:[%s3797_s7] sm:$0xff]  ;;  %1548 = vmatpush.msra.mxu3 %v842_v60 }
  0xb4   : > { %v706_v62 = vld [vmem:[%s3797_s7 + $0x800] sm:$0xff]  ;;  %1489 = vmatpush.msra.mxu0 %v450_v61 }
  0xb5   : > { %v1082_v63 = vld [vmem:[%s3797_s7 + $0x13c0] sm:$0xff]  ;;  %1529 = vmatpush.msra.mxu2 %v706_v62 }
  0xb6   : > { %v1338_v0 = vld [vmem:[%s3797_s7 + $0x1bc0] sm:$0xff]  ;;  %1554 = vmatpush.msrb.mxu0 %v1082_v63  ;;  %1530 = vmatmul.f32.vlgmr.msra.gmra.mxu2 %v3955_v59 }
  0xb7   : > { %v578_v1 = vld [vmem:[%s3797_s7 + $0x400] sm:$0xff]  ;;  %1594 = vmatpush.msrb.mxu2 %v1338_v0 }
  0xb8   : > { %v834_v2 = vld [vmem:[%s3797_s7 + $0xc00] sm:$0xff]  ;;  %1509 = vmatpush.msra.mxu1 %v578_v1  ;;  %v3966_v1 = vld [vmem:[%s3788_s15 + $0x18] sm:$0xff] }
  0xb9   : > { %v1074_v3 = vld [vmem:[%s3797_s7 + $0x1380] sm:$0xff]  ;;  %1549 = vmatpush.msra.mxu3 %v834_v2  ;;  %v571_v2 = vld [vmem:[%s3797_s7 + $0x3c8] sm:$0xff] }
  0xba   : > { %v1210_v4 = vld [vmem:[%s3797_s7 + $0x17c0] sm:$0xff]  ;;  %1555 = vmatpush.msrb.mxu0 %v1074_v3  ;;  %v827_v3 = vld [vmem:[%s3797_s7 + $0xbc8] sm:$0xff]  ;;  %1550 = vmatmul.f32.vlgmr.msra.gmra.mxu3 %v3966_v1 }
  0xbb   : > { %v1330_v5 = vld [vmem:[%s3797_s7 + $0x1b80] sm:$0xff]  ;;  %1574 = vmatpush.msrb.mxu1 %v1210_v4 }
  0xbc   : > { %v1466_v6 = vld [vmem:[%s3797_s7 + $0x1fc0] sm:$0xff]  ;;  %1595 = vmatpush.msrb.mxu2 %v1330_v5 }
  0xbd   : > { %v1066_v7 = vld [vmem:[%s3797_s7 + $0x1340] sm:$0xff]  ;;  %1614 = vmatpush.msrb.mxu3 %v1466_v6  ;;  %v3974_v6 = vld [vmem:[%s3788_s15 + $0x8] sm:$0xff] }
  0xbe   : > { %v1202_v8 = vld [vmem:[%s3797_s7 + $0x1780] sm:$0xff]  ;;  %1556 = vmatpush.msrb.mxu0 %v1066_v7  ;;  %v563_v7 = vld [vmem:[%s3797_s7 + $0x388] sm:$0xff]  ;;  %1510 = vmatmul.f32.vlgmr.msra.gmra.mxu1 %v3974_v6 }
  0xbf   : > { %v1322_v9 = vld [vmem:[%s3797_s7 + $0x1b40] sm:$0xff]  ;;  %1575 = vmatpush.msrb.mxu1 %v1202_v8  ;;  %v699_v8 = vld [vmem:[%s3797_s7 + $0x7c8] sm:$0xff] }
  0xc0   : > { %v1458_v10 = vld [vmem:[%s3797_s7 + $0x1f80] sm:$0xff]  ;;  %1596 = vmatpush.msrb.mxu2 %v1322_v9  ;;  %v819_v9 = vld [vmem:[%s3797_s7 + $0xb88] sm:$0xff] }
  0xc1   : > { %v1058_v11 = vld [vmem:[%s3797_s7 + $0x1300] sm:$0xff]  ;;  %1615 = vmatpush.msrb.mxu3 %v1458_v10  ;;  %v955_v10 = vld [vmem:[%s3797_s7 + $0xfc8] sm:$0xff] }
  0xc2   : > { %v1194_v12 = vld [vmem:[%s3797_s7 + $0x1740] sm:$0xff]  ;;  %1557 = vmatpush.msrb.mxu0 %v1058_v11  ;;  %v555_v11 = vld [vmem:[%s3797_s7 + $0x348] sm:$0xff] }
  0xc3   : > { %v1314_v13 = vld [vmem:[%s3797_s7 + $0x1b00] sm:$0xff]  ;;  %1576 = vmatpush.msrb.mxu1 %v1194_v12  ;;  %v691_v12 = vld [vmem:[%s3797_s7 + $0x788] sm:$0xff] }
  0xc4   : > { %v1450_v14 = vld [vmem:[%s3797_s7 + $0x1f40] sm:$0xff]  ;;  %1597 = vmatpush.msrb.mxu2 %v1314_v13  ;;  %v811_v13 = vld [vmem:[%s3797_s7 + $0xb48] sm:$0xff] }
  0xc5   : > { %v1050_v15 = vld [vmem:[%s3797_s7 + $0x12c0] sm:$0xff]  ;;  %1616 = vmatpush.msrb.mxu3 %v1450_v14  ;;  %v947_v14 = vld [vmem:[%s3797_s7 + $0xf88] sm:$0xff] }
  0xc6   : > { %v1186_v16 = vld [vmem:[%s3797_s7 + $0x1700] sm:$0xff]  ;;  %1558 = vmatpush.msrb.mxu0 %v1050_v15  ;;  %v3987_v15 = vld [vmem:[%s3788_s15 + $0x30] sm:$0xff] }
  0xc7   : > { %v1306_v17 = vld [vmem:[%s3797_s7 + $0x1ac0] sm:$0xff]  ;;  %1577 = vmatpush.msrb.mxu1 %v1186_v16  ;;  %v547_v16 = vld [vmem:[%s3797_s7 + $0x308] sm:$0xff] }
  0xc8   : > { %v1442_v18 = vld [vmem:[%s3797_s7 + $0x1f00] sm:$0xff]  ;;  %1598 = vmatpush.msrb.mxu2 %v1306_v17  ;;  %v683_v17 = vld [vmem:[%s3797_s7 + $0x748] sm:$0xff] }
  0xc9   : > { %v1042_v19 = vld [vmem:[%s3797_s7 + $0x1280] sm:$0xff]  ;;  %1617 = vmatpush.msrb.mxu3 %v1442_v18  ;;  %v803_v18 = vld [vmem:[%s3797_s7 + $0xb08] sm:$0xff] }
  0xca   : > { %v1178_v20 = vld [vmem:[%s3797_s7 + $0x16c0] sm:$0xff]  ;;  %1559 = vmatpush.msrb.mxu0 %v1042_v19  ;;  %v939_v19 = vld [vmem:[%s3797_s7 + $0xf48] sm:$0xff] }
  0xcb   : > { %v1298_v21 = vld [vmem:[%s3797_s7 + $0x1a80] sm:$0xff]  ;;  %1578 = vmatpush.msrb.mxu1 %v1178_v20 }
  0xcc   : > { %v1434_v22 = vld [vmem:[%s3797_s7 + $0x1ec0] sm:$0xff]  ;;  %1599 = vmatpush.msrb.mxu2 %v1298_v21  ;;  %v3998_v21 = vld [vmem:[%s3788_s15 + $0x38] sm:$0xff] }
  0xcd   : > { %v1034_v23 = vld [vmem:[%s3797_s7 + $0x1240] sm:$0xff]  ;;  %1618 = vmatpush.msrb.mxu3 %v1434_v22  ;;  %v539_v22 = vld [vmem:[%s3797_s7 + $0x2c8] sm:$0xff] }
  0xce   : > { %v1170_v24 = vld [vmem:[%s3797_s7 + $0x1680] sm:$0xff]  ;;  %1560 = vmatpush.msrb.mxu0 %v1034_v23  ;;  %v675_v23 = vld [vmem:[%s3797_s7 + $0x708] sm:$0xff] }
  0xcf   : > { %v1290_v25 = vld [vmem:[%s3797_s7 + $0x1a40] sm:$0xff]  ;;  %1579 = vmatpush.msrb.mxu1 %v1170_v24  ;;  %v795_v24 = vld [vmem:[%s3797_s7 + $0xac8] sm:$0xff] }
  0xd0   : > { %v1426_v26 = vld [vmem:[%s3797_s7 + $0x1e80] sm:$0xff]  ;;  %1600 = vmatpush.msrb.mxu2 %v1290_v25  ;;  %v931_v25 = vld [vmem:[%s3797_s7 + $0xf08] sm:$0xff] }
  0xd1   : > { %v1026_v27 = vld [vmem:[%s3797_s7 + $0x1200] sm:$0xff]  ;;  %1619 = vmatpush.msrb.mxu3 %v1426_v26  ;;  %v4006_v26 = vld [vmem:[%s3788_s15 + $0x28] sm:$0xff] }
  0xd2   : > { %v1162_v28 = vld [vmem:[%s3797_s7 + $0x1640] sm:$0xff]  ;;  %1561 = vmatpush.msrb.mxu0 %v1026_v27  ;;  %v531_v27 = vld [vmem:[%s3797_s7 + $0x288] sm:$0xff] }
  0xd3   : > { %v1282_v29 = vld [vmem:[%s3797_s7 + $0x1a00] sm:$0xff]  ;;  %1580 = vmatpush.msrb.mxu1 %v1162_v28  ;;  %v667_v28 = vld [vmem:[%s3797_s7 + $0x6c8] sm:$0xff] }
  0xd4   : > { %v1418_v30 = vld [vmem:[%s3797_s7 + $0x1e40] sm:$0xff]  ;;  %1601 = vmatpush.msrb.mxu2 %v1282_v29  ;;  %v787_v29 = vld [vmem:[%s3797_s7 + $0xa88] sm:$0xff] }
  0xd5   : > { %v1018_v31 = vld [vmem:[%s3797_s7 + $0x11c0] sm:$0xff]  ;;  %1620 = vmatpush.msrb.mxu3 %v1418_v30  ;;  %v923_v30 = vld [vmem:[%s3797_s7 + $0xec8] sm:$0xff] }
  0xd6   : > { %v1154_v32 = vld [vmem:[%s3797_s7 + $0x1600] sm:$0xff]  ;;  %1562 = vmatpush.msrb.mxu0 %v1018_v31  ;;  %v523_v31 = vld [vmem:[%s3797_s7 + $0x248] sm:$0xff] }
  0xd7   : > { %v1274_v33 = vld [vmem:[%s3797_s7 + $0x19c0] sm:$0xff]  ;;  %1581 = vmatpush.msrb.mxu1 %v1154_v32  ;;  %v659_v32 = vld [vmem:[%s3797_s7 + $0x688] sm:$0xff] }
  0xd8   : > { %v1410_v34 = vld [vmem:[%s3797_s7 + $0x1e00] sm:$0xff]  ;;  %1602 = vmatpush.msrb.mxu2 %v1274_v33  ;;  %v779_v33 = vld [vmem:[%s3797_s7 + $0xa48] sm:$0xff] }
  0xd9   : > { %v1010_v35 = vld [vmem:[%s3797_s7 + $0x1180] sm:$0xff]  ;;  %1621 = vmatpush.msrb.mxu3 %v1410_v34  ;;  %v915_v34 = vld [vmem:[%s3797_s7 + $0xe88] sm:$0xff] }
  0xda   : > { %v1146_v36 = vld [vmem:[%s3797_s7 + $0x15c0] sm:$0xff]  ;;  %1563 = vmatpush.msrb.mxu0 %v1010_v35  ;;  %v515_v35 = vld [vmem:[%s3797_s7 + $0x208] sm:$0xff] }
  0xdb   : > { %v1266_v37 = vld [vmem:[%s3797_s7 + $0x1980] sm:$0xff]  ;;  %1582 = vmatpush.msrb.mxu1 %v1146_v36  ;;  %v651_v36 = vld [vmem:[%s3797_s7 + $0x648] sm:$0xff] }
  0xdc   : > { %v1402_v38 = vld [vmem:[%s3797_s7 + $0x1dc0] sm:$0xff]  ;;  %1603 = vmatpush.msrb.mxu2 %v1266_v37  ;;  %v771_v37 = vld [vmem:[%s3797_s7 + $0xa08] sm:$0xff] }
  0xdd   : > { %v1002_v39 = vld [vmem:[%s3797_s7 + $0x1140] sm:$0xff]  ;;  %1622 = vmatpush.msrb.mxu3 %v1402_v38  ;;  %v907_v38 = vld [vmem:[%s3797_s7 + $0xe48] sm:$0xff] }
  0xde   : > { %v1138_v40 = vld [vmem:[%s3797_s7 + $0x1580] sm:$0xff]  ;;  %1564 = vmatpush.msrb.mxu0 %v1002_v39  ;;  %v507_v39 = vld [vmem:[%s3797_s7 + $0x1c8] sm:$0xff] }
  0xdf   : > { %v1258_v41 = vld [vmem:[%s3797_s7 + $0x1940] sm:$0xff]  ;;  %1583 = vmatpush.msrb.mxu1 %v1138_v40  ;;  %v643_v40 = vld [vmem:[%s3797_s7 + $0x608] sm:$0xff] }
  0xe0   : > { %v1394_v42 = vld [vmem:[%s3797_s7 + $0x1d80] sm:$0xff]  ;;  %1604 = vmatpush.msrb.mxu2 %v1258_v41  ;;  %v763_v41 = vld [vmem:[%s3797_s7 + $0x9c8] sm:$0xff] }
  0xe1   : > { %v994_v43 = vld [vmem:[%s3797_s7 + $0x1100] sm:$0xff]  ;;  %1623 = vmatpush.msrb.mxu3 %v1394_v42  ;;  %v899_v42 = vld [vmem:[%s3797_s7 + $0xe08] sm:$0xff] }
  0xe2   : > { %v1130_v44 = vld [vmem:[%s3797_s7 + $0x1540] sm:$0xff]  ;;  %1565 = vmatpush.msrb.mxu0 %v994_v43  ;;  %v499_v43 = vld [vmem:[%s3797_s7 + $0x188] sm:$0xff] }
  0xe3   : > { %v1250_v45 = vld [vmem:[%s3797_s7 + $0x1900] sm:$0xff]  ;;  %1584 = vmatpush.msrb.mxu1 %v1130_v44  ;;  %v635_v44 = vld [vmem:[%s3797_s7 + $0x5c8] sm:$0xff] }
  0xe4   : > { %v1386_v46 = vld [vmem:[%s3797_s7 + $0x1d40] sm:$0xff]  ;;  %1605 = vmatpush.msrb.mxu2 %v1250_v45  ;;  %v755_v45 = vld [vmem:[%s3797_s7 + $0x988] sm:$0xff] }
  0xe5   : > { %v986_v47 = vld [vmem:[%s3797_s7 + $0x10c0] sm:$0xff]  ;;  %1624 = vmatpush.msrb.mxu3 %v1386_v46  ;;  %v891_v46 = vld [vmem:[%s3797_s7 + $0xdc8] sm:$0xff] }
  0xe6   : > { %v1122_v48 = vld [vmem:[%s3797_s7 + $0x1500] sm:$0xff]  ;;  %1566 = vmatpush.msrb.mxu0 %v986_v47  ;;  %v491_v47 = vld [vmem:[%s3797_s7 + $0x148] sm:$0xff] }
  0xe7   : > { %v1242_v49 = vld [vmem:[%s3797_s7 + $0x18c0] sm:$0xff]  ;;  %1585 = vmatpush.msrb.mxu1 %v1122_v48  ;;  %v627_v48 = vld [vmem:[%s3797_s7 + $0x588] sm:$0xff] }
  0xe8   : > { %v1378_v50 = vld [vmem:[%s3797_s7 + $0x1d00] sm:$0xff]  ;;  %1606 = vmatpush.msrb.mxu2 %v1242_v49  ;;  %v747_v49 = vld [vmem:[%s3797_s7 + $0x948] sm:$0xff] }
  0xe9   : > { %v978_v51 = vld [vmem:[%s3797_s7 + $0x1080] sm:$0xff]  ;;  %1625 = vmatpush.msrb.mxu3 %v1378_v50  ;;  %v883_v50 = vld [vmem:[%s3797_s7 + $0xd88] sm:$0xff] }
  0xea   : > { %v1114_v52 = vld [vmem:[%s3797_s7 + $0x14c0] sm:$0xff]  ;;  %1567 = vmatpush.msrb.mxu0 %v978_v51  ;;  %v483_v51 = vld [vmem:[%s3797_s7 + $0x108] sm:$0xff] }
  0xeb   : > { %v1234_v53 = vld [vmem:[%s3797_s7 + $0x1880] sm:$0xff]  ;;  %1586 = vmatpush.msrb.mxu1 %v1114_v52  ;;  %v619_v52 = vld [vmem:[%s3797_s7 + $0x548] sm:$0xff] }
  0xec   : > { %v1370_v54 = vld [vmem:[%s3797_s7 + $0x1cc0] sm:$0xff]  ;;  %1607 = vmatpush.msrb.mxu2 %v1234_v53  ;;  %v739_v53 = vld [vmem:[%s3797_s7 + $0x908] sm:$0xff] }
  0xed   : > { %v970_v55 = vld [vmem:[%s3797_s7 + $0x1040] sm:$0xff]  ;;  %1626 = vmatpush.msrb.mxu3 %v1370_v54  ;;  %v875_v54 = vld [vmem:[%s3797_s7 + $0xd48] sm:$0xff] }
  0xee   : > { %v1106_v56 = vld [vmem:[%s3797_s7 + $0x1480] sm:$0xff]  ;;  %1568 = vmatpush.msrb.mxu0 %v970_v55  ;;  %v475_v55 = vld [vmem:[%s3797_s7 + $0xc8] sm:$0xff] }
  0xef   : > { %v1226_v57 = vld [vmem:[%s3797_s7 + $0x1840] sm:$0xff]  ;;  %1587 = vmatpush.msrb.mxu1 %v1106_v56  ;;  %v611_v56 = vld [vmem:[%s3797_s7 + $0x508] sm:$0xff] }
  0xf0   : > { %v1362_v58 = vld [vmem:[%s3797_s7 + $0x1c80] sm:$0xff]  ;;  %1608 = vmatpush.msrb.mxu2 %v1226_v57  ;;  %v731_v57 = vld [vmem:[%s3797_s7 + $0x8c8] sm:$0xff] }
  0xf1   : > { %v962_v60 = vld [vmem:[%s3797_s7 + $0x1000] sm:$0xff]  ;;  %1627 = vmatpush.msrb.mxu3 %v1362_v58  ;;  %v867_v58 = vld [vmem:[%s3797_s7 + $0xd08] sm:$0xff] }
  0xf2   : > { %v1098_v61 = vld [vmem:[%s3797_s7 + $0x1440] sm:$0xff]  ;;  %1569 = vmatpush.msrb.mxu0 %v962_v60  ;;  %v467_v60 = vld [vmem:[%s3797_s7 + $0x88] sm:$0xff] }
  0xf3   : > { %v1218_v62 = vld [vmem:[%s3797_s7 + $0x1800] sm:$0xff]  ;;  %1588 = vmatpush.msrb.mxu1 %v1098_v61  ;;  %v603_v61 = vld [vmem:[%s3797_s7 + $0x4c8] sm:$0xff] }
  0xf4   : > { %v1354_v63 = vld [vmem:[%s3797_s7 + $0x1c40] sm:$0xff]  ;;  %1609 = vmatpush.msrb.mxu2 %v1218_v62  ;;  %v723_v62 = vld [vmem:[%s3797_s7 + $0x888] sm:$0xff] }
  0xf5   : > { %v3962_v0 = vld [vmem:[%s3788_s15] sm:$0xff]  ;;  %1628 = vmatpush.msrb.mxu3 %v1354_v63  ;;  %1610 = vmatmul.f32.vlgmr.msrb.gmra.mxu2 %v3987_v15  ;;  %v859_v63 = vld [vmem:[%s3797_s7 + $0xcc8] sm:$0xff] }
  0xf6   : > { %v1090_v4 = vld [vmem:[%s3797_s7 + $0x1400] sm:$0xff]  ;;  %1490 = vmatmul.f32.vlgmr.msra.gmra.mxu0 %v3962_v0  ;;  %1674 = vmatpush.msra.mxu2 %v827_v3  ;;  %v595_v3 = vld [vmem:[%s3797_s7 + $0x488] sm:$0xff] }
  0xf7   : > { %v1346_v5 = vld [vmem:[%s3797_s7 + $0x1c00] sm:$0xff]  ;;  %1634 = vmatpush.msra.mxu0 %v571_v2  ;;  %1589 = vmatpush.msrb.mxu1 %v1090_v4  ;;  %v459_v2 = vld [vmem:[%s3797_s7 + $0x48] sm:$0xff] }
  0xf8   : > { %1629 = vmatpush.msrb.mxu3 %v1346_v5  ;;  %1675 = vmatpush.msra.mxu2 %v819_v9  ;;  %v3994_v20 = vld [vmem:[%s3788_s15 + $0x20] sm:$0xff]  ;;  %v715_v4 = vld [vmem:[%s3797_s7 + $0x848] sm:$0xff] }
  0xf9   : > { %1635 = vmatpush.msra.mxu0 %v563_v7  ;;  %1654 = vmatpush.msra.mxu1 %v699_v8  ;;  %v851_v5 = vld [vmem:[%s3797_s7 + $0xc88] sm:$0xff] }
  0xfa   : > { %1694 = vmatpush.msra.mxu3 %v955_v10  ;;  %1676 = vmatpush.msra.mxu2 %v811_v13  ;;  %v451_v7 = vld [vmem:[%s3797_s7 + $0x8] sm:$0xff] }
  0xfb   : > { %1636 = vmatpush.msra.mxu0 %v555_v11  ;;  %1655 = vmatpush.msra.mxu1 %v691_v12  ;;  %v587_v8 = vld [vmem:[%s3797_s7 + $0x448] sm:$0xff] }
  0xfc   : > { %1695 = vmatpush.msra.mxu3 %v947_v14  ;;  %1677 = vmatpush.msra.mxu2 %v803_v18  ;;  %v707_v9 = vld [vmem:[%s3797_s7 + $0x808] sm:$0xff] }
  0xfd   : > { %1637 = vmatpush.msra.mxu0 %v547_v16  ;;  %1656 = vmatpush.msra.mxu1 %v683_v17  ;;  %v843_v10 = vld [vmem:[%s3797_s7 + $0xc48] sm:$0xff] }
  0xfe   : > { %1696 = vmatpush.msra.mxu3 %v939_v19  ;;  %1570 = vmatmul.f32.vlgmr.msrb.gmra.mxu0 %v3994_v20  ;;  %v1083_v11 = vld [vmem:[%s3797_s7 + $0x13c8] sm:$0xff] }
  0xff   : > { %1630 = vmatmul.f32.vlgmr.msrb.gmra.mxu3 %v3998_v21  ;;  %1638 = vmatpush.msra.mxu0 %v539_v22  ;;  %v1339_v12 = vld [vmem:[%s3797_s7 + $0x1bc8] sm:$0xff] }
 0x100   : > { %1657 = vmatpush.msra.mxu1 %v675_v23  ;;  %1678 = vmatpush.msra.mxu2 %v795_v24  ;;  %v579_v13 = vld [vmem:[%s3797_s7 + $0x408] sm:$0xff] }
 0x101   : > { %1697 = vmatpush.msra.mxu3 %v931_v25  ;;  %1590 = vmatmul.f32.vlgmr.msrb.gmra.mxu1 %v4006_v26  ;;  %v835_v14 = vld [vmem:[%s3797_s7 + $0xc08] sm:$0xff] }
 0x102   : > { %1639 = vmatpush.msra.mxu0 %v531_v27  ;;  %1658 = vmatpush.msra.mxu1 %v667_v28  ;;  %v1075_v16 = vld [vmem:[%s3797_s7 + $0x1388] sm:$0xff] }
 0x103   : > { %1679 = vmatpush.msra.mxu2 %v787_v29  ;;  %1698 = vmatpush.msra.mxu3 %v923_v30  ;;  %v1211_v17 = vld [vmem:[%s3797_s7 + $0x17c8] sm:$0xff] }
 0x104   : > { %1640 = vmatpush.msra.mxu0 %v523_v31  ;;  %1659 = vmatpush.msra.mxu1 %v659_v32  ;;  %v1331_v18 = vld [vmem:[%s3797_s7 + $0x1b88] sm:$0xff] }
 0x105   : > { %1680 = vmatpush.msra.mxu2 %v779_v33  ;;  %1699 = vmatpush.msra.mxu3 %v915_v34  ;;  %v1467_v19 = vld [vmem:[%s3797_s7 + $0x1fc8] sm:$0xff] }
 0x106   : > { %1641 = vmatpush.msra.mxu0 %v515_v35  ;;  %1660 = vmatpush.msra.mxu1 %v651_v36  ;;  %v1067_v22 = vld [vmem:[%s3797_s7 + $0x1348] sm:$0xff] }
 0x107   : > { %1681 = vmatpush.msra.mxu2 %v771_v37  ;;  %1700 = vmatpush.msra.mxu3 %v907_v38  ;;  %v1203_v23 = vld [vmem:[%s3797_s7 + $0x1788] sm:$0xff] }
 0x108   : > { %1642 = vmatpush.msra.mxu0 %v507_v39  ;;  %1661 = vmatpush.msra.mxu1 %v643_v40  ;;  %v1323_v24 = vld [vmem:[%s3797_s7 + $0x1b48] sm:$0xff] }
 0x109   : > { %1682 = vmatpush.msra.mxu2 %v763_v41  ;;  %1701 = vmatpush.msra.mxu3 %v899_v42  ;;  %v1459_v25 = vld [vmem:[%s3797_s7 + $0x1f88] sm:$0xff] }
 0x10a   : > { %1643 = vmatpush.msra.mxu0 %v499_v43  ;;  %1662 = vmatpush.msra.mxu1 %v635_v44  ;;  %v1059_v27 = vld [vmem:[%s3797_s7 + $0x1308] sm:$0xff] }
 0x10b   : > { %1683 = vmatpush.msra.mxu2 %v755_v45  ;;  %1702 = vmatpush.msra.mxu3 %v891_v46  ;;  %v1195_v28 = vld [vmem:[%s3797_s7 + $0x1748] sm:$0xff] }
 0x10c   : > { %1644 = vmatpush.msra.mxu0 %v491_v47  ;;  %1663 = vmatpush.msra.mxu1 %v627_v48  ;;  %v1315_v29 = vld [vmem:[%s3797_s7 + $0x1b08] sm:$0xff] }
 0x10d   : > { %1684 = vmatpush.msra.mxu2 %v747_v49  ;;  %1703 = vmatpush.msra.mxu3 %v883_v50  ;;  %v1451_v30 = vld [vmem:[%s3797_s7 + $0x1f48] sm:$0xff] }
 0x10e   : > { %1645 = vmatpush.msra.mxu0 %v483_v51  ;;  %1664 = vmatpush.msra.mxu1 %v619_v52  ;;  %v1051_v31 = vld [vmem:[%s3797_s7 + $0x12c8] sm:$0xff] }
 0x10f   : > { %1685 = vmatpush.msra.mxu2 %v739_v53  ;;  %1704 = vmatpush.msra.mxu3 %v875_v54  ;;  %v1187_v32 = vld [vmem:[%s3797_s7 + $0x1708] sm:$0xff] }
 0x110   : > { %1646 = vmatpush.msra.mxu0 %v475_v55  ;;  %1665 = vmatpush.msra.mxu1 %v611_v56  ;;  %v1307_v33 = vld [vmem:[%s3797_s7 + $0x1ac8] sm:$0xff] }
 0x111   : > { %1686 = vmatpush.msra.mxu2 %v731_v57  ;;  %1705 = vmatpush.msra.mxu3 %v867_v58  ;;  %v1443_v34 = vld [vmem:[%s3797_s7 + $0x1f08] sm:$0xff] }
 0x112   : > { %1647 = vmatpush.msra.mxu0 %v467_v60  ;;  %1666 = vmatpush.msra.mxu1 %v603_v61  ;;  %v1043_v35 = vld [vmem:[%s3797_s7 + $0x1288] sm:$0xff] }
 0x113   : > { %1687 = vmatpush.msra.mxu2 %v723_v62  ;;  %1706 = vmatpush.msra.mxu3 %v859_v63  ;;  %v1179_v36 = vld [vmem:[%s3797_s7 + $0x16c8] sm:$0xff] }
 0x114   : > { %1648 = vmatpush.msra.mxu0 %v459_v2  ;;  %1667 = vmatpush.msra.mxu1 %v595_v3  ;;  %v1299_v37 = vld [vmem:[%s3797_s7 + $0x1a88] sm:$0xff] }
 0x115   : > { %1688 = vmatpush.msra.mxu2 %v715_v4  ;;  %1707 = vmatpush.msra.mxu3 %v851_v5  ;;  %v1435_v38 = vld [vmem:[%s3797_s7 + $0x1ec8] sm:$0xff] }
 0x116   : > { %1649 = vmatpush.msra.mxu0 %v451_v7  ;;  %1668 = vmatpush.msra.mxu1 %v587_v8  ;;  %v1035_v39 = vld [vmem:[%s3797_s7 + $0x1248] sm:$0xff] }
 0x117   : > { %1689 = vmatpush.msra.mxu2 %v707_v9  ;;  %1708 = vmatpush.msra.mxu3 %v843_v10  ;;  %v1171_v40 = vld [vmem:[%s3797_s7 + $0x1688] sm:$0xff] }
 0x118   : > { %1714 = vmatpush.msrb.mxu0 %v1083_v11  ;;  %1669 = vmatpush.msra.mxu1 %v579_v13  ;;  %v1291_v41 = vld [vmem:[%s3797_s7 + $0x1a48] sm:$0xff] }
 0x119   : > { %1754 = vmatpush.msrb.mxu2 %v1339_v12  ;;  %1709 = vmatpush.msra.mxu3 %v835_v14  ;;  %v1427_v42 = vld [vmem:[%s3797_s7 + $0x1e88] sm:$0xff] }
 0x11a   : > { %1715 = vmatpush.msrb.mxu0 %v1075_v16  ;;  %1734 = vmatpush.msrb.mxu1 %v1211_v17  ;;  %v1027_v43 = vld [vmem:[%s3797_s7 + $0x1208] sm:$0xff] }
 0x11b   : > { %1755 = vmatpush.msrb.mxu2 %v1331_v18  ;;  %1774 = vmatpush.msrb.mxu3 %v1467_v19  ;;  %v1163_v44 = vld [vmem:[%s3797_s7 + $0x1648] sm:$0xff] }
 0x11c   : > { %1716 = vmatpush.msrb.mxu0 %v1067_v22  ;;  %1735 = vmatpush.msrb.mxu1 %v1203_v23  ;;  %v1283_v45 = vld [vmem:[%s3797_s7 + $0x1a08] sm:$0xff]  ;;  %v572_v22 = vld [vmem:[%s3797_s7 + $0x3d0] sm:$0xff] }
 0x11d   : > { %1756 = vmatpush.msrb.mxu2 %v1323_v24  ;;  %1775 = vmatpush.msrb.mxu3 %v1459_v25  ;;  %v1419_v46 = vld [vmem:[%s3797_s7 + $0x1e48] sm:$0xff]  ;;  %v828_v23 = vld [vmem:[%s3797_s7 + $0xbd0] sm:$0xff] }
 0x11e   : > { %1717 = vmatpush.msrb.mxu0 %v1059_v27  ;;  %1736 = vmatpush.msrb.mxu1 %v1195_v28  ;;  %v1019_v47 = vld [vmem:[%s3797_s7 + $0x11c8] sm:$0xff]  ;;  %v700_v27 = vld [vmem:[%s3797_s7 + $0x7d0] sm:$0xff] }
 0x11f   : > { %1757 = vmatpush.msrb.mxu2 %v1315_v29  ;;  %1776 = vmatpush.msrb.mxu3 %v1451_v30  ;;  %v1155_v48 = vld [vmem:[%s3797_s7 + $0x1608] sm:$0xff]  ;;  %v820_v28 = vld [vmem:[%s3797_s7 + $0xb90] sm:$0xff] }
 0x120   : > { %1718 = vmatpush.msrb.mxu0 %v1051_v31  ;;  %1737 = vmatpush.msrb.mxu1 %v1187_v32  ;;  %v1275_v49 = vld [vmem:[%s3797_s7 + $0x19c8] sm:$0xff]  ;;  %v956_v29 = vld [vmem:[%s3797_s7 + $0xfd0] sm:$0xff] }
 0x121   : > { %1758 = vmatpush.msrb.mxu2 %v1307_v33  ;;  %1777 = vmatpush.msrb.mxu3 %v1443_v34  ;;  %v1411_v50 = vld [vmem:[%s3797_s7 + $0x1e08] sm:$0xff]  ;;  %v692_v30 = vld [vmem:[%s3797_s7 + $0x790] sm:$0xff] }
 0x122   : > { %1719 = vmatpush.msrb.mxu0 %v1043_v35  ;;  %1738 = vmatpush.msrb.mxu1 %v1179_v36  ;;  %v1011_v51 = vld [vmem:[%s3797_s7 + $0x1188] sm:$0xff]  ;;  %v948_v31 = vld [vmem:[%s3797_s7 + $0xf90] sm:$0xff] }
 0x123   : > { %1759 = vmatpush.msrb.mxu2 %v1299_v37  ;;  %1778 = vmatpush.msrb.mxu3 %v1435_v38  ;;  %v1147_v52 = vld [vmem:[%s3797_s7 + $0x15c8] sm:$0xff]  ;;  %v548_v32 = vld [vmem:[%s3797_s7 + $0x310] sm:$0xff] }
 0x124   : > { %1720 = vmatpush.msrb.mxu0 %v1035_v39  ;;  %1739 = vmatpush.msrb.mxu1 %v1171_v40  ;;  %v1267_v53 = vld [vmem:[%s3797_s7 + $0x1988] sm:$0xff]  ;;  %v684_v33 = vld [vmem:[%s3797_s7 + $0x750] sm:$0xff] }
 0x125   : > { %1760 = vmatpush.msrb.mxu2 %v1291_v41  ;;  %1779 = vmatpush.msrb.mxu3 %v1427_v42  ;;  %v1403_v54 = vld [vmem:[%s3797_s7 + $0x1dc8] sm:$0xff]  ;;  %v804_v34 = vld [vmem:[%s3797_s7 + $0xb10] sm:$0xff] }
 0x126   : > { %1721 = vmatpush.msrb.mxu0 %v1027_v43  ;;  %1740 = vmatpush.msrb.mxu1 %v1163_v44  ;;  %v1003_v55 = vld [vmem:[%s3797_s7 + $0x1148] sm:$0xff]  ;;  %v540_v35 = vld [vmem:[%s3797_s7 + $0x2d0] sm:$0xff] }
 0x127   : > { %1761 = vmatpush.msrb.mxu2 %v1283_v45  ;;  %1780 = vmatpush.msrb.mxu3 %v1419_v46  ;;  %v1139_v56 = vld [vmem:[%s3797_s7 + $0x1588] sm:$0xff]  ;;  %v676_v36 = vld [vmem:[%s3797_s7 + $0x710] sm:$0xff] }
 0x128   : > { %1722 = vmatpush.msrb.mxu0 %v1019_v47  ;;  %1741 = vmatpush.msrb.mxu1 %v1155_v48  ;;  %v1259_v57 = vld [vmem:[%s3797_s7 + $0x1948] sm:$0xff]  ;;  %v796_v37 = vld [vmem:[%s3797_s7 + $0xad0] sm:$0xff] }
 0x129   : > { %1762 = vmatpush.msrb.mxu2 %v1275_v49  ;;  %1781 = vmatpush.msrb.mxu3 %v1411_v50  ;;  %v1395_v58 = vld [vmem:[%s3797_s7 + $0x1d88] sm:$0xff]  ;;  %v932_v38 = vld [vmem:[%s3797_s7 + $0xf10] sm:$0xff] }
 0x12a   : > { %1723 = vmatpush.msrb.mxu0 %v1011_v51  ;;  %1742 = vmatpush.msrb.mxu1 %v1147_v52  ;;  %v995_v60 = vld [vmem:[%s3797_s7 + $0x1108] sm:$0xff]  ;;  %v668_v39 = vld [vmem:[%s3797_s7 + $0x6d0] sm:$0xff] }
 0x12b   : > { %1763 = vmatpush.msrb.mxu2 %v1267_v53  ;;  %1782 = vmatpush.msrb.mxu3 %v1403_v54  ;;  %v1131_v61 = vld [vmem:[%s3797_s7 + $0x1548] sm:$0xff]  ;;  %v788_v40 = vld [vmem:[%s3797_s7 + $0xa90] sm:$0xff] }
 0x12c   : > { %1724 = vmatpush.msrb.mxu0 %v1003_v55  ;;  %1743 = vmatpush.msrb.mxu1 %v1139_v56  ;;  %v1251_v62 = vld [vmem:[%s3797_s7 + $0x1908] sm:$0xff]  ;;  %v924_v41 = vld [vmem:[%s3797_s7 + $0xed0] sm:$0xff] }
 0x12d   : > { %v1387_v63 = vld [vmem:[%s3797_s7 + $0x1d48] sm:$0xff]  ;;  %1764 = vmatpush.msrb.mxu2 %v1259_v57  ;;  %1783 = vmatpush.msrb.mxu3 %v1395_v58  ;;  %v660_v42 = vld [vmem:[%s3797_s7 + $0x690] sm:$0xff] }
 0x12e   : > { %v987_v2 = vld [vmem:[%s3797_s7 + $0x10c8] sm:$0xff]  ;;  %1725 = vmatpush.msrb.mxu0 %v995_v60  ;;  %1744 = vmatpush.msrb.mxu1 %v1131_v61  ;;  %v916_v43 = vld [vmem:[%s3797_s7 + $0xe90] sm:$0xff] }
 0x12f   : > { %v1123_v3 = vld [vmem:[%s3797_s7 + $0x1508] sm:$0xff]  ;;  %1765 = vmatpush.msrb.mxu2 %v1251_v62  ;;  %1784 = vmatpush.msrb.mxu3 %v1387_v63  ;;  %v516_v44 = vld [vmem:[%s3797_s7 + $0x210] sm:$0xff] }
 0x130   : > { %v1243_v4 = vld [vmem:[%s3797_s7 + $0x18c8] sm:$0xff]  ;;  %1726 = vmatpush.msrb.mxu0 %v987_v2  ;;  %1745 = vmatpush.msrb.mxu1 %v1123_v3  ;;  %v652_v45 = vld [vmem:[%s3797_s7 + $0x650] sm:$0xff] }
 0x131   : > { %v1379_v5 = vld [vmem:[%s3797_s7 + $0x1d08] sm:$0xff]  ;;  %1766 = vmatpush.msrb.mxu2 %v1243_v4  ;;  %1650 = vmatmul.f32.vlgmr.msra.gmra.mxu0 %v3962_v0  ;;  %v556_v0 = vld [vmem:[%s3797_s7 + $0x350] sm:$0xff] }
 0x132   : > { %v979_v7 = vld [vmem:[%s3797_s7 + $0x1088] sm:$0xff]  ;;  %1785 = vmatpush.msrb.mxu3 %v1379_v5  ;;  %1690 = vmatmul.f32.vlgmr.msra.gmra.mxu2 %v3955_v59  ;;  %v564_v59 = vld [vmem:[%s3797_s7 + $0x390] sm:$0xff] }
 0x133   : > { %v1115_v8 = vld [vmem:[%s3797_s7 + $0x14c8] sm:$0xff]  ;;  %1727 = vmatpush.msrb.mxu0 %v979_v7  ;;  %1710 = vmatmul.f32.vlgmr.msra.gmra.mxu3 %v3966_v1  ;;  %v812_v1 = vld [vmem:[%s3797_s7 + $0xb50] sm:$0xff] }
 0x134   : > { %v1235_v9 = vld [vmem:[%s3797_s7 + $0x1888] sm:$0xff]  ;;  %1746 = vmatpush.msrb.mxu1 %v1115_v8  ;;  %v772_v46 = vld [vmem:[%s3797_s7 + $0xa10] sm:$0xff] }
 0x135   : > { %v1371_v10 = vld [vmem:[%s3797_s7 + $0x1cc8] sm:$0xff]  ;;  %1767 = vmatpush.msrb.mxu2 %v1235_v9  ;;  %1670 = vmatmul.f32.vlgmr.msra.gmra.mxu1 %v3974_v6  ;;  %v940_v6 = vld [vmem:[%s3797_s7 + $0xf50] sm:$0xff] }
 0x136   : > { %v971_v11 = vld [vmem:[%s3797_s7 + $0x1048] sm:$0xff]  ;;  %1786 = vmatpush.msrb.mxu3 %v1371_v10  ;;  %v508_v47 = vld [vmem:[%s3797_s7 + $0x1d0] sm:$0xff] }
 0x137   : > { %v1107_v12 = vld [vmem:[%s3797_s7 + $0x1488] sm:$0xff]  ;;  %1728 = vmatpush.msrb.mxu0 %v971_v11  ;;  %v644_v48 = vld [vmem:[%s3797_s7 + $0x610] sm:$0xff] }
 0x138   : > { %v1227_v13 = vld [vmem:[%s3797_s7 + $0x1848] sm:$0xff]  ;;  %1747 = vmatpush.msrb.mxu1 %v1107_v12  ;;  %v764_v49 = vld [vmem:[%s3797_s7 + $0x9d0] sm:$0xff] }
 0x139   : > { %v1363_v14 = vld [vmem:[%s3797_s7 + $0x1c88] sm:$0xff]  ;;  %1768 = vmatpush.msrb.mxu2 %v1227_v13  ;;  %v900_v50 = vld [vmem:[%s3797_s7 + $0xe10] sm:$0xff] }
 0x13a   : > { %v963_v16 = vld [vmem:[%s3797_s7 + $0x1008] sm:$0xff]  ;;  %1787 = vmatpush.msrb.mxu3 %v1363_v14  ;;  %v500_v51 = vld [vmem:[%s3797_s7 + $0x190] sm:$0xff] }
 0x13b   : > { %v1099_v17 = vld [vmem:[%s3797_s7 + $0x1448] sm:$0xff]  ;;  %1729 = vmatpush.msrb.mxu0 %v963_v16  ;;  %v636_v52 = vld [vmem:[%s3797_s7 + $0x5d0] sm:$0xff] }
 0x13c   : > { %v1219_v18 = vld [vmem:[%s3797_s7 + $0x1808] sm:$0xff]  ;;  %1748 = vmatpush.msrb.mxu1 %v1099_v17  ;;  %1730 = vmatmul.f32.vlgmr.msrb.gmra.mxu0 %v3994_v20  ;;  %v524_v20 = vld [vmem:[%s3797_s7 + $0x250] sm:$0xff] }
 0x13d   : > { %v1355_v19 = vld [vmem:[%s3797_s7 + $0x1c48] sm:$0xff]  ;;  %1769 = vmatpush.msrb.mxu2 %v1219_v18  ;;  %1794 = vmatpush.msra.mxu0 %v572_v22  ;;  %v756_v53 = vld [vmem:[%s3797_s7 + $0x990] sm:$0xff] }
 0x13e   : > { %v1091_v24 = vld [vmem:[%s3797_s7 + $0x1408] sm:$0xff]  ;;  %1788 = vmatpush.msrb.mxu3 %v1355_v19  ;;  %1770 = vmatmul.f32.vlgmr.msrb.gmra.mxu2 %v3987_v15  ;;  %v532_v15 = vld [vmem:[%s3797_s7 + $0x290] sm:$0xff] }
 0x13f   : > { %v1347_v25 = vld [vmem:[%s3797_s7 + $0x1c08] sm:$0xff]  ;;  %1834 = vmatpush.msra.mxu2 %v828_v23  ;;  %1749 = vmatpush.msrb.mxu1 %v1091_v24  ;;  %v892_v54 = vld [vmem:[%s3797_s7 + $0xdd0] sm:$0xff] }
 0x140   : > { %1789 = vmatpush.msrb.mxu3 %v1347_v25  ;;  %1795 = vmatpush.msra.mxu0 %v564_v59  ;;  %v492_v55 = vld [vmem:[%s3797_s7 + $0x150] sm:$0xff] }
 0x141   : > { %1814 = vmatpush.msra.mxu1 %v700_v27  ;;  %1835 = vmatpush.msra.mxu2 %v820_v28  ;;  %v628_v56 = vld [vmem:[%s3797_s7 + $0x590] sm:$0xff] }
 0x142   : > { %1854 = vmatpush.msra.mxu3 %v956_v29  ;;  %1796 = vmatpush.msra.mxu0 %v556_v0  ;;  %v748_v57 = vld [vmem:[%s3797_s7 + $0x950] sm:$0xff] }
 0x143   : > { %1815 = vmatpush.msra.mxu1 %v692_v30  ;;  %1836 = vmatpush.msra.mxu2 %v812_v1  ;;  %v884_v58 = vld [vmem:[%s3797_s7 + $0xd90] sm:$0xff] }
 0x144   : > { %1855 = vmatpush.msra.mxu3 %v948_v31  ;;  %1797 = vmatpush.msra.mxu0 %v548_v32  ;;  %v484_v60 = vld [vmem:[%s3797_s7 + $0x110] sm:$0xff] }
 0x145   : > { %1816 = vmatpush.msra.mxu1 %v684_v33  ;;  %1837 = vmatpush.msra.mxu2 %v804_v34  ;;  %v620_v61 = vld [vmem:[%s3797_s7 + $0x550] sm:$0xff] }
 0x146   : > { %1856 = vmatpush.msra.mxu3 %v940_v6  ;;  %1798 = vmatpush.msra.mxu0 %v540_v35  ;;  %v740_v62 = vld [vmem:[%s3797_s7 + $0x910] sm:$0xff] }
 0x147   : > { %1790 = vmatmul.f32.vlgmr.msrb.gmra.mxu3 %v3998_v21  ;;  %1817 = vmatpush.msra.mxu1 %v676_v36  ;;  %v780_v21 = vld [vmem:[%s3797_s7 + $0xa50] sm:$0xff] }
 0x148   : > { %1838 = vmatpush.msra.mxu2 %v796_v37  ;;  %1857 = vmatpush.msra.mxu3 %v932_v38  ;;  %v876_v63 = vld [vmem:[%s3797_s7 + $0xd50] sm:$0xff] }
 0x149   : > { %1750 = vmatmul.f32.vlgmr.msrb.gmra.mxu1 %v4006_v26  ;;  %1799 = vmatpush.msra.mxu0 %v532_v15  ;;  %v908_v26 = vld [vmem:[%s3797_s7 + $0xe50] sm:$0xff] }
 0x14a   : > { %1818 = vmatpush.msra.mxu1 %v668_v39  ;;  %1839 = vmatpush.msra.mxu2 %v788_v40  ;;  %v476_v2 = vld [vmem:[%s3797_s7 + $0xd0] sm:$0xff] }
 0x14b   : > { %1858 = vmatpush.msra.mxu3 %v924_v41  ;;  %1800 = vmatpush.msra.mxu0 %v524_v20  ;;  %v612_v3 = vld [vmem:[%s3797_s7 + $0x510] sm:$0xff] }
 0x14c   : > { %1819 = vmatpush.msra.mxu1 %v660_v42  ;;  %1840 = vmatpush.msra.mxu2 %v780_v21  ;;  %v732_v4 = vld [vmem:[%s3797_s7 + $0x8d0] sm:$0xff] }
 0x14d   : > { %1859 = vmatpush.msra.mxu3 %v916_v43  ;;  %1801 = vmatpush.msra.mxu0 %v516_v44  ;;  %v868_v5 = vld [vmem:[%s3797_s7 + $0xd10] sm:$0xff] }
 0x14e   : > { %1820 = vmatpush.msra.mxu1 %v652_v45  ;;  %1841 = vmatpush.msra.mxu2 %v772_v46  ;;  %v468_v7 = vld [vmem:[%s3797_s7 + $0x90] sm:$0xff] }
 0x14f   : > { %1860 = vmatpush.msra.mxu3 %v908_v26  ;;  %1802 = vmatpush.msra.mxu0 %v508_v47  ;;  %v604_v8 = vld [vmem:[%s3797_s7 + $0x4d0] sm:$0xff] }
 0x150   : > { %1821 = vmatpush.msra.mxu1 %v644_v48  ;;  %1842 = vmatpush.msra.mxu2 %v764_v49  ;;  %v724_v9 = vld [vmem:[%s3797_s7 + $0x890] sm:$0xff] }
 0x151   : > { %1861 = vmatpush.msra.mxu3 %v900_v50  ;;  %1803 = vmatpush.msra.mxu0 %v500_v51  ;;  %v860_v10 = vld [vmem:[%s3797_s7 + $0xcd0] sm:$0xff] }
 0x152   : > { %1822 = vmatpush.msra.mxu1 %v636_v52  ;;  %1843 = vmatpush.msra.mxu2 %v756_v53  ;;  %v460_v11 = vld [vmem:[%s3797_s7 + $0x50] sm:$0xff] }
 0x153   : > { %1862 = vmatpush.msra.mxu3 %v892_v54  ;;  %1804 = vmatpush.msra.mxu0 %v492_v55  ;;  %v596_v12 = vld [vmem:[%s3797_s7 + $0x490] sm:$0xff] }
 0x154   : > { %1823 = vmatpush.msra.mxu1 %v628_v56  ;;  %1844 = vmatpush.msra.mxu2 %v748_v57  ;;  %v716_v13 = vld [vmem:[%s3797_s7 + $0x850] sm:$0xff] }
 0x155   : > { %1863 = vmatpush.msra.mxu3 %v884_v58  ;;  %1805 = vmatpush.msra.mxu0 %v484_v60  ;;  %v852_v14 = vld [vmem:[%s3797_s7 + $0xc90] sm:$0xff] }
 0x156   : > { %1824 = vmatpush.msra.mxu1 %v620_v61  ;;  %1845 = vmatpush.msra.mxu2 %v740_v62  ;;  %v452_v16 = vld [vmem:[%s3797_s7 + $0x10] sm:$0xff] }
 0x157   : > { %1864 = vmatpush.msra.mxu3 %v876_v63  ;;  %1806 = vmatpush.msra.mxu0 %v476_v2  ;;  %v588_v17 = vld [vmem:[%s3797_s7 + $0x450] sm:$0xff] }
 0x158   : > { %1825 = vmatpush.msra.mxu1 %v612_v3  ;;  %1846 = vmatpush.msra.mxu2 %v732_v4  ;;  %v708_v18 = vld [vmem:[%s3797_s7 + $0x810] sm:$0xff] }
 0x159   : > { %1865 = vmatpush.msra.mxu3 %v868_v5  ;;  %1807 = vmatpush.msra.mxu0 %v468_v7  ;;  %v844_v19 = vld [vmem:[%s3797_s7 + $0xc50] sm:$0xff] }
 0x15a   : > { %1826 = vmatpush.msra.mxu1 %v604_v8  ;;  %1847 = vmatpush.msra.mxu2 %v724_v9  ;;  %v1084_v22 = vld [vmem:[%s3797_s7 + $0x13d0] sm:$0xff] }
 0x15b   : > { %1866 = vmatpush.msra.mxu3 %v860_v10  ;;  %1808 = vmatpush.msra.mxu0 %v460_v11  ;;  %v1340_v23 = vld [vmem:[%s3797_s7 + $0x1bd0] sm:$0xff] }
 0x15c   : > { %1827 = vmatpush.msra.mxu1 %v596_v12  ;;  %1848 = vmatpush.msra.mxu2 %v716_v13  ;;  %v580_v24 = vld [vmem:[%s3797_s7 + $0x410] sm:$0xff]  ;;  %v1511_v12 = vpop.f32.mrf.mxu1 }
 0x15d   : > { %1867 = vmatpush.msra.mxu3 %v852_v14  ;;  %1809 = vmatpush.msra.mxu0 %v452_v16  ;;  %v836_v25 = vld [vmem:[%s3797_s7 + $0xc10] sm:$0xff] }
 0x15e   : > { %1828 = vmatpush.msra.mxu1 %v588_v17  ;;  %1849 = vmatpush.msra.mxu2 %v708_v18  ;;  %v1076_v59 = vld [vmem:[%s3797_s7 + $0x1390] sm:$0xff]  ;;  %v1531_v17 = vpop.f32.mrf.mxu2 }
 0x15f   : > { %1868 = vmatpush.msra.mxu3 %v844_v19  ;;  %v1212_v27 = vld [vmem:[%s3797_s7 + $0x17d0] sm:$0xff]  ;;  %1874 = vmatpush.msrb.mxu0 %v1084_v22 }
 0x160   : > { %1914 = vmatpush.msrb.mxu2 %v1340_v23  ;;  %v1332_v28 = vld [vmem:[%s3797_s7 + $0x1b90] sm:$0xff]  ;;  %1829 = vmatpush.msra.mxu1 %v580_v24 }
 0x161   : > { %v1468_v29 = vld [vmem:[%s3797_s7 + $0x1fd0] sm:$0xff]  ;;  %1869 = vmatpush.msra.mxu3 %v836_v25  ;;  %1875 = vmatpush.msrb.mxu0 %v1076_v59  ;;  %v1551_v59 = vpop.f32.mrf.mxu3 }
 0x162   : > { %v1068_v0 = vld [vmem:[%s3797_s7 + $0x1350] sm:$0xff]  ;;  %1894 = vmatpush.msrb.mxu1 %v1212_v27  ;;  %1915 = vmatpush.msrb.mxu2 %v1332_v28 }
 0x163   : > { %v1204_v30 = vld [vmem:[%s3797_s7 + $0x1790] sm:$0xff]  ;;  %1934 = vmatpush.msrb.mxu3 %v1468_v29  ;;  %1876 = vmatpush.msrb.mxu0 %v1068_v0  ;;  %v573_v0 = vld [vmem:[%s3797_s7 + $0x3d8] sm:$0xff] }
 0x164   : > { %v1324_v1 = vld [vmem:[%s3797_s7 + $0x1b50] sm:$0xff]  ;;  %1895 = vmatpush.msrb.mxu1 %v1204_v30  ;;  %v829_v30 = vld [vmem:[%s3797_s7 + $0xbd8] sm:$0xff] }
 0x165   : > { %v1460_v31 = vld [vmem:[%s3797_s7 + $0x1f90] sm:$0xff]  ;;  %1916 = vmatpush.msrb.mxu2 %v1324_v1 }
 0x166   : > { %v1060_v32 = vld [vmem:[%s3797_s7 + $0x1310] sm:$0xff]  ;;  %1935 = vmatpush.msrb.mxu3 %v1460_v31 }
 0x167   : > { %v1196_v33 = vld [vmem:[%s3797_s7 + $0x1750] sm:$0xff]  ;;  %1877 = vmatpush.msrb.mxu0 %v1060_v32  ;;  %v4262_v32 = vld [vmem:[%s3788_s15] sm:$0xff] }
 0x168   : > { %v1316_v34 = vld [vmem:[%s3797_s7 + $0x1b10] sm:$0xff]  ;;  %1896 = vmatpush.msrb.mxu1 %v1196_v33  ;;  %1810 = vmatmul.f32.vlgmr.msra.gmra.mxu0 %v4262_v32 }
 0x169   : > { %v1452_v6 = vld [vmem:[%s3797_s7 + $0x1f50] sm:$0xff]  ;;  %1917 = vmatpush.msrb.mxu2 %v1316_v34 }
 0x16a   : > { %v1052_v35 = vld [vmem:[%s3797_s7 + $0x12d0] sm:$0xff]  ;;  %1936 = vmatpush.msrb.mxu3 %v1452_v6  ;;  %v4267_v6 = vld [vmem:[%s3788_s15 + $0x18] sm:$0xff] }
 0x16b   : > { %v1188_v36 = vld [vmem:[%s3797_s7 + $0x1710] sm:$0xff]  ;;  %1878 = vmatpush.msrb.mxu0 %v1052_v35  ;;  %1870 = vmatmul.f32.vlgmr.msra.gmra.mxu3 %v4267_v6  ;;  %v565_v35 = vld [vmem:[%s3797_s7 + $0x398] sm:$0xff] }
 0x16c   : > { %v1308_v37 = vld [vmem:[%s3797_s7 + $0x1ad0] sm:$0xff]  ;;  %1897 = vmatpush.msrb.mxu1 %v1188_v36  ;;  %v701_v36 = vld [vmem:[%s3797_s7 + $0x7d8] sm:$0xff] }
 0x16d   : > { %v1444_v38 = vld [vmem:[%s3797_s7 + $0x1f10] sm:$0xff]  ;;  %1918 = vmatpush.msrb.mxu2 %v1308_v37  ;;  %v821_v37 = vld [vmem:[%s3797_s7 + $0xb98] sm:$0xff] }
 0x16e   : > { %v1044_v15 = vld [vmem:[%s3797_s7 + $0x1290] sm:$0xff]  ;;  %1937 = vmatpush.msrb.mxu3 %v1444_v38  ;;  %v957_v38 = vld [vmem:[%s3797_s7 + $0xfd8] sm:$0xff] }
 0x16f   : > { %v1180_v39 = vld [vmem:[%s3797_s7 + $0x16d0] sm:$0xff]  ;;  %1879 = vmatpush.msrb.mxu0 %v1044_v15 }
 0x170   : > { %v1300_v40 = vld [vmem:[%s3797_s7 + $0x1a90] sm:$0xff]  ;;  %1898 = vmatpush.msrb.mxu1 %v1180_v39  ;;  %v4275_v39 = vld [vmem:[%s3788_s15 + $0x8] sm:$0xff] }
 0x171   : > { %v1436_v41 = vld [vmem:[%s3797_s7 + $0x1ed0] sm:$0xff]  ;;  %1919 = vmatpush.msrb.mxu2 %v1300_v40  ;;  %1830 = vmatmul.f32.vlgmr.msra.gmra.mxu1 %v4275_v39  ;;  %v557_v40 = vld [vmem:[%s3797_s7 + $0x358] sm:$0xff] }
 0x172   : > { %v1036_v20 = vld [vmem:[%s3797_s7 + $0x1250] sm:$0xff]  ;;  %1938 = vmatpush.msrb.mxu3 %v1436_v41  ;;  %v693_v41 = vld [vmem:[%s3797_s7 + $0x798] sm:$0xff] }
 0x173   : > { %v1172_v42 = vld [vmem:[%s3797_s7 + $0x1690] sm:$0xff]  ;;  %1880 = vmatpush.msrb.mxu0 %v1036_v20  ;;  %v1491_v4 = vpop.f32.mrf.mxu0 }
 0x174   : > { %v1292_v21 = vld [vmem:[%s3797_s7 + $0x1a50] sm:$0xff]  ;;  %1899 = vmatpush.msrb.mxu1 %v1172_v42  ;;  %v1512_v16 = vadd.f32 %v1511_v12, %v1491_v4  ;;  %v661_v4 = vld [vmem:[%s3797_s7 + $0x698] sm:$0xff] }
 0x175   : > { %v1428_v43 = vld [vmem:[%s3797_s7 + $0x1e90] sm:$0xff]  ;;  %1920 = vmatpush.msrb.mxu2 %v1292_v21  ;;  %v813_v21 = vld [vmem:[%s3797_s7 + $0xb58] sm:$0xff] }
 0x176   : > { %v1028_v44 = vld [vmem:[%s3797_s7 + $0x1210] sm:$0xff]  ;;  %1939 = vmatpush.msrb.mxu3 %v1428_v43  ;;  %v1532_v23 = vadd.f32 %v1531_v17, %v1512_v16  ;;  %v949_v43 = vld [vmem:[%s3797_s7 + $0xf98] sm:$0xff] }
 0x177   : > { %v1164_v45 = vld [vmem:[%s3797_s7 + $0x1650] sm:$0xff]  ;;  %1881 = vmatpush.msrb.mxu0 %v1028_v44  ;;  %v549_v44 = vld [vmem:[%s3797_s7 + $0x318] sm:$0xff] }
 0x178   : > { %v1284_v46 = vld [vmem:[%s3797_s7 + $0x1a10] sm:$0xff]  ;;  %1900 = vmatpush.msrb.mxu1 %v1164_v45  ;;  %v1552_v28 = vadd.f32 %v1551_v59, %v1532_v23  ;;  %v1611_v42 = vpop.f32.mrf.mxu2  ;;  %v509_v12 = vld [vmem:[%s3797_s7 + $0x1d8] sm:$0xff] }
 0x179   : > { %v1420_v26 = vld [vmem:[%s3797_s7 + $0x1e50] sm:$0xff]  ;;  %1921 = vmatpush.msrb.mxu2 %v1284_v46  ;;  %v685_v46 = vld [vmem:[%s3797_s7 + $0x758] sm:$0xff] }
 0x17a   : > { %v1020_v47 = vld [vmem:[%s3797_s7 + $0x11d0] sm:$0xff]  ;;  %1940 = vmatpush.msrb.mxu3 %v1420_v26  ;;  %v805_v26 = vld [vmem:[%s3797_s7 + $0xb18] sm:$0xff] }
 0x17b   : > { %v1156_v48 = vld [vmem:[%s3797_s7 + $0x1610] sm:$0xff]  ;;  %1882 = vmatpush.msrb.mxu0 %v1020_v47  ;;  %v1571_v31 = vpop.f32.mrf.mxu0  ;;  %v434_v47 = vld [vmem:[%s3820_s21] sm:$0xff]  ;;  %v901_v16 = vld [vmem:[%s3797_s7 + $0xe18] sm:$0xff] }
 0x17c   : > { %v1276_v49 = vld [vmem:[%s3797_s7 + $0x19d0] sm:$0xff]  ;;  %1901 = vmatpush.msrb.mxu1 %v1156_v48  ;;  %v1572_v34 = vadd.f32 %v1571_v31, %v1552_v28  ;;  %v501_v17 = vld [vmem:[%s3797_s7 + $0x198] sm:$0xff] }
 0x17d   : > { %v1412_v50 = vld [vmem:[%s3797_s7 + $0x1e10] sm:$0xff]  ;;  %1922 = vmatpush.msrb.mxu2 %v1276_v49  ;;  %v941_v49 = vld [vmem:[%s3797_s7 + $0xf58] sm:$0xff] }
 0x17e   : > { %v1012_v51 = vld [vmem:[%s3797_s7 + $0x1190] sm:$0xff]  ;;  %1941 = vmatpush.msrb.mxu3 %v1412_v50  ;;  %v1591_v15 = vpop.f32.mrf.mxu1  ;;  %v493_v23 = vld [vmem:[%s3797_s7 + $0x158] sm:$0xff] }
 0x17f   : > { %v1148_v52 = vld [vmem:[%s3797_s7 + $0x15d0] sm:$0xff]  ;;  %1883 = vmatpush.msrb.mxu0 %v1012_v51  ;;  %v1592_v20 = vadd.f32 %v1591_v15, %v1572_v34  ;;  %v885_v59 = vld [vmem:[%s3797_s7 + $0xd98] sm:$0xff] }
 0x180   : > { %v1268_v53 = vld [vmem:[%s3797_s7 + $0x1990] sm:$0xff]  ;;  %1902 = vmatpush.msrb.mxu1 %v1148_v52  ;;  %v541_v52 = vld [vmem:[%s3797_s7 + $0x2d8] sm:$0xff] }
 0x181   : > { %v1404_v54 = vld [vmem:[%s3797_s7 + $0x1dd0] sm:$0xff]  ;;  %1923 = vmatpush.msrb.mxu2 %v1268_v53  ;;  %v1612_v45 = vadd.f32 %v1611_v42, %v1592_v20  ;;  %v677_v53 = vld [vmem:[%s3797_s7 + $0x718] sm:$0xff] }
 0x182   : > { %v1004_v55 = vld [vmem:[%s3797_s7 + $0x1150] sm:$0xff]  ;;  %1942 = vmatpush.msrb.mxu3 %v1404_v54  ;;  %v1631_v48 = vpop.f32.mrf.mxu3  ;;  %v797_v54 = vld [vmem:[%s3797_s7 + $0xad8] sm:$0xff] }
 0x183   : > { %v1140_v56 = vld [vmem:[%s3797_s7 + $0x1590] sm:$0xff]  ;;  %1884 = vmatpush.msrb.mxu0 %v1004_v55  ;;  %v1632_v50 = vadd.f32 %v1631_v48, %v1612_v45  ;;  %v621_v28 = vld [vmem:[%s3797_s7 + $0x558] sm:$0xff] }
 0x184   : > { %v1260_v57 = vld [vmem:[%s3797_s7 + $0x1950] sm:$0xff]  ;;  %1903 = vmatpush.msrb.mxu1 %v1140_v56  ;;  %v4295_v56 = vld [vmem:[%s3788_s15 + $0x20] sm:$0xff]  ;;  %v613_v31 = vld [vmem:[%s3797_s7 + $0x518] sm:$0xff] }
 0x185   : > { %v1396_v58 = vld [vmem:[%s3797_s7 + $0x1d90] sm:$0xff]  ;;  %1924 = vmatpush.msrb.mxu2 %v1260_v57  ;;  %v2754_v55 = vadd.f32 %v1632_v50, %v434_v47  ;;  %v933_v57 = vld [vmem:[%s3797_s7 + $0xf18] sm:$0xff] }
 0x186   : > { %v996_v60 = vld [vmem:[%s3797_s7 + $0x1110] sm:$0xff]  ;;  %1943 = vmatpush.msrb.mxu3 %v1396_v58  ;;  %v4300_v58 = vld [vmem:[%s3788_s15 + $0x38] sm:$0xff] }
 0x187   : > { %v1132_v61 = vld [vmem:[%s3797_s7 + $0x1550] sm:$0xff]  ;;  %1885 = vmatpush.msrb.mxu0 %v996_v60  ;;  %v533_v60 = vld [vmem:[%s3797_s7 + $0x298] sm:$0xff]  ;;  %2762 = vst [vmem:[%s3820_s21] sm:$0xff] %v2754_v55 }
 0x188   : > { %v1252_v62 = vld [vmem:[%s3797_s7 + $0x1910] sm:$0xff]  ;;  %1904 = vmatpush.msrb.mxu1 %v1132_v61  ;;  %v669_v61 = vld [vmem:[%s3797_s7 + $0x6d8] sm:$0xff] }
 0x189   : > { %v1388_v63 = vld [vmem:[%s3797_s7 + $0x1d50] sm:$0xff]  ;;  %1925 = vmatpush.msrb.mxu2 %v1252_v62  ;;  %v789_v62 = vld [vmem:[%s3797_s7 + $0xa98] sm:$0xff] }
 0x18a   : > { %v988_v2 = vld [vmem:[%s3797_s7 + $0x10d0] sm:$0xff]  ;;  %1944 = vmatpush.msrb.mxu3 %v1388_v63  ;;  %v925_v63 = vld [vmem:[%s3797_s7 + $0xed8] sm:$0xff] }
 0x18b   : > { %v1124_v3 = vld [vmem:[%s3797_s7 + $0x1510] sm:$0xff]  ;;  %1886 = vmatpush.msrb.mxu0 %v988_v2  ;;  %v4309_v2 = vld [vmem:[%s3788_s15 + $0x28] sm:$0xff]  ;;  %v869_v34 = vld [vmem:[%s3797_s7 + $0xd18] sm:$0xff] }
 0x18c   : > { %v1244_v5 = vld [vmem:[%s3797_s7 + $0x18d0] sm:$0xff]  ;;  %1905 = vmatpush.msrb.mxu1 %v1124_v3  ;;  %v525_v3 = vld [vmem:[%s3797_s7 + $0x258] sm:$0xff] }
 0x18d   : > { %v1380_v7 = vld [vmem:[%s3797_s7 + $0x1d10] sm:$0xff]  ;;  %1926 = vmatpush.msrb.mxu2 %v1244_v5  ;;  %v781_v5 = vld [vmem:[%s3797_s7 + $0xa58] sm:$0xff] }
 0x18e   : > { %v980_v8 = vld [vmem:[%s3797_s7 + $0x1090] sm:$0xff]  ;;  %1945 = vmatpush.msrb.mxu3 %v1380_v7  ;;  %v917_v7 = vld [vmem:[%s3797_s7 + $0xe98] sm:$0xff] }
 0x18f   : > { %v1116_v9 = vld [vmem:[%s3797_s7 + $0x14d0] sm:$0xff]  ;;  %1887 = vmatpush.msrb.mxu0 %v980_v8  ;;  %v517_v8 = vld [vmem:[%s3797_s7 + $0x218] sm:$0xff] }
 0x190   : > { %v1236_v10 = vld [vmem:[%s3797_s7 + $0x1890] sm:$0xff]  ;;  %1906 = vmatpush.msrb.mxu1 %v1116_v9  ;;  %v653_v9 = vld [vmem:[%s3797_s7 + $0x658] sm:$0xff] }
 0x191   : > { %v1372_v11 = vld [vmem:[%s3797_s7 + $0x1cd0] sm:$0xff]  ;;  %1927 = vmatpush.msrb.mxu2 %v1236_v10  ;;  %v773_v10 = vld [vmem:[%s3797_s7 + $0xa18] sm:$0xff] }
 0x192   : > { %v972_v13 = vld [vmem:[%s3797_s7 + $0x1050] sm:$0xff]  ;;  %1946 = vmatpush.msrb.mxu3 %v1372_v11  ;;  %v909_v11 = vld [vmem:[%s3797_s7 + $0xe58] sm:$0xff] }
 0x193   : > { %v1108_v14 = vld [vmem:[%s3797_s7 + $0x1490] sm:$0xff]  ;;  %1888 = vmatpush.msrb.mxu0 %v972_v13  ;;  %v645_v13 = vld [vmem:[%s3797_s7 + $0x618] sm:$0xff] }
 0x194   : > { %v1228_v18 = vld [vmem:[%s3797_s7 + $0x1850] sm:$0xff]  ;;  %1907 = vmatpush.msrb.mxu1 %v1108_v14  ;;  %v765_v14 = vld [vmem:[%s3797_s7 + $0x9d8] sm:$0xff] }
 0x195   : > { %v1364_v19 = vld [vmem:[%s3797_s7 + $0x1c90] sm:$0xff]  ;;  %1928 = vmatpush.msrb.mxu2 %v1228_v18  ;;  %v637_v18 = vld [vmem:[%s3797_s7 + $0x5d8] sm:$0xff] }
 0x196   : > { %v964_v22 = vld [vmem:[%s3797_s7 + $0x1010] sm:$0xff]  ;;  %1947 = vmatpush.msrb.mxu3 %v1364_v19  ;;  %v757_v19 = vld [vmem:[%s3797_s7 + $0x998] sm:$0xff] }
 0x197   : > { %v1100_v24 = vld [vmem:[%s3797_s7 + $0x1450] sm:$0xff]  ;;  %1889 = vmatpush.msrb.mxu0 %v964_v22  ;;  %v893_v22 = vld [vmem:[%s3797_s7 + $0xdd8] sm:$0xff] }
 0x198   : > { %v1220_v25 = vld [vmem:[%s3797_s7 + $0x1810] sm:$0xff]  ;;  %1908 = vmatpush.msrb.mxu1 %v1100_v24  ;;  %1890 = vmatmul.f32.vlgmr.msrb.gmra.mxu0 %v4295_v56  ;;  %v629_v24 = vld [vmem:[%s3797_s7 + $0x598] sm:$0xff] }
 0x199   : > { %v1356_v27 = vld [vmem:[%s3797_s7 + $0x1c50] sm:$0xff]  ;;  %1929 = vmatpush.msrb.mxu2 %v1220_v25  ;;  %1954 = vmatpush.msra.mxu0 %v573_v0  ;;  %v749_v25 = vld [vmem:[%s3797_s7 + $0x958] sm:$0xff] }
 0x19a   : > { %v4255_v29 = vld [vmem:[%s3788_s15 + $0x10] sm:$0xff]  ;;  %1948 = vmatpush.msrb.mxu3 %v1356_v27  ;;  %v485_v27 = vld [vmem:[%s3797_s7 + $0x118] sm:$0xff] }
 0x19b   : > { %1850 = vmatmul.f32.vlgmr.msra.gmra.mxu2 %v4255_v29  ;;  %v1092_v1 = vld [vmem:[%s3797_s7 + $0x1410] sm:$0xff]  ;;  %1955 = vmatpush.msra.mxu0 %v565_v35  ;;  %v741_v0 = vld [vmem:[%s3797_s7 + $0x918] sm:$0xff] }
 0x19c   : > { %v1348_v33 = vld [vmem:[%s3797_s7 + $0x1c10] sm:$0xff]  ;;  %1994 = vmatpush.msra.mxu2 %v829_v30  ;;  %1909 = vmatpush.msrb.mxu1 %v1092_v1  ;;  %v877_v30 = vld [vmem:[%s3797_s7 + $0xd58] sm:$0xff] }
 0x19d   : > { %1949 = vmatpush.msrb.mxu3 %v1348_v33  ;;  %1956 = vmatpush.msra.mxu0 %v557_v40  ;;  %v4288_v51 = vld [vmem:[%s3788_s15 + $0x30] sm:$0xff]  ;;  %v477_v1 = vld [vmem:[%s3797_s7 + $0xd8] sm:$0xff] }
 0x19e   : > { %1974 = vmatpush.msra.mxu1 %v701_v36  ;;  %1995 = vmatpush.msra.mxu2 %v821_v37  ;;  %v733_v33 = vld [vmem:[%s3797_s7 + $0x8d8] sm:$0xff] }
 0x19f   : > { %2014 = vmatpush.msra.mxu3 %v957_v38  ;;  %1957 = vmatpush.msra.mxu0 %v549_v44  ;;  %v469_v35 = vld [vmem:[%s3797_s7 + $0x98] sm:$0xff] }
 0x1a0   : > { %1975 = vmatpush.msra.mxu1 %v693_v41  ;;  %1996 = vmatpush.msra.mxu2 %v813_v21  ;;  %v605_v36 = vld [vmem:[%s3797_s7 + $0x4d8] sm:$0xff] }
 0x1a1   : > { %2015 = vmatpush.msra.mxu3 %v949_v43  ;;  %1958 = vmatpush.msra.mxu0 %v541_v52  ;;  %v725_v37 = vld [vmem:[%s3797_s7 + $0x898] sm:$0xff] }
 0x1a2   : > { %1976 = vmatpush.msra.mxu1 %v685_v46  ;;  %1997 = vmatpush.msra.mxu2 %v805_v26  ;;  %v861_v38 = vld [vmem:[%s3797_s7 + $0xcd8] sm:$0xff] }
 0x1a3   : > { %1930 = vmatmul.f32.vlgmr.msrb.gmra.mxu2 %v4288_v51  ;;  %2016 = vmatpush.msra.mxu3 %v941_v49  ;;  %v461_v15 = vld [vmem:[%s3797_s7 + $0x58] sm:$0xff] }
 0x1a4   : > { %1950 = vmatmul.f32.vlgmr.msrb.gmra.mxu3 %v4300_v58  ;;  %1977 = vmatpush.msra.mxu1 %v677_v53  ;;  %v597_v40 = vld [vmem:[%s3797_s7 + $0x498] sm:$0xff] }
 0x1a5   : > { %1998 = vmatpush.msra.mxu2 %v797_v54  ;;  %2017 = vmatpush.msra.mxu3 %v933_v57  ;;  %v717_v41 = vld [vmem:[%s3797_s7 + $0x858] sm:$0xff] }
 0x1a6   : > { %1910 = vmatmul.f32.vlgmr.msrb.gmra.mxu1 %v4309_v2  ;;  %1959 = vmatpush.msra.mxu0 %v533_v60  ;;  %v853_v20 = vld [vmem:[%s3797_s7 + $0xc98] sm:$0xff] }
 0x1a7   : > { %1978 = vmatpush.msra.mxu1 %v669_v61  ;;  %1999 = vmatpush.msra.mxu2 %v789_v62  ;;  %v453_v42 = vld [vmem:[%s3797_s7 + $0x18] sm:$0xff] }
 0x1a8   : > { %2018 = vmatpush.msra.mxu3 %v925_v63  ;;  %1960 = vmatpush.msra.mxu0 %v525_v3  ;;  %v589_v21 = vld [vmem:[%s3797_s7 + $0x458] sm:$0xff] }
 0x1a9   : > { %1979 = vmatpush.msra.mxu1 %v661_v4  ;;  %2000 = vmatpush.msra.mxu2 %v781_v5  ;;  %v709_v43 = vld [vmem:[%s3797_s7 + $0x818] sm:$0xff] }
 0x1aa   : > { %2019 = vmatpush.msra.mxu3 %v917_v7  ;;  %1961 = vmatpush.msra.mxu0 %v517_v8  ;;  %v845_v44 = vld [vmem:[%s3797_s7 + $0xc58] sm:$0xff] }
 0x1ab   : > { %1980 = vmatpush.msra.mxu1 %v653_v9  ;;  %2001 = vmatpush.msra.mxu2 %v773_v10  ;;  %v1085_v45 = vld [vmem:[%s3797_s7 + $0x13d8] sm:$0xff] }
 0x1ac   : > { %2020 = vmatpush.msra.mxu3 %v909_v11  ;;  %1962 = vmatpush.msra.mxu0 %v509_v12  ;;  %v1341_v46 = vld [vmem:[%s3797_s7 + $0x1bd8] sm:$0xff] }
 0x1ad   : > { %1981 = vmatpush.msra.mxu1 %v645_v13  ;;  %2002 = vmatpush.msra.mxu2 %v765_v14  ;;  %v581_v26 = vld [vmem:[%s3797_s7 + $0x418] sm:$0xff] }
 0x1ae   : > { %2021 = vmatpush.msra.mxu3 %v901_v16  ;;  %1963 = vmatpush.msra.mxu0 %v501_v17  ;;  %v837_v47 = vld [vmem:[%s3797_s7 + $0xc18] sm:$0xff] }
 0x1af   : > { %1982 = vmatpush.msra.mxu1 %v637_v18  ;;  %2003 = vmatpush.msra.mxu2 %v757_v19  ;;  %v1077_v48 = vld [vmem:[%s3797_s7 + $0x1398] sm:$0xff] }
 0x1b0   : > { %2022 = vmatpush.msra.mxu3 %v893_v22  ;;  %1964 = vmatpush.msra.mxu0 %v493_v23  ;;  %v1213_v49 = vld [vmem:[%s3797_s7 + $0x17d8] sm:$0xff] }
 0x1b1   : > { %1983 = vmatpush.msra.mxu1 %v629_v24  ;;  %2004 = vmatpush.msra.mxu2 %v749_v25  ;;  %v1333_v50 = vld [vmem:[%s3797_s7 + $0x1b98] sm:$0xff] }
 0x1b2   : > { %2023 = vmatpush.msra.mxu3 %v885_v59  ;;  %1965 = vmatpush.msra.mxu0 %v485_v27  ;;  %v1469_v52 = vld [vmem:[%s3797_s7 + $0x1fd8] sm:$0xff] }
 0x1b3   : > { %1984 = vmatpush.msra.mxu1 %v621_v28  ;;  %2005 = vmatpush.msra.mxu2 %v741_v0  ;;  %v1069_v53 = vld [vmem:[%s3797_s7 + $0x1358] sm:$0xff] }
 0x1b4   : > { %2024 = vmatpush.msra.mxu3 %v877_v30  ;;  %1966 = vmatpush.msra.mxu0 %v477_v1  ;;  %v1205_v54 = vld [vmem:[%s3797_s7 + $0x1798] sm:$0xff] }
 0x1b5   : > { %1985 = vmatpush.msra.mxu1 %v613_v31  ;;  %2006 = vmatpush.msra.mxu2 %v733_v33  ;;  %v1325_v55 = vld [vmem:[%s3797_s7 + $0x1b58] sm:$0xff] }
 0x1b6   : > { %2025 = vmatpush.msra.mxu3 %v869_v34  ;;  %1967 = vmatpush.msra.mxu0 %v469_v35  ;;  %v1461_v57 = vld [vmem:[%s3797_s7 + $0x1f98] sm:$0xff] }
 0x1b7   : > { %1986 = vmatpush.msra.mxu1 %v605_v36  ;;  %2007 = vmatpush.msra.mxu2 %v725_v37  ;;  %v1061_v60 = vld [vmem:[%s3797_s7 + $0x1318] sm:$0xff] }
 0x1b8   : > { %2026 = vmatpush.msra.mxu3 %v861_v38  ;;  %1968 = vmatpush.msra.mxu0 %v461_v15  ;;  %v1197_v61 = vld [vmem:[%s3797_s7 + $0x1758] sm:$0xff] }
 0x1b9   : > { %1987 = vmatpush.msra.mxu1 %v597_v40  ;;  %2008 = vmatpush.msra.mxu2 %v717_v41  ;;  %v1317_v62 = vld [vmem:[%s3797_s7 + $0x1b18] sm:$0xff]  ;;  %v1651_v41 = vpop.f32.mrf.mxu0 }
 0x1ba   : > { %2027 = vmatpush.msra.mxu3 %v853_v20  ;;  %1969 = vmatpush.msra.mxu0 %v453_v42  ;;  %v1453_v63 = vld [vmem:[%s3797_s7 + $0x1f58] sm:$0xff] }
 0x1bb   : > { %1988 = vmatpush.msra.mxu1 %v589_v21  ;;  %2009 = vmatpush.msra.mxu2 %v709_v43  ;;  %v1053_v3 = vld [vmem:[%s3797_s7 + $0x12d8] sm:$0xff] }
 0x1bc   : > { %2028 = vmatpush.msra.mxu3 %v845_v44  ;;  %2034 = vmatpush.msrb.mxu0 %v1085_v45  ;;  %v1189_v4 = vld [vmem:[%s3797_s7 + $0x1718] sm:$0xff] }
 0x1bd   : > { %2074 = vmatpush.msrb.mxu2 %v1341_v46  ;;  %1989 = vmatpush.msra.mxu1 %v581_v26  ;;  %v1309_v5 = vld [vmem:[%s3797_s7 + $0x1ad8] sm:$0xff]  ;;  %v1671_v46 = vpop.f32.mrf.mxu1 }
 0x1be   : > { %2029 = vmatpush.msra.mxu3 %v837_v47  ;;  %2035 = vmatpush.msrb.mxu0 %v1077_v48  ;;  %v1445_v7 = vld [vmem:[%s3797_s7 + $0x1f18] sm:$0xff]  ;;  %v1672_v48 = vadd.f32 %v1671_v46, %v1651_v41  ;;  %v646_v41 = vld [vmem:[%s3797_s7 + $0x620] sm:$0xff] }
 0x1bf   : > { %2054 = vmatpush.msrb.mxu1 %v1213_v49  ;;  %2075 = vmatpush.msrb.mxu2 %v1333_v50  ;;  %v1045_v8 = vld [vmem:[%s3797_s7 + $0x1298] sm:$0xff]  ;;  %v1691_v49 = vpop.f32.mrf.mxu2  ;;  %v494_v46 = vld [vmem:[%s3797_s7 + $0x160] sm:$0xff] }
 0x1c0   : > { %2094 = vmatpush.msrb.mxu3 %v1469_v52  ;;  %2036 = vmatpush.msrb.mxu0 %v1069_v53  ;;  %v1181_v9 = vld [vmem:[%s3797_s7 + $0x16d8] sm:$0xff] }
 0x1c1   : > { %2055 = vmatpush.msrb.mxu1 %v1205_v54  ;;  %2076 = vmatpush.msrb.mxu2 %v1325_v55  ;;  %v1301_v10 = vld [vmem:[%s3797_s7 + $0x1a98] sm:$0xff]  ;;  %v1692_v54 = vadd.f32 %v1691_v49, %v1672_v48  ;;  %v886_v48 = vld [vmem:[%s3797_s7 + $0xda0] sm:$0xff] }
 0x1c2   : > { %2095 = vmatpush.msrb.mxu3 %v1461_v57  ;;  %2037 = vmatpush.msrb.mxu0 %v1061_v60  ;;  %v1437_v11 = vld [vmem:[%s3797_s7 + $0x1ed8] sm:$0xff]  ;;  %v1711_v60 = vpop.f32.mrf.mxu3  ;;  %v486_v49 = vld [vmem:[%s3797_s7 + $0x120] sm:$0xff] }
 0x1c3   : > { %2056 = vmatpush.msrb.mxu1 %v1197_v61  ;;  %2077 = vmatpush.msrb.mxu2 %v1317_v62  ;;  %v1037_v12 = vld [vmem:[%s3797_s7 + $0x1258] sm:$0xff]  ;;  %v1712_v62 = vadd.f32 %v1711_v60, %v1692_v54  ;;  %v478_v54 = vld [vmem:[%s3797_s7 + $0xe0] sm:$0xff] }
 0x1c4   : > { %2096 = vmatpush.msrb.mxu3 %v1453_v63  ;;  %2038 = vmatpush.msrb.mxu0 %v1053_v3  ;;  %v1173_v13 = vld [vmem:[%s3797_s7 + $0x1698] sm:$0xff]  ;;  %v574_v63 = vld [vmem:[%s3797_s7 + $0x3e0] sm:$0xff] }
 0x1c5   : > { %2057 = vmatpush.msrb.mxu1 %v1189_v4  ;;  %2078 = vmatpush.msrb.mxu2 %v1309_v5  ;;  %v1293_v14 = vld [vmem:[%s3797_s7 + $0x1a58] sm:$0xff]  ;;  %v830_v3 = vld [vmem:[%s3797_s7 + $0xbe0] sm:$0xff]  ;;  %v1731_v5 = vpop.f32.mrf.mxu0 }
 0x1c6   : > { %2097 = vmatpush.msrb.mxu3 %v1445_v7  ;;  %2039 = vmatpush.msrb.mxu0 %v1045_v8  ;;  %v1429_v16 = vld [vmem:[%s3797_s7 + $0x1e98] sm:$0xff]  ;;  %v1732_v8 = vadd.f32 %v1731_v5, %v1712_v62  ;;  %v870_v60 = vld [vmem:[%s3797_s7 + $0xd20] sm:$0xff] }
 0x1c7   : > { %2058 = vmatpush.msrb.mxu1 %v1181_v9  ;;  %2079 = vmatpush.msrb.mxu2 %v1301_v10  ;;  %v1029_v17 = vld [vmem:[%s3797_s7 + $0x1218] sm:$0xff]  ;;  %v702_v9 = vld [vmem:[%s3797_s7 + $0x7e0] sm:$0xff] }
 0x1c8   : > { %2098 = vmatpush.msrb.mxu3 %v1437_v11  ;;  %v1165_v18 = vld [vmem:[%s3797_s7 + $0x1658] sm:$0xff]  ;;  %2040 = vmatpush.msrb.mxu0 %v1037_v12  ;;  %v822_v10 = vld [vmem:[%s3797_s7 + $0xba0] sm:$0xff]  ;;  %v1751_v12 = vpop.f32.mrf.mxu1 }
 0x1c9   : > { %2059 = vmatpush.msrb.mxu1 %v1173_v13  ;;  %v1285_v19 = vld [vmem:[%s3797_s7 + $0x1a18] sm:$0xff]  ;;  %2080 = vmatpush.msrb.mxu2 %v1293_v14  ;;  %v958_v11 = vld [vmem:[%s3797_s7 + $0xfe0] sm:$0xff]  ;;  %v1771_v14 = vpop.f32.mrf.mxu2 }
 0x1ca   : > { %v1421_v22 = vld [vmem:[%s3797_s7 + $0x1e58] sm:$0xff]  ;;  %2099 = vmatpush.msrb.mxu3 %v1429_v16  ;;  %2041 = vmatpush.msrb.mxu0 %v1029_v17  ;;  %v694_v13 = vld [vmem:[%s3797_s7 + $0x7a0] sm:$0xff] }
 0x1cb   : > { %v1021_v23 = vld [vmem:[%s3797_s7 + $0x11d8] sm:$0xff]  ;;  %2060 = vmatpush.msrb.mxu1 %v1165_v18  ;;  %2081 = vmatpush.msrb.mxu2 %v1285_v19  ;;  %v814_v16 = vld [vmem:[%s3797_s7 + $0xb60] sm:$0xff] }
 0x1cc   : > { %v1157_v24 = vld [vmem:[%s3797_s7 + $0x1618] sm:$0xff]  ;;  %2100 = vmatpush.msrb.mxu3 %v1421_v22  ;;  %2042 = vmatpush.msrb.mxu0 %v1021_v23  ;;  %v950_v17 = vld [vmem:[%s3797_s7 + $0xfa0] sm:$0xff]  ;;  %v435_v23 = vld [vmem:[%s3820_s21 + $0x8] sm:$0xff] }
 0x1cd   : > { %v1277_v25 = vld [vmem:[%s3797_s7 + $0x19d8] sm:$0xff]  ;;  %2061 = vmatpush.msrb.mxu1 %v1157_v24  ;;  %2010 = vmatmul.f32.vlgmr.msra.gmra.mxu2 %v4255_v29  ;;  %v566_v29 = vld [vmem:[%s3797_s7 + $0x3a0] sm:$0xff]  ;;  %v1791_v24 = vpop.f32.mrf.mxu3 }
 0x1ce   : > { %v1413_v59 = vld [vmem:[%s3797_s7 + $0x1e18] sm:$0xff]  ;;  %2082 = vmatpush.msrb.mxu2 %v1277_v25  ;;  %1970 = vmatmul.f32.vlgmr.msra.gmra.mxu0 %v4262_v32  ;;  %v558_v32 = vld [vmem:[%s3797_s7 + $0x360] sm:$0xff] }
 0x1cf   : > { %v1013_v27 = vld [vmem:[%s3797_s7 + $0x1198] sm:$0xff]  ;;  %2101 = vmatpush.msrb.mxu3 %v1413_v59  ;;  %1990 = vmatmul.f32.vlgmr.msra.gmra.mxu1 %v4275_v39  ;;  %v550_v18 = vld [vmem:[%s3797_s7 + $0x320] sm:$0xff] }
 0x1d0   : > { %v1149_v28 = vld [vmem:[%s3797_s7 + $0x15d8] sm:$0xff]  ;;  %2043 = vmatpush.msrb.mxu0 %v1013_v27  ;;  %2030 = vmatmul.f32.vlgmr.msra.gmra.mxu3 %v4267_v6  ;;  %v1752_v6 = vadd.f32 %v1751_v12, %v1732_v8  ;;  %v686_v39 = vld [vmem:[%s3797_s7 + $0x760] sm:$0xff] }
 0x1d1   : > { %v1269_v0 = vld [vmem:[%s3797_s7 + $0x1998] sm:$0xff]  ;;  %2062 = vmatpush.msrb.mxu1 %v1149_v28  ;;  %v806_v22 = vld [vmem:[%s3797_s7 + $0xb20] sm:$0xff] }
 0x1d2   : > { %v1405_v30 = vld [vmem:[%s3797_s7 + $0x1dd8] sm:$0xff]  ;;  %2083 = vmatpush.msrb.mxu2 %v1269_v0  ;;  %v1772_v19 = vadd.f32 %v1771_v14, %v1752_v6  ;;  %v942_v25 = vld [vmem:[%s3797_s7 + $0xf60] sm:$0xff] }
 0x1d3   : > { %v1005_v1 = vld [vmem:[%s3797_s7 + $0x1158] sm:$0xff]  ;;  %2102 = vmatpush.msrb.mxu3 %v1405_v30  ;;  %v542_v27 = vld [vmem:[%s3797_s7 + $0x2e0] sm:$0xff] }
 0x1d4   : > { %v1141_v31 = vld [vmem:[%s3797_s7 + $0x1598] sm:$0xff]  ;;  %2044 = vmatpush.msrb.mxu0 %v1005_v1  ;;  %v1792_v59 = vadd.f32 %v1791_v24, %v1772_v19  ;;  %v678_v28 = vld [vmem:[%s3797_s7 + $0x720] sm:$0xff] }
 0x1d5   : > { %v1261_v33 = vld [vmem:[%s3797_s7 + $0x1958] sm:$0xff]  ;;  %2063 = vmatpush.msrb.mxu1 %v1141_v31  ;;  %v798_v0 = vld [vmem:[%s3797_s7 + $0xae0] sm:$0xff] }
 0x1d6   : > { %v1397_v34 = vld [vmem:[%s3797_s7 + $0x1d98] sm:$0xff]  ;;  %2084 = vmatpush.msrb.mxu2 %v1261_v33  ;;  %v2755_v30 = vadd.f32 %v1792_v59, %v435_v23  ;;  %v934_v1 = vld [vmem:[%s3797_s7 + $0xf20] sm:$0xff] }
 0x1d7   : > { %v997_v35 = vld [vmem:[%s3797_s7 + $0x1118] sm:$0xff]  ;;  %2103 = vmatpush.msrb.mxu3 %v1397_v34  ;;  %v670_v31 = vld [vmem:[%s3797_s7 + $0x6e0] sm:$0xff] }
 0x1d8   : > { %v1133_v36 = vld [vmem:[%s3797_s7 + $0x1558] sm:$0xff]  ;;  %2045 = vmatpush.msrb.mxu0 %v997_v35  ;;  %2763 = vst [vmem:[%s3820_s21 + $0x8] sm:$0xff] %v2755_v30  ;;  %v790_v33 = vld [vmem:[%s3797_s7 + $0xaa0] sm:$0xff] }
 0x1d9   : > { %v1253_v37 = vld [vmem:[%s3797_s7 + $0x1918] sm:$0xff]  ;;  %2064 = vmatpush.msrb.mxu1 %v1133_v36  ;;  %v926_v34 = vld [vmem:[%s3797_s7 + $0xee0] sm:$0xff] }
 0x1da   : > { %v1389_v38 = vld [vmem:[%s3797_s7 + $0x1d58] sm:$0xff]  ;;  %2085 = vmatpush.msrb.mxu2 %v1253_v37  ;;  %v662_v35 = vld [vmem:[%s3797_s7 + $0x6a0] sm:$0xff] }
 0x1db   : > { %v989_v15 = vld [vmem:[%s3797_s7 + $0x10d8] sm:$0xff]  ;;  %2104 = vmatpush.msrb.mxu3 %v1389_v38  ;;  %v918_v36 = vld [vmem:[%s3797_s7 + $0xea0] sm:$0xff] }
 0x1dc   : > { %v1125_v40 = vld [vmem:[%s3797_s7 + $0x1518] sm:$0xff]  ;;  %2046 = vmatpush.msrb.mxu0 %v989_v15  ;;  %v518_v37 = vld [vmem:[%s3797_s7 + $0x220] sm:$0xff] }
 0x1dd   : > { %v1245_v20 = vld [vmem:[%s3797_s7 + $0x18d8] sm:$0xff]  ;;  %2065 = vmatpush.msrb.mxu1 %v1125_v40  ;;  %v654_v38 = vld [vmem:[%s3797_s7 + $0x660] sm:$0xff] }
 0x1de   : > { %v1381_v42 = vld [vmem:[%s3797_s7 + $0x1d18] sm:$0xff]  ;;  %2086 = vmatpush.msrb.mxu2 %v1245_v20  ;;  %v774_v15 = vld [vmem:[%s3797_s7 + $0xa20] sm:$0xff] }
 0x1df   : > { %v981_v21 = vld [vmem:[%s3797_s7 + $0x1098] sm:$0xff]  ;;  %2105 = vmatpush.msrb.mxu3 %v1381_v42  ;;  %v510_v40 = vld [vmem:[%s3797_s7 + $0x1e0] sm:$0xff] }
 0x1e0   : > { %v1117_v43 = vld [vmem:[%s3797_s7 + $0x14d8] sm:$0xff]  ;;  %2047 = vmatpush.msrb.mxu0 %v981_v21  ;;  %v766_v20 = vld [vmem:[%s3797_s7 + $0x9e0] sm:$0xff] }
 0x1e1   : > { %v1237_v44 = vld [vmem:[%s3797_s7 + $0x1898] sm:$0xff]  ;;  %2066 = vmatpush.msrb.mxu1 %v1117_v43  ;;  %v902_v42 = vld [vmem:[%s3797_s7 + $0xe20] sm:$0xff] }
 0x1e2   : > { %v1373_v45 = vld [vmem:[%s3797_s7 + $0x1cd8] sm:$0xff]  ;;  %2087 = vmatpush.msrb.mxu2 %v1237_v44  ;;  %v502_v21 = vld [vmem:[%s3797_s7 + $0x1a0] sm:$0xff] }
 0x1e3   : > { %v973_v26 = vld [vmem:[%s3797_s7 + $0x1058] sm:$0xff]  ;;  %2106 = vmatpush.msrb.mxu3 %v1373_v45  ;;  %v638_v43 = vld [vmem:[%s3797_s7 + $0x5e0] sm:$0xff] }
 0x1e4   : > { %v1109_v47 = vld [vmem:[%s3797_s7 + $0x1498] sm:$0xff]  ;;  %2048 = vmatpush.msrb.mxu0 %v973_v26  ;;  %v758_v44 = vld [vmem:[%s3797_s7 + $0x9a0] sm:$0xff] }
 0x1e5   : > { %v1229_v50 = vld [vmem:[%s3797_s7 + $0x1858] sm:$0xff]  ;;  %2067 = vmatpush.msrb.mxu1 %v1109_v47  ;;  %v894_v45 = vld [vmem:[%s3797_s7 + $0xde0] sm:$0xff] }
 0x1e6   : > { %v1365_v52 = vld [vmem:[%s3797_s7 + $0x1c98] sm:$0xff]  ;;  %2088 = vmatpush.msrb.mxu2 %v1229_v50  ;;  %v630_v26 = vld [vmem:[%s3797_s7 + $0x5a0] sm:$0xff] }
 0x1e7   : > { %v965_v53 = vld [vmem:[%s3797_s7 + $0x1018] sm:$0xff]  ;;  %2107 = vmatpush.msrb.mxu3 %v1365_v52  ;;  %v750_v47 = vld [vmem:[%s3797_s7 + $0x960] sm:$0xff] }
 0x1e8   : > { %v1101_v55 = vld [vmem:[%s3797_s7 + $0x1458] sm:$0xff]  ;;  %2049 = vmatpush.msrb.mxu0 %v965_v53  ;;  %v622_v50 = vld [vmem:[%s3797_s7 + $0x560] sm:$0xff] }
 0x1e9   : > { %v1221_v57 = vld [vmem:[%s3797_s7 + $0x1818] sm:$0xff]  ;;  %2068 = vmatpush.msrb.mxu1 %v1101_v55  ;;  %2050 = vmatmul.f32.vlgmr.msrb.gmra.mxu0 %v4295_v56  ;;  %v526_v56 = vld [vmem:[%s3797_s7 + $0x260] sm:$0xff] }
 0x1ea   : > { %v1357_v61 = vld [vmem:[%s3797_s7 + $0x1c58] sm:$0xff]  ;;  %2089 = vmatpush.msrb.mxu2 %v1221_v57  ;;  %2114 = vmatpush.msra.mxu0 %v574_v63  ;;  %v742_v52 = vld [vmem:[%s3797_s7 + $0x920] sm:$0xff] }
 0x1eb   : > { %v1093_v4 = vld [vmem:[%s3797_s7 + $0x1418] sm:$0xff]  ;;  %2108 = vmatpush.msrb.mxu3 %v1357_v61  ;;  %2090 = vmatmul.f32.vlgmr.msrb.gmra.mxu2 %v4288_v51  ;;  %v534_v51 = vld [vmem:[%s3797_s7 + $0x2a0] sm:$0xff] }
 0x1ec   : > { %v1349_v7 = vld [vmem:[%s3797_s7 + $0x1c18] sm:$0xff]  ;;  %2154 = vmatpush.msra.mxu2 %v830_v3  ;;  %2069 = vmatpush.msrb.mxu1 %v1093_v4  ;;  %v878_v53 = vld [vmem:[%s3797_s7 + $0xd60] sm:$0xff] }
 0x1ed   : > { %2109 = vmatpush.msrb.mxu3 %v1349_v7  ;;  %2115 = vmatpush.msra.mxu0 %v566_v29  ;;  %v614_v55 = vld [vmem:[%s3797_s7 + $0x520] sm:$0xff] }
 0x1ee   : > { %2134 = vmatpush.msra.mxu1 %v702_v9  ;;  %2155 = vmatpush.msra.mxu2 %v822_v10  ;;  %v734_v57 = vld [vmem:[%s3797_s7 + $0x8e0] sm:$0xff] }
 0x1ef   : > { %2174 = vmatpush.msra.mxu3 %v958_v11  ;;  %2116 = vmatpush.msra.mxu0 %v558_v32  ;;  %v470_v61 = vld [vmem:[%s3797_s7 + $0xa0] sm:$0xff] }
 0x1f0   : > { %2135 = vmatpush.msra.mxu1 %v694_v13  ;;  %2156 = vmatpush.msra.mxu2 %v814_v16  ;;  %v606_v62 = vld [vmem:[%s3797_s7 + $0x4e0] sm:$0xff] }
 0x1f1   : > { %2175 = vmatpush.msra.mxu3 %v950_v17  ;;  %2117 = vmatpush.msra.mxu0 %v550_v18  ;;  %v726_v63 = vld [vmem:[%s3797_s7 + $0x8a0] sm:$0xff] }
 0x1f2   : > { %2136 = vmatpush.msra.mxu1 %v686_v39  ;;  %2157 = vmatpush.msra.mxu2 %v806_v22  ;;  %v862_v3 = vld [vmem:[%s3797_s7 + $0xce0] sm:$0xff] }
 0x1f3   : > { %2176 = vmatpush.msra.mxu3 %v942_v25  ;;  %2118 = vmatpush.msra.mxu0 %v542_v27  ;;  %v462_v4 = vld [vmem:[%s3797_s7 + $0x60] sm:$0xff] }
 0x1f4   : > { %2110 = vmatmul.f32.vlgmr.msrb.gmra.mxu3 %v4300_v58  ;;  %2137 = vmatpush.msra.mxu1 %v678_v28  ;;  %v782_v58 = vld [vmem:[%s3797_s7 + $0xa60] sm:$0xff] }
 0x1f5   : > { %2158 = vmatpush.msra.mxu2 %v798_v0  ;;  %2177 = vmatpush.msra.mxu3 %v934_v1  ;;  %v598_v5 = vld [vmem:[%s3797_s7 + $0x4a0] sm:$0xff] }
 0x1f6   : > { %2070 = vmatmul.f32.vlgmr.msrb.gmra.mxu1 %v4309_v2  ;;  %2119 = vmatpush.msra.mxu0 %v534_v51  ;;  %v910_v2 = vld [vmem:[%s3797_s7 + $0xe60] sm:$0xff] }
 0x1f7   : > { %2138 = vmatpush.msra.mxu1 %v670_v31  ;;  %2159 = vmatpush.msra.mxu2 %v790_v33  ;;  %v718_v7 = vld [vmem:[%s3797_s7 + $0x860] sm:$0xff] }
 0x1f8   : > { %2178 = vmatpush.msra.mxu3 %v926_v34  ;;  %2120 = vmatpush.msra.mxu0 %v526_v56  ;;  %v854_v8 = vld [vmem:[%s3797_s7 + $0xca0] sm:$0xff] }
 0x1f9   : > { %2139 = vmatpush.msra.mxu1 %v662_v35  ;;  %2160 = vmatpush.msra.mxu2 %v782_v58  ;;  %v454_v29 = vld [vmem:[%s3797_s7 + $0x20] sm:$0xff] }
 0x1fa   : > { %2179 = vmatpush.msra.mxu3 %v918_v36  ;;  %2121 = vmatpush.msra.mxu0 %v518_v37  ;;  %v590_v9 = vld [vmem:[%s3797_s7 + $0x460] sm:$0xff] }
 0x1fb   : > { %2140 = vmatpush.msra.mxu1 %v654_v38  ;;  %2161 = vmatpush.msra.mxu2 %v774_v15  ;;  %v710_v10 = vld [vmem:[%s3797_s7 + $0x820] sm:$0xff] }
 0x1fc   : > { %2180 = vmatpush.msra.mxu3 %v910_v2  ;;  %2122 = vmatpush.msra.mxu0 %v510_v40  ;;  %v846_v11 = vld [vmem:[%s3797_s7 + $0xc60] sm:$0xff] }
 0x1fd   : > { %2141 = vmatpush.msra.mxu1 %v646_v41  ;;  %2162 = vmatpush.msra.mxu2 %v766_v20  ;;  %v1086_v12 = vld [vmem:[%s3797_s7 + $0x13e0] sm:$0xff] }
 0x1fe   : > { %2181 = vmatpush.msra.mxu3 %v902_v42  ;;  %2123 = vmatpush.msra.mxu0 %v502_v21  ;;  %v1342_v32 = vld [vmem:[%s3797_s7 + $0x1be0] sm:$0xff] }
 0x1ff   : > { %2142 = vmatpush.msra.mxu1 %v638_v43  ;;  %2163 = vmatpush.msra.mxu2 %v758_v44  ;;  %v582_v13 = vld [vmem:[%s3797_s7 + $0x420] sm:$0xff] }
 0x200   : > { %2182 = vmatpush.msra.mxu3 %v894_v45  ;;  %2124 = vmatpush.msra.mxu0 %v494_v46  ;;  %v838_v6 = vld [vmem:[%s3797_s7 + $0xc20] sm:$0xff] }
 0x201   : > { %2143 = vmatpush.msra.mxu1 %v630_v26  ;;  %2164 = vmatpush.msra.mxu2 %v750_v47  ;;  %v1078_v14 = vld [vmem:[%s3797_s7 + $0x13a0] sm:$0xff] }
 0x202   : > { %2183 = vmatpush.msra.mxu3 %v886_v48  ;;  %2125 = vmatpush.msra.mxu0 %v486_v49  ;;  %v1214_v16 = vld [vmem:[%s3797_s7 + $0x17e0] sm:$0xff] }
 0x203   : > { %2144 = vmatpush.msra.mxu1 %v622_v50  ;;  %2165 = vmatpush.msra.mxu2 %v742_v52  ;;  %v1334_v17 = vld [vmem:[%s3797_s7 + $0x1ba0] sm:$0xff] }
 0x204   : > { %2184 = vmatpush.msra.mxu3 %v878_v53  ;;  %2126 = vmatpush.msra.mxu0 %v478_v54  ;;  %v1470_v18 = vld [vmem:[%s3797_s7 + $0x1fe0] sm:$0xff] }
 0x205   : > { %2145 = vmatpush.msra.mxu1 %v614_v55  ;;  %2166 = vmatpush.msra.mxu2 %v734_v57  ;;  %v1070_v19 = vld [vmem:[%s3797_s7 + $0x1360] sm:$0xff]  ;;  %v1811_v57 = vpop.f32.mrf.mxu0 }
 0x206   : > { %2185 = vmatpush.msra.mxu3 %v870_v60  ;;  %2127 = vmatpush.msra.mxu0 %v470_v61  ;;  %v1206_v39 = vld [vmem:[%s3797_s7 + $0x17a0] sm:$0xff] }
 0x207   : > { %2146 = vmatpush.msra.mxu1 %v606_v62  ;;  %2167 = vmatpush.msra.mxu2 %v726_v63  ;;  %v1326_v22 = vld [vmem:[%s3797_s7 + $0x1b60] sm:$0xff] }
 0x208   : > { %2186 = vmatpush.msra.mxu3 %v862_v3  ;;  %2128 = vmatpush.msra.mxu0 %v462_v4  ;;  %v1462_v23 = vld [vmem:[%s3797_s7 + $0x1fa0] sm:$0xff] }
 0x209   : > { %2147 = vmatpush.msra.mxu1 %v598_v5  ;;  %2168 = vmatpush.msra.mxu2 %v718_v7  ;;  %v1062_v24 = vld [vmem:[%s3797_s7 + $0x1320] sm:$0xff]  ;;  %v1831_v5 = vpop.f32.mrf.mxu1 }
 0x20a   : > { %2187 = vmatpush.msra.mxu3 %v854_v8  ;;  %2129 = vmatpush.msra.mxu0 %v454_v29  ;;  %v1198_v25 = vld [vmem:[%s3797_s7 + $0x1760] sm:$0xff]  ;;  %v1832_v29 = vadd.f32 %v1831_v5, %v1811_v57  ;;  %v663_v57 = vld [vmem:[%s3797_s7 + $0x6a8] sm:$0xff] }
 0x20b   : > { %2148 = vmatpush.msra.mxu1 %v590_v9  ;;  %2169 = vmatpush.msra.mxu2 %v710_v10  ;;  %v1318_v59 = vld [vmem:[%s3797_s7 + $0x1b20] sm:$0xff]  ;;  %v511_v5 = vld [vmem:[%s3797_s7 + $0x1e8] sm:$0xff] }
 0x20c   : > { %2188 = vmatpush.msra.mxu3 %v846_v11  ;;  %2194 = vmatpush.msrb.mxu0 %v1086_v12  ;;  %v1454_v27 = vld [vmem:[%s3797_s7 + $0x1f60] sm:$0xff] }
 0x20d   : > { %2234 = vmatpush.msrb.mxu2 %v1342_v32  ;;  %2149 = vmatpush.msra.mxu1 %v582_v13  ;;  %v1054_v28 = vld [vmem:[%s3797_s7 + $0x12e0] sm:$0xff] }
 0x20e   : > { %2189 = vmatpush.msra.mxu3 %v838_v6  ;;  %2195 = vmatpush.msrb.mxu0 %v1078_v14  ;;  %v1190_v0 = vld [vmem:[%s3797_s7 + $0x1720] sm:$0xff]  ;;  %v1871_v14 = vpop.f32.mrf.mxu3 }
 0x20f   : > { %2214 = vmatpush.msrb.mxu1 %v1214_v16  ;;  %2235 = vmatpush.msrb.mxu2 %v1334_v17  ;;  %v1310_v30 = vld [vmem:[%s3797_s7 + $0x1ae0] sm:$0xff] }
 0x210   : > { %2254 = vmatpush.msrb.mxu3 %v1470_v18  ;;  %2196 = vmatpush.msrb.mxu0 %v1070_v19  ;;  %v1446_v1 = vld [vmem:[%s3797_s7 + $0x1f20] sm:$0xff]  ;;  %v4555_v18 = vld [vmem:[%s3788_s15 + $0x10] sm:$0xff]  ;;  %v575_v19 = vld [vmem:[%s3797_s7 + $0x3e8] sm:$0xff] }
 0x211   : > { %2215 = vmatpush.msrb.mxu1 %v1206_v39  ;;  %2236 = vmatpush.msrb.mxu2 %v1326_v22  ;;  %v1046_v51 = vld [vmem:[%s3797_s7 + $0x12a0] sm:$0xff]  ;;  %v831_v39 = vld [vmem:[%s3797_s7 + $0xbe8] sm:$0xff] }
 0x212   : > { %2255 = vmatpush.msrb.mxu3 %v1462_v23  ;;  %2197 = vmatpush.msrb.mxu0 %v1062_v24  ;;  %v1182_v31 = vld [vmem:[%s3797_s7 + $0x16e0] sm:$0xff] }
 0x213   : > { %2216 = vmatpush.msrb.mxu1 %v1198_v25  ;;  %2237 = vmatpush.msrb.mxu2 %v1318_v59  ;;  %v1302_v33 = vld [vmem:[%s3797_s7 + $0x1aa0] sm:$0xff] }
 0x214   : > { %2256 = vmatpush.msrb.mxu3 %v1454_v27  ;;  %2198 = vmatpush.msrb.mxu0 %v1054_v28  ;;  %v1438_v34 = vld [vmem:[%s3797_s7 + $0x1ee0] sm:$0xff]  ;;  %v4567_v27 = vld [vmem:[%s3788_s15 + $0x18] sm:$0xff]  ;;  %v567_v28 = vld [vmem:[%s3797_s7 + $0x3a8] sm:$0xff] }
 0x215   : > { %2217 = vmatpush.msrb.mxu1 %v1190_v0  ;;  %2238 = vmatpush.msrb.mxu2 %v1310_v30  ;;  %v1038_v56 = vld [vmem:[%s3797_s7 + $0x1260] sm:$0xff]  ;;  %v1891_v23 = vpop.f32.mrf.mxu0  ;;  %v703_v0 = vld [vmem:[%s3797_s7 + $0x7e8] sm:$0xff] }
 0x216   : > { %2257 = vmatpush.msrb.mxu3 %v1446_v1  ;;  %v1174_v35 = vld [vmem:[%s3797_s7 + $0x16a0] sm:$0xff]  ;;  %2199 = vmatpush.msrb.mxu0 %v1046_v51  ;;  %v823_v30 = vld [vmem:[%s3797_s7 + $0xba8] sm:$0xff] }
 0x217   : > { %2218 = vmatpush.msrb.mxu1 %v1182_v31  ;;  %v1294_v58 = vld [vmem:[%s3797_s7 + $0x1a60] sm:$0xff]  ;;  %2239 = vmatpush.msrb.mxu2 %v1302_v33  ;;  %v959_v1 = vld [vmem:[%s3797_s7 + $0xfe8] sm:$0xff] }
 0x218   : > { %v1430_v36 = vld [vmem:[%s3797_s7 + $0x1ea0] sm:$0xff]  ;;  %2258 = vmatpush.msrb.mxu3 %v1438_v34  ;;  %2200 = vmatpush.msrb.mxu0 %v1038_v56  ;;  %v4575_v31 = vld [vmem:[%s3788_s15 + $0x8] sm:$0xff] }
 0x219   : > { %v1030_v37 = vld [vmem:[%s3797_s7 + $0x1220] sm:$0xff]  ;;  %2219 = vmatpush.msrb.mxu1 %v1174_v35  ;;  %2240 = vmatpush.msrb.mxu2 %v1294_v58  ;;  %v559_v33 = vld [vmem:[%s3797_s7 + $0x368] sm:$0xff] }
 0x21a   : > { %v1166_v38 = vld [vmem:[%s3797_s7 + $0x1660] sm:$0xff]  ;;  %2259 = vmatpush.msrb.mxu3 %v1430_v36  ;;  %2201 = vmatpush.msrb.mxu0 %v1030_v37  ;;  %v695_v34 = vld [vmem:[%s3797_s7 + $0x7a8] sm:$0xff] }
 0x21b   : > { %v1286_v15 = vld [vmem:[%s3797_s7 + $0x1a20] sm:$0xff]  ;;  %2220 = vmatpush.msrb.mxu1 %v1166_v38  ;;  %2170 = vmatmul.f32.vlgmr.msra.gmra.mxu2 %v4555_v18  ;;  %v815_v58 = vld [vmem:[%s3797_s7 + $0xb68] sm:$0xff] }
 0x21c   : > { %v1422_v2 = vld [vmem:[%s3797_s7 + $0x1e60] sm:$0xff]  ;;  %2241 = vmatpush.msrb.mxu2 %v1286_v15  ;;  %2190 = vmatmul.f32.vlgmr.msra.gmra.mxu3 %v4567_v27  ;;  %v951_v36 = vld [vmem:[%s3797_s7 + $0xfa8] sm:$0xff] }
 0x21d   : > { %v1022_v40 = vld [vmem:[%s3797_s7 + $0x11e0] sm:$0xff]  ;;  %2260 = vmatpush.msrb.mxu3 %v1422_v2  ;;  %2150 = vmatmul.f32.vlgmr.msra.gmra.mxu1 %v4575_v31  ;;  %v551_v37 = vld [vmem:[%s3797_s7 + $0x328] sm:$0xff] }
 0x21e   : > { %v1158_v41 = vld [vmem:[%s3797_s7 + $0x1620] sm:$0xff]  ;;  %2202 = vmatpush.msrb.mxu0 %v1022_v40  ;;  %v1851_v9 = vpop.f32.mrf.mxu2  ;;  %v687_v15 = vld [vmem:[%s3797_s7 + $0x768] sm:$0xff]  ;;  %v436_v40 = vld [vmem:[%s3820_s21 + $0x10] sm:$0xff] }
 0x21f   : > { %v1278_v20 = vld [vmem:[%s3797_s7 + $0x19e0] sm:$0xff]  ;;  %2221 = vmatpush.msrb.mxu1 %v1158_v41  ;;  %v1852_v32 = vadd.f32 %v1851_v9, %v1832_v29  ;;  %v807_v2 = vld [vmem:[%s3797_s7 + $0xb28] sm:$0xff] }
 0x220   : > { %v1414_v42 = vld [vmem:[%s3797_s7 + $0x1e20] sm:$0xff]  ;;  %2242 = vmatpush.msrb.mxu2 %v1278_v20  ;;  %v943_v20 = vld [vmem:[%s3797_s7 + $0xf68] sm:$0xff] }
 0x221   : > { %v1014_v21 = vld [vmem:[%s3797_s7 + $0x11a0] sm:$0xff]  ;;  %2261 = vmatpush.msrb.mxu3 %v1414_v42  ;;  %v1872_v17 = vadd.f32 %v1871_v14, %v1852_v32  ;;  %v903_v29 = vld [vmem:[%s3797_s7 + $0xe28] sm:$0xff] }
 0x222   : > { %v1150_v43 = vld [vmem:[%s3797_s7 + $0x15e0] sm:$0xff]  ;;  %2203 = vmatpush.msrb.mxu0 %v1014_v21  ;;  %v4588_v21 = vld [vmem:[%s3788_s15 + $0x30] sm:$0xff]  ;;  %v503_v9 = vld [vmem:[%s3797_s7 + $0x1a8] sm:$0xff] }
 0x223   : > { %v1270_v44 = vld [vmem:[%s3797_s7 + $0x19a0] sm:$0xff]  ;;  %2222 = vmatpush.msrb.mxu1 %v1150_v43  ;;  %v1892_v59 = vadd.f32 %v1891_v23, %v1872_v17  ;;  %v1911_v51 = vpop.f32.mrf.mxu1  ;;  %v543_v43 = vld [vmem:[%s3797_s7 + $0x2e8] sm:$0xff] }
 0x224   : > { %v1406_v45 = vld [vmem:[%s3797_s7 + $0x1de0] sm:$0xff]  ;;  %2243 = vmatpush.msrb.mxu2 %v1270_v44  ;;  %v679_v44 = vld [vmem:[%s3797_s7 + $0x728] sm:$0xff] }
 0x225   : > { %v1006_v46 = vld [vmem:[%s3797_s7 + $0x1160] sm:$0xff]  ;;  %2262 = vmatpush.msrb.mxu3 %v1406_v45  ;;  %v1912_v56 = vadd.f32 %v1911_v51, %v1892_v59  ;;  %v799_v45 = vld [vmem:[%s3797_s7 + $0xae8] sm:$0xff] }
 0x226   : > { %v1142_v26 = vld [vmem:[%s3797_s7 + $0x15a0] sm:$0xff]  ;;  %2204 = vmatpush.msrb.mxu0 %v1006_v46  ;;  %v1931_v35 = vpop.f32.mrf.mxu2  ;;  %v495_v32 = vld [vmem:[%s3797_s7 + $0x168] sm:$0xff] }
 0x227   : > { %v1262_v47 = vld [vmem:[%s3797_s7 + $0x1960] sm:$0xff]  ;;  %2223 = vmatpush.msrb.mxu1 %v1142_v26  ;;  %v1932_v38 = vadd.f32 %v1931_v35, %v1912_v56  ;;  %v1951_v41 = vpop.f32.mrf.mxu3  ;;  %v887_v14 = vld [vmem:[%s3797_s7 + $0xda8] sm:$0xff] }
 0x228   : > { %v1398_v48 = vld [vmem:[%s3797_s7 + $0x1da0] sm:$0xff]  ;;  %2244 = vmatpush.msrb.mxu2 %v1262_v47  ;;  %v935_v47 = vld [vmem:[%s3797_s7 + $0xf28] sm:$0xff] }
 0x229   : > { %v998_v49 = vld [vmem:[%s3797_s7 + $0x1120] sm:$0xff]  ;;  %2263 = vmatpush.msrb.mxu3 %v1398_v48  ;;  %v1952_v42 = vadd.f32 %v1951_v41, %v1932_v38  ;;  %v4600_v48 = vld [vmem:[%s3788_s15 + $0x38] sm:$0xff]  ;;  %v623_v17 = vld [vmem:[%s3797_s7 + $0x568] sm:$0xff] }
 0x22a   : > { %v1134_v50 = vld [vmem:[%s3797_s7 + $0x1560] sm:$0xff]  ;;  %2205 = vmatpush.msrb.mxu0 %v998_v49  ;;  %v535_v49 = vld [vmem:[%s3797_s7 + $0x2a8] sm:$0xff] }
 0x22b   : > { %v1254_v52 = vld [vmem:[%s3797_s7 + $0x1920] sm:$0xff]  ;;  %2224 = vmatpush.msrb.mxu1 %v1134_v50  ;;  %v2756_v46 = vadd.f32 %v1952_v42, %v436_v40  ;;  %v671_v50 = vld [vmem:[%s3797_s7 + $0x6e8] sm:$0xff] }
 0x22c   : > { %v1390_v53 = vld [vmem:[%s3797_s7 + $0x1d60] sm:$0xff]  ;;  %2245 = vmatpush.msrb.mxu2 %v1254_v52  ;;  %v791_v52 = vld [vmem:[%s3797_s7 + $0xaa8] sm:$0xff] }
 0x22d   : > { %v990_v54 = vld [vmem:[%s3797_s7 + $0x10e0] sm:$0xff]  ;;  %2264 = vmatpush.msrb.mxu3 %v1390_v53  ;;  %2764 = vst [vmem:[%s3820_s21 + $0x10] sm:$0xff] %v2756_v46  ;;  %v927_v53 = vld [vmem:[%s3797_s7 + $0xee8] sm:$0xff] }
 0x22e   : > { %v1126_v55 = vld [vmem:[%s3797_s7 + $0x1520] sm:$0xff]  ;;  %2206 = vmatpush.msrb.mxu0 %v990_v54  ;;  %v4609_v54 = vld [vmem:[%s3788_s15 + $0x28] sm:$0xff] }
 0x22f   : > { %v1246_v60 = vld [vmem:[%s3797_s7 + $0x18e0] sm:$0xff]  ;;  %2225 = vmatpush.msrb.mxu1 %v1126_v55  ;;  %v527_v55 = vld [vmem:[%s3797_s7 + $0x268] sm:$0xff] }
 0x230   : > { %v1382_v61 = vld [vmem:[%s3797_s7 + $0x1d20] sm:$0xff]  ;;  %2246 = vmatpush.msrb.mxu2 %v1246_v60  ;;  %v783_v60 = vld [vmem:[%s3797_s7 + $0xa68] sm:$0xff] }
 0x231   : > { %v982_v62 = vld [vmem:[%s3797_s7 + $0x10a0] sm:$0xff]  ;;  %2265 = vmatpush.msrb.mxu3 %v1382_v61  ;;  %v919_v61 = vld [vmem:[%s3797_s7 + $0xea8] sm:$0xff] }
 0x232   : > { %v1118_v63 = vld [vmem:[%s3797_s7 + $0x14e0] sm:$0xff]  ;;  %2207 = vmatpush.msrb.mxu0 %v982_v62  ;;  %v519_v62 = vld [vmem:[%s3797_s7 + $0x228] sm:$0xff] }
 0x233   : > { %v1238_v3 = vld [vmem:[%s3797_s7 + $0x18a0] sm:$0xff]  ;;  %2226 = vmatpush.msrb.mxu1 %v1118_v63  ;;  %v655_v63 = vld [vmem:[%s3797_s7 + $0x668] sm:$0xff] }
 0x234   : > { %v1374_v4 = vld [vmem:[%s3797_s7 + $0x1ce0] sm:$0xff]  ;;  %2247 = vmatpush.msrb.mxu2 %v1238_v3  ;;  %v775_v3 = vld [vmem:[%s3797_s7 + $0xa28] sm:$0xff] }
 0x235   : > { %v974_v7 = vld [vmem:[%s3797_s7 + $0x1060] sm:$0xff]  ;;  %2266 = vmatpush.msrb.mxu3 %v1374_v4  ;;  %v911_v4 = vld [vmem:[%s3797_s7 + $0xe68] sm:$0xff] }
 0x236   : > { %v1110_v8 = vld [vmem:[%s3797_s7 + $0x14a0] sm:$0xff]  ;;  %2208 = vmatpush.msrb.mxu0 %v974_v7  ;;  %v647_v7 = vld [vmem:[%s3797_s7 + $0x628] sm:$0xff] }
 0x237   : > { %v1230_v10 = vld [vmem:[%s3797_s7 + $0x1860] sm:$0xff]  ;;  %2227 = vmatpush.msrb.mxu1 %v1110_v8  ;;  %v767_v8 = vld [vmem:[%s3797_s7 + $0x9e8] sm:$0xff] }
 0x238   : > { %v1366_v11 = vld [vmem:[%s3797_s7 + $0x1ca0] sm:$0xff]  ;;  %2248 = vmatpush.msrb.mxu2 %v1230_v10  ;;  %v639_v10 = vld [vmem:[%s3797_s7 + $0x5e8] sm:$0xff] }
 0x239   : > { %v966_v12 = vld [vmem:[%s3797_s7 + $0x1020] sm:$0xff]  ;;  %2267 = vmatpush.msrb.mxu3 %v1366_v11  ;;  %v759_v11 = vld [vmem:[%s3797_s7 + $0x9a8] sm:$0xff] }
 0x23a   : > { %v1102_v13 = vld [vmem:[%s3797_s7 + $0x1460] sm:$0xff]  ;;  %2209 = vmatpush.msrb.mxu0 %v966_v12  ;;  %v895_v12 = vld [vmem:[%s3797_s7 + $0xde8] sm:$0xff] }
 0x23b   : > { %v1222_v6 = vld [vmem:[%s3797_s7 + $0x1820] sm:$0xff]  ;;  %2228 = vmatpush.msrb.mxu1 %v1102_v13  ;;  %v631_v13 = vld [vmem:[%s3797_s7 + $0x5a8] sm:$0xff] }
 0x23c   : > { %v1358_v16 = vld [vmem:[%s3797_s7 + $0x1c60] sm:$0xff]  ;;  %2249 = vmatpush.msrb.mxu2 %v1222_v6  ;;  %v751_v6 = vld [vmem:[%s3797_s7 + $0x968] sm:$0xff] }
 0x23d   : > { %v1094_v22 = vld [vmem:[%s3797_s7 + $0x1420] sm:$0xff]  ;;  %2268 = vmatpush.msrb.mxu3 %v1358_v16  ;;  %2250 = vmatmul.f32.vlgmr.msrb.gmra.mxu2 %v4588_v21  ;;  %v487_v16 = vld [vmem:[%s3797_s7 + $0x128] sm:$0xff] }
 0x23e   : > { %v4562_v24 = vld [vmem:[%s3788_s15] sm:$0xff]  ;;  %2314 = vmatpush.msra.mxu2 %v831_v39  ;;  %2229 = vmatpush.msrb.mxu1 %v1094_v22  ;;  %v879_v39 = vld [vmem:[%s3797_s7 + $0xd68] sm:$0xff] }
 0x23f   : > { %2130 = vmatmul.f32.vlgmr.msra.gmra.mxu0 %v4562_v24  ;;  %v1350_v25 = vld [vmem:[%s3797_s7 + $0x1c20] sm:$0xff]  ;;  %2230 = vmatmul.f32.vlgmr.msrb.gmra.mxu1 %v4609_v54  ;;  %v479_v22 = vld [vmem:[%s3797_s7 + $0xe8] sm:$0xff] }
 0x240   : > { %2274 = vmatpush.msra.mxu0 %v575_v19  ;;  %2269 = vmatpush.msrb.mxu3 %v1350_v25  ;;  %v4595_v26 = vld [vmem:[%s3788_s15 + $0x20] sm:$0xff]  ;;  %v743_v19 = vld [vmem:[%s3797_s7 + $0x928] sm:$0xff] }
 0x241   : > { %2294 = vmatpush.msra.mxu1 %v703_v0  ;;  %2315 = vmatpush.msra.mxu2 %v823_v30  ;;  %v615_v23 = vld [vmem:[%s3797_s7 + $0x528] sm:$0xff] }
 0x242   : > { %2275 = vmatpush.msra.mxu0 %v567_v28  ;;  %2334 = vmatpush.msra.mxu3 %v959_v1  ;;  %v735_v25 = vld [vmem:[%s3797_s7 + $0x8e8] sm:$0xff] }
 0x243   : > { %2295 = vmatpush.msra.mxu1 %v695_v34  ;;  %2316 = vmatpush.msra.mxu2 %v815_v58  ;;  %v871_v59 = vld [vmem:[%s3797_s7 + $0xd28] sm:$0xff] }
 0x244   : > { %2276 = vmatpush.msra.mxu0 %v559_v33  ;;  %2335 = vmatpush.msra.mxu3 %v951_v36  ;;  %v471_v28 = vld [vmem:[%s3797_s7 + $0xa8] sm:$0xff] }
 0x245   : > { %2296 = vmatpush.msra.mxu1 %v687_v15  ;;  %2317 = vmatpush.msra.mxu2 %v807_v2  ;;  %v607_v0 = vld [vmem:[%s3797_s7 + $0x4e8] sm:$0xff] }
 0x246   : > { %2277 = vmatpush.msra.mxu0 %v551_v37  ;;  %2336 = vmatpush.msra.mxu3 %v943_v20  ;;  %v727_v30 = vld [vmem:[%s3797_s7 + $0x8a8] sm:$0xff] }
 0x247   : > { %2210 = vmatmul.f32.vlgmr.msrb.gmra.mxu0 %v4595_v26  ;;  %2270 = vmatmul.f32.vlgmr.msrb.gmra.mxu3 %v4600_v48  ;;  %v863_v1 = vld [vmem:[%s3797_s7 + $0xce8] sm:$0xff] }
 0x248   : > { %2278 = vmatpush.msra.mxu0 %v543_v43  ;;  %2297 = vmatpush.msra.mxu1 %v679_v44  ;;  %v463_v51 = vld [vmem:[%s3797_s7 + $0x68] sm:$0xff] }
 0x249   : > { %2318 = vmatpush.msra.mxu2 %v799_v45  ;;  %2337 = vmatpush.msra.mxu3 %v935_v47  ;;  %v599_v33 = vld [vmem:[%s3797_s7 + $0x4a8] sm:$0xff] }
 0x24a   : > { %2279 = vmatpush.msra.mxu0 %v535_v49  ;;  %2298 = vmatpush.msra.mxu1 %v671_v50  ;;  %v719_v34 = vld [vmem:[%s3797_s7 + $0x868] sm:$0xff] }
 0x24b   : > { %2319 = vmatpush.msra.mxu2 %v791_v52  ;;  %2338 = vmatpush.msra.mxu3 %v927_v53  ;;  %v855_v56 = vld [vmem:[%s3797_s7 + $0xca8] sm:$0xff] }
 0x24c   : > { %2280 = vmatpush.msra.mxu0 %v527_v55  ;;  %2299 = vmatpush.msra.mxu1 %v663_v57  ;;  %v455_v35 = vld [vmem:[%s3797_s7 + $0x28] sm:$0xff] }
 0x24d   : > { %2320 = vmatpush.msra.mxu2 %v783_v60  ;;  %2339 = vmatpush.msra.mxu3 %v919_v61  ;;  %v591_v58 = vld [vmem:[%s3797_s7 + $0x468] sm:$0xff] }
 0x24e   : > { %2281 = vmatpush.msra.mxu0 %v519_v62  ;;  %2300 = vmatpush.msra.mxu1 %v655_v63  ;;  %v711_v36 = vld [vmem:[%s3797_s7 + $0x828] sm:$0xff] }
 0x24f   : > { %2321 = vmatpush.msra.mxu2 %v775_v3  ;;  %2340 = vmatpush.msra.mxu3 %v911_v4  ;;  %v847_v37 = vld [vmem:[%s3797_s7 + $0xc68] sm:$0xff] }
 0x250   : > { %2282 = vmatpush.msra.mxu0 %v511_v5  ;;  %2301 = vmatpush.msra.mxu1 %v647_v7  ;;  %v1087_v38 = vld [vmem:[%s3797_s7 + $0x13e8] sm:$0xff] }
 0x251   : > { %2322 = vmatpush.msra.mxu2 %v767_v8  ;;  %2341 = vmatpush.msra.mxu3 %v903_v29  ;;  %v1343_v15 = vld [vmem:[%s3797_s7 + $0x1be8] sm:$0xff] }
 0x252   : > { %2283 = vmatpush.msra.mxu0 %v503_v9  ;;  %2302 = vmatpush.msra.mxu1 %v639_v10  ;;  %v583_v2 = vld [vmem:[%s3797_s7 + $0x428] sm:$0xff] }
 0x253   : > { %2323 = vmatpush.msra.mxu2 %v759_v11  ;;  %2342 = vmatpush.msra.mxu3 %v895_v12  ;;  %v839_v40 = vld [vmem:[%s3797_s7 + $0xc28] sm:$0xff] }
 0x254   : > { %2284 = vmatpush.msra.mxu0 %v495_v32  ;;  %2303 = vmatpush.msra.mxu1 %v631_v13  ;;  %v1079_v41 = vld [vmem:[%s3797_s7 + $0x13a8] sm:$0xff] }
 0x255   : > { %2324 = vmatpush.msra.mxu2 %v751_v6  ;;  %2343 = vmatpush.msra.mxu3 %v887_v14  ;;  %v1215_v20 = vld [vmem:[%s3797_s7 + $0x17e8] sm:$0xff] }
 0x256   : > { %2285 = vmatpush.msra.mxu0 %v487_v16  ;;  %2304 = vmatpush.msra.mxu1 %v623_v17  ;;  %v1335_v42 = vld [vmem:[%s3797_s7 + $0x1ba8] sm:$0xff] }
 0x257   : > { %2325 = vmatpush.msra.mxu2 %v743_v19  ;;  %2344 = vmatpush.msra.mxu3 %v879_v39  ;;  %v1471_v43 = vld [vmem:[%s3797_s7 + $0x1fe8] sm:$0xff] }
 0x258   : > { %2286 = vmatpush.msra.mxu0 %v479_v22  ;;  %2305 = vmatpush.msra.mxu1 %v615_v23  ;;  %v1071_v44 = vld [vmem:[%s3797_s7 + $0x1368] sm:$0xff] }
 0x259   : > { %2326 = vmatpush.msra.mxu2 %v735_v25  ;;  %2345 = vmatpush.msra.mxu3 %v871_v59  ;;  %v1207_v45 = vld [vmem:[%s3797_s7 + $0x17a8] sm:$0xff] }
 0x25a   : > { %2287 = vmatpush.msra.mxu0 %v471_v28  ;;  %2306 = vmatpush.msra.mxu1 %v607_v0  ;;  %v1327_v46 = vld [vmem:[%s3797_s7 + $0x1b68] sm:$0xff] }
 0x25b   : > { %2327 = vmatpush.msra.mxu2 %v727_v30  ;;  %2346 = vmatpush.msra.mxu3 %v863_v1  ;;  %v1463_v47 = vld [vmem:[%s3797_s7 + $0x1fa8] sm:$0xff] }
 0x25c   : > { %2288 = vmatpush.msra.mxu0 %v463_v51  ;;  %2307 = vmatpush.msra.mxu1 %v599_v33  ;;  %v1063_v49 = vld [vmem:[%s3797_s7 + $0x1328] sm:$0xff] }
 0x25d   : > { %2328 = vmatpush.msra.mxu2 %v719_v34  ;;  %2347 = vmatpush.msra.mxu3 %v855_v56  ;;  %v1199_v50 = vld [vmem:[%s3797_s7 + $0x1768] sm:$0xff]  ;;  %v1971_v34 = vpop.f32.mrf.mxu0 }
 0x25e   : > { %2289 = vmatpush.msra.mxu0 %v455_v35  ;;  %2308 = vmatpush.msra.mxu1 %v591_v58  ;;  %v1319_v52 = vld [vmem:[%s3797_s7 + $0x1b28] sm:$0xff] }
 0x25f   : > { %2329 = vmatpush.msra.mxu2 %v711_v36  ;;  %2348 = vmatpush.msra.mxu3 %v847_v37  ;;  %v1455_v53 = vld [vmem:[%s3797_s7 + $0x1f68] sm:$0xff] }
 0x260   : > { %2354 = vmatpush.msrb.mxu0 %v1087_v38  ;;  %2309 = vmatpush.msra.mxu1 %v583_v2  ;;  %v1055_v55 = vld [vmem:[%s3797_s7 + $0x12e8] sm:$0xff] }
 0x261   : > { %2394 = vmatpush.msrb.mxu2 %v1343_v15  ;;  %2349 = vmatpush.msra.mxu3 %v839_v40  ;;  %v1191_v57 = vld [vmem:[%s3797_s7 + $0x1728] sm:$0xff]  ;;  %v1991_v15 = vpop.f32.mrf.mxu1 }
 0x262   : > { %2355 = vmatpush.msrb.mxu0 %v1079_v41  ;;  %2374 = vmatpush.msrb.mxu1 %v1215_v20  ;;  %v1311_v60 = vld [vmem:[%s3797_s7 + $0x1ae8] sm:$0xff]  ;;  %v1992_v41 = vadd.f32 %v1991_v15, %v1971_v34  ;;  %v2011_v20 = vpop.f32.mrf.mxu2  ;;  %v648_v34 = vld [vmem:[%s3797_s7 + $0x630] sm:$0xff] }
 0x263   : > { %2395 = vmatpush.msrb.mxu2 %v1335_v42  ;;  %2414 = vmatpush.msrb.mxu3 %v1471_v43  ;;  %v1447_v61 = vld [vmem:[%s3797_s7 + $0x1f28] sm:$0xff]  ;;  %v496_v15 = vld [vmem:[%s3797_s7 + $0x170] sm:$0xff] }
 0x264   : > { %2356 = vmatpush.msrb.mxu0 %v1071_v44  ;;  %2375 = vmatpush.msrb.mxu1 %v1207_v45  ;;  %v1047_v62 = vld [vmem:[%s3797_s7 + $0x12a8] sm:$0xff]  ;;  %v2012_v45 = vadd.f32 %v2011_v20, %v1992_v41  ;;  %v888_v41 = vld [vmem:[%s3797_s7 + $0xdb0] sm:$0xff] }
 0x265   : > { %2396 = vmatpush.msrb.mxu2 %v1327_v46  ;;  %2415 = vmatpush.msrb.mxu3 %v1463_v47  ;;  %v1183_v63 = vld [vmem:[%s3797_s7 + $0x16e8] sm:$0xff]  ;;  %v488_v20 = vld [vmem:[%s3797_s7 + $0x130] sm:$0xff] }
 0x266   : > { %2357 = vmatpush.msrb.mxu0 %v1063_v49  ;;  %2376 = vmatpush.msrb.mxu1 %v1199_v50  ;;  %v1303_v3 = vld [vmem:[%s3797_s7 + $0x1aa8] sm:$0xff]  ;;  %v2031_v49 = vpop.f32.mrf.mxu3 }
 0x267   : > { %2397 = vmatpush.msrb.mxu2 %v1319_v52  ;;  %2416 = vmatpush.msrb.mxu3 %v1455_v53  ;;  %v1439_v4 = vld [vmem:[%s3797_s7 + $0x1ee8] sm:$0xff]  ;;  %v2032_v52 = vadd.f32 %v2031_v49, %v2012_v45  ;;  %v576_v53 = vld [vmem:[%s3797_s7 + $0x3f0] sm:$0xff] }
 0x268   : > { %2358 = vmatpush.msrb.mxu0 %v1055_v55  ;;  %2377 = vmatpush.msrb.mxu1 %v1191_v57  ;;  %v1039_v5 = vld [vmem:[%s3797_s7 + $0x1268] sm:$0xff]  ;;  %v832_v55 = vld [vmem:[%s3797_s7 + $0xbf0] sm:$0xff] }
 0x269   : > { %2398 = vmatpush.msrb.mxu2 %v1311_v60  ;;  %2417 = vmatpush.msrb.mxu3 %v1447_v61  ;;  %v1175_v7 = vld [vmem:[%s3797_s7 + $0x16a8] sm:$0xff]  ;;  %v2051_v60 = vpop.f32.mrf.mxu0  ;;  %v480_v45 = vld [vmem:[%s3797_s7 + $0xf0] sm:$0xff] }
 0x26a   : > { %2359 = vmatpush.msrb.mxu0 %v1047_v62  ;;  %2378 = vmatpush.msrb.mxu1 %v1183_v63  ;;  %v1295_v8 = vld [vmem:[%s3797_s7 + $0x1a68] sm:$0xff]  ;;  %v2052_v62 = vadd.f32 %v2051_v60, %v2032_v52  ;;  %v704_v63 = vld [vmem:[%s3797_s7 + $0x7f0] sm:$0xff] }
 0x26b   : > { %v1431_v29 = vld [vmem:[%s3797_s7 + $0x1ea8] sm:$0xff]  ;;  %2399 = vmatpush.msrb.mxu2 %v1303_v3  ;;  %2418 = vmatpush.msrb.mxu3 %v1439_v4  ;;  %v824_v3 = vld [vmem:[%s3797_s7 + $0xbb0] sm:$0xff] }
 0x26c   : > { %v1031_v9 = vld [vmem:[%s3797_s7 + $0x1228] sm:$0xff]  ;;  %2360 = vmatpush.msrb.mxu0 %v1039_v5  ;;  %2379 = vmatpush.msrb.mxu1 %v1175_v7  ;;  %v960_v4 = vld [vmem:[%s3797_s7 + $0xff0] sm:$0xff] }
 0x26d   : > { %v1167_v10 = vld [vmem:[%s3797_s7 + $0x1668] sm:$0xff]  ;;  %2400 = vmatpush.msrb.mxu2 %v1295_v8  ;;  %2419 = vmatpush.msrb.mxu3 %v1431_v29  ;;  %v696_v7 = vld [vmem:[%s3797_s7 + $0x7b0] sm:$0xff] }
 0x26e   : > { %v1287_v11 = vld [vmem:[%s3797_s7 + $0x1a28] sm:$0xff]  ;;  %2361 = vmatpush.msrb.mxu0 %v1031_v9  ;;  %2380 = vmatpush.msrb.mxu1 %v1167_v10  ;;  %v2091_v8 = vpop.f32.mrf.mxu2  ;;  %v816_v29 = vld [vmem:[%s3797_s7 + $0xb70] sm:$0xff] }
 0x26f   : > { %v1423_v12 = vld [vmem:[%s3797_s7 + $0x1e68] sm:$0xff]  ;;  %2401 = vmatpush.msrb.mxu2 %v1287_v11  ;;  %2290 = vmatmul.f32.vlgmr.msra.gmra.mxu0 %v4562_v24  ;;  %v560_v24 = vld [vmem:[%s3797_s7 + $0x370] sm:$0xff] }
 0x270   : > { %v1023_v32 = vld [vmem:[%s3797_s7 + $0x11e8] sm:$0xff]  ;;  %2420 = vmatpush.msrb.mxu3 %v1423_v12  ;;  %2330 = vmatmul.f32.vlgmr.msra.gmra.mxu2 %v4555_v18  ;;  %v568_v18 = vld [vmem:[%s3797_s7 + $0x3b0] sm:$0xff] }
 0x271   : > { %v1159_v13 = vld [vmem:[%s3797_s7 + $0x1628] sm:$0xff]  ;;  %2362 = vmatpush.msrb.mxu0 %v1023_v32  ;;  %2350 = vmatmul.f32.vlgmr.msra.gmra.mxu3 %v4567_v27  ;;  %v952_v9 = vld [vmem:[%s3797_s7 + $0xfb0] sm:$0xff]  ;;  %v437_v32 = vld [vmem:[%s3820_s21 + $0x18] sm:$0xff] }
 0x272   : > { %v1279_v6 = vld [vmem:[%s3797_s7 + $0x19e8] sm:$0xff]  ;;  %2381 = vmatpush.msrb.mxu1 %v1159_v13  ;;  %v552_v10 = vld [vmem:[%s3797_s7 + $0x330] sm:$0xff] }
 0x273   : > { %v1415_v14 = vld [vmem:[%s3797_s7 + $0x1e28] sm:$0xff]  ;;  %2402 = vmatpush.msrb.mxu2 %v1279_v6  ;;  %v2071_v5 = vpop.f32.mrf.mxu1  ;;  %2310 = vmatmul.f32.vlgmr.msra.gmra.mxu1 %v4575_v31  ;;  %v688_v31 = vld [vmem:[%s3797_s7 + $0x770] sm:$0xff] }
 0x274   : > { %v1015_v16 = vld [vmem:[%s3797_s7 + $0x11a8] sm:$0xff]  ;;  %2421 = vmatpush.msrb.mxu3 %v1415_v14  ;;  %v2072_v27 = vadd.f32 %v2071_v5, %v2052_v62  ;;  %v808_v12 = vld [vmem:[%s3797_s7 + $0xb30] sm:$0xff] }
 0x275   : > { %v1151_v17 = vld [vmem:[%s3797_s7 + $0x15e8] sm:$0xff]  ;;  %2363 = vmatpush.msrb.mxu0 %v1015_v16  ;;  %v944_v6 = vld [vmem:[%s3797_s7 + $0xf70] sm:$0xff] }
 0x276   : > { %v1271_v19 = vld [vmem:[%s3797_s7 + $0x19a8] sm:$0xff]  ;;  %2382 = vmatpush.msrb.mxu1 %v1151_v17  ;;  %v2092_v11 = vadd.f32 %v2091_v8, %v2072_v27  ;;  %v544_v16 = vld [vmem:[%s3797_s7 + $0x2f0] sm:$0xff] }
 0x277   : > { %v1407_v39 = vld [vmem:[%s3797_s7 + $0x1de8] sm:$0xff]  ;;  %2403 = vmatpush.msrb.mxu2 %v1271_v19  ;;  %v2111_v13 = vpop.f32.mrf.mxu3  ;;  %v680_v17 = vld [vmem:[%s3797_s7 + $0x730] sm:$0xff] }
 0x278   : > { %v1007_v22 = vld [vmem:[%s3797_s7 + $0x1168] sm:$0xff]  ;;  %2422 = vmatpush.msrb.mxu3 %v1407_v39  ;;  %v2112_v14 = vadd.f32 %v2111_v13, %v2092_v11  ;;  %v800_v19 = vld [vmem:[%s3797_s7 + $0xaf0] sm:$0xff] }
 0x279   : > { %v1143_v23 = vld [vmem:[%s3797_s7 + $0x15a8] sm:$0xff]  ;;  %2364 = vmatpush.msrb.mxu0 %v1007_v22  ;;  %v936_v22 = vld [vmem:[%s3797_s7 + $0xf30] sm:$0xff] }
 0x27a   : > { %v1263_v25 = vld [vmem:[%s3797_s7 + $0x1968] sm:$0xff]  ;;  %2383 = vmatpush.msrb.mxu1 %v1143_v23  ;;  %v2757_v39 = vadd.f32 %v2112_v14, %v437_v32  ;;  %v672_v23 = vld [vmem:[%s3797_s7 + $0x6f0] sm:$0xff] }
 0x27b   : > { %v1399_v59 = vld [vmem:[%s3797_s7 + $0x1da8] sm:$0xff]  ;;  %2404 = vmatpush.msrb.mxu2 %v1263_v25  ;;  %v792_v25 = vld [vmem:[%s3797_s7 + $0xab0] sm:$0xff] }
 0x27c   : > { %v999_v28 = vld [vmem:[%s3797_s7 + $0x1128] sm:$0xff]  ;;  %2423 = vmatpush.msrb.mxu3 %v1399_v59  ;;  %2765 = vst [vmem:[%s3820_s21 + $0x18] sm:$0xff] %v2757_v39  ;;  %v928_v59 = vld [vmem:[%s3797_s7 + $0xef0] sm:$0xff] }
 0x27d   : > { %v1135_v0 = vld [vmem:[%s3797_s7 + $0x1568] sm:$0xff]  ;;  %2365 = vmatpush.msrb.mxu0 %v999_v28  ;;  %v664_v28 = vld [vmem:[%s3797_s7 + $0x6b0] sm:$0xff] }
 0x27e   : > { %v1255_v30 = vld [vmem:[%s3797_s7 + $0x1928] sm:$0xff]  ;;  %2384 = vmatpush.msrb.mxu1 %v1135_v0  ;;  %v920_v0 = vld [vmem:[%s3797_s7 + $0xeb0] sm:$0xff] }
 0x27f   : > { %v1391_v1 = vld [vmem:[%s3797_s7 + $0x1d68] sm:$0xff]  ;;  %2405 = vmatpush.msrb.mxu2 %v1255_v30  ;;  %v520_v30 = vld [vmem:[%s3797_s7 + $0x230] sm:$0xff] }
 0x280   : > { %v991_v51 = vld [vmem:[%s3797_s7 + $0x10e8] sm:$0xff]  ;;  %2424 = vmatpush.msrb.mxu3 %v1391_v1  ;;  %v656_v1 = vld [vmem:[%s3797_s7 + $0x670] sm:$0xff] }
 0x281   : > { %v1127_v33 = vld [vmem:[%s3797_s7 + $0x1528] sm:$0xff]  ;;  %2366 = vmatpush.msrb.mxu0 %v991_v51  ;;  %v776_v51 = vld [vmem:[%s3797_s7 + $0xa30] sm:$0xff] }
 0x282   : > { %v1247_v56 = vld [vmem:[%s3797_s7 + $0x18e8] sm:$0xff]  ;;  %2385 = vmatpush.msrb.mxu1 %v1127_v33  ;;  %v512_v33 = vld [vmem:[%s3797_s7 + $0x1f0] sm:$0xff] }
 0x283   : > { %v1383_v35 = vld [vmem:[%s3797_s7 + $0x1d28] sm:$0xff]  ;;  %2406 = vmatpush.msrb.mxu2 %v1247_v56  ;;  %v768_v56 = vld [vmem:[%s3797_s7 + $0x9f0] sm:$0xff] }
 0x284   : > { %v983_v58 = vld [vmem:[%s3797_s7 + $0x10a8] sm:$0xff]  ;;  %2425 = vmatpush.msrb.mxu3 %v1383_v35  ;;  %v904_v35 = vld [vmem:[%s3797_s7 + $0xe30] sm:$0xff] }
 0x285   : > { %v1119_v36 = vld [vmem:[%s3797_s7 + $0x14e8] sm:$0xff]  ;;  %2367 = vmatpush.msrb.mxu0 %v983_v58  ;;  %v504_v58 = vld [vmem:[%s3797_s7 + $0x1b0] sm:$0xff] }
 0x286   : > { %v1239_v37 = vld [vmem:[%s3797_s7 + $0x18a8] sm:$0xff]  ;;  %2386 = vmatpush.msrb.mxu1 %v1119_v36  ;;  %v640_v36 = vld [vmem:[%s3797_s7 + $0x5f0] sm:$0xff] }
 0x287   : > { %v1375_v38 = vld [vmem:[%s3797_s7 + $0x1ce8] sm:$0xff]  ;;  %2407 = vmatpush.msrb.mxu2 %v1239_v37  ;;  %v760_v37 = vld [vmem:[%s3797_s7 + $0x9b0] sm:$0xff] }
 0x288   : > { %v975_v2 = vld [vmem:[%s3797_s7 + $0x1068] sm:$0xff]  ;;  %2426 = vmatpush.msrb.mxu3 %v1375_v38  ;;  %v896_v38 = vld [vmem:[%s3797_s7 + $0xdf0] sm:$0xff] }
 0x289   : > { %v1111_v40 = vld [vmem:[%s3797_s7 + $0x14a8] sm:$0xff]  ;;  %2368 = vmatpush.msrb.mxu0 %v975_v2  ;;  %v632_v2 = vld [vmem:[%s3797_s7 + $0x5b0] sm:$0xff] }
 0x28a   : > { %v1231_v42 = vld [vmem:[%s3797_s7 + $0x1868] sm:$0xff]  ;;  %2387 = vmatpush.msrb.mxu1 %v1111_v40  ;;  %v752_v40 = vld [vmem:[%s3797_s7 + $0x970] sm:$0xff] }
 0x28b   : > { %v1367_v43 = vld [vmem:[%s3797_s7 + $0x1ca8] sm:$0xff]  ;;  %2408 = vmatpush.msrb.mxu2 %v1231_v42  ;;  %v624_v42 = vld [vmem:[%s3797_s7 + $0x570] sm:$0xff] }
 0x28c   : > { %v967_v44 = vld [vmem:[%s3797_s7 + $0x1028] sm:$0xff]  ;;  %2427 = vmatpush.msrb.mxu3 %v1367_v43  ;;  %v744_v43 = vld [vmem:[%s3797_s7 + $0x930] sm:$0xff] }
 0x28d   : > { %v1103_v46 = vld [vmem:[%s3797_s7 + $0x1468] sm:$0xff]  ;;  %2369 = vmatpush.msrb.mxu0 %v967_v44  ;;  %v880_v44 = vld [vmem:[%s3797_s7 + $0xd70] sm:$0xff] }
 0x28e   : > { %v1223_v47 = vld [vmem:[%s3797_s7 + $0x1828] sm:$0xff]  ;;  %2388 = vmatpush.msrb.mxu1 %v1103_v46  ;;  %2370 = vmatmul.f32.vlgmr.msrb.gmra.mxu0 %v4595_v26  ;;  %v528_v26 = vld [vmem:[%s3797_s7 + $0x270] sm:$0xff] }
 0x28f   : > { %v1359_v50 = vld [vmem:[%s3797_s7 + $0x1c68] sm:$0xff]  ;;  %2409 = vmatpush.msrb.mxu2 %v1223_v47  ;;  %2434 = vmatpush.msra.mxu0 %v576_v53  ;;  %v616_v46 = vld [vmem:[%s3797_s7 + $0x530] sm:$0xff] }
 0x290   : > { %v1095_v57 = vld [vmem:[%s3797_s7 + $0x1428] sm:$0xff]  ;;  %2428 = vmatpush.msrb.mxu3 %v1359_v50  ;;  %2410 = vmatmul.f32.vlgmr.msrb.gmra.mxu2 %v4588_v21  ;;  %v536_v21 = vld [vmem:[%s3797_s7 + $0x2b0] sm:$0xff] }
 0x291   : > { %v1351_v61 = vld [vmem:[%s3797_s7 + $0x1c28] sm:$0xff]  ;;  %2474 = vmatpush.msra.mxu2 %v832_v55  ;;  %2389 = vmatpush.msrb.mxu1 %v1095_v57  ;;  %v736_v47 = vld [vmem:[%s3797_s7 + $0x8f0] sm:$0xff] }
 0x292   : > { %2429 = vmatpush.msrb.mxu3 %v1351_v61  ;;  %2435 = vmatpush.msra.mxu0 %v568_v18  ;;  %v872_v49 = vld [vmem:[%s3797_s7 + $0xd30] sm:$0xff] }
 0x293   : > { %2454 = vmatpush.msra.mxu1 %v704_v63  ;;  %2475 = vmatpush.msra.mxu2 %v824_v3  ;;  %v472_v50 = vld [vmem:[%s3797_s7 + $0xb0] sm:$0xff] }
 0x294   : > { %2494 = vmatpush.msra.mxu3 %v960_v4  ;;  %2436 = vmatpush.msra.mxu0 %v560_v24  ;;  %v608_v52 = vld [vmem:[%s3797_s7 + $0x4f0] sm:$0xff] }
 0x295   : > { %2455 = vmatpush.msra.mxu1 %v696_v7  ;;  %2476 = vmatpush.msra.mxu2 %v816_v29  ;;  %v728_v53 = vld [vmem:[%s3797_s7 + $0x8b0] sm:$0xff] }
 0x296   : > { %2495 = vmatpush.msra.mxu3 %v952_v9  ;;  %2437 = vmatpush.msra.mxu0 %v552_v10  ;;  %v864_v55 = vld [vmem:[%s3797_s7 + $0xcf0] sm:$0xff] }
 0x297   : > { %2456 = vmatpush.msra.mxu1 %v688_v31  ;;  %2477 = vmatpush.msra.mxu2 %v808_v12  ;;  %v464_v57 = vld [vmem:[%s3797_s7 + $0x70] sm:$0xff] }
 0x298   : > { %2496 = vmatpush.msra.mxu3 %v944_v6  ;;  %2438 = vmatpush.msra.mxu0 %v544_v16  ;;  %v600_v60 = vld [vmem:[%s3797_s7 + $0x4b0] sm:$0xff] }
 0x299   : > { %2430 = vmatmul.f32.vlgmr.msrb.gmra.mxu3 %v4600_v48  ;;  %2457 = vmatpush.msra.mxu1 %v680_v17  ;;  %v784_v48 = vld [vmem:[%s3797_s7 + $0xa70] sm:$0xff] }
 0x29a   : > { %2478 = vmatpush.msra.mxu2 %v800_v19  ;;  %2497 = vmatpush.msra.mxu3 %v936_v22  ;;  %v720_v61 = vld [vmem:[%s3797_s7 + $0x870] sm:$0xff] }
 0x29b   : > { %2390 = vmatmul.f32.vlgmr.msrb.gmra.mxu1 %v4609_v54  ;;  %2439 = vmatpush.msra.mxu0 %v536_v21  ;;  %v912_v54 = vld [vmem:[%s3797_s7 + $0xe70] sm:$0xff] }
 0x29c   : > { %2458 = vmatpush.msra.mxu1 %v672_v23  ;;  %2479 = vmatpush.msra.mxu2 %v792_v25  ;;  %v856_v62 = vld [vmem:[%s3797_s7 + $0xcb0] sm:$0xff] }
 0x29d   : > { %2498 = vmatpush.msra.mxu3 %v928_v59  ;;  %2440 = vmatpush.msra.mxu0 %v528_v26  ;;  %v456_v18 = vld [vmem:[%s3797_s7 + $0x30] sm:$0xff] }
 0x29e   : > { %2459 = vmatpush.msra.mxu1 %v664_v28  ;;  %2480 = vmatpush.msra.mxu2 %v784_v48  ;;  %v592_v63 = vld [vmem:[%s3797_s7 + $0x470] sm:$0xff] }
 0x29f   : > { %2499 = vmatpush.msra.mxu3 %v920_v0  ;;  %2441 = vmatpush.msra.mxu0 %v520_v30  ;;  %v712_v3 = vld [vmem:[%s3797_s7 + $0x830] sm:$0xff] }
 0x2a0   : > { %2460 = vmatpush.msra.mxu1 %v656_v1  ;;  %2481 = vmatpush.msra.mxu2 %v776_v51  ;;  %v848_v4 = vld [vmem:[%s3797_s7 + $0xc70] sm:$0xff] }
 0x2a1   : > { %2500 = vmatpush.msra.mxu3 %v912_v54  ;;  %2442 = vmatpush.msra.mxu0 %v512_v33  ;;  %v1088_v5 = vld [vmem:[%s3797_s7 + $0x13f0] sm:$0xff] }
 0x2a2   : > { %2461 = vmatpush.msra.mxu1 %v648_v34  ;;  %2482 = vmatpush.msra.mxu2 %v768_v56  ;;  %v1344_v24 = vld [vmem:[%s3797_s7 + $0x1bf0] sm:$0xff] }
 0x2a3   : > { %2501 = vmatpush.msra.mxu3 %v904_v35  ;;  %2443 = vmatpush.msra.mxu0 %v504_v58  ;;  %v584_v7 = vld [vmem:[%s3797_s7 + $0x430] sm:$0xff] }
 0x2a4   : > { %2462 = vmatpush.msra.mxu1 %v640_v36  ;;  %2483 = vmatpush.msra.mxu2 %v760_v37  ;;  %v840_v27 = vld [vmem:[%s3797_s7 + $0xc30] sm:$0xff] }
 0x2a5   : > { %2502 = vmatpush.msra.mxu3 %v896_v38  ;;  %2444 = vmatpush.msra.mxu0 %v496_v15  ;;  %v1080_v8 = vld [vmem:[%s3797_s7 + $0x13b0] sm:$0xff] }
 0x2a6   : > { %2463 = vmatpush.msra.mxu1 %v632_v2  ;;  %2484 = vmatpush.msra.mxu2 %v752_v40  ;;  %v1216_v29 = vld [vmem:[%s3797_s7 + $0x17f0] sm:$0xff] }
 0x2a7   : > { %2503 = vmatpush.msra.mxu3 %v888_v41  ;;  %2445 = vmatpush.msra.mxu0 %v488_v20  ;;  %v1336_v9 = vld [vmem:[%s3797_s7 + $0x1bb0] sm:$0xff] }
 0x2a8   : > { %2464 = vmatpush.msra.mxu1 %v624_v42  ;;  %2485 = vmatpush.msra.mxu2 %v744_v43  ;;  %v1472_v10 = vld [vmem:[%s3797_s7 + $0x1ff0] sm:$0xff] }
 0x2a9   : > { %2504 = vmatpush.msra.mxu3 %v880_v44  ;;  %2446 = vmatpush.msra.mxu0 %v480_v45  ;;  %v1072_v11 = vld [vmem:[%s3797_s7 + $0x1370] sm:$0xff] }
 0x2aa   : > { %2465 = vmatpush.msra.mxu1 %v616_v46  ;;  %2486 = vmatpush.msra.mxu2 %v736_v47  ;;  %v1208_v31 = vld [vmem:[%s3797_s7 + $0x17b0] sm:$0xff] }
 0x2ab   : > { %2505 = vmatpush.msra.mxu3 %v872_v49  ;;  %2447 = vmatpush.msra.mxu0 %v472_v50  ;;  %v1328_v12 = vld [vmem:[%s3797_s7 + $0x1b70] sm:$0xff] }
 0x2ac   : > { %2466 = vmatpush.msra.mxu1 %v608_v52  ;;  %2487 = vmatpush.msra.mxu2 %v728_v53  ;;  %v1464_v32 = vld [vmem:[%s3797_s7 + $0x1fb0] sm:$0xff] }
 0x2ad   : > { %2506 = vmatpush.msra.mxu3 %v864_v55  ;;  %2448 = vmatpush.msra.mxu0 %v464_v57  ;;  %v1064_v13 = vld [vmem:[%s3797_s7 + $0x1330] sm:$0xff] }
 0x2ae   : > { %2467 = vmatpush.msra.mxu1 %v600_v60  ;;  %2488 = vmatpush.msra.mxu2 %v720_v61  ;;  %v1200_v6 = vld [vmem:[%s3797_s7 + $0x1770] sm:$0xff]  ;;  %v2151_v60 = vpop.f32.mrf.mxu1 }
 0x2af   : > { %2507 = vmatpush.msra.mxu3 %v856_v62  ;;  %2449 = vmatpush.msra.mxu0 %v456_v18  ;;  %v1320_v14 = vld [vmem:[%s3797_s7 + $0x1b30] sm:$0xff] }
 0x2b0   : > { %2468 = vmatpush.msra.mxu1 %v592_v63  ;;  %2489 = vmatpush.msra.mxu2 %v712_v3  ;;  %v1456_v16 = vld [vmem:[%s3797_s7 + $0x1f70] sm:$0xff]  ;;  %v2171_v63 = vpop.f32.mrf.mxu2 }
 0x2b1   : > { %2508 = vmatpush.msra.mxu3 %v848_v4  ;;  %2514 = vmatpush.msrb.mxu0 %v1088_v5  ;;  %v1056_v17 = vld [vmem:[%s3797_s7 + $0x12f0] sm:$0xff] }
 0x2b2   : > { %2554 = vmatpush.msrb.mxu2 %v1344_v24  ;;  %2469 = vmatpush.msra.mxu1 %v584_v7  ;;  %v1192_v19 = vld [vmem:[%s3797_s7 + $0x1730] sm:$0xff] }
 0x2b3   : > { %2509 = vmatpush.msra.mxu3 %v840_v27  ;;  %2515 = vmatpush.msrb.mxu0 %v1080_v8  ;;  %v1312_v39 = vld [vmem:[%s3797_s7 + $0x1af0] sm:$0xff]  ;;  %v2191_v8 = vpop.f32.mrf.mxu3 }
 0x2b4   : > { %2534 = vmatpush.msrb.mxu1 %v1216_v29  ;;  %2555 = vmatpush.msrb.mxu2 %v1336_v9  ;;  %v1448_v22 = vld [vmem:[%s3797_s7 + $0x1f30] sm:$0xff] }
 0x2b5   : > { %2574 = vmatpush.msrb.mxu3 %v1472_v10  ;;  %2516 = vmatpush.msrb.mxu0 %v1072_v11  ;;  %v1048_v21 = vld [vmem:[%s3797_s7 + $0x12b0] sm:$0xff]  ;;  %v577_v11 = vld [vmem:[%s3797_s7 + $0x3f8] sm:$0xff] }
 0x2b6   : > { %2535 = vmatpush.msrb.mxu1 %v1208_v31  ;;  %2556 = vmatpush.msrb.mxu2 %v1328_v12  ;;  %v1184_v23 = vld [vmem:[%s3797_s7 + $0x16f0] sm:$0xff]  ;;  %v833_v31 = vld [vmem:[%s3797_s7 + $0xbf8] sm:$0xff] }
 0x2b7   : > { %2575 = vmatpush.msrb.mxu3 %v1464_v32  ;;  %2517 = vmatpush.msrb.mxu0 %v1064_v13  ;;  %v1304_v25 = vld [vmem:[%s3797_s7 + $0x1ab0] sm:$0xff]  ;;  %v4862_v13 = vld [vmem:[%s3788_s15] sm:$0xff] }
 0x2b8   : > { %2536 = vmatpush.msrb.mxu1 %v1200_v6  ;;  %2557 = vmatpush.msrb.mxu2 %v1320_v14  ;;  %v1440_v59 = vld [vmem:[%s3797_s7 + $0x1ef0] sm:$0xff] }
 0x2b9   : > { %2576 = vmatpush.msrb.mxu3 %v1456_v16  ;;  %2518 = vmatpush.msrb.mxu0 %v1056_v17  ;;  %v1040_v26 = vld [vmem:[%s3797_s7 + $0x1270] sm:$0xff]  ;;  %v4867_v16 = vld [vmem:[%s3788_s15 + $0x18] sm:$0xff] }
 0x2ba   : > { %2537 = vmatpush.msrb.mxu1 %v1192_v19  ;;  %2558 = vmatpush.msrb.mxu2 %v1312_v39  ;;  %v1176_v28 = vld [vmem:[%s3797_s7 + $0x16b0] sm:$0xff]  ;;  %v569_v17 = vld [vmem:[%s3797_s7 + $0x3b8] sm:$0xff] }
 0x2bb   : > { %2577 = vmatpush.msrb.mxu3 %v1448_v22  ;;  %2519 = vmatpush.msrb.mxu0 %v1048_v21  ;;  %v1296_v48 = vld [vmem:[%s3797_s7 + $0x1a70] sm:$0xff]  ;;  %v705_v19 = vld [vmem:[%s3797_s7 + $0x7f8] sm:$0xff] }
 0x2bc   : > { %2538 = vmatpush.msrb.mxu1 %v1184_v23  ;;  %v1432_v0 = vld [vmem:[%s3797_s7 + $0x1eb0] sm:$0xff]  ;;  %2559 = vmatpush.msrb.mxu2 %v1304_v25  ;;  %v2131_v47 = vpop.f32.mrf.mxu0  ;;  %v825_v39 = vld [vmem:[%s3797_s7 + $0xbb8] sm:$0xff]  ;;  %v2231_v21 = vpop.f32.mrf.mxu1  ;;  %v4875_v23 = vld [vmem:[%s3788_s15 + $0x8] sm:$0xff] }
 0x2bd   : > { %2578 = vmatpush.msrb.mxu3 %v1440_v59  ;;  %v1032_v30 = vld [vmem:[%s3797_s7 + $0x1230] sm:$0xff]  ;;  %2520 = vmatpush.msrb.mxu0 %v1040_v26  ;;  %v2152_v18 = vadd.f32 %v2151_v60, %v2131_v47  ;;  %v961_v22 = vld [vmem:[%s3797_s7 + $0xff8] sm:$0xff] }
 0x2be   : > { %v1168_v1 = vld [vmem:[%s3797_s7 + $0x1670] sm:$0xff]  ;;  %2539 = vmatpush.msrb.mxu1 %v1176_v28  ;;  %2560 = vmatpush.msrb.mxu2 %v1296_v48  ;;  %v561_v25 = vld [vmem:[%s3797_s7 + $0x378] sm:$0xff] }
 0x2bf   : > { %v1288_v51 = vld [vmem:[%s3797_s7 + $0x1a30] sm:$0xff]  ;;  %2579 = vmatpush.msrb.mxu3 %v1432_v0  ;;  %2521 = vmatpush.msrb.mxu0 %v1032_v30  ;;  %v2172_v24 = vadd.f32 %v2171_v63, %v2152_v18  ;;  %v697_v59 = vld [vmem:[%s3797_s7 + $0x7b8] sm:$0xff] }
 0x2c0   : > { %v1424_v54 = vld [vmem:[%s3797_s7 + $0x1e70] sm:$0xff]  ;;  %2540 = vmatpush.msrb.mxu1 %v1168_v1  ;;  %2561 = vmatpush.msrb.mxu2 %v1288_v51  ;;  %v2251_v28 = vpop.f32.mrf.mxu2  ;;  %v817_v48 = vld [vmem:[%s3797_s7 + $0xb78] sm:$0xff] }
 0x2c1   : > { %v1024_v33 = vld [vmem:[%s3797_s7 + $0x11f0] sm:$0xff]  ;;  %2580 = vmatpush.msrb.mxu3 %v1424_v54  ;;  %v2192_v9 = vadd.f32 %v2191_v8, %v2172_v24  ;;  %2450 = vmatmul.f32.vlgmr.msra.gmra.mxu0 %v4862_v13  ;;  %v953_v0 = vld [vmem:[%s3797_s7 + $0xfb8] sm:$0xff] }
 0x2c2   : > { %v1160_v34 = vld [vmem:[%s3797_s7 + $0x1630] sm:$0xff]  ;;  %2522 = vmatpush.msrb.mxu0 %v1024_v33  ;;  %2510 = vmatmul.f32.vlgmr.msra.gmra.mxu3 %v4867_v16  ;;  %v553_v30 = vld [vmem:[%s3797_s7 + $0x338] sm:$0xff]  ;;  %v438_v33 = vld [vmem:[%s3820_s21 + $0x20] sm:$0xff] }
 0x2c3   : > { %v1280_v56 = vld [vmem:[%s3797_s7 + $0x19f0] sm:$0xff]  ;;  %2541 = vmatpush.msrb.mxu1 %v1160_v34  ;;  %v689_v51 = vld [vmem:[%s3797_s7 + $0x778] sm:$0xff] }
 0x2c4   : > { %v1416_v35 = vld [vmem:[%s3797_s7 + $0x1e30] sm:$0xff]  ;;  %2562 = vmatpush.msrb.mxu2 %v1280_v56  ;;  %v2211_v32 = vpop.f32.mrf.mxu0  ;;  %2470 = vmatmul.f32.vlgmr.msra.gmra.mxu1 %v4875_v23  ;;  %v809_v54 = vld [vmem:[%s3797_s7 + $0xb38] sm:$0xff] }
 0x2c5   : > { %v1016_v58 = vld [vmem:[%s3797_s7 + $0x11b0] sm:$0xff]  ;;  %2581 = vmatpush.msrb.mxu3 %v1416_v35  ;;  %v2212_v14 = vadd.f32 %v2211_v32, %v2192_v9  ;;  %v945_v56 = vld [vmem:[%s3797_s7 + $0xf78] sm:$0xff] }
 0x2c6   : > { %v1152_v36 = vld [vmem:[%s3797_s7 + $0x15f0] sm:$0xff]  ;;  %2523 = vmatpush.msrb.mxu0 %v1016_v58  ;;  %v665_v47 = vld [vmem:[%s3797_s7 + $0x6b8] sm:$0xff] }
 0x2c7   : > { %v1272_v37 = vld [vmem:[%s3797_s7 + $0x19b0] sm:$0xff]  ;;  %2542 = vmatpush.msrb.mxu1 %v1152_v36  ;;  %v2232_v26 = vadd.f32 %v2231_v21, %v2212_v14  ;;  %v545_v36 = vld [vmem:[%s3797_s7 + $0x2f8] sm:$0xff] }
 0x2c8   : > { %v1408_v38 = vld [vmem:[%s3797_s7 + $0x1df0] sm:$0xff]  ;;  %2563 = vmatpush.msrb.mxu2 %v1272_v37  ;;  %v681_v37 = vld [vmem:[%s3797_s7 + $0x738] sm:$0xff] }
 0x2c9   : > { %v1008_v15 = vld [vmem:[%s3797_s7 + $0x1170] sm:$0xff]  ;;  %2582 = vmatpush.msrb.mxu3 %v1408_v38  ;;  %v2252_v1 = vadd.f32 %v2251_v28, %v2232_v26  ;;  %v801_v38 = vld [vmem:[%s3797_s7 + $0xaf8] sm:$0xff] }
 0x2ca   : > { %v1144_v2 = vld [vmem:[%s3797_s7 + $0x15b0] sm:$0xff]  ;;  %2524 = vmatpush.msrb.mxu0 %v1008_v15  ;;  %v2271_v34 = vpop.f32.mrf.mxu3  ;;  %v513_v60 = vld [vmem:[%s3797_s7 + $0x1f8] sm:$0xff] }
 0x2cb   : > { %v1264_v40 = vld [vmem:[%s3797_s7 + $0x1970] sm:$0xff]  ;;  %2543 = vmatpush.msrb.mxu1 %v1144_v2  ;;  %v2272_v35 = vadd.f32 %v2271_v34, %v2252_v1  ;;  %v4895_v2 = vld [vmem:[%s3788_s15 + $0x20] sm:$0xff]  ;;  %v905_v18 = vld [vmem:[%s3797_s7 + $0xe38] sm:$0xff] }
 0x2cc   : > { %v1400_v41 = vld [vmem:[%s3797_s7 + $0x1db0] sm:$0xff]  ;;  %2564 = vmatpush.msrb.mxu2 %v1264_v40  ;;  %v937_v40 = vld [vmem:[%s3797_s7 + $0xf38] sm:$0xff] }
 0x2cd   : > { %v1000_v20 = vld [vmem:[%s3797_s7 + $0x1130] sm:$0xff]  ;;  %2583 = vmatpush.msrb.mxu3 %v1400_v41  ;;  %v2758_v15 = vadd.f32 %v2272_v35, %v438_v33  ;;  %v4900_v41 = vld [vmem:[%s3788_s15 + $0x38] sm:$0xff] }
 0x2ce   : > { %v1136_v42 = vld [vmem:[%s3797_s7 + $0x1570] sm:$0xff]  ;;  %2525 = vmatpush.msrb.mxu0 %v1000_v20  ;;  %v537_v20 = vld [vmem:[%s3797_s7 + $0x2b8] sm:$0xff] }
 0x2cf   : > { %v1256_v43 = vld [vmem:[%s3797_s7 + $0x1930] sm:$0xff]  ;;  %2544 = vmatpush.msrb.mxu1 %v1136_v42  ;;  %v673_v42 = vld [vmem:[%s3797_s7 + $0x6f8] sm:$0xff]  ;;  %2766 = vst [vmem:[%s3820_s21 + $0x20] sm:$0xff] %v2758_v15 }
 0x2d0   : > { %v1392_v44 = vld [vmem:[%s3797_s7 + $0x1d70] sm:$0xff]  ;;  %2565 = vmatpush.msrb.mxu2 %v1256_v43  ;;  %v793_v43 = vld [vmem:[%s3797_s7 + $0xab8] sm:$0xff] }
 0x2d1   : > { %v992_v45 = vld [vmem:[%s3797_s7 + $0x10f0] sm:$0xff]  ;;  %2584 = vmatpush.msrb.mxu3 %v1392_v44  ;;  %v929_v44 = vld [vmem:[%s3797_s7 + $0xef8] sm:$0xff] }
 0x2d2   : > { %v1128_v46 = vld [vmem:[%s3797_s7 + $0x1530] sm:$0xff]  ;;  %2526 = vmatpush.msrb.mxu0 %v992_v45  ;;  %v4909_v45 = vld [vmem:[%s3788_s15 + $0x28] sm:$0xff]  ;;  %v505_v63 = vld [vmem:[%s3797_s7 + $0x1b8] sm:$0xff] }
 0x2d3   : > { %v1248_v49 = vld [vmem:[%s3797_s7 + $0x18f0] sm:$0xff]  ;;  %2545 = vmatpush.msrb.mxu1 %v1128_v46  ;;  %v529_v46 = vld [vmem:[%s3797_s7 + $0x278] sm:$0xff] }
 0x2d4   : > { %v1384_v50 = vld [vmem:[%s3797_s7 + $0x1d30] sm:$0xff]  ;;  %2566 = vmatpush.msrb.mxu2 %v1248_v49  ;;  %v785_v49 = vld [vmem:[%s3797_s7 + $0xa78] sm:$0xff] }
 0x2d5   : > { %v984_v52 = vld [vmem:[%s3797_s7 + $0x10b0] sm:$0xff]  ;;  %2585 = vmatpush.msrb.mxu3 %v1384_v50  ;;  %v921_v50 = vld [vmem:[%s3797_s7 + $0xeb8] sm:$0xff] }
 0x2d6   : > { %v1120_v53 = vld [vmem:[%s3797_s7 + $0x14f0] sm:$0xff]  ;;  %2527 = vmatpush.msrb.mxu0 %v984_v52  ;;  %v521_v52 = vld [vmem:[%s3797_s7 + $0x238] sm:$0xff] }
 0x2d7   : > { %v1240_v55 = vld [vmem:[%s3797_s7 + $0x18b0] sm:$0xff]  ;;  %2546 = vmatpush.msrb.mxu1 %v1120_v53  ;;  %v657_v53 = vld [vmem:[%s3797_s7 + $0x678] sm:$0xff] }
 0x2d8   : > { %v1376_v57 = vld [vmem:[%s3797_s7 + $0x1cf0] sm:$0xff]  ;;  %2567 = vmatpush.msrb.mxu2 %v1240_v55  ;;  %v777_v55 = vld [vmem:[%s3797_s7 + $0xa38] sm:$0xff] }
 0x2d9   : > { %v976_v61 = vld [vmem:[%s3797_s7 + $0x1070] sm:$0xff]  ;;  %2586 = vmatpush.msrb.mxu3 %v1376_v57  ;;  %v913_v57 = vld [vmem:[%s3797_s7 + $0xe78] sm:$0xff] }
 0x2da   : > { %v1112_v62 = vld [vmem:[%s3797_s7 + $0x14b0] sm:$0xff]  ;;  %2528 = vmatpush.msrb.mxu0 %v976_v61  ;;  %v649_v61 = vld [vmem:[%s3797_s7 + $0x638] sm:$0xff] }
 0x2db   : > { %v1232_v3 = vld [vmem:[%s3797_s7 + $0x1870] sm:$0xff]  ;;  %2547 = vmatpush.msrb.mxu1 %v1112_v62  ;;  %v769_v62 = vld [vmem:[%s3797_s7 + $0x9f8] sm:$0xff] }
 0x2dc   : > { %v1368_v4 = vld [vmem:[%s3797_s7 + $0x1cb0] sm:$0xff]  ;;  %2568 = vmatpush.msrb.mxu2 %v1232_v3  ;;  %v641_v3 = vld [vmem:[%s3797_s7 + $0x5f8] sm:$0xff] }
 0x2dd   : > { %v968_v5 = vld [vmem:[%s3797_s7 + $0x1030] sm:$0xff]  ;;  %2587 = vmatpush.msrb.mxu3 %v1368_v4  ;;  %v761_v4 = vld [vmem:[%s3797_s7 + $0x9b8] sm:$0xff] }
 0x2de   : > { %v1104_v7 = vld [vmem:[%s3797_s7 + $0x1470] sm:$0xff]  ;;  %2529 = vmatpush.msrb.mxu0 %v968_v5  ;;  %v897_v5 = vld [vmem:[%s3797_s7 + $0xdf8] sm:$0xff] }
 0x2df   : > { %v1224_v27 = vld [vmem:[%s3797_s7 + $0x1830] sm:$0xff]  ;;  %2548 = vmatpush.msrb.mxu1 %v1104_v7  ;;  %2530 = vmatmul.f32.vlgmr.msrb.gmra.mxu0 %v4895_v2  ;;  %v497_v24 = vld [vmem:[%s3797_s7 + $0x178] sm:$0xff] }
 0x2e0   : > { %v1360_v29 = vld [vmem:[%s3797_s7 + $0x1c70] sm:$0xff]  ;;  %2569 = vmatpush.msrb.mxu2 %v1224_v27  ;;  %2594 = vmatpush.msra.mxu0 %v577_v11  ;;  %v633_v7 = vld [vmem:[%s3797_s7 + $0x5b8] sm:$0xff] }
 0x2e1   : > { %v4855_v10 = vld [vmem:[%s3788_s15 + $0x10] sm:$0xff]  ;;  %2588 = vmatpush.msrb.mxu3 %v1360_v29  ;;  %v753_v27 = vld [vmem:[%s3797_s7 + $0x978] sm:$0xff] }
 0x2e2   : > { %2490 = vmatmul.f32.vlgmr.msra.gmra.mxu2 %v4855_v10  ;;  %v1096_v12 = vld [vmem:[%s3797_s7 + $0x1430] sm:$0xff]  ;;  %2595 = vmatpush.msra.mxu0 %v569_v17  ;;  %v889_v8 = vld [vmem:[%s3797_s7 + $0xdb8] sm:$0xff] }
 0x2e3   : > { %v1352_v6 = vld [vmem:[%s3797_s7 + $0x1c30] sm:$0xff]  ;;  %2634 = vmatpush.msra.mxu2 %v833_v31  ;;  %2549 = vmatpush.msrb.mxu1 %v1096_v12  ;;  %v489_v29 = vld [vmem:[%s3797_s7 + $0x138] sm:$0xff] }
 0x2e4   : > { %2589 = vmatpush.msrb.mxu3 %v1352_v6  ;;  %2596 = vmatpush.msra.mxu0 %v561_v25  ;;  %v4888_v58 = vld [vmem:[%s3788_s15 + $0x30] sm:$0xff]  ;;  %v625_v9 = vld [vmem:[%s3797_s7 + $0x578] sm:$0xff]  ;;  %s5180_s15 = sld [smem:[#allocation16_spill]] }
 0x2e5   : > { %2614 = vmatpush.msra.mxu1 %v705_v19  ;;  %2635 = vmatpush.msra.mxu2 %v825_v39  ;;  %v745_v11 = vld [vmem:[%s3797_s7 + $0x938] sm:$0xff] }
 0x2e6   : > { %2654 = vmatpush.msra.mxu3 %v961_v22  ;;  %2597 = vmatpush.msra.mxu0 %v553_v30  ;;  %v881_v31 = vld [vmem:[%s3797_s7 + $0xd78] sm:$0xff] }
 0x2e7   : > { %2615 = vmatpush.msra.mxu1 %v697_v59  ;;  %2636 = vmatpush.msra.mxu2 %v817_v48  ;;  %v481_v12 = vld [vmem:[%s3797_s7 + $0xf8] sm:$0xff] }
 0x2e8   : > { %2655 = vmatpush.msra.mxu3 %v953_v0  ;;  %2598 = vmatpush.msra.mxu0 %v545_v36  ;;  %v617_v32 = vld [vmem:[%s3797_s7 + $0x538] sm:$0xff] }
 0x2e9   : > { %2616 = vmatpush.msra.mxu1 %v689_v51  ;;  %2637 = vmatpush.msra.mxu2 %v809_v54  ;;  %v737_v6 = vld [vmem:[%s3797_s7 + $0x8f8] sm:$0xff] }
 0x2ea   : > { %2570 = vmatmul.f32.vlgmr.msrb.gmra.mxu2 %v4888_v58  ;;  %2656 = vmatpush.msra.mxu3 %v945_v56  ;;  %v873_v14 = vld [vmem:[%s3797_s7 + $0xd38] sm:$0xff]  ;;  %p3071_p10 = scmp.ne.s32.totalorder %s5180_s15, 3 }
 0x2eb   : > { %2590 = vmatmul.f32.vlgmr.msrb.gmra.mxu3 %v4900_v41  ;;  %2617 = vmatpush.msra.mxu1 %v681_v37  ;;  %v473_v17 = vld [vmem:[%s3797_s7 + $0xb8] sm:$0xff] }
 0x2ec   : > { %2638 = vmatpush.msra.mxu2 %v801_v38  ;;  %2657 = vmatpush.msra.mxu3 %v937_v40  ;;  %v609_v19 = vld [vmem:[%s3797_s7 + $0x4f8] sm:$0xff] }
 0x2ed   : > { %2550 = vmatmul.f32.vlgmr.msrb.gmra.mxu1 %v4909_v45  ;;  %2599 = vmatpush.msra.mxu0 %v537_v20  ;;  %v729_v39 = vld [vmem:[%s3797_s7 + $0x8b8] sm:$0xff] }
 0x2ee   : > { %2618 = vmatpush.msra.mxu1 %v673_v42  ;;  %2639 = vmatpush.msra.mxu2 %v793_v43  ;;  %v865_v22 = vld [vmem:[%s3797_s7 + $0xcf8] sm:$0xff] }
 0x2ef   : > { %2658 = vmatpush.msra.mxu3 %v929_v44  ;;  %2600 = vmatpush.msra.mxu0 %v529_v46  ;;  %v465_v21 = vld [vmem:[%s3797_s7 + $0x78] sm:$0xff] }
 0x2f0   : > { %2619 = vmatpush.msra.mxu1 %v665_v47  ;;  %2640 = vmatpush.msra.mxu2 %v785_v49  ;;  %v601_v25 = vld [vmem:[%s3797_s7 + $0x4b8] sm:$0xff] }
 0x2f1   : > { %2659 = vmatpush.msra.mxu3 %v921_v50  ;;  %2601 = vmatpush.msra.mxu0 %v521_v52  ;;  %v721_v59 = vld [vmem:[%s3797_s7 + $0x878] sm:$0xff] }
 0x2f2   : > { %2620 = vmatpush.msra.mxu1 %v657_v53  ;;  %2641 = vmatpush.msra.mxu2 %v777_v55  ;;  %v857_v26 = vld [vmem:[%s3797_s7 + $0xcb8] sm:$0xff] }
 0x2f3   : > { %2660 = vmatpush.msra.mxu3 %v913_v57  ;;  %2602 = vmatpush.msra.mxu0 %v513_v60  ;;  %v457_v28 = vld [vmem:[%s3797_s7 + $0x38] sm:$0xff] }
 0x2f4   : > { %2621 = vmatpush.msra.mxu1 %v649_v61  ;;  %2642 = vmatpush.msra.mxu2 %v769_v62  ;;  %v593_v48 = vld [vmem:[%s3797_s7 + $0x478] sm:$0xff] }
 0x2f5   : > { %2661 = vmatpush.msra.mxu3 %v905_v18  ;;  %2603 = vmatpush.msra.mxu0 %v505_v63  ;;  %v713_v0 = vld [vmem:[%s3797_s7 + $0x838] sm:$0xff] }
 0x2f6   : > { %2622 = vmatpush.msra.mxu1 %v641_v3  ;;  %2643 = vmatpush.msra.mxu2 %v761_v4  ;;  %v849_v30 = vld [vmem:[%s3797_s7 + $0xc78] sm:$0xff] }
 0x2f7   : > { %2662 = vmatpush.msra.mxu3 %v897_v5  ;;  %2604 = vmatpush.msra.mxu0 %v497_v24  ;;  %v1089_v1 = vld [vmem:[%s3797_s7 + $0x13f8] sm:$0xff] }
 0x2f8   : > { %2623 = vmatpush.msra.mxu1 %v633_v7  ;;  %2644 = vmatpush.msra.mxu2 %v753_v27  ;;  %v1345_v51 = vld [vmem:[%s3797_s7 + $0x1bf8] sm:$0xff] }
 0x2f9   : > { %2663 = vmatpush.msra.mxu3 %v889_v8  ;;  %2605 = vmatpush.msra.mxu0 %v489_v29  ;;  %v585_v54 = vld [vmem:[%s3797_s7 + $0x438] sm:$0xff] }
 0x2fa   : > { %2624 = vmatpush.msra.mxu1 %v625_v9  ;;  %2645 = vmatpush.msra.mxu2 %v745_v11  ;;  %v841_v33 = vld [vmem:[%s3797_s7 + $0xc38] sm:$0xff] }
 0x2fb   : > { %2664 = vmatpush.msra.mxu3 %v881_v31  ;;  %2606 = vmatpush.msra.mxu0 %v481_v12  ;;  %v1081_v34 = vld [vmem:[%s3797_s7 + $0x13b8] sm:$0xff] }
 0x2fc   : > { %2625 = vmatpush.msra.mxu1 %v617_v32  ;;  %2646 = vmatpush.msra.mxu2 %v737_v6  ;;  %v1217_v56 = vld [vmem:[%s3797_s7 + $0x17f8] sm:$0xff] }
 0x2fd   : > { %2665 = vmatpush.msra.mxu3 %v873_v14  ;;  %2607 = vmatpush.msra.mxu0 %v473_v17  ;;  %v1337_v35 = vld [vmem:[%s3797_s7 + $0x1bb8] sm:$0xff] }
 0x2fe   : > { %2626 = vmatpush.msra.mxu1 %v609_v19  ;;  %2647 = vmatpush.msra.mxu2 %v729_v39  ;;  %v1473_v36 = vld [vmem:[%s3797_s7 + $0x1ff8] sm:$0xff] }
 0x2ff   : > { %2666 = vmatpush.msra.mxu3 %v865_v22  ;;  %2608 = vmatpush.msra.mxu0 %v465_v21  ;;  %v1073_v37 = vld [vmem:[%s3797_s7 + $0x1378] sm:$0xff]  ;;  %v2291_v21 = vpop.f32.mrf.mxu0 }
 0x300   : > { %2627 = vmatpush.msra.mxu1 %v601_v25  ;;  %2648 = vmatpush.msra.mxu2 %v721_v59  ;;  %v1209_v38 = vld [vmem:[%s3797_s7 + $0x17b8] sm:$0xff] }
 0x301   : > { %2667 = vmatpush.msra.mxu3 %v857_v26  ;;  %2609 = vmatpush.msra.mxu0 %v457_v28  ;;  %v1329_v15 = vld [vmem:[%s3797_s7 + $0x1b78] sm:$0xff] }
 0x302   : > { %2628 = vmatpush.msra.mxu1 %v593_v48  ;;  %2649 = vmatpush.msra.mxu2 %v713_v0  ;;  %v1465_v40 = vld [vmem:[%s3797_s7 + $0x1fb8] sm:$0xff]  ;;  %v2311_v48 = vpop.f32.mrf.mxu1 }
 0x303   : > { %2668 = vmatpush.msra.mxu3 %v849_v30  ;;  %2674 = vmatpush.msrb.mxu0 %v1089_v1  ;;  %v1065_v20 = vld [vmem:[%s3797_s7 + $0x1338] sm:$0xff]  ;;  %v2312_v30 = vadd.f32 %v2311_v48, %v2291_v21  ;;  %v2331_v1 = vpop.f32.mrf.mxu2 }
 0x304   : > { %2714 = vmatpush.msrb.mxu2 %v1345_v51  ;;  %2629 = vmatpush.msra.mxu1 %v585_v54  ;;  %v1201_v42 = vld [vmem:[%s3797_s7 + $0x1778] sm:$0xff] }
 0x305   : > { %2669 = vmatpush.msra.mxu3 %v841_v33  ;;  %2675 = vmatpush.msrb.mxu0 %v1081_v34  ;;  %v1321_v43 = vld [vmem:[%s3797_s7 + $0x1b38] sm:$0xff]  ;;  %v2332_v33 = vadd.f32 %v2331_v1, %v2312_v30 }
 0x306   : > { %2694 = vmatpush.msrb.mxu1 %v1217_v56  ;;  %2715 = vmatpush.msrb.mxu2 %v1337_v35  ;;  %v1457_v44 = vld [vmem:[%s3797_s7 + $0x1f78] sm:$0xff]  ;;  %v2351_v35 = vpop.f32.mrf.mxu3 }
 0x307   : > { %2734 = vmatpush.msrb.mxu3 %v1473_v36  ;;  %2676 = vmatpush.msrb.mxu0 %v1073_v37  ;;  %v1057_v46 = vld [vmem:[%s3797_s7 + $0x12f8] sm:$0xff] }
 0x308   : > { %2695 = vmatpush.msrb.mxu1 %v1209_v38  ;;  %2716 = vmatpush.msrb.mxu2 %v1329_v15  ;;  %v1193_v47 = vld [vmem:[%s3797_s7 + $0x1738] sm:$0xff]  ;;  %v2352_v38 = vadd.f32 %v2351_v35, %v2332_v33 }
 0x309   : > { %2735 = vmatpush.msrb.mxu3 %v1465_v40  ;;  %2677 = vmatpush.msrb.mxu0 %v1065_v20  ;;  %v1313_v49 = vld [vmem:[%s3797_s7 + $0x1af8] sm:$0xff] }
 0x30a   : > { %2696 = vmatpush.msrb.mxu1 %v1201_v42  ;;  %v1449_v50 = vld [vmem:[%s3797_s7 + $0x1f38] sm:$0xff]  ;;  %2717 = vmatpush.msrb.mxu2 %v1321_v43 }
 0x30b   : > { %2736 = vmatpush.msrb.mxu3 %v1457_v44  ;;  %v1049_v52 = vld [vmem:[%s3797_s7 + $0x12b8] sm:$0xff]  ;;  %2678 = vmatpush.msrb.mxu0 %v1057_v46  ;;  %v2371_v40 = vpop.f32.mrf.mxu0 }
 0x30c   : > { %v1185_v53 = vld [vmem:[%s3797_s7 + $0x16f8] sm:$0xff]  ;;  %2697 = vmatpush.msrb.mxu1 %v1193_v47  ;;  %2718 = vmatpush.msrb.mxu2 %v1313_v49  ;;  %v2372_v43 = vadd.f32 %v2371_v40, %v2352_v38 }
 0x30d   : > { %v1305_v55 = vld [vmem:[%s3797_s7 + $0x1ab8] sm:$0xff]  ;;  %2737 = vmatpush.msrb.mxu3 %v1449_v50  ;;  %2679 = vmatpush.msrb.mxu0 %v1049_v52  ;;  %v439_v50 = vld [vmem:[%s3820_s21 + $0x28] sm:$0xff] }
 0x30e   : > { %v1441_v57 = vld [vmem:[%s3797_s7 + $0x1ef8] sm:$0xff]  ;;  %2698 = vmatpush.msrb.mxu1 %v1185_v53  ;;  %2719 = vmatpush.msrb.mxu2 %v1305_v55 }
 0x30f   : > { %v1041_v60 = vld [vmem:[%s3797_s7 + $0x1278] sm:$0xff]  ;;  %2738 = vmatpush.msrb.mxu3 %v1441_v57  ;;  %2650 = vmatmul.f32.vlgmr.msra.gmra.mxu2 %v4855_v10 }
 0x310   : > { %v1177_v61 = vld [vmem:[%s3797_s7 + $0x16b8] sm:$0xff]  ;;  %2680 = vmatpush.msrb.mxu0 %v1041_v60  ;;  %2670 = vmatmul.f32.vlgmr.msra.gmra.mxu3 %v4867_v16 }
 0x311   : > { %v1297_v62 = vld [vmem:[%s3797_s7 + $0x1a78] sm:$0xff]  ;;  %2699 = vmatpush.msrb.mxu1 %v1177_v61  ;;  %2610 = vmatmul.f32.vlgmr.msra.gmra.mxu0 %v4862_v13 }
 0x312   : > { %v1433_v18 = vld [vmem:[%s3797_s7 + $0x1eb8] sm:$0xff]  ;;  %2720 = vmatpush.msrb.mxu2 %v1297_v62  ;;  %2630 = vmatmul.f32.vlgmr.msra.gmra.mxu1 %v4875_v23 }
 0x313   : > { %v1033_v63 = vld [vmem:[%s3797_s7 + $0x1238] sm:$0xff]  ;;  %2739 = vmatpush.msrb.mxu3 %v1433_v18  ;;  %v2411_v47 = vpop.f32.mrf.mxu2 }
 0x314   : > { %v1169_v3 = vld [vmem:[%s3797_s7 + $0x1678] sm:$0xff]  ;;  %2681 = vmatpush.msrb.mxu0 %v1033_v63 }
 0x315   : > { %v1289_v4 = vld [vmem:[%s3797_s7 + $0x1a38] sm:$0xff]  ;;  %2700 = vmatpush.msrb.mxu1 %v1169_v3 }
 0x316   : > { %v1425_v5 = vld [vmem:[%s3797_s7 + $0x1e78] sm:$0xff]  ;;  %2721 = vmatpush.msrb.mxu2 %v1289_v4 }
 0x317   : > { %v1025_v24 = vld [vmem:[%s3797_s7 + $0x11f8] sm:$0xff]  ;;  %2740 = vmatpush.msrb.mxu3 %v1425_v5 }
 0x318   : > { %v1161_v7 = vld [vmem:[%s3797_s7 + $0x1638] sm:$0xff]  ;;  %2682 = vmatpush.msrb.mxu0 %v1025_v24  ;;  %v2391_v44 = vpop.f32.mrf.mxu1  ;;  %v440_v24 = vld [vmem:[%s3820_s21 + $0x30] sm:$0xff] }
 0x319   : > { %v1281_v27 = vld [vmem:[%s3797_s7 + $0x19f8] sm:$0xff]  ;;  %2701 = vmatpush.msrb.mxu1 %v1161_v7  ;;  %v2392_v46 = vadd.f32 %v2391_v44, %v2372_v43 }
 0x31a   : > { %v1417_v8 = vld [vmem:[%s3797_s7 + $0x1e38] sm:$0xff]  ;;  %2722 = vmatpush.msrb.mxu2 %v1281_v27 }
 0x31b   : > { %v1017_v29 = vld [vmem:[%s3797_s7 + $0x11b8] sm:$0xff]  ;;  %2741 = vmatpush.msrb.mxu3 %v1417_v8  ;;  %v2412_v49 = vadd.f32 %v2411_v47, %v2392_v46 }
 0x31c   : > { %v1153_v9 = vld [vmem:[%s3797_s7 + $0x15f8] sm:$0xff]  ;;  %2683 = vmatpush.msrb.mxu0 %v1017_v29  ;;  %v2431_v52 = vpop.f32.mrf.mxu3 }
 0x31d   : > { %v1273_v11 = vld [vmem:[%s3797_s7 + $0x19b8] sm:$0xff]  ;;  %2702 = vmatpush.msrb.mxu1 %v1153_v9  ;;  %v2432_v53 = vadd.f32 %v2431_v52, %v2412_v49 }
 0x31e   : > { %v1409_v31 = vld [vmem:[%s3797_s7 + $0x1df8] sm:$0xff]  ;;  %2723 = vmatpush.msrb.mxu2 %v1273_v11 }
 0x31f   : > { %v1009_v12 = vld [vmem:[%s3797_s7 + $0x1178] sm:$0xff]  ;;  %2742 = vmatpush.msrb.mxu3 %v1409_v31  ;;  %v2759_v55 = vadd.f32 %v2432_v53, %v439_v50 }
 0x320   : > { %v1145_v32 = vld [vmem:[%s3797_s7 + $0x15b8] sm:$0xff]  ;;  %2684 = vmatpush.msrb.mxu0 %v1009_v12 }
 0x321   : > { %v1265_v6 = vld [vmem:[%s3797_s7 + $0x1978] sm:$0xff]  ;;  %2703 = vmatpush.msrb.mxu1 %v1145_v32  ;;  %2767 = vst [vmem:[%s3820_s21 + $0x28] sm:$0xff] %v2759_v55 }
 0x322   : > { %v1401_v14 = vld [vmem:[%s3797_s7 + $0x1db8] sm:$0xff]  ;;  %2724 = vmatpush.msrb.mxu2 %v1265_v6 }
 0x323   : > { %v1001_v17 = vld [vmem:[%s3797_s7 + $0x1138] sm:$0xff]  ;;  %2743 = vmatpush.msrb.mxu3 %v1401_v14 }
 0x324   : > { %v1137_v19 = vld [vmem:[%s3797_s7 + $0x1578] sm:$0xff]  ;;  %2685 = vmatpush.msrb.mxu0 %v1001_v17 }
 0x325   : > { %v1257_v39 = vld [vmem:[%s3797_s7 + $0x1938] sm:$0xff]  ;;  %2704 = vmatpush.msrb.mxu1 %v1137_v19 }
 0x326   : > { %v1393_v22 = vld [vmem:[%s3797_s7 + $0x1d78] sm:$0xff]  ;;  %2725 = vmatpush.msrb.mxu2 %v1257_v39 }
 0x327   : > { %v993_v25 = vld [vmem:[%s3797_s7 + $0x10f8] sm:$0xff]  ;;  %2744 = vmatpush.msrb.mxu3 %v1393_v22 }
 0x328   : > { %v1129_v59 = vld [vmem:[%s3797_s7 + $0x1538] sm:$0xff]  ;;  %2686 = vmatpush.msrb.mxu0 %v993_v25 }
 0x329   : > { %v1249_v26 = vld [vmem:[%s3797_s7 + $0x18f8] sm:$0xff]  ;;  %2705 = vmatpush.msrb.mxu1 %v1129_v59 }
 0x32a   : > { %v1385_v28 = vld [vmem:[%s3797_s7 + $0x1d38] sm:$0xff]  ;;  %2726 = vmatpush.msrb.mxu2 %v1249_v26 }
 0x32b   : > { %v985_v10 = vld [vmem:[%s3797_s7 + $0x10b8] sm:$0xff]  ;;  %2745 = vmatpush.msrb.mxu3 %v1385_v28 }
 0x32c   : > { %v1121_v0 = vld [vmem:[%s3797_s7 + $0x14f8] sm:$0xff]  ;;  %2687 = vmatpush.msrb.mxu0 %v985_v10 }
 0x32d   : > { %v1241_v51 = vld [vmem:[%s3797_s7 + $0x18b8] sm:$0xff]  ;;  %2706 = vmatpush.msrb.mxu1 %v1121_v0 }
 0x32e   : > { %v1377_v54 = vld [vmem:[%s3797_s7 + $0x1cf8] sm:$0xff]  ;;  %2727 = vmatpush.msrb.mxu2 %v1241_v51 }
 0x32f   : > { %v977_v13 = vld [vmem:[%s3797_s7 + $0x1078] sm:$0xff]  ;;  %2746 = vmatpush.msrb.mxu3 %v1377_v54 }
 0x330   : > { %v1113_v16 = vld [vmem:[%s3797_s7 + $0x14b8] sm:$0xff]  ;;  %2688 = vmatpush.msrb.mxu0 %v977_v13 }
 0x331   : > { %v1233_v34 = vld [vmem:[%s3797_s7 + $0x1878] sm:$0xff]  ;;  %2707 = vmatpush.msrb.mxu1 %v1113_v16 }
 0x332   : > { %v1369_v56 = vld [vmem:[%s3797_s7 + $0x1cb8] sm:$0xff]  ;;  %2728 = vmatpush.msrb.mxu2 %v1233_v34 }
 0x333   : > { %v969_v36 = vld [vmem:[%s3797_s7 + $0x1038] sm:$0xff]  ;;  %2747 = vmatpush.msrb.mxu3 %v1369_v56 }
 0x334   : > { %v1105_v37 = vld [vmem:[%s3797_s7 + $0x1478] sm:$0xff]  ;;  %2689 = vmatpush.msrb.mxu0 %v969_v36 }
 0x335   : > { %v1225_v23 = vld [vmem:[%s3797_s7 + $0x1838] sm:$0xff]  ;;  %2708 = vmatpush.msrb.mxu1 %v1105_v37  ;;  %2690 = vmatmul.f32.vlgmr.msrb.gmra.mxu0 %v4895_v2 }
 0x336   : > { %v1361_v15 = vld [vmem:[%s3797_s7 + $0x1c78] sm:$0xff]  ;;  %2729 = vmatpush.msrb.mxu2 %v1225_v23 }
 0x337   : > { %v1097_v20 = vld [vmem:[%s3797_s7 + $0x1438] sm:$0xff]  ;;  %2748 = vmatpush.msrb.mxu3 %v1361_v15  ;;  %2730 = vmatmul.f32.vlgmr.msrb.gmra.mxu2 %v4888_v58 }
 0x338   : > { %v1353_v42 = vld [vmem:[%s3797_s7 + $0x1c38] sm:$0xff]  ;;  %2709 = vmatpush.msrb.mxu1 %v1097_v20 }
 0x339   : > { %2749 = vmatpush.msrb.mxu3 %v1353_v42  ;;  %2710 = vmatmul.f32.vlgmr.msrb.gmra.mxu1 %v4909_v45  ;;  %v441_v25 = vld [vmem:[%s3820_s21 + $0x38] sm:$0xff] }
 0x33a   : > { %2750 = vmatmul.f32.vlgmr.msrb.gmra.mxu3 %v4900_v41 }
 0x33e   : > { %v2451_v57 = vpop.f32.mrf.mxu0 }
 0x341   : > { %v2471_v2 = vpop.f32.mrf.mxu1 }
 0x342   : > { %v2472_v58 = vadd.f32 %v2471_v2, %v2451_v57 }
 0x345   : > { %v2511_v62 = vpop.f32.mrf.mxu3 }
 0x35c   : > { %v2531_v63 = vpop.f32.mrf.mxu0 }
 0x365   : > { %v2491_v60 = vpop.f32.mrf.mxu2 }
 0x366   : > { %v2492_v61 = vadd.f32 %v2491_v60, %v2472_v58 }
 0x368   : > { %v2512_v18 = vadd.f32 %v2511_v62, %v2492_v61 }
 0x36a   : > { %v2532_v3 = vadd.f32 %v2531_v63, %v2512_v18  ;;  %v2551_v45 = vpop.f32.mrf.mxu1 }
 0x36c   : > { %v2552_v4 = vadd.f32 %v2551_v45, %v2532_v3 }
 0x36d   : > { %v2571_v41 = vpop.f32.mrf.mxu2 }
 0x36e   : > { %v2572_v5 = vadd.f32 %v2571_v41, %v2552_v4  ;;  %v2591_v7 = vpop.f32.mrf.mxu3 }
 0x370   : > { %v2592_v27 = vadd.f32 %v2591_v7, %v2572_v5 }
 0x372   : > { %v2760_v8 = vadd.f32 %v2592_v27, %v440_v24 }
 0x374   : > { %2768 = vst [vmem:[%s3820_s21 + $0x30] sm:$0xff] %v2760_v8 }
 0x38e   : > { %v2611_v29 = vpop.f32.mrf.mxu0 }
 0x38f   : > { %v2631_v9 = vpop.f32.mrf.mxu1 }
 0x390   : > { %v2632_v11 = vadd.f32 %v2631_v9, %v2611_v29 }
 0x392   : > { %v2651_v31 = vpop.f32.mrf.mxu2 }
 0x393   : > { %v2652_v12 = vadd.f32 %v2651_v31, %v2632_v11  ;;  %v2671_v32 = vpop.f32.mrf.mxu3 }
 0x395   : > { %v2672_v6 = vadd.f32 %v2671_v32, %v2652_v12 }
 0x3b2   : > { %v2691_v14 = vpop.f32.mrf.mxu0 }
 0x3b3   : > { %v2692_v17 = vadd.f32 %v2691_v14, %v2672_v6 }
 0x3b6   : > { %v2711_v19 = vpop.f32.mrf.mxu1 }
 0x3b7   : > { %v2712_v39 = vadd.f32 %v2711_v19, %v2692_v17 }
 0x3ba   : > { %v2731_v22 = vpop.f32.mrf.mxu2 }
 0x3bb   : > { %v2732_v21 = vadd.f32 %v2731_v22, %v2712_v39 }
 0x3bd   : > { %v2751_v59 = vpop.f32.mrf.mxu3 }
 0x3be   : > { %v2752_v26 = vadd.f32 %v2751_v59, %v2732_v21  ;;  %2773 = sbr.rel (%p3071_p10) target bundleno = 986 (0x3da), region = 68 }
 0x3c0   : > { %v2761_v28 = vadd.f32 %v2752_v26, %v441_v25 }
 0x3c2   : > { %2769 = vst [vmem:[%s3820_s21 + $0x38] sm:$0xff] %v2761_v28 }
 0x3c3   : > { %v2774_v48 = vld [vmem:[%s3820_s21] sm:$0xff]  ;;  %v5038_v0 = vld [vmem:[%s352_s16] sm:$0xff]  ;;  %v2775_v54 = vld [vmem:[%s3820_s21 + $0x8] sm:$0xff] }
 0x3c4   : > { %v2782_v10 = vld [vmem:[%s342_s18] sm:$0xff]  ;;  %v2810_v1 = vperm.slane %v5038_v0, 0  ;;  %v2811_v16 = vperm.slane %v5038_v0, 1  ;;  %v2776_v56 = vld [vmem:[%s3820_s21 + $0x10] sm:$0xff]  ;;  %v2812_v36 = vperm.slane %v5038_v0, 2  ;;  %v2777_v37 = vld [vmem:[%s3820_s21 + $0x18] sm:$0xff] }
 0x3c5   : > { %v2784_v30 = vperm.slane %v2782_v10, 0  ;;  %v5043_v51 = vld [vmem:[%s362_s1] sm:$0xff]  ;;  %v2785_v13 = vperm.slane %v2782_v10, 1  ;;  %v2786_v35 = vperm.slane %v2782_v10, 2  ;;  %v2787_v40 = vperm.slane %v2782_v10, 3  ;;  %v2780_v41 = vld [vmem:[%s3820_s21 + $0x30] sm:$0xff] }
 0x3c6   : > { %v2836_v33 = vperm.slane %v5043_v51, 0  ;;  %v2837_v34 = vperm.slane %v5043_v51, 1  ;;  %v2838_v15 = vperm.slane %v5043_v51, 2  ;;  %v2778_v20 = vld [vmem:[%s3820_s21 + $0x20] sm:$0xff]  ;;  %v2813_v43 = vperm.slane %v5038_v0, 3  ;;  %v2779_v53 = vld [vmem:[%s3820_s21 + $0x28] sm:$0xff] }
 0x3c7   : > { %v2800_v38 = vadd.f32 %v2784_v30, %v2774_v48  ;;  %v2801_v23 = vadd.f32 %v2785_v13, %v2775_v54  ;;  %v2802_v42 = vadd.f32 %v2786_v35, %v2776_v56  ;;  %v2839_v44 = vperm.slane %v5043_v51, 3 }
 0x3c8   : > { %v2788_v46 = vperm.slane %v2782_v10, 4  ;;  %v2803_v50 = vadd.f32 %v2787_v40, %v2777_v37  ;;  %v2814_v52 = vperm.slane %v5038_v0, 4  ;;  %v2840_v2 = vperm.slane %v5043_v51, 4 }
 0x3c9   : > { %v2826_v47 = vmul.f32 %v2810_v1, %v2800_v38  ;;  %v2827_v49 = vmul.f32 %v2811_v16, %v2801_v23  ;;  %v2828_v55 = vmul.f32 %v2812_v36, %v2802_v42  ;;  %v2789_v58 = vperm.slane %v2782_v10, 5  ;;  %v2781_v31 = vld [vmem:[%s3820_s21 + $0x38] sm:$0xff] }
 0x3ca   : > { %v2804_v57 = vadd.f32 %v2788_v46, %v2778_v20  ;;  %v2829_v62 = vmul.f32 %v2813_v43, %v2803_v50  ;;  %v2815_v18 = vperm.slane %v5038_v0, 5  ;;  %v2841_v4 = vperm.slane %v5043_v51, 5 }
 0x3cb   : > { %v2852_v60 = vadd.f32 %v2836_v33, %v2826_v47  ;;  %v2853_v61 = vadd.f32 %v2837_v34, %v2827_v49  ;;  %v2854_v63 = vadd.f32 %v2838_v15, %v2828_v55  ;;  %v2805_v45 = vadd.f32 %v2789_v58, %v2779_v53 }
 0x3cc   : > { %v2830_v3 = vmul.f32 %v2814_v52, %v2804_v57  ;;  %v2855_v7 = vadd.f32 %v2839_v44, %v2829_v62  ;;  %v2790_v27 = vperm.slane %v2782_v10, 6  ;;  %v2816_v11 = vperm.slane %v5038_v0, 6 }
 0x3cd   : > { %v2860_v5 = vmax.f32 %v2852_v60, 0.0  ;;  %v2861_v24 = vmax.f32 %v2853_v61, 0.0  ;;  %v2862_v8 = vmax.f32 %v2854_v63, 0.0  ;;  %v2831_v9 = vmul.f32 %v2815_v18, %v2805_v45 }
 0x3ce   : > { %v2856_v29 = vadd.f32 %v2840_v2, %v2830_v3  ;;  %v2863_v12 = vmax.f32 %v2855_v7, 0.0  ;;  %v2806_v32 = vadd.f32 %v2790_v27, %v2780_v41  ;;  %v2842_v6 = vperm.slane %v5043_v51, 6 }
 0x3cf   : > { %2868 = vst [vmem:[%s3820_s21] sm:$0xff] %v2860_v5  ;;  %v2791_v14 = vperm.slane %v2782_v10, 7  ;;  %v2857_v19 = vadd.f32 %v2841_v4, %v2831_v9  ;;  %v2817_v39 = vperm.slane %v5038_v0, 7  ;;  %v2843_v25 = vperm.slane %v5043_v51, 7 }
 0x3d0   : > { %2869 = vst [vmem:[%s3820_s21 + $0x8] sm:$0xff] %v2861_v24  ;;  %v2864_v17 = vmax.f32 %v2856_v29, 0.0  ;;  %v2832_v22 = vmul.f32 %v2816_v11, %v2806_v32 }
 0x3d1   : > { %2870 = vst [vmem:[%s3820_s21 + $0x10] sm:$0xff] %v2862_v8  ;;  %v2807_v21 = vadd.f32 %v2791_v14, %v2781_v31  ;;  %v2865_v59 = vmax.f32 %v2857_v19, 0.0 }
 0x3d2   : > { %2871 = vst [vmem:[%s3820_s21 + $0x18] sm:$0xff] %v2863_v12  ;;  %v2858_v26 = vadd.f32 %v2842_v6, %v2832_v22 }
 0x3d3   : > { %2872 = vst [vmem:[%s3820_s21 + $0x20] sm:$0xff] %v2864_v17  ;;  %v2833_v28 = vmul.f32 %v2817_v39, %v2807_v21 }
 0x3d4   : > { %2873 = vst [vmem:[%s3820_s21 + $0x28] sm:$0xff] %v2865_v59  ;;  %v2866_v48 = vmax.f32 %v2858_v26, 0.0 }
 0x3d5   : > { %v2859_v10 = vadd.f32 %v2843_v25, %v2833_v28 }
 0x3d6   : > { %2874 = vst [vmem:[%s3820_s21 + $0x30] sm:$0xff] %v2866_v48 }
 0x3d7   : > { %v2867_v30 = vmax.f32 %v2859_v10, 0.0 }
 0x3d9   : > { %2875 = vst [vmem:[%s3820_s21 + $0x38] sm:$0xff] %v2867_v30 }
 0x3da PF: > { %s24_s6 = sadd.s32 1, %s3519_s6   ;;  %s5182_s18 = sld [smem:[#allocation14_spill]] }
 0x3db   : > { %p5076_p2 = scmp.ge.s32.totalorder %s24_s6, 10   ;;  %s5183_s19 = sld [smem:[#allocation15_spill]] }
 0x3dc   : > { %s5184_s20 = sld [smem:[#allocation23_spill]]  ;;  %s5190_s21 = smov %s3483_s22 }
 0x3dd   : > { %s5185_s29 = sld [smem:[#allocation25_spill]]  ;;  %s5191_s22 = smov %s3487_s23 }
 0x3de   : > { %s5186_s27 = sld [smem:[#allocation18_spill]]  ;;  %s5192_s23 = smov %s3759_s3 }
 0x3df   : > { %s5187_s28 = sld [smem:[#allocation19_spill]]  ;;  %s5193_s24 = smov %s3495_s25 }
 0x3e0   : > { %s5188_s8 = sld [smem:[#allocation24_spill]]  ;;  %s5194_s25 = smov %s3499_s26 }
 0x3e1   : > { %s5189_s30 = sld [smem:[#allocation21_spill]] }
 0x3e2   :  { %23 = sbr.rel (!%p5076_p2) target bundleno = 17 (0x11), region = 136 }
 0x3e3   : > { %s5195_s26 = smov %s5185_s29 }
 0x3e6   : > { %s5196_s29 = smov %s5188_s8 }
 0x3e7   :  { %2898 = vsyncpa [#allocation3], 1 }
 0x3e8   :  { %2900 = vsyncpa [#allocation3 + $0x1], 1 }
 0x3e9   :  { %2901 = vsyncpa [#allocation5], 1 }
 0x3ea   :  { %2903 = vsyncpa [#allocation5 + $0x1], 1 }
 0x3eb   :  { %2904 = vsyncpa [#allocation8], 1 }
 0x3ec   :  { %2906 = vsyncpa [#allocation8 + $0x1], 1 }

// kernel: torchnn_forward.3
= control target key start
LH: loop header
LB: loop body
LE: loop exit
PB: predicated region body
PF: predicated region fallthrough
CT: control target
= control target key end

     0   :  { %12 = vsyncpa [#allocation4], 0  ;;  %s5402_s0 = inlined_call_operand.vmem [shape: f32[8,2048], index: 0, kind: input, shape index: {}]   ;;  %s5403_s1 = inlined_call_operand.hbm [shape: f32[2048,1024], index: 1, kind: input, shape index: {}]   ;;  %s5404_s2 = inlined_call_operand.hbm [shape: f32[1,1024], index: 2, kind: input, shape index: {}]   ;;  %s5405_s3 = inlined_call_operand.hbm [shape: f32[1,1024], index: 3, kind: input, shape index: {}]   ;;  %s5406_s4 = inlined_call_operand.hbm [shape: f32[1,1024], index: 4, kind: input, shape index: {}]   ;;  %s5407_s5 = inlined_call_operand.vmem [shape: f32[1024,40], index: 5, kind: input, shape index: {}]   ;;  %s5408_s6 = inlined_call_operand.hbm [shape: f32[1,40], index: 6, kind: input, shape index: {}]   ;;  %s5409_s7 = inlined_call_operand.hbm [shape: f32[8,40], index: 7, kind: output, shape index: {}]  }
   0x1   :  { %14 = vsyncpa [#allocation4 + $0x1], 0 }
   0x2   :  { %15 = vsyncpa [#allocation7], 0 }
   0x3   :  { %16 = vsyncpa [#allocation10], 0 }
   0x4   :  { %17 = vsyncpa [#allocation5], 0  ;;  %s3662_s24 = smov 0   ;;  %s3664_s25 = smov 0  }
   0x5   :  { %s3666_s26 = smov 0   ;;  %s3668_s27 = smov 0  }
   0x6 LB: > { %s3681_s28 = sadd.s32 4294967295, %s3612_s27   ;;  %p69_p0 = scmp.ne.s32.totalorder %s3604_s25, %s3600_s24  ;;  %s3612_s27 = sphi %s3668_s27, %s5417_s27   ;;  %s3608_s26 = sphi %s3666_s26, %s5416_s26   ;;  %s3604_s25 = sphi %s3664_s25, %s5415_s25   ;;  %s3600_s24 = sphi %s3662_s24, %s5414_s24  }
   0x7   : > { %p70_p1 = scmp.eq.s32.totalorder %s3681_s28, 0  ;;  %p3243_p2 = scmp.ge.s32.totalorder %s3612_s27, 1 }
   0x8   : > { %p206_p3 = scmp.lt.s32.totalorder %s3612_s27, 3  ;;  %p3244_p4 = scmp.ne.s32.totalorder %s3681_s28, 0 }
   0x9   : > { %p3690_p5 = por %p70_p1, %p69_p0  ;;  %s218_s9 = sshll.u32 %s5404_s2, 4  ;;  %s219_s9 = int_to_ptr.hbm [resolvable:$true] %s218_s9 }
   0xa   : > { %p3697_p6 = pnand %p3243_p2, %p206_p3  ;;  %s3614_s11 = smov [#allocation6]  }
   0xb   : > { %s220_s12 = sshll.u32 %s3614_s11, 4  ;;  %s242_s15 = sshll.u32 %s5406_s4, 4  ;;  %s221_s12 = int_to_ptr.vmem [resolvable:$true] %s220_s12  ;;  %s243_s15 = int_to_ptr.hbm [resolvable:$true] %s242_s15 }
   0xc   : > { %p3291_p7 = pneg %p3697_p6  ;;  %s230_s19 = sshll.u32 %s5405_s3, 4  ;;  %s231_s19 = int_to_ptr.hbm [resolvable:$true] %s230_s19 }
   0xd   : > { %s3615_s20 = smov [#allocation9]   ;;  %s257_s24 = sshll.u32 %s5408_s6, 4  ;;  %s258_s24 = int_to_ptr.hbm [resolvable:$true] %s257_s24 }
   0xe   : > { %p3708_p8 = pnand %p3291_p7, %p70_p1  ;;  %s244_s21 = sshll.u32 %s3615_s20, 4  ;;  %s245_s21 = int_to_ptr.vmem [resolvable:$true] %s244_s21 }
   0xf   : > { %s3616_s30 = smov [#allocation8]   ;;  %s56_s13 = sadd.s32 1, %s3608_s26 }
  0x10   : > { %3294 = dma.hbm_to_vmem [thread:$0]  (!%p3708_p8), %s219_s9, 128, %s221_s12, [#allocation7]  }
  0x11   : > { %3300 = dma.hbm_to_vmem [thread:$0]  (!%p3708_p8), %s243_s15, 128, %s245_s21, [#allocation10]  }
  0x12   : > { %s232_s8 = sshll.u32 %s3616_s30, 4  ;;  %s3617_s9 = smov [#allocation11]   ;;  %s233_s8 = int_to_ptr.vmem [resolvable:$true] %s232_s8 }
  0x13   : > { %3297 = dma.hbm_to_vmem [thread:$0]  (!%p3708_p8), %s231_s19, 128, %s233_s8, [#allocation7]  }
  0x14   : > { %s259_s11 = sshll.u32 %s3617_s9, 4  ;;  %s3727_s12 = sadd.s32 1, %s3612_s27   ;;  %s260_s11 = int_to_ptr.vmem [resolvable:$true] %s259_s11 }
  0x15   : > { %3303 = dma.hbm_to_vmem [thread:$0]  (!%p3708_p8), %s258_s24, 16, %s260_s11, [#allocation10]  }
  0x16   : > { %s53_s14 = ssub.s32 %s3612_s27, %s3727_s12  ;;  %p63_p9 = scmp.ne.s32.totalorder %s3608_s26, %s3604_s25 }
  0x17   : > { %p54_p10 = scmp.eq.s32.totalorder %s53_s14, 0  ;;  %p64_p11 = scmp.eq.s32.totalorder %s3612_s27, 0 }
  0x18   : > { %p3312_p12 = scmp.lt.s32.totalorder %s3612_s27, 2  ;;  %s279_s15 = sand.u32 1, %s3608_s26  }
  0x19   : > { %s3738_s17 = scalar_select %p54_p10, %s3608_s26, %s56_s13  }
  0x1a   : > { %p65_p13 = por %p64_p11, %p63_p9  ;;  %s3249_s18 = sshll.u32 %s279_s15, 13 }
  0x1b   : > { %s3268_s19 = sshll.u32 %s3612_s27, 13  ;;  %s283_s23 = scalar_lea.vmem [#allocation3], %s3249_s18 }
  0x1c   : > { %s289_s16 = scalar_lea.hbm %s5403_s1, %s3268_s19  ;;  %s292_s24 = sshll.u32 %s283_s23, 4  ;;  %s293_s24 = int_to_ptr.vmem [resolvable:$true] %s292_s24 }
  0x1d   : > { %s290_s22 = sshll.u32 %s289_s16, 4  ;;  %p3744_p0 = pnand %p3312_p12, %p65_p13  ;;  %s291_s22 = int_to_ptr.hbm [resolvable:$true] %s290_s22 }
  0x1e   : > { %s280_s8 = scalar_lea.sflag [#allocation4], %s279_s15  ;;  %s3508_s9 = sshra.s32 %s291_s22, 4  ;;  %s3509_s9 = int_to_ptr.hbm [resolvable:$true] %s3508_s9 }
  0x1f   : > { %s3510_s11 = scalar_lea.hbm %s3509_s9, 8192  ;;  %p3512_p3 = pneg %p3744_p0 }
  0x20   : > { %p3511_p2 = scmp.ne.s32.totalorder %s3509_s9, %s3510_s11  ;;  %s3515_s14 = scalar_lea.hbm %s5403_s1, 16384 }
  0x21   : > { %p3516_p9 = scmp.lt.s32.totalorder %s3509_s9, %s5403_s1  ;;  %p3517_p10 = scmp.lt.s32.totalorder %s3515_s14, %s3510_s11 }
  0x22   : > { %p3513_p7 = pnand %p3512_p3, %p3511_p2 }
  0x23   : > { %p3518_p11 = por %p3517_p10, %p3516_p9 }
  0x24   : > { %p3514_p8 = pneg %p3513_p7 }
  0x26   : > { %p3519_p12 = pnand %p3518_p11, %p3514_p8 }
  0x28   : > { %3522 = shalt.err (!%p3519_p12)
}
  0x29   : > { %s3618_s15 = smov 1024   ;;  %s3619_s20 = smov 64  }
  0x2a   : > { %3307 = dma.hbm_to_vmem [thread:$0]  (!%p3744_p0), %s291_s22, 131072, %s293_s24, %s280_s8, %s3618_s15, %s3618_s15, %s3619_s20  }
  0x2b   : > { %304 = sbr.rel (%p3697_p6) target bundleno = 1384 (0x568), region = 48  ;;  %s306_s21 = sand.u32 (!%p3697_p6), 1, %s3604_s25  }
  0x2c   : > { %s3254_s16 = sshll.u32 (!%p3697_p6), %s306_s21, 13  ;;  %s307_s23 = scalar_lea.sflag (!%p3697_p6), [#allocation4], %s306_s21 }
  0x2d   : > { %s3761_s27 = scalar_lea.vmem (!%p3697_p6), [#allocation3], %s3254_s16 }
  0x30   : > { %3583 = dma.done.wait (%p3690_p5), %s307_s23, 131072  }
  0x31   : > { %3585 = vsyncadd (%p3690_p5), %s307_s23, 4294836224 }
  0x32   : > { %3587 = dma.done.wait (%p70_p1), [#allocation7], 256  }
  0x33   : > { %3589 = vsyncadd (%p70_p1), [#allocation7], 4294967040 }
  0x34   : > { %3591 = dma.done.wait (%p70_p1), [#allocation10], 144  }
  0x35   : > { %3593 = vsyncadd (%p70_p1), [#allocation10], 4294967152  ;;  %s3259_s10 = sshll.u32 %s3681_s28, 3 }
  0x36   : > { %p363_p6 = scmp.lt.s32.totalorder %s3259_s10, 15  ;;  %372 = sbr.rel (%p3244_p4) target bundleno = 68 (0x44), region = 72 }
  0x38   : > { %s5419_s10 = smov (!%p363_p6, %s3259_s10), 15 }
  0x39   : > { %s3260_s22 = sshll.u32 %s5419_s10, 3 }
  0x3a   : > { %s3779_s30 = scalar_lea.vmem %s5402_s0, %s3260_s22 }
  0x3b   : > { %v3620_v0 = vmov 0.0  }
  0x3c   : > { %373 = vst [vmem:[#allocation2 + $0x30] sm:$0xff] %v3620_v0 }
  0x3d   : > { %374 = vst [vmem:[#allocation2] sm:$0xff] %v3620_v0 }
  0x3e   : > { %375 = vst [vmem:[#allocation2 + $0x18] sm:$0xff] %v3620_v0 }
  0x3f   : > { %376 = vst [vmem:[#allocation2 + $0x10] sm:$0xff] %v3620_v0 }
  0x40   : > { %377 = vst [vmem:[#allocation2 + $0x8] sm:$0xff] %v3620_v0 }
  0x41   : > { %378 = vst [vmem:[#allocation2 + $0x20] sm:$0xff] %v3620_v0 }
  0x42   : > { %379 = vst [vmem:[#allocation2 + $0x28] sm:$0xff] %v3620_v0 }
  0x43   : > { %380 = vst [vmem:[#allocation2 + $0x38] sm:$0xff] %v3620_v0 }
  0x44 PF: > { %v517_v1 = vld [vmem:[%s3761_s27 + $0x3c0] sm:$0xff]  ;;  %p3262_p1 = scmp.ne.s32.totalorder %s3681_s28, 1 }
  0x45   : > { %v773_v2 = vld [vmem:[%s3761_s27 + $0xbc0] sm:$0xff]  ;;  %1421 = vmatpush.msra.mxu0 %v517_v1 }
  0x46   : > { %v509_v3 = vld [vmem:[%s3761_s27 + $0x380] sm:$0xff]  ;;  %1461 = vmatpush.msra.mxu2 %v773_v2 }
  0x47   : > { %v645_v4 = vld [vmem:[%s3761_s27 + $0x7c0] sm:$0xff]  ;;  %1422 = vmatpush.msra.mxu0 %v509_v3 }
  0x48   : > { %v765_v5 = vld [vmem:[%s3761_s27 + $0xb80] sm:$0xff]  ;;  %1441 = vmatpush.msra.mxu1 %v645_v4 }
  0x49   : > { %v901_v6 = vld [vmem:[%s3761_s27 + $0xfc0] sm:$0xff]  ;;  %1462 = vmatpush.msra.mxu2 %v765_v5 }
  0x4a   : > { %1481 = vmatpush.msra.mxu3 %v901_v6  ;;  %v501_v7 = vld [vmem:[%s3761_s27 + $0x340] sm:$0xff] }
  0x4b   : > { %v637_v8 = vld [vmem:[%s3761_s27 + $0x780] sm:$0xff]  ;;  %1423 = vmatpush.msra.mxu0 %v501_v7 }
  0x4c   : > { %v757_v9 = vld [vmem:[%s3761_s27 + $0xb40] sm:$0xff]  ;;  %1442 = vmatpush.msra.mxu1 %v637_v8 }
  0x4d   : > { %v893_v10 = vld [vmem:[%s3761_s27 + $0xf80] sm:$0xff]  ;;  %1463 = vmatpush.msra.mxu2 %v757_v9 }
  0x4e   : > { %v629_v11 = vld [vmem:[%s3761_s27 + $0x740] sm:$0xff]  ;;  %1482 = vmatpush.msra.mxu3 %v893_v10 }
  0x4f   : > { %v493_v12 = vld [vmem:[%s3761_s27 + $0x300] sm:$0xff]  ;;  %1443 = vmatpush.msra.mxu1 %v629_v11 }
  0x50   : > { %v749_v13 = vld [vmem:[%s3761_s27 + $0xb00] sm:$0xff]  ;;  %1424 = vmatpush.msra.mxu0 %v493_v12 }
  0x51   : > { %v885_v14 = vld [vmem:[%s3761_s27 + $0xf40] sm:$0xff]  ;;  %1464 = vmatpush.msra.mxu2 %v749_v13 }
  0x52   : > { %v621_v15 = vld [vmem:[%s3761_s27 + $0x700] sm:$0xff]  ;;  %1483 = vmatpush.msra.mxu3 %v885_v14 }
  0x53   : > { %v877_v16 = vld [vmem:[%s3761_s27 + $0xf00] sm:$0xff]  ;;  %1444 = vmatpush.msra.mxu1 %v621_v15 }
  0x54   : > { %v485_v17 = vld [vmem:[%s3761_s27 + $0x2c0] sm:$0xff]  ;;  %1484 = vmatpush.msra.mxu3 %v877_v16 }
  0x55   : > { %v741_v18 = vld [vmem:[%s3761_s27 + $0xac0] sm:$0xff]  ;;  %1425 = vmatpush.msra.mxu0 %v485_v17 }
  0x56   : > { %v613_v19 = vld [vmem:[%s3761_s27 + $0x6c0] sm:$0xff]  ;;  %1465 = vmatpush.msra.mxu2 %v741_v18 }
  0x57   : > { %v869_v20 = vld [vmem:[%s3761_s27 + $0xec0] sm:$0xff]  ;;  %1445 = vmatpush.msra.mxu1 %v613_v19 }
  0x58   : > { %v477_v21 = vld [vmem:[%s3761_s27 + $0x280] sm:$0xff]  ;;  %1485 = vmatpush.msra.mxu3 %v869_v20 }
  0x59   : > { %v733_v22 = vld [vmem:[%s3761_s27 + $0xa80] sm:$0xff]  ;;  %1426 = vmatpush.msra.mxu0 %v477_v21 }
  0x5a   : > { %v605_v23 = vld [vmem:[%s3761_s27 + $0x680] sm:$0xff]  ;;  %1466 = vmatpush.msra.mxu2 %v733_v22 }
  0x5b   : > { %v861_v24 = vld [vmem:[%s3761_s27 + $0xe80] sm:$0xff]  ;;  %1446 = vmatpush.msra.mxu1 %v605_v23 }
  0x5c   : > { %v469_v25 = vld [vmem:[%s3761_s27 + $0x240] sm:$0xff]  ;;  %1486 = vmatpush.msra.mxu3 %v861_v24 }
  0x5d   : > { %v725_v26 = vld [vmem:[%s3761_s27 + $0xa40] sm:$0xff]  ;;  %1427 = vmatpush.msra.mxu0 %v469_v25 }
  0x5e   : > { %v597_v27 = vld [vmem:[%s3761_s27 + $0x640] sm:$0xff]  ;;  %1467 = vmatpush.msra.mxu2 %v725_v26 }
  0x5f   : > { %v853_v28 = vld [vmem:[%s3761_s27 + $0xe40] sm:$0xff]  ;;  %1447 = vmatpush.msra.mxu1 %v597_v27 }
  0x60   : > { %v461_v29 = vld [vmem:[%s3761_s27 + $0x200] sm:$0xff]  ;;  %1487 = vmatpush.msra.mxu3 %v853_v28 }
  0x61   : > { %v717_v30 = vld [vmem:[%s3761_s27 + $0xa00] sm:$0xff]  ;;  %1428 = vmatpush.msra.mxu0 %v461_v29 }
  0x62   : > { %v589_v31 = vld [vmem:[%s3761_s27 + $0x600] sm:$0xff]  ;;  %1468 = vmatpush.msra.mxu2 %v717_v30 }
  0x63   : > { %v845_v32 = vld [vmem:[%s3761_s27 + $0xe00] sm:$0xff]  ;;  %1448 = vmatpush.msra.mxu1 %v589_v31 }
  0x64   : > { %v453_v33 = vld [vmem:[%s3761_s27 + $0x1c0] sm:$0xff]  ;;  %1488 = vmatpush.msra.mxu3 %v845_v32 }
  0x65   : > { %v709_v34 = vld [vmem:[%s3761_s27 + $0x9c0] sm:$0xff]  ;;  %1429 = vmatpush.msra.mxu0 %v453_v33 }
  0x66   : > { %v581_v35 = vld [vmem:[%s3761_s27 + $0x5c0] sm:$0xff]  ;;  %1469 = vmatpush.msra.mxu2 %v709_v34 }
  0x67   : > { %v837_v36 = vld [vmem:[%s3761_s27 + $0xdc0] sm:$0xff]  ;;  %1449 = vmatpush.msra.mxu1 %v581_v35 }
  0x68   : > { %v445_v37 = vld [vmem:[%s3761_s27 + $0x180] sm:$0xff]  ;;  %1489 = vmatpush.msra.mxu3 %v837_v36 }
  0x69   : > { %v701_v38 = vld [vmem:[%s3761_s27 + $0x980] sm:$0xff]  ;;  %1430 = vmatpush.msra.mxu0 %v445_v37 }
  0x6a   : > { %v573_v39 = vld [vmem:[%s3761_s27 + $0x580] sm:$0xff]  ;;  %1470 = vmatpush.msra.mxu2 %v701_v38 }
  0x6b   : > { %v829_v40 = vld [vmem:[%s3761_s27 + $0xd80] sm:$0xff]  ;;  %1450 = vmatpush.msra.mxu1 %v573_v39 }
  0x6c   : > { %v437_v41 = vld [vmem:[%s3761_s27 + $0x140] sm:$0xff]  ;;  %1490 = vmatpush.msra.mxu3 %v829_v40 }
  0x6d   : > { %v693_v42 = vld [vmem:[%s3761_s27 + $0x940] sm:$0xff]  ;;  %1431 = vmatpush.msra.mxu0 %v437_v41 }
  0x6e   : > { %v565_v43 = vld [vmem:[%s3761_s27 + $0x540] sm:$0xff]  ;;  %1471 = vmatpush.msra.mxu2 %v693_v42 }
  0x6f   : > { %v821_v44 = vld [vmem:[%s3761_s27 + $0xd40] sm:$0xff]  ;;  %1451 = vmatpush.msra.mxu1 %v565_v43 }
  0x70   : > { %v429_v45 = vld [vmem:[%s3761_s27 + $0x100] sm:$0xff]  ;;  %1491 = vmatpush.msra.mxu3 %v821_v44 }
  0x71   : > { %v685_v46 = vld [vmem:[%s3761_s27 + $0x900] sm:$0xff]  ;;  %1432 = vmatpush.msra.mxu0 %v429_v45 }
  0x72   : > { %v557_v47 = vld [vmem:[%s3761_s27 + $0x500] sm:$0xff]  ;;  %1472 = vmatpush.msra.mxu2 %v685_v46 }
  0x73   : > { %v813_v48 = vld [vmem:[%s3761_s27 + $0xd00] sm:$0xff]  ;;  %1452 = vmatpush.msra.mxu1 %v557_v47 }
  0x74   : > { %v421_v49 = vld [vmem:[%s3761_s27 + $0xc0] sm:$0xff]  ;;  %1492 = vmatpush.msra.mxu3 %v813_v48 }
  0x75   : > { %v677_v50 = vld [vmem:[%s3761_s27 + $0x8c0] sm:$0xff]  ;;  %1433 = vmatpush.msra.mxu0 %v421_v49 }
  0x76   : > { %v549_v51 = vld [vmem:[%s3761_s27 + $0x4c0] sm:$0xff]  ;;  %1473 = vmatpush.msra.mxu2 %v677_v50 }
  0x77   : > { %v805_v52 = vld [vmem:[%s3761_s27 + $0xcc0] sm:$0xff]  ;;  %1453 = vmatpush.msra.mxu1 %v549_v51 }
  0x78   : > { %v413_v53 = vld [vmem:[%s3761_s27 + $0x80] sm:$0xff]  ;;  %1493 = vmatpush.msra.mxu3 %v805_v52 }
  0x79   : > { %v669_v54 = vld [vmem:[%s3761_s27 + $0x880] sm:$0xff]  ;;  %1434 = vmatpush.msra.mxu0 %v413_v53 }
  0x7a   : > { %v541_v55 = vld [vmem:[%s3761_s27 + $0x480] sm:$0xff]  ;;  %1474 = vmatpush.msra.mxu2 %v669_v54 }
  0x7b   : > { %v797_v56 = vld [vmem:[%s3761_s27 + $0xc80] sm:$0xff]  ;;  %1454 = vmatpush.msra.mxu1 %v541_v55 }
  0x7c   : > { %v405_v57 = vld [vmem:[%s3761_s27 + $0x40] sm:$0xff]  ;;  %1494 = vmatpush.msra.mxu3 %v797_v56 }
  0x7d   : > { %v661_v58 = vld [vmem:[%s3761_s27 + $0x840] sm:$0xff]  ;;  %1435 = vmatpush.msra.mxu0 %v405_v57 }
  0x7e   : > { %v533_v59 = vld [vmem:[%s3761_s27 + $0x440] sm:$0xff]  ;;  %1475 = vmatpush.msra.mxu2 %v661_v58 }
  0x7f   : > { %v789_v60 = vld [vmem:[%s3761_s27 + $0xc40] sm:$0xff]  ;;  %1455 = vmatpush.msra.mxu1 %v533_v59  ;;  %v3906_v59 = vld [vmem:[%s3779_s30 + $0x10] sm:$0xff] }
  0x80   : > { %v397_v61 = vld [vmem:[%s3761_s27] sm:$0xff]  ;;  %1495 = vmatpush.msra.mxu3 %v789_v60 }
  0x81   : > { %v653_v62 = vld [vmem:[%s3761_s27 + $0x800] sm:$0xff]  ;;  %1436 = vmatpush.msra.mxu0 %v397_v61 }
  0x82   : > { %v1029_v63 = vld [vmem:[%s3761_s27 + $0x13c0] sm:$0xff]  ;;  %1476 = vmatpush.msra.mxu2 %v653_v62 }
  0x83   : > { %v1285_v0 = vld [vmem:[%s3761_s27 + $0x1bc0] sm:$0xff]  ;;  %1501 = vmatpush.msrb.mxu0 %v1029_v63  ;;  %1477 = vmatmul.f32.vlgmr.msra.gmra.mxu2 %v3906_v59 }
  0x84   : > { %v525_v1 = vld [vmem:[%s3761_s27 + $0x400] sm:$0xff]  ;;  %1541 = vmatpush.msrb.mxu2 %v1285_v0 }
  0x85   : > { %v781_v2 = vld [vmem:[%s3761_s27 + $0xc00] sm:$0xff]  ;;  %1456 = vmatpush.msra.mxu1 %v525_v1  ;;  %v3917_v1 = vld [vmem:[%s3779_s30 + $0x18] sm:$0xff] }
  0x86   : > { %v1021_v3 = vld [vmem:[%s3761_s27 + $0x1380] sm:$0xff]  ;;  %1496 = vmatpush.msra.mxu3 %v781_v2  ;;  %v518_v2 = vld [vmem:[%s3761_s27 + $0x3c8] sm:$0xff] }
  0x87   : > { %v1157_v4 = vld [vmem:[%s3761_s27 + $0x17c0] sm:$0xff]  ;;  %1502 = vmatpush.msrb.mxu0 %v1021_v3  ;;  %v774_v3 = vld [vmem:[%s3761_s27 + $0xbc8] sm:$0xff]  ;;  %1497 = vmatmul.f32.vlgmr.msra.gmra.mxu3 %v3917_v1 }
  0x88   : > { %v1277_v5 = vld [vmem:[%s3761_s27 + $0x1b80] sm:$0xff]  ;;  %1521 = vmatpush.msrb.mxu1 %v1157_v4 }
  0x89   : > { %v1413_v6 = vld [vmem:[%s3761_s27 + $0x1fc0] sm:$0xff]  ;;  %1542 = vmatpush.msrb.mxu2 %v1277_v5 }
  0x8a   : > { %v1013_v7 = vld [vmem:[%s3761_s27 + $0x1340] sm:$0xff]  ;;  %1561 = vmatpush.msrb.mxu3 %v1413_v6  ;;  %v3925_v6 = vld [vmem:[%s3779_s30 + $0x8] sm:$0xff] }
  0x8b   : > { %v1149_v8 = vld [vmem:[%s3761_s27 + $0x1780] sm:$0xff]  ;;  %1503 = vmatpush.msrb.mxu0 %v1013_v7  ;;  %v510_v7 = vld [vmem:[%s3761_s27 + $0x388] sm:$0xff]  ;;  %1457 = vmatmul.f32.vlgmr.msra.gmra.mxu1 %v3925_v6 }
  0x8c   : > { %v1269_v9 = vld [vmem:[%s3761_s27 + $0x1b40] sm:$0xff]  ;;  %1522 = vmatpush.msrb.mxu1 %v1149_v8  ;;  %v646_v8 = vld [vmem:[%s3761_s27 + $0x7c8] sm:$0xff] }
  0x8d   : > { %v1405_v10 = vld [vmem:[%s3761_s27 + $0x1f80] sm:$0xff]  ;;  %1543 = vmatpush.msrb.mxu2 %v1269_v9  ;;  %v766_v9 = vld [vmem:[%s3761_s27 + $0xb88] sm:$0xff] }
  0x8e   : > { %v1005_v11 = vld [vmem:[%s3761_s27 + $0x1300] sm:$0xff]  ;;  %1562 = vmatpush.msrb.mxu3 %v1405_v10  ;;  %v902_v10 = vld [vmem:[%s3761_s27 + $0xfc8] sm:$0xff] }
  0x8f   : > { %v1141_v12 = vld [vmem:[%s3761_s27 + $0x1740] sm:$0xff]  ;;  %1504 = vmatpush.msrb.mxu0 %v1005_v11  ;;  %v502_v11 = vld [vmem:[%s3761_s27 + $0x348] sm:$0xff] }
  0x90   : > { %v1261_v13 = vld [vmem:[%s3761_s27 + $0x1b00] sm:$0xff]  ;;  %1523 = vmatpush.msrb.mxu1 %v1141_v12  ;;  %v638_v12 = vld [vmem:[%s3761_s27 + $0x788] sm:$0xff] }
  0x91   : > { %v1397_v14 = vld [vmem:[%s3761_s27 + $0x1f40] sm:$0xff]  ;;  %1544 = vmatpush.msrb.mxu2 %v1261_v13  ;;  %v758_v13 = vld [vmem:[%s3761_s27 + $0xb48] sm:$0xff] }
  0x92   : > { %v997_v15 = vld [vmem:[%s3761_s27 + $0x12c0] sm:$0xff]  ;;  %1563 = vmatpush.msrb.mxu3 %v1397_v14  ;;  %v894_v14 = vld [vmem:[%s3761_s27 + $0xf88] sm:$0xff] }
  0x93   : > { %v1133_v16 = vld [vmem:[%s3761_s27 + $0x1700] sm:$0xff]  ;;  %1505 = vmatpush.msrb.mxu0 %v997_v15  ;;  %v3938_v15 = vld [vmem:[%s3779_s30 + $0x30] sm:$0xff] }
  0x94   : > { %v1253_v17 = vld [vmem:[%s3761_s27 + $0x1ac0] sm:$0xff]  ;;  %1524 = vmatpush.msrb.mxu1 %v1133_v16  ;;  %v494_v16 = vld [vmem:[%s3761_s27 + $0x308] sm:$0xff] }
  0x95   : > { %v1389_v18 = vld [vmem:[%s3761_s27 + $0x1f00] sm:$0xff]  ;;  %1545 = vmatpush.msrb.mxu2 %v1253_v17  ;;  %v630_v17 = vld [vmem:[%s3761_s27 + $0x748] sm:$0xff] }
  0x96   : > { %v989_v19 = vld [vmem:[%s3761_s27 + $0x1280] sm:$0xff]  ;;  %1564 = vmatpush.msrb.mxu3 %v1389_v18  ;;  %v750_v18 = vld [vmem:[%s3761_s27 + $0xb08] sm:$0xff] }
  0x97   : > { %v1125_v20 = vld [vmem:[%s3761_s27 + $0x16c0] sm:$0xff]  ;;  %1506 = vmatpush.msrb.mxu0 %v989_v19  ;;  %v886_v19 = vld [vmem:[%s3761_s27 + $0xf48] sm:$0xff] }
  0x98   : > { %v1245_v21 = vld [vmem:[%s3761_s27 + $0x1a80] sm:$0xff]  ;;  %1525 = vmatpush.msrb.mxu1 %v1125_v20 }
  0x99   : > { %v1381_v22 = vld [vmem:[%s3761_s27 + $0x1ec0] sm:$0xff]  ;;  %1546 = vmatpush.msrb.mxu2 %v1245_v21  ;;  %v3949_v21 = vld [vmem:[%s3779_s30 + $0x38] sm:$0xff] }
  0x9a   : > { %v981_v23 = vld [vmem:[%s3761_s27 + $0x1240] sm:$0xff]  ;;  %1565 = vmatpush.msrb.mxu3 %v1381_v22  ;;  %v486_v22 = vld [vmem:[%s3761_s27 + $0x2c8] sm:$0xff] }
  0x9b   : > { %v1117_v24 = vld [vmem:[%s3761_s27 + $0x1680] sm:$0xff]  ;;  %1507 = vmatpush.msrb.mxu0 %v981_v23  ;;  %v622_v23 = vld [vmem:[%s3761_s27 + $0x708] sm:$0xff] }
  0x9c   : > { %v1237_v25 = vld [vmem:[%s3761_s27 + $0x1a40] sm:$0xff]  ;;  %1526 = vmatpush.msrb.mxu1 %v1117_v24  ;;  %v742_v24 = vld [vmem:[%s3761_s27 + $0xac8] sm:$0xff] }
  0x9d   : > { %v1373_v26 = vld [vmem:[%s3761_s27 + $0x1e80] sm:$0xff]  ;;  %1547 = vmatpush.msrb.mxu2 %v1237_v25  ;;  %v878_v25 = vld [vmem:[%s3761_s27 + $0xf08] sm:$0xff] }
  0x9e   : > { %v973_v27 = vld [vmem:[%s3761_s27 + $0x1200] sm:$0xff]  ;;  %1566 = vmatpush.msrb.mxu3 %v1373_v26  ;;  %v3957_v26 = vld [vmem:[%s3779_s30 + $0x28] sm:$0xff] }
  0x9f   : > { %v1109_v28 = vld [vmem:[%s3761_s27 + $0x1640] sm:$0xff]  ;;  %1508 = vmatpush.msrb.mxu0 %v973_v27  ;;  %v478_v27 = vld [vmem:[%s3761_s27 + $0x288] sm:$0xff] }
  0xa0   : > { %v1229_v29 = vld [vmem:[%s3761_s27 + $0x1a00] sm:$0xff]  ;;  %1527 = vmatpush.msrb.mxu1 %v1109_v28  ;;  %v614_v28 = vld [vmem:[%s3761_s27 + $0x6c8] sm:$0xff] }
  0xa1   : > { %v1365_v30 = vld [vmem:[%s3761_s27 + $0x1e40] sm:$0xff]  ;;  %1548 = vmatpush.msrb.mxu2 %v1229_v29  ;;  %v734_v29 = vld [vmem:[%s3761_s27 + $0xa88] sm:$0xff] }
  0xa2   : > { %v965_v31 = vld [vmem:[%s3761_s27 + $0x11c0] sm:$0xff]  ;;  %1567 = vmatpush.msrb.mxu3 %v1365_v30  ;;  %v870_v30 = vld [vmem:[%s3761_s27 + $0xec8] sm:$0xff] }
  0xa3   : > { %v1101_v32 = vld [vmem:[%s3761_s27 + $0x1600] sm:$0xff]  ;;  %1509 = vmatpush.msrb.mxu0 %v965_v31  ;;  %v470_v31 = vld [vmem:[%s3761_s27 + $0x248] sm:$0xff] }
  0xa4   : > { %v1221_v33 = vld [vmem:[%s3761_s27 + $0x19c0] sm:$0xff]  ;;  %1528 = vmatpush.msrb.mxu1 %v1101_v32  ;;  %v606_v32 = vld [vmem:[%s3761_s27 + $0x688] sm:$0xff] }
  0xa5   : > { %v1357_v34 = vld [vmem:[%s3761_s27 + $0x1e00] sm:$0xff]  ;;  %1549 = vmatpush.msrb.mxu2 %v1221_v33  ;;  %v726_v33 = vld [vmem:[%s3761_s27 + $0xa48] sm:$0xff] }
  0xa6   : > { %v957_v35 = vld [vmem:[%s3761_s27 + $0x1180] sm:$0xff]  ;;  %1568 = vmatpush.msrb.mxu3 %v1357_v34  ;;  %v862_v34 = vld [vmem:[%s3761_s27 + $0xe88] sm:$0xff] }
  0xa7   : > { %v1093_v36 = vld [vmem:[%s3761_s27 + $0x15c0] sm:$0xff]  ;;  %1510 = vmatpush.msrb.mxu0 %v957_v35  ;;  %v462_v35 = vld [vmem:[%s3761_s27 + $0x208] sm:$0xff] }
  0xa8   : > { %v1213_v37 = vld [vmem:[%s3761_s27 + $0x1980] sm:$0xff]  ;;  %1529 = vmatpush.msrb.mxu1 %v1093_v36  ;;  %v598_v36 = vld [vmem:[%s3761_s27 + $0x648] sm:$0xff] }
  0xa9   : > { %v1349_v38 = vld [vmem:[%s3761_s27 + $0x1dc0] sm:$0xff]  ;;  %1550 = vmatpush.msrb.mxu2 %v1213_v37  ;;  %v718_v37 = vld [vmem:[%s3761_s27 + $0xa08] sm:$0xff] }
  0xaa   : > { %v949_v39 = vld [vmem:[%s3761_s27 + $0x1140] sm:$0xff]  ;;  %1569 = vmatpush.msrb.mxu3 %v1349_v38  ;;  %v854_v38 = vld [vmem:[%s3761_s27 + $0xe48] sm:$0xff] }
  0xab   : > { %v1085_v40 = vld [vmem:[%s3761_s27 + $0x1580] sm:$0xff]  ;;  %1511 = vmatpush.msrb.mxu0 %v949_v39  ;;  %v454_v39 = vld [vmem:[%s3761_s27 + $0x1c8] sm:$0xff] }
  0xac   : > { %v1205_v41 = vld [vmem:[%s3761_s27 + $0x1940] sm:$0xff]  ;;  %1530 = vmatpush.msrb.mxu1 %v1085_v40  ;;  %v590_v40 = vld [vmem:[%s3761_s27 + $0x608] sm:$0xff] }
  0xad   : > { %v1341_v42 = vld [vmem:[%s3761_s27 + $0x1d80] sm:$0xff]  ;;  %1551 = vmatpush.msrb.mxu2 %v1205_v41  ;;  %v710_v41 = vld [vmem:[%s3761_s27 + $0x9c8] sm:$0xff] }
  0xae   : > { %v941_v43 = vld [vmem:[%s3761_s27 + $0x1100] sm:$0xff]  ;;  %1570 = vmatpush.msrb.mxu3 %v1341_v42  ;;  %v846_v42 = vld [vmem:[%s3761_s27 + $0xe08] sm:$0xff] }
  0xaf   : > { %v1077_v44 = vld [vmem:[%s3761_s27 + $0x1540] sm:$0xff]  ;;  %1512 = vmatpush.msrb.mxu0 %v941_v43  ;;  %v446_v43 = vld [vmem:[%s3761_s27 + $0x188] sm:$0xff] }
  0xb0   : > { %v1197_v45 = vld [vmem:[%s3761_s27 + $0x1900] sm:$0xff]  ;;  %1531 = vmatpush.msrb.mxu1 %v1077_v44  ;;  %v582_v44 = vld [vmem:[%s3761_s27 + $0x5c8] sm:$0xff] }
  0xb1   : > { %v1333_v46 = vld [vmem:[%s3761_s27 + $0x1d40] sm:$0xff]  ;;  %1552 = vmatpush.msrb.mxu2 %v1197_v45  ;;  %v702_v45 = vld [vmem:[%s3761_s27 + $0x988] sm:$0xff] }
  0xb2   : > { %v933_v47 = vld [vmem:[%s3761_s27 + $0x10c0] sm:$0xff]  ;;  %1571 = vmatpush.msrb.mxu3 %v1333_v46  ;;  %v838_v46 = vld [vmem:[%s3761_s27 + $0xdc8] sm:$0xff] }
  0xb3   : > { %v1069_v48 = vld [vmem:[%s3761_s27 + $0x1500] sm:$0xff]  ;;  %1513 = vmatpush.msrb.mxu0 %v933_v47  ;;  %v438_v47 = vld [vmem:[%s3761_s27 + $0x148] sm:$0xff] }
  0xb4   : > { %v1189_v49 = vld [vmem:[%s3761_s27 + $0x18c0] sm:$0xff]  ;;  %1532 = vmatpush.msrb.mxu1 %v1069_v48  ;;  %v574_v48 = vld [vmem:[%s3761_s27 + $0x588] sm:$0xff] }
  0xb5   : > { %v1325_v50 = vld [vmem:[%s3761_s27 + $0x1d00] sm:$0xff]  ;;  %1553 = vmatpush.msrb.mxu2 %v1189_v49  ;;  %v694_v49 = vld [vmem:[%s3761_s27 + $0x948] sm:$0xff] }
  0xb6   : > { %v925_v51 = vld [vmem:[%s3761_s27 + $0x1080] sm:$0xff]  ;;  %1572 = vmatpush.msrb.mxu3 %v1325_v50  ;;  %v830_v50 = vld [vmem:[%s3761_s27 + $0xd88] sm:$0xff] }
  0xb7   : > { %v1061_v52 = vld [vmem:[%s3761_s27 + $0x14c0] sm:$0xff]  ;;  %1514 = vmatpush.msrb.mxu0 %v925_v51  ;;  %v430_v51 = vld [vmem:[%s3761_s27 + $0x108] sm:$0xff] }
  0xb8   : > { %v1181_v53 = vld [vmem:[%s3761_s27 + $0x1880] sm:$0xff]  ;;  %1533 = vmatpush.msrb.mxu1 %v1061_v52  ;;  %v566_v52 = vld [vmem:[%s3761_s27 + $0x548] sm:$0xff] }
  0xb9   : > { %v1317_v54 = vld [vmem:[%s3761_s27 + $0x1cc0] sm:$0xff]  ;;  %1554 = vmatpush.msrb.mxu2 %v1181_v53  ;;  %v686_v53 = vld [vmem:[%s3761_s27 + $0x908] sm:$0xff] }
  0xba   : > { %v917_v55 = vld [vmem:[%s3761_s27 + $0x1040] sm:$0xff]  ;;  %1573 = vmatpush.msrb.mxu3 %v1317_v54  ;;  %v822_v54 = vld [vmem:[%s3761_s27 + $0xd48] sm:$0xff] }
  0xbb   : > { %v1053_v56 = vld [vmem:[%s3761_s27 + $0x1480] sm:$0xff]  ;;  %1515 = vmatpush.msrb.mxu0 %v917_v55  ;;  %v422_v55 = vld [vmem:[%s3761_s27 + $0xc8] sm:$0xff] }
  0xbc   : > { %v1173_v57 = vld [vmem:[%s3761_s27 + $0x1840] sm:$0xff]  ;;  %1534 = vmatpush.msrb.mxu1 %v1053_v56  ;;  %v558_v56 = vld [vmem:[%s3761_s27 + $0x508] sm:$0xff] }
  0xbd   : > { %v1309_v58 = vld [vmem:[%s3761_s27 + $0x1c80] sm:$0xff]  ;;  %1555 = vmatpush.msrb.mxu2 %v1173_v57  ;;  %v678_v57 = vld [vmem:[%s3761_s27 + $0x8c8] sm:$0xff] }
  0xbe   : > { %v909_v60 = vld [vmem:[%s3761_s27 + $0x1000] sm:$0xff]  ;;  %1574 = vmatpush.msrb.mxu3 %v1309_v58  ;;  %v814_v58 = vld [vmem:[%s3761_s27 + $0xd08] sm:$0xff] }
  0xbf   : > { %v1045_v61 = vld [vmem:[%s3761_s27 + $0x1440] sm:$0xff]  ;;  %1516 = vmatpush.msrb.mxu0 %v909_v60  ;;  %v414_v60 = vld [vmem:[%s3761_s27 + $0x88] sm:$0xff] }
  0xc0   : > { %v1165_v62 = vld [vmem:[%s3761_s27 + $0x1800] sm:$0xff]  ;;  %1535 = vmatpush.msrb.mxu1 %v1045_v61  ;;  %v550_v61 = vld [vmem:[%s3761_s27 + $0x4c8] sm:$0xff] }
  0xc1   : > { %v1301_v63 = vld [vmem:[%s3761_s27 + $0x1c40] sm:$0xff]  ;;  %1556 = vmatpush.msrb.mxu2 %v1165_v62  ;;  %v670_v62 = vld [vmem:[%s3761_s27 + $0x888] sm:$0xff] }
  0xc2   : > { %v3913_v0 = vld [vmem:[%s3779_s30] sm:$0xff]  ;;  %1575 = vmatpush.msrb.mxu3 %v1301_v63  ;;  %1557 = vmatmul.f32.vlgmr.msrb.gmra.mxu2 %v3938_v15  ;;  %v806_v63 = vld [vmem:[%s3761_s27 + $0xcc8] sm:$0xff] }
  0xc3   : > { %v1037_v4 = vld [vmem:[%s3761_s27 + $0x1400] sm:$0xff]  ;;  %1437 = vmatmul.f32.vlgmr.msra.gmra.mxu0 %v3913_v0  ;;  %1621 = vmatpush.msra.mxu2 %v774_v3  ;;  %v542_v3 = vld [vmem:[%s3761_s27 + $0x488] sm:$0xff] }
  0xc4   : > { %v1293_v5 = vld [vmem:[%s3761_s27 + $0x1c00] sm:$0xff]  ;;  %1581 = vmatpush.msra.mxu0 %v518_v2  ;;  %1536 = vmatpush.msrb.mxu1 %v1037_v4  ;;  %v406_v2 = vld [vmem:[%s3761_s27 + $0x48] sm:$0xff] }
  0xc5   : > { %1576 = vmatpush.msrb.mxu3 %v1293_v5  ;;  %1622 = vmatpush.msra.mxu2 %v766_v9  ;;  %v3945_v20 = vld [vmem:[%s3779_s30 + $0x20] sm:$0xff]  ;;  %v662_v4 = vld [vmem:[%s3761_s27 + $0x848] sm:$0xff] }
  0xc6   : > { %1582 = vmatpush.msra.mxu0 %v510_v7  ;;  %1601 = vmatpush.msra.mxu1 %v646_v8  ;;  %v798_v5 = vld [vmem:[%s3761_s27 + $0xc88] sm:$0xff] }
  0xc7   : > { %1641 = vmatpush.msra.mxu3 %v902_v10  ;;  %1623 = vmatpush.msra.mxu2 %v758_v13  ;;  %v398_v7 = vld [vmem:[%s3761_s27 + $0x8] sm:$0xff] }
  0xc8   : > { %1583 = vmatpush.msra.mxu0 %v502_v11  ;;  %1602 = vmatpush.msra.mxu1 %v638_v12  ;;  %v534_v8 = vld [vmem:[%s3761_s27 + $0x448] sm:$0xff] }
  0xc9   : > { %1642 = vmatpush.msra.mxu3 %v894_v14  ;;  %1624 = vmatpush.msra.mxu2 %v750_v18  ;;  %v654_v9 = vld [vmem:[%s3761_s27 + $0x808] sm:$0xff] }
  0xca   : > { %1584 = vmatpush.msra.mxu0 %v494_v16  ;;  %1603 = vmatpush.msra.mxu1 %v630_v17  ;;  %v790_v10 = vld [vmem:[%s3761_s27 + $0xc48] sm:$0xff] }
  0xcb   : > { %1643 = vmatpush.msra.mxu3 %v886_v19  ;;  %1517 = vmatmul.f32.vlgmr.msrb.gmra.mxu0 %v3945_v20  ;;  %v1030_v11 = vld [vmem:[%s3761_s27 + $0x13c8] sm:$0xff] }
  0xcc   : > { %1577 = vmatmul.f32.vlgmr.msrb.gmra.mxu3 %v3949_v21  ;;  %1585 = vmatpush.msra.mxu0 %v486_v22  ;;  %v1286_v12 = vld [vmem:[%s3761_s27 + $0x1bc8] sm:$0xff] }
  0xcd   : > { %1604 = vmatpush.msra.mxu1 %v622_v23  ;;  %1625 = vmatpush.msra.mxu2 %v742_v24  ;;  %v526_v13 = vld [vmem:[%s3761_s27 + $0x408] sm:$0xff] }
  0xce   : > { %1644 = vmatpush.msra.mxu3 %v878_v25  ;;  %1537 = vmatmul.f32.vlgmr.msrb.gmra.mxu1 %v3957_v26  ;;  %v782_v14 = vld [vmem:[%s3761_s27 + $0xc08] sm:$0xff] }
  0xcf   : > { %1586 = vmatpush.msra.mxu0 %v478_v27  ;;  %1605 = vmatpush.msra.mxu1 %v614_v28  ;;  %v1022_v16 = vld [vmem:[%s3761_s27 + $0x1388] sm:$0xff] }
  0xd0   : > { %1626 = vmatpush.msra.mxu2 %v734_v29  ;;  %1645 = vmatpush.msra.mxu3 %v870_v30  ;;  %v1158_v17 = vld [vmem:[%s3761_s27 + $0x17c8] sm:$0xff] }
  0xd1   : > { %1587 = vmatpush.msra.mxu0 %v470_v31  ;;  %1606 = vmatpush.msra.mxu1 %v606_v32  ;;  %v1278_v18 = vld [vmem:[%s3761_s27 + $0x1b88] sm:$0xff] }
  0xd2   : > { %1627 = vmatpush.msra.mxu2 %v726_v33  ;;  %1646 = vmatpush.msra.mxu3 %v862_v34  ;;  %v1414_v19 = vld [vmem:[%s3761_s27 + $0x1fc8] sm:$0xff] }
  0xd3   : > { %1588 = vmatpush.msra.mxu0 %v462_v35  ;;  %1607 = vmatpush.msra.mxu1 %v598_v36  ;;  %v1014_v22 = vld [vmem:[%s3761_s27 + $0x1348] sm:$0xff] }
  0xd4   : > { %1628 = vmatpush.msra.mxu2 %v718_v37  ;;  %1647 = vmatpush.msra.mxu3 %v854_v38  ;;  %v1150_v23 = vld [vmem:[%s3761_s27 + $0x1788] sm:$0xff] }
  0xd5   : > { %1589 = vmatpush.msra.mxu0 %v454_v39  ;;  %1608 = vmatpush.msra.mxu1 %v590_v40  ;;  %v1270_v24 = vld [vmem:[%s3761_s27 + $0x1b48] sm:$0xff] }
  0xd6   : > { %1629 = vmatpush.msra.mxu2 %v710_v41  ;;  %1648 = vmatpush.msra.mxu3 %v846_v42  ;;  %v1406_v25 = vld [vmem:[%s3761_s27 + $0x1f88] sm:$0xff] }
  0xd7   : > { %1590 = vmatpush.msra.mxu0 %v446_v43  ;;  %1609 = vmatpush.msra.mxu1 %v582_v44  ;;  %v1006_v27 = vld [vmem:[%s3761_s27 + $0x1308] sm:$0xff] }
  0xd8   : > { %1630 = vmatpush.msra.mxu2 %v702_v45  ;;  %1649 = vmatpush.msra.mxu3 %v838_v46  ;;  %v1142_v28 = vld [vmem:[%s3761_s27 + $0x1748] sm:$0xff] }
  0xd9   : > { %1591 = vmatpush.msra.mxu0 %v438_v47  ;;  %1610 = vmatpush.msra.mxu1 %v574_v48  ;;  %v1262_v29 = vld [vmem:[%s3761_s27 + $0x1b08] sm:$0xff] }
  0xda   : > { %1631 = vmatpush.msra.mxu2 %v694_v49  ;;  %1650 = vmatpush.msra.mxu3 %v830_v50  ;;  %v1398_v30 = vld [vmem:[%s3761_s27 + $0x1f48] sm:$0xff] }
  0xdb   : > { %1592 = vmatpush.msra.mxu0 %v430_v51  ;;  %1611 = vmatpush.msra.mxu1 %v566_v52  ;;  %v998_v31 = vld [vmem:[%s3761_s27 + $0x12c8] sm:$0xff] }
  0xdc   : > { %1632 = vmatpush.msra.mxu2 %v686_v53  ;;  %1651 = vmatpush.msra.mxu3 %v822_v54  ;;  %v1134_v32 = vld [vmem:[%s3761_s27 + $0x1708] sm:$0xff] }
  0xdd   : > { %1593 = vmatpush.msra.mxu0 %v422_v55  ;;  %1612 = vmatpush.msra.mxu1 %v558_v56  ;;  %v1254_v33 = vld [vmem:[%s3761_s27 + $0x1ac8] sm:$0xff] }
  0xde   : > { %1633 = vmatpush.msra.mxu2 %v678_v57  ;;  %1652 = vmatpush.msra.mxu3 %v814_v58  ;;  %v1390_v34 = vld [vmem:[%s3761_s27 + $0x1f08] sm:$0xff] }
  0xdf   : > { %1594 = vmatpush.msra.mxu0 %v414_v60  ;;  %1613 = vmatpush.msra.mxu1 %v550_v61  ;;  %v990_v35 = vld [vmem:[%s3761_s27 + $0x1288] sm:$0xff] }
  0xe0   : > { %1634 = vmatpush.msra.mxu2 %v670_v62  ;;  %1653 = vmatpush.msra.mxu3 %v806_v63  ;;  %v1126_v36 = vld [vmem:[%s3761_s27 + $0x16c8] sm:$0xff] }
  0xe1   : > { %1595 = vmatpush.msra.mxu0 %v406_v2  ;;  %1614 = vmatpush.msra.mxu1 %v542_v3  ;;  %v1246_v37 = vld [vmem:[%s3761_s27 + $0x1a88] sm:$0xff] }
  0xe2   : > { %1635 = vmatpush.msra.mxu2 %v662_v4  ;;  %1654 = vmatpush.msra.mxu3 %v798_v5  ;;  %v1382_v38 = vld [vmem:[%s3761_s27 + $0x1ec8] sm:$0xff] }
  0xe3   : > { %1596 = vmatpush.msra.mxu0 %v398_v7  ;;  %1615 = vmatpush.msra.mxu1 %v534_v8  ;;  %v982_v39 = vld [vmem:[%s3761_s27 + $0x1248] sm:$0xff] }
  0xe4   : > { %1636 = vmatpush.msra.mxu2 %v654_v9  ;;  %1655 = vmatpush.msra.mxu3 %v790_v10  ;;  %v1118_v40 = vld [vmem:[%s3761_s27 + $0x1688] sm:$0xff] }
  0xe5   : > { %1661 = vmatpush.msrb.mxu0 %v1030_v11  ;;  %1616 = vmatpush.msra.mxu1 %v526_v13  ;;  %v1238_v41 = vld [vmem:[%s3761_s27 + $0x1a48] sm:$0xff] }
  0xe6   : > { %1701 = vmatpush.msrb.mxu2 %v1286_v12  ;;  %1656 = vmatpush.msra.mxu3 %v782_v14  ;;  %v1374_v42 = vld [vmem:[%s3761_s27 + $0x1e88] sm:$0xff] }
  0xe7   : > { %1662 = vmatpush.msrb.mxu0 %v1022_v16  ;;  %1681 = vmatpush.msrb.mxu1 %v1158_v17  ;;  %v974_v43 = vld [vmem:[%s3761_s27 + $0x1208] sm:$0xff] }
  0xe8   : > { %1702 = vmatpush.msrb.mxu2 %v1278_v18  ;;  %1721 = vmatpush.msrb.mxu3 %v1414_v19  ;;  %v1110_v44 = vld [vmem:[%s3761_s27 + $0x1648] sm:$0xff] }
  0xe9   : > { %1663 = vmatpush.msrb.mxu0 %v1014_v22  ;;  %1682 = vmatpush.msrb.mxu1 %v1150_v23  ;;  %v1230_v45 = vld [vmem:[%s3761_s27 + $0x1a08] sm:$0xff]  ;;  %v519_v22 = vld [vmem:[%s3761_s27 + $0x3d0] sm:$0xff] }
  0xea   : > { %1703 = vmatpush.msrb.mxu2 %v1270_v24  ;;  %1722 = vmatpush.msrb.mxu3 %v1406_v25  ;;  %v1366_v46 = vld [vmem:[%s3761_s27 + $0x1e48] sm:$0xff]  ;;  %v775_v23 = vld [vmem:[%s3761_s27 + $0xbd0] sm:$0xff] }
  0xeb   : > { %1664 = vmatpush.msrb.mxu0 %v1006_v27  ;;  %1683 = vmatpush.msrb.mxu1 %v1142_v28  ;;  %v966_v47 = vld [vmem:[%s3761_s27 + $0x11c8] sm:$0xff]  ;;  %v647_v27 = vld [vmem:[%s3761_s27 + $0x7d0] sm:$0xff] }
  0xec   : > { %1704 = vmatpush.msrb.mxu2 %v1262_v29  ;;  %1723 = vmatpush.msrb.mxu3 %v1398_v30  ;;  %v1102_v48 = vld [vmem:[%s3761_s27 + $0x1608] sm:$0xff]  ;;  %v767_v28 = vld [vmem:[%s3761_s27 + $0xb90] sm:$0xff] }
  0xed   : > { %1665 = vmatpush.msrb.mxu0 %v998_v31  ;;  %1684 = vmatpush.msrb.mxu1 %v1134_v32  ;;  %v1222_v49 = vld [vmem:[%s3761_s27 + $0x19c8] sm:$0xff]  ;;  %v903_v29 = vld [vmem:[%s3761_s27 + $0xfd0] sm:$0xff] }
  0xee   : > { %1705 = vmatpush.msrb.mxu2 %v1254_v33  ;;  %1724 = vmatpush.msrb.mxu3 %v1390_v34  ;;  %v1358_v50 = vld [vmem:[%s3761_s27 + $0x1e08] sm:$0xff]  ;;  %v639_v30 = vld [vmem:[%s3761_s27 + $0x790] sm:$0xff] }
  0xef   : > { %1666 = vmatpush.msrb.mxu0 %v990_v35  ;;  %1685 = vmatpush.msrb.mxu1 %v1126_v36  ;;  %v958_v51 = vld [vmem:[%s3761_s27 + $0x1188] sm:$0xff]  ;;  %v895_v31 = vld [vmem:[%s3761_s27 + $0xf90] sm:$0xff] }
  0xf0   : > { %1706 = vmatpush.msrb.mxu2 %v1246_v37  ;;  %1725 = vmatpush.msrb.mxu3 %v1382_v38  ;;  %v1094_v52 = vld [vmem:[%s3761_s27 + $0x15c8] sm:$0xff]  ;;  %v495_v32 = vld [vmem:[%s3761_s27 + $0x310] sm:$0xff] }
  0xf1   : > { %1667 = vmatpush.msrb.mxu0 %v982_v39  ;;  %1686 = vmatpush.msrb.mxu1 %v1118_v40  ;;  %v1214_v53 = vld [vmem:[%s3761_s27 + $0x1988] sm:$0xff]  ;;  %v631_v33 = vld [vmem:[%s3761_s27 + $0x750] sm:$0xff] }
  0xf2   : > { %1707 = vmatpush.msrb.mxu2 %v1238_v41  ;;  %1726 = vmatpush.msrb.mxu3 %v1374_v42  ;;  %v1350_v54 = vld [vmem:[%s3761_s27 + $0x1dc8] sm:$0xff]  ;;  %v751_v34 = vld [vmem:[%s3761_s27 + $0xb10] sm:$0xff] }
  0xf3   : > { %1668 = vmatpush.msrb.mxu0 %v974_v43  ;;  %1687 = vmatpush.msrb.mxu1 %v1110_v44  ;;  %v950_v55 = vld [vmem:[%s3761_s27 + $0x1148] sm:$0xff]  ;;  %v487_v35 = vld [vmem:[%s3761_s27 + $0x2d0] sm:$0xff] }
  0xf4   : > { %1708 = vmatpush.msrb.mxu2 %v1230_v45  ;;  %1727 = vmatpush.msrb.mxu3 %v1366_v46  ;;  %v1086_v56 = vld [vmem:[%s3761_s27 + $0x1588] sm:$0xff]  ;;  %v623_v36 = vld [vmem:[%s3761_s27 + $0x710] sm:$0xff] }
  0xf5   : > { %1669 = vmatpush.msrb.mxu0 %v966_v47  ;;  %1688 = vmatpush.msrb.mxu1 %v1102_v48  ;;  %v1206_v57 = vld [vmem:[%s3761_s27 + $0x1948] sm:$0xff]  ;;  %v743_v37 = vld [vmem:[%s3761_s27 + $0xad0] sm:$0xff] }
  0xf6   : > { %1709 = vmatpush.msrb.mxu2 %v1222_v49  ;;  %1728 = vmatpush.msrb.mxu3 %v1358_v50  ;;  %v1342_v58 = vld [vmem:[%s3761_s27 + $0x1d88] sm:$0xff]  ;;  %v879_v38 = vld [vmem:[%s3761_s27 + $0xf10] sm:$0xff] }
  0xf7   : > { %1670 = vmatpush.msrb.mxu0 %v958_v51  ;;  %1689 = vmatpush.msrb.mxu1 %v1094_v52  ;;  %v942_v60 = vld [vmem:[%s3761_s27 + $0x1108] sm:$0xff]  ;;  %v615_v39 = vld [vmem:[%s3761_s27 + $0x6d0] sm:$0xff] }
  0xf8   : > { %1710 = vmatpush.msrb.mxu2 %v1214_v53  ;;  %1729 = vmatpush.msrb.mxu3 %v1350_v54  ;;  %v1078_v61 = vld [vmem:[%s3761_s27 + $0x1548] sm:$0xff]  ;;  %v735_v40 = vld [vmem:[%s3761_s27 + $0xa90] sm:$0xff] }
  0xf9   : > { %1671 = vmatpush.msrb.mxu0 %v950_v55  ;;  %1690 = vmatpush.msrb.mxu1 %v1086_v56  ;;  %v1198_v62 = vld [vmem:[%s3761_s27 + $0x1908] sm:$0xff]  ;;  %v871_v41 = vld [vmem:[%s3761_s27 + $0xed0] sm:$0xff] }
  0xfa   : > { %v1334_v63 = vld [vmem:[%s3761_s27 + $0x1d48] sm:$0xff]  ;;  %1711 = vmatpush.msrb.mxu2 %v1206_v57  ;;  %1730 = vmatpush.msrb.mxu3 %v1342_v58  ;;  %v607_v42 = vld [vmem:[%s3761_s27 + $0x690] sm:$0xff] }
  0xfb   : > { %v934_v2 = vld [vmem:[%s3761_s27 + $0x10c8] sm:$0xff]  ;;  %1672 = vmatpush.msrb.mxu0 %v942_v60  ;;  %1691 = vmatpush.msrb.mxu1 %v1078_v61  ;;  %v863_v43 = vld [vmem:[%s3761_s27 + $0xe90] sm:$0xff] }
  0xfc   : > { %v1070_v3 = vld [vmem:[%s3761_s27 + $0x1508] sm:$0xff]  ;;  %1712 = vmatpush.msrb.mxu2 %v1198_v62  ;;  %1731 = vmatpush.msrb.mxu3 %v1334_v63  ;;  %v463_v44 = vld [vmem:[%s3761_s27 + $0x210] sm:$0xff] }
  0xfd   : > { %v1190_v4 = vld [vmem:[%s3761_s27 + $0x18c8] sm:$0xff]  ;;  %1673 = vmatpush.msrb.mxu0 %v934_v2  ;;  %1692 = vmatpush.msrb.mxu1 %v1070_v3  ;;  %v599_v45 = vld [vmem:[%s3761_s27 + $0x650] sm:$0xff] }
  0xfe   : > { %v1326_v5 = vld [vmem:[%s3761_s27 + $0x1d08] sm:$0xff]  ;;  %1713 = vmatpush.msrb.mxu2 %v1190_v4  ;;  %1597 = vmatmul.f32.vlgmr.msra.gmra.mxu0 %v3913_v0  ;;  %v503_v0 = vld [vmem:[%s3761_s27 + $0x350] sm:$0xff] }
  0xff   : > { %v926_v7 = vld [vmem:[%s3761_s27 + $0x1088] sm:$0xff]  ;;  %1732 = vmatpush.msrb.mxu3 %v1326_v5  ;;  %1637 = vmatmul.f32.vlgmr.msra.gmra.mxu2 %v3906_v59  ;;  %v511_v59 = vld [vmem:[%s3761_s27 + $0x390] sm:$0xff] }
 0x100   : > { %v1062_v8 = vld [vmem:[%s3761_s27 + $0x14c8] sm:$0xff]  ;;  %1674 = vmatpush.msrb.mxu0 %v926_v7  ;;  %1657 = vmatmul.f32.vlgmr.msra.gmra.mxu3 %v3917_v1  ;;  %v759_v1 = vld [vmem:[%s3761_s27 + $0xb50] sm:$0xff] }
 0x101   : > { %v1182_v9 = vld [vmem:[%s3761_s27 + $0x1888] sm:$0xff]  ;;  %1693 = vmatpush.msrb.mxu1 %v1062_v8  ;;  %v719_v46 = vld [vmem:[%s3761_s27 + $0xa10] sm:$0xff] }
 0x102   : > { %v1318_v10 = vld [vmem:[%s3761_s27 + $0x1cc8] sm:$0xff]  ;;  %1714 = vmatpush.msrb.mxu2 %v1182_v9  ;;  %1617 = vmatmul.f32.vlgmr.msra.gmra.mxu1 %v3925_v6  ;;  %v887_v6 = vld [vmem:[%s3761_s27 + $0xf50] sm:$0xff] }
 0x103   : > { %v918_v11 = vld [vmem:[%s3761_s27 + $0x1048] sm:$0xff]  ;;  %1733 = vmatpush.msrb.mxu3 %v1318_v10  ;;  %v455_v47 = vld [vmem:[%s3761_s27 + $0x1d0] sm:$0xff] }
 0x104   : > { %v1054_v12 = vld [vmem:[%s3761_s27 + $0x1488] sm:$0xff]  ;;  %1675 = vmatpush.msrb.mxu0 %v918_v11  ;;  %v591_v48 = vld [vmem:[%s3761_s27 + $0x610] sm:$0xff] }
 0x105   : > { %v1174_v13 = vld [vmem:[%s3761_s27 + $0x1848] sm:$0xff]  ;;  %1694 = vmatpush.msrb.mxu1 %v1054_v12  ;;  %v711_v49 = vld [vmem:[%s3761_s27 + $0x9d0] sm:$0xff] }
 0x106   : > { %v1310_v14 = vld [vmem:[%s3761_s27 + $0x1c88] sm:$0xff]  ;;  %1715 = vmatpush.msrb.mxu2 %v1174_v13  ;;  %v847_v50 = vld [vmem:[%s3761_s27 + $0xe10] sm:$0xff] }
 0x107   : > { %v910_v16 = vld [vmem:[%s3761_s27 + $0x1008] sm:$0xff]  ;;  %1734 = vmatpush.msrb.mxu3 %v1310_v14  ;;  %v447_v51 = vld [vmem:[%s3761_s27 + $0x190] sm:$0xff] }
 0x108   : > { %v1046_v17 = vld [vmem:[%s3761_s27 + $0x1448] sm:$0xff]  ;;  %1676 = vmatpush.msrb.mxu0 %v910_v16  ;;  %v583_v52 = vld [vmem:[%s3761_s27 + $0x5d0] sm:$0xff] }
 0x109   : > { %v1166_v18 = vld [vmem:[%s3761_s27 + $0x1808] sm:$0xff]  ;;  %1695 = vmatpush.msrb.mxu1 %v1046_v17  ;;  %1677 = vmatmul.f32.vlgmr.msrb.gmra.mxu0 %v3945_v20  ;;  %v471_v20 = vld [vmem:[%s3761_s27 + $0x250] sm:$0xff] }
 0x10a   : > { %v1302_v19 = vld [vmem:[%s3761_s27 + $0x1c48] sm:$0xff]  ;;  %1716 = vmatpush.msrb.mxu2 %v1166_v18  ;;  %1741 = vmatpush.msra.mxu0 %v519_v22  ;;  %v703_v53 = vld [vmem:[%s3761_s27 + $0x990] sm:$0xff] }
 0x10b   : > { %v1038_v24 = vld [vmem:[%s3761_s27 + $0x1408] sm:$0xff]  ;;  %1735 = vmatpush.msrb.mxu3 %v1302_v19  ;;  %1717 = vmatmul.f32.vlgmr.msrb.gmra.mxu2 %v3938_v15  ;;  %v479_v15 = vld [vmem:[%s3761_s27 + $0x290] sm:$0xff] }
 0x10c   : > { %v1294_v25 = vld [vmem:[%s3761_s27 + $0x1c08] sm:$0xff]  ;;  %1781 = vmatpush.msra.mxu2 %v775_v23  ;;  %1696 = vmatpush.msrb.mxu1 %v1038_v24  ;;  %v839_v54 = vld [vmem:[%s3761_s27 + $0xdd0] sm:$0xff] }
 0x10d   : > { %1736 = vmatpush.msrb.mxu3 %v1294_v25  ;;  %1742 = vmatpush.msra.mxu0 %v511_v59  ;;  %v439_v55 = vld [vmem:[%s3761_s27 + $0x150] sm:$0xff] }
 0x10e   : > { %1761 = vmatpush.msra.mxu1 %v647_v27  ;;  %1782 = vmatpush.msra.mxu2 %v767_v28  ;;  %v575_v56 = vld [vmem:[%s3761_s27 + $0x590] sm:$0xff] }
 0x10f   : > { %1801 = vmatpush.msra.mxu3 %v903_v29  ;;  %1743 = vmatpush.msra.mxu0 %v503_v0  ;;  %v695_v57 = vld [vmem:[%s3761_s27 + $0x950] sm:$0xff] }
 0x110   : > { %1762 = vmatpush.msra.mxu1 %v639_v30  ;;  %1783 = vmatpush.msra.mxu2 %v759_v1  ;;  %v831_v58 = vld [vmem:[%s3761_s27 + $0xd90] sm:$0xff] }
 0x111   : > { %1802 = vmatpush.msra.mxu3 %v895_v31  ;;  %1744 = vmatpush.msra.mxu0 %v495_v32  ;;  %v431_v60 = vld [vmem:[%s3761_s27 + $0x110] sm:$0xff] }
 0x112   : > { %1763 = vmatpush.msra.mxu1 %v631_v33  ;;  %1784 = vmatpush.msra.mxu2 %v751_v34  ;;  %v567_v61 = vld [vmem:[%s3761_s27 + $0x550] sm:$0xff] }
 0x113   : > { %1803 = vmatpush.msra.mxu3 %v887_v6  ;;  %1745 = vmatpush.msra.mxu0 %v487_v35  ;;  %v687_v62 = vld [vmem:[%s3761_s27 + $0x910] sm:$0xff] }
 0x114   : > { %1737 = vmatmul.f32.vlgmr.msrb.gmra.mxu3 %v3949_v21  ;;  %1764 = vmatpush.msra.mxu1 %v623_v36  ;;  %v727_v21 = vld [vmem:[%s3761_s27 + $0xa50] sm:$0xff] }
 0x115   : > { %1785 = vmatpush.msra.mxu2 %v743_v37  ;;  %1804 = vmatpush.msra.mxu3 %v879_v38  ;;  %v823_v63 = vld [vmem:[%s3761_s27 + $0xd50] sm:$0xff] }
 0x116   : > { %1697 = vmatmul.f32.vlgmr.msrb.gmra.mxu1 %v3957_v26  ;;  %1746 = vmatpush.msra.mxu0 %v479_v15  ;;  %v855_v26 = vld [vmem:[%s3761_s27 + $0xe50] sm:$0xff] }
 0x117   : > { %1765 = vmatpush.msra.mxu1 %v615_v39  ;;  %1786 = vmatpush.msra.mxu2 %v735_v40  ;;  %v423_v2 = vld [vmem:[%s3761_s27 + $0xd0] sm:$0xff] }
 0x118   : > { %1805 = vmatpush.msra.mxu3 %v871_v41  ;;  %1747 = vmatpush.msra.mxu0 %v471_v20  ;;  %v559_v3 = vld [vmem:[%s3761_s27 + $0x510] sm:$0xff] }
 0x119   : > { %1766 = vmatpush.msra.mxu1 %v607_v42  ;;  %1787 = vmatpush.msra.mxu2 %v727_v21  ;;  %v679_v4 = vld [vmem:[%s3761_s27 + $0x8d0] sm:$0xff] }
 0x11a   : > { %1806 = vmatpush.msra.mxu3 %v863_v43  ;;  %1748 = vmatpush.msra.mxu0 %v463_v44  ;;  %v815_v5 = vld [vmem:[%s3761_s27 + $0xd10] sm:$0xff] }
 0x11b   : > { %1767 = vmatpush.msra.mxu1 %v599_v45  ;;  %1788 = vmatpush.msra.mxu2 %v719_v46  ;;  %v415_v7 = vld [vmem:[%s3761_s27 + $0x90] sm:$0xff] }
 0x11c   : > { %1807 = vmatpush.msra.mxu3 %v855_v26  ;;  %1749 = vmatpush.msra.mxu0 %v455_v47  ;;  %v551_v8 = vld [vmem:[%s3761_s27 + $0x4d0] sm:$0xff] }
 0x11d   : > { %1768 = vmatpush.msra.mxu1 %v591_v48  ;;  %1789 = vmatpush.msra.mxu2 %v711_v49  ;;  %v671_v9 = vld [vmem:[%s3761_s27 + $0x890] sm:$0xff] }
 0x11e   : > { %1808 = vmatpush.msra.mxu3 %v847_v50  ;;  %1750 = vmatpush.msra.mxu0 %v447_v51  ;;  %v807_v10 = vld [vmem:[%s3761_s27 + $0xcd0] sm:$0xff] }
 0x11f   : > { %1769 = vmatpush.msra.mxu1 %v583_v52  ;;  %1790 = vmatpush.msra.mxu2 %v703_v53  ;;  %v407_v11 = vld [vmem:[%s3761_s27 + $0x50] sm:$0xff] }
 0x120   : > { %1809 = vmatpush.msra.mxu3 %v839_v54  ;;  %1751 = vmatpush.msra.mxu0 %v439_v55  ;;  %v543_v12 = vld [vmem:[%s3761_s27 + $0x490] sm:$0xff] }
 0x121   : > { %1770 = vmatpush.msra.mxu1 %v575_v56  ;;  %1791 = vmatpush.msra.mxu2 %v695_v57  ;;  %v663_v13 = vld [vmem:[%s3761_s27 + $0x850] sm:$0xff] }
 0x122   : > { %1810 = vmatpush.msra.mxu3 %v831_v58  ;;  %1752 = vmatpush.msra.mxu0 %v431_v60  ;;  %v799_v14 = vld [vmem:[%s3761_s27 + $0xc90] sm:$0xff] }
 0x123   : > { %1771 = vmatpush.msra.mxu1 %v567_v61  ;;  %1792 = vmatpush.msra.mxu2 %v687_v62  ;;  %v399_v16 = vld [vmem:[%s3761_s27 + $0x10] sm:$0xff] }
 0x124   : > { %1811 = vmatpush.msra.mxu3 %v823_v63  ;;  %1753 = vmatpush.msra.mxu0 %v423_v2  ;;  %v535_v17 = vld [vmem:[%s3761_s27 + $0x450] sm:$0xff] }
 0x125   : > { %1772 = vmatpush.msra.mxu1 %v559_v3  ;;  %1793 = vmatpush.msra.mxu2 %v679_v4  ;;  %v655_v18 = vld [vmem:[%s3761_s27 + $0x810] sm:$0xff] }
 0x126   : > { %1812 = vmatpush.msra.mxu3 %v815_v5  ;;  %1754 = vmatpush.msra.mxu0 %v415_v7  ;;  %v791_v19 = vld [vmem:[%s3761_s27 + $0xc50] sm:$0xff] }
 0x127   : > { %1773 = vmatpush.msra.mxu1 %v551_v8  ;;  %1794 = vmatpush.msra.mxu2 %v671_v9  ;;  %v1031_v22 = vld [vmem:[%s3761_s27 + $0x13d0] sm:$0xff] }
 0x128   : > { %1813 = vmatpush.msra.mxu3 %v807_v10  ;;  %1755 = vmatpush.msra.mxu0 %v407_v11  ;;  %v1287_v23 = vld [vmem:[%s3761_s27 + $0x1bd0] sm:$0xff] }
 0x129   : > { %1774 = vmatpush.msra.mxu1 %v543_v12  ;;  %1795 = vmatpush.msra.mxu2 %v663_v13  ;;  %v527_v24 = vld [vmem:[%s3761_s27 + $0x410] sm:$0xff]  ;;  %v1458_v12 = vpop.f32.mrf.mxu1 }
 0x12a   : > { %1814 = vmatpush.msra.mxu3 %v799_v14  ;;  %1756 = vmatpush.msra.mxu0 %v399_v16  ;;  %v783_v25 = vld [vmem:[%s3761_s27 + $0xc10] sm:$0xff] }
 0x12b   : > { %1775 = vmatpush.msra.mxu1 %v535_v17  ;;  %1796 = vmatpush.msra.mxu2 %v655_v18  ;;  %v1023_v59 = vld [vmem:[%s3761_s27 + $0x1390] sm:$0xff]  ;;  %v1478_v17 = vpop.f32.mrf.mxu2 }
 0x12c   : > { %1815 = vmatpush.msra.mxu3 %v791_v19  ;;  %v1159_v27 = vld [vmem:[%s3761_s27 + $0x17d0] sm:$0xff]  ;;  %1821 = vmatpush.msrb.mxu0 %v1031_v22 }
 0x12d   : > { %1861 = vmatpush.msrb.mxu2 %v1287_v23  ;;  %v1279_v28 = vld [vmem:[%s3761_s27 + $0x1b90] sm:$0xff]  ;;  %1776 = vmatpush.msra.mxu1 %v527_v24 }
 0x12e   : > { %v1415_v29 = vld [vmem:[%s3761_s27 + $0x1fd0] sm:$0xff]  ;;  %1816 = vmatpush.msra.mxu3 %v783_v25  ;;  %1822 = vmatpush.msrb.mxu0 %v1023_v59  ;;  %v1498_v59 = vpop.f32.mrf.mxu3 }
 0x12f   : > { %v1015_v0 = vld [vmem:[%s3761_s27 + $0x1350] sm:$0xff]  ;;  %1841 = vmatpush.msrb.mxu1 %v1159_v27  ;;  %1862 = vmatpush.msrb.mxu2 %v1279_v28 }
 0x130   : > { %v1151_v30 = vld [vmem:[%s3761_s27 + $0x1790] sm:$0xff]  ;;  %1881 = vmatpush.msrb.mxu3 %v1415_v29  ;;  %1823 = vmatpush.msrb.mxu0 %v1015_v0  ;;  %v520_v0 = vld [vmem:[%s3761_s27 + $0x3d8] sm:$0xff] }
 0x131   : > { %v1271_v1 = vld [vmem:[%s3761_s27 + $0x1b50] sm:$0xff]  ;;  %1842 = vmatpush.msrb.mxu1 %v1151_v30  ;;  %v776_v30 = vld [vmem:[%s3761_s27 + $0xbd8] sm:$0xff] }
 0x132   : > { %v1407_v31 = vld [vmem:[%s3761_s27 + $0x1f90] sm:$0xff]  ;;  %1863 = vmatpush.msrb.mxu2 %v1271_v1 }
 0x133   : > { %v1007_v32 = vld [vmem:[%s3761_s27 + $0x1310] sm:$0xff]  ;;  %1882 = vmatpush.msrb.mxu3 %v1407_v31 }
 0x134   : > { %v1143_v33 = vld [vmem:[%s3761_s27 + $0x1750] sm:$0xff]  ;;  %1824 = vmatpush.msrb.mxu0 %v1007_v32  ;;  %v4213_v32 = vld [vmem:[%s3779_s30] sm:$0xff] }
 0x135   : > { %v1263_v34 = vld [vmem:[%s3761_s27 + $0x1b10] sm:$0xff]  ;;  %1843 = vmatpush.msrb.mxu1 %v1143_v33  ;;  %1757 = vmatmul.f32.vlgmr.msra.gmra.mxu0 %v4213_v32 }
 0x136   : > { %v1399_v6 = vld [vmem:[%s3761_s27 + $0x1f50] sm:$0xff]  ;;  %1864 = vmatpush.msrb.mxu2 %v1263_v34 }
 0x137   : > { %v999_v35 = vld [vmem:[%s3761_s27 + $0x12d0] sm:$0xff]  ;;  %1883 = vmatpush.msrb.mxu3 %v1399_v6  ;;  %v4218_v6 = vld [vmem:[%s3779_s30 + $0x18] sm:$0xff] }
 0x138   : > { %v1135_v36 = vld [vmem:[%s3761_s27 + $0x1710] sm:$0xff]  ;;  %1825 = vmatpush.msrb.mxu0 %v999_v35  ;;  %1817 = vmatmul.f32.vlgmr.msra.gmra.mxu3 %v4218_v6  ;;  %v512_v35 = vld [vmem:[%s3761_s27 + $0x398] sm:$0xff] }
 0x139   : > { %v1255_v37 = vld [vmem:[%s3761_s27 + $0x1ad0] sm:$0xff]  ;;  %1844 = vmatpush.msrb.mxu1 %v1135_v36  ;;  %v648_v36 = vld [vmem:[%s3761_s27 + $0x7d8] sm:$0xff] }
 0x13a   : > { %v1391_v38 = vld [vmem:[%s3761_s27 + $0x1f10] sm:$0xff]  ;;  %1865 = vmatpush.msrb.mxu2 %v1255_v37  ;;  %v768_v37 = vld [vmem:[%s3761_s27 + $0xb98] sm:$0xff] }
 0x13b   : > { %v991_v15 = vld [vmem:[%s3761_s27 + $0x1290] sm:$0xff]  ;;  %1884 = vmatpush.msrb.mxu3 %v1391_v38  ;;  %v904_v38 = vld [vmem:[%s3761_s27 + $0xfd8] sm:$0xff] }
 0x13c   : > { %v1127_v39 = vld [vmem:[%s3761_s27 + $0x16d0] sm:$0xff]  ;;  %1826 = vmatpush.msrb.mxu0 %v991_v15 }
 0x13d   : > { %v1247_v40 = vld [vmem:[%s3761_s27 + $0x1a90] sm:$0xff]  ;;  %1845 = vmatpush.msrb.mxu1 %v1127_v39  ;;  %v4226_v39 = vld [vmem:[%s3779_s30 + $0x8] sm:$0xff] }
 0x13e   : > { %v1383_v41 = vld [vmem:[%s3761_s27 + $0x1ed0] sm:$0xff]  ;;  %1866 = vmatpush.msrb.mxu2 %v1247_v40  ;;  %1777 = vmatmul.f32.vlgmr.msra.gmra.mxu1 %v4226_v39  ;;  %v504_v40 = vld [vmem:[%s3761_s27 + $0x358] sm:$0xff] }
 0x13f   : > { %v983_v20 = vld [vmem:[%s3761_s27 + $0x1250] sm:$0xff]  ;;  %1885 = vmatpush.msrb.mxu3 %v1383_v41  ;;  %v640_v41 = vld [vmem:[%s3761_s27 + $0x798] sm:$0xff] }
 0x140   : > { %v1119_v42 = vld [vmem:[%s3761_s27 + $0x1690] sm:$0xff]  ;;  %1827 = vmatpush.msrb.mxu0 %v983_v20  ;;  %v1438_v4 = vpop.f32.mrf.mxu0 }
 0x141   : > { %v1239_v21 = vld [vmem:[%s3761_s27 + $0x1a50] sm:$0xff]  ;;  %1846 = vmatpush.msrb.mxu1 %v1119_v42  ;;  %v1459_v16 = vadd.f32 %v1458_v12, %v1438_v4  ;;  %v608_v4 = vld [vmem:[%s3761_s27 + $0x698] sm:$0xff] }
 0x142   : > { %v1375_v43 = vld [vmem:[%s3761_s27 + $0x1e90] sm:$0xff]  ;;  %1867 = vmatpush.msrb.mxu2 %v1239_v21  ;;  %v760_v21 = vld [vmem:[%s3761_s27 + $0xb58] sm:$0xff] }
 0x143   : > { %v975_v44 = vld [vmem:[%s3761_s27 + $0x1210] sm:$0xff]  ;;  %1886 = vmatpush.msrb.mxu3 %v1375_v43  ;;  %v1479_v23 = vadd.f32 %v1478_v17, %v1459_v16  ;;  %v896_v43 = vld [vmem:[%s3761_s27 + $0xf98] sm:$0xff] }
 0x144   : > { %v1111_v45 = vld [vmem:[%s3761_s27 + $0x1650] sm:$0xff]  ;;  %1828 = vmatpush.msrb.mxu0 %v975_v44  ;;  %v496_v44 = vld [vmem:[%s3761_s27 + $0x318] sm:$0xff] }
 0x145   : > { %v1231_v46 = vld [vmem:[%s3761_s27 + $0x1a10] sm:$0xff]  ;;  %1847 = vmatpush.msrb.mxu1 %v1111_v45  ;;  %v1499_v28 = vadd.f32 %v1498_v59, %v1479_v23  ;;  %v1558_v42 = vpop.f32.mrf.mxu2  ;;  %v456_v12 = vld [vmem:[%s3761_s27 + $0x1d8] sm:$0xff] }
 0x146   : > { %v1367_v26 = vld [vmem:[%s3761_s27 + $0x1e50] sm:$0xff]  ;;  %1868 = vmatpush.msrb.mxu2 %v1231_v46  ;;  %v632_v46 = vld [vmem:[%s3761_s27 + $0x758] sm:$0xff] }
 0x147   : > { %v967_v47 = vld [vmem:[%s3761_s27 + $0x11d0] sm:$0xff]  ;;  %1887 = vmatpush.msrb.mxu3 %v1367_v26  ;;  %v752_v26 = vld [vmem:[%s3761_s27 + $0xb18] sm:$0xff] }
 0x148   : > { %v1103_v48 = vld [vmem:[%s3761_s27 + $0x1610] sm:$0xff]  ;;  %1829 = vmatpush.msrb.mxu0 %v967_v47  ;;  %v1518_v31 = vpop.f32.mrf.mxu0  ;;  %v848_v16 = vld [vmem:[%s3761_s27 + $0xe18] sm:$0xff] }
 0x149   : > { %v1223_v49 = vld [vmem:[%s3761_s27 + $0x19d0] sm:$0xff]  ;;  %1848 = vmatpush.msrb.mxu1 %v1103_v48  ;;  %v1519_v34 = vadd.f32 %v1518_v31, %v1499_v28  ;;  %v448_v17 = vld [vmem:[%s3761_s27 + $0x198] sm:$0xff] }
 0x14a   : > { %v1359_v50 = vld [vmem:[%s3761_s27 + $0x1e10] sm:$0xff]  ;;  %1869 = vmatpush.msrb.mxu2 %v1223_v49  ;;  %v888_v49 = vld [vmem:[%s3761_s27 + $0xf58] sm:$0xff] }
 0x14b   : > { %v959_v51 = vld [vmem:[%s3761_s27 + $0x1190] sm:$0xff]  ;;  %1888 = vmatpush.msrb.mxu3 %v1359_v50  ;;  %v1538_v15 = vpop.f32.mrf.mxu1  ;;  %v440_v23 = vld [vmem:[%s3761_s27 + $0x158] sm:$0xff] }
 0x14c   : > { %v1095_v52 = vld [vmem:[%s3761_s27 + $0x15d0] sm:$0xff]  ;;  %1830 = vmatpush.msrb.mxu0 %v959_v51  ;;  %v1539_v20 = vadd.f32 %v1538_v15, %v1519_v34  ;;  %v832_v59 = vld [vmem:[%s3761_s27 + $0xd98] sm:$0xff] }
 0x14d   : > { %v1215_v53 = vld [vmem:[%s3761_s27 + $0x1990] sm:$0xff]  ;;  %1849 = vmatpush.msrb.mxu1 %v1095_v52  ;;  %v488_v52 = vld [vmem:[%s3761_s27 + $0x2d8] sm:$0xff] }
 0x14e   : > { %v1351_v54 = vld [vmem:[%s3761_s27 + $0x1dd0] sm:$0xff]  ;;  %1870 = vmatpush.msrb.mxu2 %v1215_v53  ;;  %v1559_v45 = vadd.f32 %v1558_v42, %v1539_v20  ;;  %v624_v53 = vld [vmem:[%s3761_s27 + $0x718] sm:$0xff] }
 0x14f   : > { %v951_v55 = vld [vmem:[%s3761_s27 + $0x1150] sm:$0xff]  ;;  %1889 = vmatpush.msrb.mxu3 %v1351_v54  ;;  %v1578_v48 = vpop.f32.mrf.mxu3  ;;  %v744_v54 = vld [vmem:[%s3761_s27 + $0xad8] sm:$0xff] }
 0x150   : > { %v1087_v56 = vld [vmem:[%s3761_s27 + $0x1590] sm:$0xff]  ;;  %1831 = vmatpush.msrb.mxu0 %v951_v55  ;;  %v1579_v50 = vadd.f32 %v1578_v48, %v1559_v45  ;;  %v568_v28 = vld [vmem:[%s3761_s27 + $0x558] sm:$0xff] }
 0x151   : > { %v1207_v57 = vld [vmem:[%s3761_s27 + $0x1950] sm:$0xff]  ;;  %1850 = vmatpush.msrb.mxu1 %v1087_v56  ;;  %v4245_v56 = vld [vmem:[%s3779_s30 + $0x20] sm:$0xff]  ;;  %v560_v31 = vld [vmem:[%s3761_s27 + $0x518] sm:$0xff] }
 0x152   : > { %v1343_v58 = vld [vmem:[%s3761_s27 + $0x1d90] sm:$0xff]  ;;  %1871 = vmatpush.msrb.mxu2 %v1207_v57  ;;  %v880_v57 = vld [vmem:[%s3761_s27 + $0xf18] sm:$0xff] }
 0x153   : > { %v943_v60 = vld [vmem:[%s3761_s27 + $0x1110] sm:$0xff]  ;;  %1890 = vmatpush.msrb.mxu3 %v1343_v58  ;;  %v4250_v58 = vld [vmem:[%s3779_s30 + $0x38] sm:$0xff] }
 0x154   : > { %v1079_v61 = vld [vmem:[%s3761_s27 + $0x1550] sm:$0xff]  ;;  %1832 = vmatpush.msrb.mxu0 %v943_v60  ;;  %v480_v60 = vld [vmem:[%s3761_s27 + $0x298] sm:$0xff] }
 0x155   : > { %v1199_v62 = vld [vmem:[%s3761_s27 + $0x1910] sm:$0xff]  ;;  %1851 = vmatpush.msrb.mxu1 %v1079_v61  ;;  %v616_v61 = vld [vmem:[%s3761_s27 + $0x6d8] sm:$0xff] }
 0x156   : > { %v1335_v63 = vld [vmem:[%s3761_s27 + $0x1d50] sm:$0xff]  ;;  %1872 = vmatpush.msrb.mxu2 %v1199_v62  ;;  %v736_v62 = vld [vmem:[%s3761_s27 + $0xa98] sm:$0xff] }
 0x157   : > { %v935_v2 = vld [vmem:[%s3761_s27 + $0x10d0] sm:$0xff]  ;;  %1891 = vmatpush.msrb.mxu3 %v1335_v63  ;;  %v872_v63 = vld [vmem:[%s3761_s27 + $0xed8] sm:$0xff] }
 0x158   : > { %v1071_v3 = vld [vmem:[%s3761_s27 + $0x1510] sm:$0xff]  ;;  %1833 = vmatpush.msrb.mxu0 %v935_v2  ;;  %v4258_v2 = vld [vmem:[%s3779_s30 + $0x28] sm:$0xff]  ;;  %v816_v34 = vld [vmem:[%s3761_s27 + $0xd18] sm:$0xff] }
 0x159   : > { %v1191_v5 = vld [vmem:[%s3761_s27 + $0x18d0] sm:$0xff]  ;;  %1852 = vmatpush.msrb.mxu1 %v1071_v3  ;;  %v472_v3 = vld [vmem:[%s3761_s27 + $0x258] sm:$0xff] }
 0x15a   : > { %v1327_v7 = vld [vmem:[%s3761_s27 + $0x1d10] sm:$0xff]  ;;  %1873 = vmatpush.msrb.mxu2 %v1191_v5  ;;  %v728_v5 = vld [vmem:[%s3761_s27 + $0xa58] sm:$0xff] }
 0x15b   : > { %v927_v8 = vld [vmem:[%s3761_s27 + $0x1090] sm:$0xff]  ;;  %1892 = vmatpush.msrb.mxu3 %v1327_v7  ;;  %v864_v7 = vld [vmem:[%s3761_s27 + $0xe98] sm:$0xff] }
 0x15c   : > { %v1063_v9 = vld [vmem:[%s3761_s27 + $0x14d0] sm:$0xff]  ;;  %1834 = vmatpush.msrb.mxu0 %v927_v8  ;;  %v464_v8 = vld [vmem:[%s3761_s27 + $0x218] sm:$0xff] }
 0x15d   : > { %v1183_v10 = vld [vmem:[%s3761_s27 + $0x1890] sm:$0xff]  ;;  %1853 = vmatpush.msrb.mxu1 %v1063_v9  ;;  %v600_v9 = vld [vmem:[%s3761_s27 + $0x658] sm:$0xff] }
 0x15e   : > { %v1319_v11 = vld [vmem:[%s3761_s27 + $0x1cd0] sm:$0xff]  ;;  %1874 = vmatpush.msrb.mxu2 %v1183_v10  ;;  %v720_v10 = vld [vmem:[%s3761_s27 + $0xa18] sm:$0xff] }
 0x15f   : > { %v919_v13 = vld [vmem:[%s3761_s27 + $0x1050] sm:$0xff]  ;;  %1893 = vmatpush.msrb.mxu3 %v1319_v11  ;;  %v856_v11 = vld [vmem:[%s3761_s27 + $0xe58] sm:$0xff] }
 0x160   : > { %v1055_v14 = vld [vmem:[%s3761_s27 + $0x1490] sm:$0xff]  ;;  %1835 = vmatpush.msrb.mxu0 %v919_v13  ;;  %v592_v13 = vld [vmem:[%s3761_s27 + $0x618] sm:$0xff] }
 0x161   : > { %v1175_v18 = vld [vmem:[%s3761_s27 + $0x1850] sm:$0xff]  ;;  %1854 = vmatpush.msrb.mxu1 %v1055_v14  ;;  %v712_v14 = vld [vmem:[%s3761_s27 + $0x9d8] sm:$0xff] }
 0x162   : > { %v1311_v19 = vld [vmem:[%s3761_s27 + $0x1c90] sm:$0xff]  ;;  %1875 = vmatpush.msrb.mxu2 %v1175_v18  ;;  %v584_v18 = vld [vmem:[%s3761_s27 + $0x5d8] sm:$0xff] }
 0x163   : > { %v911_v22 = vld [vmem:[%s3761_s27 + $0x1010] sm:$0xff]  ;;  %1894 = vmatpush.msrb.mxu3 %v1311_v19  ;;  %v704_v19 = vld [vmem:[%s3761_s27 + $0x998] sm:$0xff] }
 0x164   : > { %v1047_v24 = vld [vmem:[%s3761_s27 + $0x1450] sm:$0xff]  ;;  %1836 = vmatpush.msrb.mxu0 %v911_v22  ;;  %v840_v22 = vld [vmem:[%s3761_s27 + $0xdd8] sm:$0xff] }
 0x165   : > { %v1167_v25 = vld [vmem:[%s3761_s27 + $0x1810] sm:$0xff]  ;;  %1855 = vmatpush.msrb.mxu1 %v1047_v24  ;;  %1837 = vmatmul.f32.vlgmr.msrb.gmra.mxu0 %v4245_v56  ;;  %v576_v24 = vld [vmem:[%s3761_s27 + $0x598] sm:$0xff] }
 0x166   : > { %v1303_v27 = vld [vmem:[%s3761_s27 + $0x1c50] sm:$0xff]  ;;  %1876 = vmatpush.msrb.mxu2 %v1167_v25  ;;  %1901 = vmatpush.msra.mxu0 %v520_v0  ;;  %v696_v25 = vld [vmem:[%s3761_s27 + $0x958] sm:$0xff] }
 0x167   : > { %v4206_v29 = vld [vmem:[%s3779_s30 + $0x10] sm:$0xff]  ;;  %1895 = vmatpush.msrb.mxu3 %v1303_v27  ;;  %v432_v27 = vld [vmem:[%s3761_s27 + $0x118] sm:$0xff] }
 0x168   : > { %1797 = vmatmul.f32.vlgmr.msra.gmra.mxu2 %v4206_v29  ;;  %v1039_v1 = vld [vmem:[%s3761_s27 + $0x1410] sm:$0xff]  ;;  %1902 = vmatpush.msra.mxu0 %v512_v35  ;;  %v688_v0 = vld [vmem:[%s3761_s27 + $0x918] sm:$0xff] }
 0x169   : > { %v1295_v33 = vld [vmem:[%s3761_s27 + $0x1c10] sm:$0xff]  ;;  %1941 = vmatpush.msra.mxu2 %v776_v30  ;;  %1856 = vmatpush.msrb.mxu1 %v1039_v1  ;;  %v824_v30 = vld [vmem:[%s3761_s27 + $0xd58] sm:$0xff] }
 0x16a   : > { %1896 = vmatpush.msrb.mxu3 %v1295_v33  ;;  %1903 = vmatpush.msra.mxu0 %v504_v40  ;;  %v381_v47 = vld [vmem:[#allocation2 + $0x30] sm:$0xff]  ;;  %v424_v1 = vld [vmem:[%s3761_s27 + $0xd8] sm:$0xff] }
 0x16b   : > { %1921 = vmatpush.msra.mxu1 %v648_v36  ;;  %1942 = vmatpush.msra.mxu2 %v768_v37  ;;  %v4238_v51 = vld [vmem:[%s3779_s30 + $0x30] sm:$0xff]  ;;  %v2701_v55 = vadd.f32 %v1579_v50, %v381_v47  ;;  %v680_v33 = vld [vmem:[%s3761_s27 + $0x8d8] sm:$0xff] }
 0x16c   : > { %1961 = vmatpush.msra.mxu3 %v904_v38  ;;  %1904 = vmatpush.msra.mxu0 %v496_v44  ;;  %v416_v35 = vld [vmem:[%s3761_s27 + $0x98] sm:$0xff] }
 0x16d   : > { %1922 = vmatpush.msra.mxu1 %v640_v41  ;;  %1943 = vmatpush.msra.mxu2 %v760_v21  ;;  %2709 = vst [vmem:[#allocation2 + $0x30] sm:$0xff] %v2701_v55  ;;  %v552_v36 = vld [vmem:[%s3761_s27 + $0x4d8] sm:$0xff] }
 0x16e   : > { %1962 = vmatpush.msra.mxu3 %v896_v43  ;;  %1905 = vmatpush.msra.mxu0 %v488_v52  ;;  %v672_v37 = vld [vmem:[%s3761_s27 + $0x898] sm:$0xff] }
 0x16f   : > { %1923 = vmatpush.msra.mxu1 %v632_v46  ;;  %1944 = vmatpush.msra.mxu2 %v752_v26  ;;  %v808_v38 = vld [vmem:[%s3761_s27 + $0xcd8] sm:$0xff] }
 0x170   : > { %1877 = vmatmul.f32.vlgmr.msrb.gmra.mxu2 %v4238_v51  ;;  %1963 = vmatpush.msra.mxu3 %v888_v49  ;;  %v408_v15 = vld [vmem:[%s3761_s27 + $0x58] sm:$0xff] }
 0x171   : > { %1897 = vmatmul.f32.vlgmr.msrb.gmra.mxu3 %v4250_v58  ;;  %1924 = vmatpush.msra.mxu1 %v624_v53  ;;  %v544_v40 = vld [vmem:[%s3761_s27 + $0x498] sm:$0xff] }
 0x172   : > { %1945 = vmatpush.msra.mxu2 %v744_v54  ;;  %1964 = vmatpush.msra.mxu3 %v880_v57  ;;  %v664_v41 = vld [vmem:[%s3761_s27 + $0x858] sm:$0xff] }
 0x173   : > { %1857 = vmatmul.f32.vlgmr.msrb.gmra.mxu1 %v4258_v2  ;;  %1906 = vmatpush.msra.mxu0 %v480_v60  ;;  %v800_v20 = vld [vmem:[%s3761_s27 + $0xc98] sm:$0xff] }
 0x174   : > { %1925 = vmatpush.msra.mxu1 %v616_v61  ;;  %1946 = vmatpush.msra.mxu2 %v736_v62  ;;  %v400_v42 = vld [vmem:[%s3761_s27 + $0x18] sm:$0xff] }
 0x175   : > { %1965 = vmatpush.msra.mxu3 %v872_v63  ;;  %1907 = vmatpush.msra.mxu0 %v472_v3  ;;  %v536_v21 = vld [vmem:[%s3761_s27 + $0x458] sm:$0xff] }
 0x176   : > { %1926 = vmatpush.msra.mxu1 %v608_v4  ;;  %1947 = vmatpush.msra.mxu2 %v728_v5  ;;  %v656_v43 = vld [vmem:[%s3761_s27 + $0x818] sm:$0xff] }
 0x177   : > { %1966 = vmatpush.msra.mxu3 %v864_v7  ;;  %1908 = vmatpush.msra.mxu0 %v464_v8  ;;  %v792_v44 = vld [vmem:[%s3761_s27 + $0xc58] sm:$0xff] }
 0x178   : > { %1927 = vmatpush.msra.mxu1 %v600_v9  ;;  %1948 = vmatpush.msra.mxu2 %v720_v10  ;;  %v1032_v45 = vld [vmem:[%s3761_s27 + $0x13d8] sm:$0xff] }
 0x179   : > { %1967 = vmatpush.msra.mxu3 %v856_v11  ;;  %1909 = vmatpush.msra.mxu0 %v456_v12  ;;  %v1288_v46 = vld [vmem:[%s3761_s27 + $0x1bd8] sm:$0xff] }
 0x17a   : > { %1928 = vmatpush.msra.mxu1 %v592_v13  ;;  %1949 = vmatpush.msra.mxu2 %v712_v14  ;;  %v528_v26 = vld [vmem:[%s3761_s27 + $0x418] sm:$0xff] }
 0x17b   : > { %1968 = vmatpush.msra.mxu3 %v848_v16  ;;  %1910 = vmatpush.msra.mxu0 %v448_v17  ;;  %v784_v47 = vld [vmem:[%s3761_s27 + $0xc18] sm:$0xff] }
 0x17c   : > { %1929 = vmatpush.msra.mxu1 %v584_v18  ;;  %1950 = vmatpush.msra.mxu2 %v704_v19  ;;  %v1024_v48 = vld [vmem:[%s3761_s27 + $0x1398] sm:$0xff] }
 0x17d   : > { %1969 = vmatpush.msra.mxu3 %v840_v22  ;;  %1911 = vmatpush.msra.mxu0 %v440_v23  ;;  %v1160_v49 = vld [vmem:[%s3761_s27 + $0x17d8] sm:$0xff] }
 0x17e   : > { %1930 = vmatpush.msra.mxu1 %v576_v24  ;;  %1951 = vmatpush.msra.mxu2 %v696_v25  ;;  %v1280_v50 = vld [vmem:[%s3761_s27 + $0x1b98] sm:$0xff] }
 0x17f   : > { %1970 = vmatpush.msra.mxu3 %v832_v59  ;;  %1912 = vmatpush.msra.mxu0 %v432_v27  ;;  %v1416_v52 = vld [vmem:[%s3761_s27 + $0x1fd8] sm:$0xff] }
 0x180   : > { %1931 = vmatpush.msra.mxu1 %v568_v28  ;;  %1952 = vmatpush.msra.mxu2 %v688_v0  ;;  %v1016_v53 = vld [vmem:[%s3761_s27 + $0x1358] sm:$0xff] }
 0x181   : > { %1971 = vmatpush.msra.mxu3 %v824_v30  ;;  %1913 = vmatpush.msra.mxu0 %v424_v1  ;;  %v1152_v54 = vld [vmem:[%s3761_s27 + $0x1798] sm:$0xff] }
 0x182   : > { %1932 = vmatpush.msra.mxu1 %v560_v31  ;;  %1953 = vmatpush.msra.mxu2 %v680_v33  ;;  %v1272_v55 = vld [vmem:[%s3761_s27 + $0x1b58] sm:$0xff] }
 0x183   : > { %1972 = vmatpush.msra.mxu3 %v816_v34  ;;  %1914 = vmatpush.msra.mxu0 %v416_v35  ;;  %v1408_v57 = vld [vmem:[%s3761_s27 + $0x1f98] sm:$0xff] }
 0x184   : > { %1933 = vmatpush.msra.mxu1 %v552_v36  ;;  %1954 = vmatpush.msra.mxu2 %v672_v37  ;;  %v1008_v60 = vld [vmem:[%s3761_s27 + $0x1318] sm:$0xff] }
 0x185   : > { %1973 = vmatpush.msra.mxu3 %v808_v38  ;;  %1915 = vmatpush.msra.mxu0 %v408_v15  ;;  %v1144_v61 = vld [vmem:[%s3761_s27 + $0x1758] sm:$0xff] }
 0x186   : > { %1934 = vmatpush.msra.mxu1 %v544_v40  ;;  %1955 = vmatpush.msra.mxu2 %v664_v41  ;;  %v1264_v62 = vld [vmem:[%s3761_s27 + $0x1b18] sm:$0xff]  ;;  %v1598_v41 = vpop.f32.mrf.mxu0 }
 0x187   : > { %1974 = vmatpush.msra.mxu3 %v800_v20  ;;  %1916 = vmatpush.msra.mxu0 %v400_v42  ;;  %v1400_v63 = vld [vmem:[%s3761_s27 + $0x1f58] sm:$0xff] }
 0x188   : > { %1935 = vmatpush.msra.mxu1 %v536_v21  ;;  %1956 = vmatpush.msra.mxu2 %v656_v43  ;;  %v1000_v3 = vld [vmem:[%s3761_s27 + $0x12d8] sm:$0xff] }
 0x189   : > { %1975 = vmatpush.msra.mxu3 %v792_v44  ;;  %1981 = vmatpush.msrb.mxu0 %v1032_v45  ;;  %v1136_v4 = vld [vmem:[%s3761_s27 + $0x1718] sm:$0xff] }
 0x18a   : > { %2021 = vmatpush.msrb.mxu2 %v1288_v46  ;;  %1936 = vmatpush.msra.mxu1 %v528_v26  ;;  %v1256_v5 = vld [vmem:[%s3761_s27 + $0x1ad8] sm:$0xff]  ;;  %v1618_v46 = vpop.f32.mrf.mxu1 }
 0x18b   : > { %1976 = vmatpush.msra.mxu3 %v784_v47  ;;  %1982 = vmatpush.msrb.mxu0 %v1024_v48  ;;  %v1392_v7 = vld [vmem:[%s3761_s27 + $0x1f18] sm:$0xff]  ;;  %v1619_v48 = vadd.f32 %v1618_v46, %v1598_v41  ;;  %v593_v41 = vld [vmem:[%s3761_s27 + $0x620] sm:$0xff] }
 0x18c   : > { %2001 = vmatpush.msrb.mxu1 %v1160_v49  ;;  %2022 = vmatpush.msrb.mxu2 %v1280_v50  ;;  %v992_v8 = vld [vmem:[%s3761_s27 + $0x1298] sm:$0xff]  ;;  %v1638_v49 = vpop.f32.mrf.mxu2  ;;  %v441_v46 = vld [vmem:[%s3761_s27 + $0x160] sm:$0xff] }
 0x18d   : > { %2041 = vmatpush.msrb.mxu3 %v1416_v52  ;;  %1983 = vmatpush.msrb.mxu0 %v1016_v53  ;;  %v1128_v9 = vld [vmem:[%s3761_s27 + $0x16d8] sm:$0xff] }
 0x18e   : > { %2002 = vmatpush.msrb.mxu1 %v1152_v54  ;;  %2023 = vmatpush.msrb.mxu2 %v1272_v55  ;;  %v1248_v10 = vld [vmem:[%s3761_s27 + $0x1a98] sm:$0xff]  ;;  %v1639_v54 = vadd.f32 %v1638_v49, %v1619_v48  ;;  %v833_v48 = vld [vmem:[%s3761_s27 + $0xda0] sm:$0xff] }
 0x18f   : > { %2042 = vmatpush.msrb.mxu3 %v1408_v57  ;;  %1984 = vmatpush.msrb.mxu0 %v1008_v60  ;;  %v1384_v11 = vld [vmem:[%s3761_s27 + $0x1ed8] sm:$0xff]  ;;  %v1658_v60 = vpop.f32.mrf.mxu3  ;;  %v433_v49 = vld [vmem:[%s3761_s27 + $0x120] sm:$0xff] }
 0x190   : > { %2003 = vmatpush.msrb.mxu1 %v1144_v61  ;;  %2024 = vmatpush.msrb.mxu2 %v1264_v62  ;;  %v984_v12 = vld [vmem:[%s3761_s27 + $0x1258] sm:$0xff]  ;;  %v1659_v62 = vadd.f32 %v1658_v60, %v1639_v54  ;;  %v425_v54 = vld [vmem:[%s3761_s27 + $0xe0] sm:$0xff] }
 0x191   : > { %2043 = vmatpush.msrb.mxu3 %v1400_v63  ;;  %1985 = vmatpush.msrb.mxu0 %v1000_v3  ;;  %v1120_v13 = vld [vmem:[%s3761_s27 + $0x1698] sm:$0xff]  ;;  %v521_v63 = vld [vmem:[%s3761_s27 + $0x3e0] sm:$0xff] }
 0x192   : > { %2004 = vmatpush.msrb.mxu1 %v1136_v4  ;;  %2025 = vmatpush.msrb.mxu2 %v1256_v5  ;;  %v1240_v14 = vld [vmem:[%s3761_s27 + $0x1a58] sm:$0xff]  ;;  %v777_v3 = vld [vmem:[%s3761_s27 + $0xbe0] sm:$0xff]  ;;  %v1678_v5 = vpop.f32.mrf.mxu0 }
 0x193   : > { %2044 = vmatpush.msrb.mxu3 %v1392_v7  ;;  %1986 = vmatpush.msrb.mxu0 %v992_v8  ;;  %v1376_v16 = vld [vmem:[%s3761_s27 + $0x1e98] sm:$0xff]  ;;  %v1679_v8 = vadd.f32 %v1678_v5, %v1659_v62  ;;  %v817_v60 = vld [vmem:[%s3761_s27 + $0xd20] sm:$0xff] }
 0x194   : > { %2005 = vmatpush.msrb.mxu1 %v1128_v9  ;;  %2026 = vmatpush.msrb.mxu2 %v1248_v10  ;;  %v976_v17 = vld [vmem:[%s3761_s27 + $0x1218] sm:$0xff]  ;;  %v649_v9 = vld [vmem:[%s3761_s27 + $0x7e0] sm:$0xff] }
 0x195   : > { %2045 = vmatpush.msrb.mxu3 %v1384_v11  ;;  %v1112_v18 = vld [vmem:[%s3761_s27 + $0x1658] sm:$0xff]  ;;  %1987 = vmatpush.msrb.mxu0 %v984_v12  ;;  %v769_v10 = vld [vmem:[%s3761_s27 + $0xba0] sm:$0xff]  ;;  %v1698_v12 = vpop.f32.mrf.mxu1 }
 0x196   : > { %2006 = vmatpush.msrb.mxu1 %v1120_v13  ;;  %v1232_v19 = vld [vmem:[%s3761_s27 + $0x1a18] sm:$0xff]  ;;  %2027 = vmatpush.msrb.mxu2 %v1240_v14  ;;  %v905_v11 = vld [vmem:[%s3761_s27 + $0xfe0] sm:$0xff]  ;;  %v1699_v14 = vadd.f32 %v1698_v12, %v1679_v8 }
 0x197   : > { %v1368_v22 = vld [vmem:[%s3761_s27 + $0x1e58] sm:$0xff]  ;;  %2046 = vmatpush.msrb.mxu3 %v1376_v16  ;;  %1988 = vmatpush.msrb.mxu0 %v976_v17  ;;  %v641_v13 = vld [vmem:[%s3761_s27 + $0x7a0] sm:$0xff] }
 0x198   : > { %v968_v23 = vld [vmem:[%s3761_s27 + $0x11d8] sm:$0xff]  ;;  %2007 = vmatpush.msrb.mxu1 %v1112_v18  ;;  %2028 = vmatpush.msrb.mxu2 %v1232_v19  ;;  %v761_v16 = vld [vmem:[%s3761_s27 + $0xb60] sm:$0xff] }
 0x199   : > { %v1104_v24 = vld [vmem:[%s3761_s27 + $0x1618] sm:$0xff]  ;;  %2047 = vmatpush.msrb.mxu3 %v1368_v22  ;;  %1989 = vmatpush.msrb.mxu0 %v968_v23  ;;  %v897_v17 = vld [vmem:[%s3761_s27 + $0xfa0] sm:$0xff] }
 0x19a   : > { %v1224_v25 = vld [vmem:[%s3761_s27 + $0x19d8] sm:$0xff]  ;;  %2008 = vmatpush.msrb.mxu1 %v1104_v24  ;;  %1957 = vmatmul.f32.vlgmr.msra.gmra.mxu2 %v4206_v29  ;;  %v513_v29 = vld [vmem:[%s3761_s27 + $0x3a0] sm:$0xff]  ;;  %v1738_v24 = vpop.f32.mrf.mxu3 }
 0x19b   : > { %v1360_v59 = vld [vmem:[%s3761_s27 + $0x1e18] sm:$0xff]  ;;  %2029 = vmatpush.msrb.mxu2 %v1224_v25  ;;  %1917 = vmatmul.f32.vlgmr.msra.gmra.mxu0 %v4213_v32  ;;  %v505_v32 = vld [vmem:[%s3761_s27 + $0x360] sm:$0xff] }
 0x19c   : > { %v960_v27 = vld [vmem:[%s3761_s27 + $0x1198] sm:$0xff]  ;;  %2048 = vmatpush.msrb.mxu3 %v1360_v59  ;;  %1937 = vmatmul.f32.vlgmr.msra.gmra.mxu1 %v4226_v39  ;;  %v497_v18 = vld [vmem:[%s3761_s27 + $0x320] sm:$0xff] }
 0x19d   : > { %v1096_v28 = vld [vmem:[%s3761_s27 + $0x15d8] sm:$0xff]  ;;  %1990 = vmatpush.msrb.mxu0 %v960_v27  ;;  %1977 = vmatmul.f32.vlgmr.msra.gmra.mxu3 %v4218_v6  ;;  %v1718_v6 = vpop.f32.mrf.mxu2  ;;  %v633_v39 = vld [vmem:[%s3761_s27 + $0x760] sm:$0xff] }
 0x19e   : > { %v1216_v0 = vld [vmem:[%s3761_s27 + $0x1998] sm:$0xff]  ;;  %2009 = vmatpush.msrb.mxu1 %v1096_v28  ;;  %v1719_v19 = vadd.f32 %v1718_v6, %v1699_v14  ;;  %v753_v22 = vld [vmem:[%s3761_s27 + $0xb20] sm:$0xff] }
 0x19f   : > { %v1352_v30 = vld [vmem:[%s3761_s27 + $0x1dd8] sm:$0xff]  ;;  %2030 = vmatpush.msrb.mxu2 %v1216_v0  ;;  %v382_v23 = vld [vmem:[#allocation2] sm:$0xff] }
 0x1a0   : > { %v952_v1 = vld [vmem:[%s3761_s27 + $0x1158] sm:$0xff]  ;;  %2049 = vmatpush.msrb.mxu3 %v1352_v30  ;;  %v889_v25 = vld [vmem:[%s3761_s27 + $0xf60] sm:$0xff]  ;;  %v1739_v59 = vadd.f32 %v1738_v24, %v1719_v19 }
 0x1a1   : > { %v1088_v31 = vld [vmem:[%s3761_s27 + $0x1598] sm:$0xff]  ;;  %1991 = vmatpush.msrb.mxu0 %v952_v1  ;;  %v489_v27 = vld [vmem:[%s3761_s27 + $0x2e0] sm:$0xff] }
 0x1a2   : > { %v1208_v33 = vld [vmem:[%s3761_s27 + $0x1958] sm:$0xff]  ;;  %2010 = vmatpush.msrb.mxu1 %v1088_v31  ;;  %v625_v28 = vld [vmem:[%s3761_s27 + $0x720] sm:$0xff]  ;;  %v2702_v30 = vadd.f32 %v1739_v59, %v382_v23 }
 0x1a3   : > { %v1344_v34 = vld [vmem:[%s3761_s27 + $0x1d98] sm:$0xff]  ;;  %2031 = vmatpush.msrb.mxu2 %v1208_v33  ;;  %v745_v0 = vld [vmem:[%s3761_s27 + $0xae0] sm:$0xff] }
 0x1a4   : > { %v944_v35 = vld [vmem:[%s3761_s27 + $0x1118] sm:$0xff]  ;;  %2050 = vmatpush.msrb.mxu3 %v1344_v34  ;;  %v881_v1 = vld [vmem:[%s3761_s27 + $0xf20] sm:$0xff]  ;;  %2710 = vst [vmem:[#allocation2] sm:$0xff] %v2702_v30 }
 0x1a5   : > { %v1080_v36 = vld [vmem:[%s3761_s27 + $0x1558] sm:$0xff]  ;;  %1992 = vmatpush.msrb.mxu0 %v944_v35  ;;  %v617_v31 = vld [vmem:[%s3761_s27 + $0x6e0] sm:$0xff] }
 0x1a6   : > { %v1200_v37 = vld [vmem:[%s3761_s27 + $0x1918] sm:$0xff]  ;;  %2011 = vmatpush.msrb.mxu1 %v1080_v36  ;;  %v737_v33 = vld [vmem:[%s3761_s27 + $0xaa0] sm:$0xff] }
 0x1a7   : > { %v1336_v38 = vld [vmem:[%s3761_s27 + $0x1d58] sm:$0xff]  ;;  %2032 = vmatpush.msrb.mxu2 %v1200_v37  ;;  %v873_v34 = vld [vmem:[%s3761_s27 + $0xee0] sm:$0xff] }
 0x1a8   : > { %v936_v15 = vld [vmem:[%s3761_s27 + $0x10d8] sm:$0xff]  ;;  %2051 = vmatpush.msrb.mxu3 %v1336_v38  ;;  %v609_v35 = vld [vmem:[%s3761_s27 + $0x6a0] sm:$0xff] }
 0x1a9   : > { %v1072_v40 = vld [vmem:[%s3761_s27 + $0x1518] sm:$0xff]  ;;  %1993 = vmatpush.msrb.mxu0 %v936_v15  ;;  %v865_v36 = vld [vmem:[%s3761_s27 + $0xea0] sm:$0xff] }
 0x1aa   : > { %v1192_v20 = vld [vmem:[%s3761_s27 + $0x18d8] sm:$0xff]  ;;  %2012 = vmatpush.msrb.mxu1 %v1072_v40  ;;  %v465_v37 = vld [vmem:[%s3761_s27 + $0x220] sm:$0xff] }
 0x1ab   : > { %v1328_v42 = vld [vmem:[%s3761_s27 + $0x1d18] sm:$0xff]  ;;  %2033 = vmatpush.msrb.mxu2 %v1192_v20  ;;  %v601_v38 = vld [vmem:[%s3761_s27 + $0x660] sm:$0xff] }
 0x1ac   : > { %v928_v21 = vld [vmem:[%s3761_s27 + $0x1098] sm:$0xff]  ;;  %2052 = vmatpush.msrb.mxu3 %v1328_v42  ;;  %v721_v15 = vld [vmem:[%s3761_s27 + $0xa20] sm:$0xff] }
 0x1ad   : > { %v1064_v43 = vld [vmem:[%s3761_s27 + $0x14d8] sm:$0xff]  ;;  %1994 = vmatpush.msrb.mxu0 %v928_v21  ;;  %v457_v40 = vld [vmem:[%s3761_s27 + $0x1e0] sm:$0xff] }
 0x1ae   : > { %v1184_v44 = vld [vmem:[%s3761_s27 + $0x1898] sm:$0xff]  ;;  %2013 = vmatpush.msrb.mxu1 %v1064_v43  ;;  %v713_v20 = vld [vmem:[%s3761_s27 + $0x9e0] sm:$0xff] }
 0x1af   : > { %v1320_v45 = vld [vmem:[%s3761_s27 + $0x1cd8] sm:$0xff]  ;;  %2034 = vmatpush.msrb.mxu2 %v1184_v44  ;;  %v849_v42 = vld [vmem:[%s3761_s27 + $0xe20] sm:$0xff] }
 0x1b0   : > { %v920_v26 = vld [vmem:[%s3761_s27 + $0x1058] sm:$0xff]  ;;  %2053 = vmatpush.msrb.mxu3 %v1320_v45  ;;  %v449_v21 = vld [vmem:[%s3761_s27 + $0x1a0] sm:$0xff] }
 0x1b1   : > { %v1056_v47 = vld [vmem:[%s3761_s27 + $0x1498] sm:$0xff]  ;;  %1995 = vmatpush.msrb.mxu0 %v920_v26  ;;  %v585_v43 = vld [vmem:[%s3761_s27 + $0x5e0] sm:$0xff] }
 0x1b2   : > { %v1176_v50 = vld [vmem:[%s3761_s27 + $0x1858] sm:$0xff]  ;;  %2014 = vmatpush.msrb.mxu1 %v1056_v47  ;;  %v705_v44 = vld [vmem:[%s3761_s27 + $0x9a0] sm:$0xff] }
 0x1b3   : > { %v1312_v52 = vld [vmem:[%s3761_s27 + $0x1c98] sm:$0xff]  ;;  %2035 = vmatpush.msrb.mxu2 %v1176_v50  ;;  %v841_v45 = vld [vmem:[%s3761_s27 + $0xde0] sm:$0xff] }
 0x1b4   : > { %v912_v53 = vld [vmem:[%s3761_s27 + $0x1018] sm:$0xff]  ;;  %2054 = vmatpush.msrb.mxu3 %v1312_v52  ;;  %v577_v26 = vld [vmem:[%s3761_s27 + $0x5a0] sm:$0xff] }
 0x1b5   : > { %v1048_v55 = vld [vmem:[%s3761_s27 + $0x1458] sm:$0xff]  ;;  %1996 = vmatpush.msrb.mxu0 %v912_v53  ;;  %v697_v47 = vld [vmem:[%s3761_s27 + $0x960] sm:$0xff] }
 0x1b6   : > { %v1168_v57 = vld [vmem:[%s3761_s27 + $0x1818] sm:$0xff]  ;;  %2015 = vmatpush.msrb.mxu1 %v1048_v55  ;;  %1997 = vmatmul.f32.vlgmr.msrb.gmra.mxu0 %v4245_v56  ;;  %v473_v56 = vld [vmem:[%s3761_s27 + $0x260] sm:$0xff] }
 0x1b7   : > { %v1304_v61 = vld [vmem:[%s3761_s27 + $0x1c58] sm:$0xff]  ;;  %2036 = vmatpush.msrb.mxu2 %v1168_v57  ;;  %2061 = vmatpush.msra.mxu0 %v521_v63  ;;  %v569_v50 = vld [vmem:[%s3761_s27 + $0x560] sm:$0xff] }
 0x1b8   : > { %v1040_v4 = vld [vmem:[%s3761_s27 + $0x1418] sm:$0xff]  ;;  %2055 = vmatpush.msrb.mxu3 %v1304_v61  ;;  %2037 = vmatmul.f32.vlgmr.msrb.gmra.mxu2 %v4238_v51  ;;  %v481_v51 = vld [vmem:[%s3761_s27 + $0x2a0] sm:$0xff] }
 0x1b9   : > { %v1296_v7 = vld [vmem:[%s3761_s27 + $0x1c18] sm:$0xff]  ;;  %2101 = vmatpush.msra.mxu2 %v777_v3  ;;  %2016 = vmatpush.msrb.mxu1 %v1040_v4  ;;  %v689_v52 = vld [vmem:[%s3761_s27 + $0x920] sm:$0xff] }
 0x1ba   : > { %2056 = vmatpush.msrb.mxu3 %v1296_v7  ;;  %2062 = vmatpush.msra.mxu0 %v513_v29  ;;  %v825_v53 = vld [vmem:[%s3761_s27 + $0xd60] sm:$0xff] }
 0x1bb   : > { %2081 = vmatpush.msra.mxu1 %v649_v9  ;;  %2102 = vmatpush.msra.mxu2 %v769_v10  ;;  %v561_v55 = vld [vmem:[%s3761_s27 + $0x520] sm:$0xff] }
 0x1bc   : > { %2121 = vmatpush.msra.mxu3 %v905_v11  ;;  %2063 = vmatpush.msra.mxu0 %v505_v32  ;;  %v681_v57 = vld [vmem:[%s3761_s27 + $0x8e0] sm:$0xff] }
 0x1bd   : > { %2082 = vmatpush.msra.mxu1 %v641_v13  ;;  %2103 = vmatpush.msra.mxu2 %v761_v16  ;;  %v417_v61 = vld [vmem:[%s3761_s27 + $0xa0] sm:$0xff] }
 0x1be   : > { %2122 = vmatpush.msra.mxu3 %v897_v17  ;;  %2064 = vmatpush.msra.mxu0 %v497_v18  ;;  %v553_v62 = vld [vmem:[%s3761_s27 + $0x4e0] sm:$0xff] }
 0x1bf   : > { %2083 = vmatpush.msra.mxu1 %v633_v39  ;;  %2104 = vmatpush.msra.mxu2 %v753_v22  ;;  %v673_v63 = vld [vmem:[%s3761_s27 + $0x8a0] sm:$0xff] }
 0x1c0   : > { %2123 = vmatpush.msra.mxu3 %v889_v25  ;;  %2065 = vmatpush.msra.mxu0 %v489_v27  ;;  %v809_v3 = vld [vmem:[%s3761_s27 + $0xce0] sm:$0xff] }
 0x1c1   : > { %2057 = vmatmul.f32.vlgmr.msrb.gmra.mxu3 %v4250_v58  ;;  %2084 = vmatpush.msra.mxu1 %v625_v28  ;;  %v729_v58 = vld [vmem:[%s3761_s27 + $0xa60] sm:$0xff] }
 0x1c2   : > { %2105 = vmatpush.msra.mxu2 %v745_v0  ;;  %2124 = vmatpush.msra.mxu3 %v881_v1  ;;  %v409_v4 = vld [vmem:[%s3761_s27 + $0x60] sm:$0xff] }
 0x1c3   : > { %2017 = vmatmul.f32.vlgmr.msrb.gmra.mxu1 %v4258_v2  ;;  %2066 = vmatpush.msra.mxu0 %v481_v51  ;;  %v857_v2 = vld [vmem:[%s3761_s27 + $0xe60] sm:$0xff] }
 0x1c4   : > { %2085 = vmatpush.msra.mxu1 %v617_v31  ;;  %2106 = vmatpush.msra.mxu2 %v737_v33  ;;  %v545_v5 = vld [vmem:[%s3761_s27 + $0x4a0] sm:$0xff] }
 0x1c5   : > { %2125 = vmatpush.msra.mxu3 %v873_v34  ;;  %2067 = vmatpush.msra.mxu0 %v473_v56  ;;  %v665_v7 = vld [vmem:[%s3761_s27 + $0x860] sm:$0xff] }
 0x1c6   : > { %2086 = vmatpush.msra.mxu1 %v609_v35  ;;  %2107 = vmatpush.msra.mxu2 %v729_v58  ;;  %v801_v8 = vld [vmem:[%s3761_s27 + $0xca0] sm:$0xff] }
 0x1c7   : > { %2126 = vmatpush.msra.mxu3 %v865_v36  ;;  %2068 = vmatpush.msra.mxu0 %v465_v37  ;;  %v401_v29 = vld [vmem:[%s3761_s27 + $0x20] sm:$0xff] }
 0x1c8   : > { %2087 = vmatpush.msra.mxu1 %v601_v38  ;;  %2108 = vmatpush.msra.mxu2 %v721_v15  ;;  %v537_v9 = vld [vmem:[%s3761_s27 + $0x460] sm:$0xff] }
 0x1c9   : > { %2127 = vmatpush.msra.mxu3 %v857_v2  ;;  %2069 = vmatpush.msra.mxu0 %v457_v40  ;;  %v657_v10 = vld [vmem:[%s3761_s27 + $0x820] sm:$0xff] }
 0x1ca   : > { %2088 = vmatpush.msra.mxu1 %v593_v41  ;;  %2109 = vmatpush.msra.mxu2 %v713_v20  ;;  %v793_v11 = vld [vmem:[%s3761_s27 + $0xc60] sm:$0xff] }
 0x1cb   : > { %2128 = vmatpush.msra.mxu3 %v849_v42  ;;  %2070 = vmatpush.msra.mxu0 %v449_v21  ;;  %v1033_v12 = vld [vmem:[%s3761_s27 + $0x13e0] sm:$0xff] }
 0x1cc   : > { %2089 = vmatpush.msra.mxu1 %v585_v43  ;;  %2110 = vmatpush.msra.mxu2 %v705_v44  ;;  %v1289_v32 = vld [vmem:[%s3761_s27 + $0x1be0] sm:$0xff] }
 0x1cd   : > { %2129 = vmatpush.msra.mxu3 %v841_v45  ;;  %2071 = vmatpush.msra.mxu0 %v441_v46  ;;  %v529_v13 = vld [vmem:[%s3761_s27 + $0x420] sm:$0xff] }
 0x1ce   : > { %2090 = vmatpush.msra.mxu1 %v577_v26  ;;  %2111 = vmatpush.msra.mxu2 %v697_v47  ;;  %v785_v14 = vld [vmem:[%s3761_s27 + $0xc20] sm:$0xff] }
 0x1cf   : > { %2130 = vmatpush.msra.mxu3 %v833_v48  ;;  %2072 = vmatpush.msra.mxu0 %v433_v49  ;;  %v1025_v6 = vld [vmem:[%s3761_s27 + $0x13a0] sm:$0xff] }
 0x1d0   : > { %2091 = vmatpush.msra.mxu1 %v569_v50  ;;  %2112 = vmatpush.msra.mxu2 %v689_v52  ;;  %v1161_v16 = vld [vmem:[%s3761_s27 + $0x17e0] sm:$0xff] }
 0x1d1   : > { %2131 = vmatpush.msra.mxu3 %v825_v53  ;;  %2073 = vmatpush.msra.mxu0 %v425_v54  ;;  %v1281_v17 = vld [vmem:[%s3761_s27 + $0x1ba0] sm:$0xff] }
 0x1d2   : > { %2092 = vmatpush.msra.mxu1 %v561_v55  ;;  %2113 = vmatpush.msra.mxu2 %v681_v57  ;;  %v1417_v18 = vld [vmem:[%s3761_s27 + $0x1fe0] sm:$0xff]  ;;  %v1758_v57 = vpop.f32.mrf.mxu0 }
 0x1d3   : > { %2132 = vmatpush.msra.mxu3 %v817_v60  ;;  %2074 = vmatpush.msra.mxu0 %v417_v61  ;;  %v1017_v19 = vld [vmem:[%s3761_s27 + $0x1360] sm:$0xff] }
 0x1d4   : > { %2093 = vmatpush.msra.mxu1 %v553_v62  ;;  %2114 = vmatpush.msra.mxu2 %v673_v63  ;;  %v1153_v39 = vld [vmem:[%s3761_s27 + $0x17a0] sm:$0xff] }
 0x1d5   : > { %2133 = vmatpush.msra.mxu3 %v809_v3  ;;  %2075 = vmatpush.msra.mxu0 %v409_v4  ;;  %v1273_v22 = vld [vmem:[%s3761_s27 + $0x1b60] sm:$0xff] }
 0x1d6   : > { %2094 = vmatpush.msra.mxu1 %v545_v5  ;;  %2115 = vmatpush.msra.mxu2 %v665_v7  ;;  %v1409_v23 = vld [vmem:[%s3761_s27 + $0x1fa0] sm:$0xff]  ;;  %v1778_v5 = vpop.f32.mrf.mxu1 }
 0x1d7   : > { %2134 = vmatpush.msra.mxu3 %v801_v8  ;;  %2076 = vmatpush.msra.mxu0 %v401_v29  ;;  %v1009_v24 = vld [vmem:[%s3761_s27 + $0x1320] sm:$0xff]  ;;  %v1779_v29 = vadd.f32 %v1778_v5, %v1758_v57  ;;  %v610_v57 = vld [vmem:[%s3761_s27 + $0x6a8] sm:$0xff] }
 0x1d8   : > { %2095 = vmatpush.msra.mxu1 %v537_v9  ;;  %2116 = vmatpush.msra.mxu2 %v657_v10  ;;  %v1145_v25 = vld [vmem:[%s3761_s27 + $0x1760] sm:$0xff]  ;;  %v458_v5 = vld [vmem:[%s3761_s27 + $0x1e8] sm:$0xff] }
 0x1d9   : > { %2135 = vmatpush.msra.mxu3 %v793_v11  ;;  %2141 = vmatpush.msrb.mxu0 %v1033_v12  ;;  %v1265_v59 = vld [vmem:[%s3761_s27 + $0x1b20] sm:$0xff] }
 0x1da   : > { %2181 = vmatpush.msrb.mxu2 %v1289_v32  ;;  %2096 = vmatpush.msra.mxu1 %v529_v13  ;;  %v1401_v27 = vld [vmem:[%s3761_s27 + $0x1f60] sm:$0xff] }
 0x1db   : > { %2136 = vmatpush.msra.mxu3 %v785_v14  ;;  %2142 = vmatpush.msrb.mxu0 %v1025_v6  ;;  %v1001_v28 = vld [vmem:[%s3761_s27 + $0x12e0] sm:$0xff]  ;;  %v1818_v6 = vpop.f32.mrf.mxu3 }
 0x1dc   : > { %2161 = vmatpush.msrb.mxu1 %v1161_v16  ;;  %2182 = vmatpush.msrb.mxu2 %v1281_v17  ;;  %v1137_v0 = vld [vmem:[%s3761_s27 + $0x1720] sm:$0xff] }
 0x1dd   : > { %2201 = vmatpush.msrb.mxu3 %v1417_v18  ;;  %2143 = vmatpush.msrb.mxu0 %v1017_v19  ;;  %v1257_v30 = vld [vmem:[%s3761_s27 + $0x1ae0] sm:$0xff]  ;;  %v4502_v18 = vld [vmem:[%s3779_s30 + $0x10] sm:$0xff]  ;;  %v522_v19 = vld [vmem:[%s3761_s27 + $0x3e8] sm:$0xff] }
 0x1de   : > { %2162 = vmatpush.msrb.mxu1 %v1153_v39  ;;  %2183 = vmatpush.msrb.mxu2 %v1273_v22  ;;  %v1393_v1 = vld [vmem:[%s3761_s27 + $0x1f20] sm:$0xff]  ;;  %v778_v39 = vld [vmem:[%s3761_s27 + $0xbe8] sm:$0xff] }
 0x1df   : > { %2202 = vmatpush.msrb.mxu3 %v1409_v23  ;;  %2144 = vmatpush.msrb.mxu0 %v1009_v24  ;;  %v993_v51 = vld [vmem:[%s3761_s27 + $0x12a0] sm:$0xff] }
 0x1e0   : > { %2163 = vmatpush.msrb.mxu1 %v1145_v25  ;;  %2184 = vmatpush.msrb.mxu2 %v1265_v59  ;;  %v1129_v31 = vld [vmem:[%s3761_s27 + $0x16e0] sm:$0xff] }
 0x1e1   : > { %2203 = vmatpush.msrb.mxu3 %v1401_v27  ;;  %2145 = vmatpush.msrb.mxu0 %v1001_v28  ;;  %v1249_v33 = vld [vmem:[%s3761_s27 + $0x1aa0] sm:$0xff]  ;;  %v4514_v27 = vld [vmem:[%s3779_s30 + $0x18] sm:$0xff]  ;;  %v514_v28 = vld [vmem:[%s3761_s27 + $0x3a8] sm:$0xff] }
 0x1e2   : > { %2164 = vmatpush.msrb.mxu1 %v1137_v0  ;;  %v1385_v34 = vld [vmem:[%s3761_s27 + $0x1ee0] sm:$0xff]  ;;  %2185 = vmatpush.msrb.mxu2 %v1257_v30  ;;  %v1838_v23 = vpop.f32.mrf.mxu0  ;;  %v650_v0 = vld [vmem:[%s3761_s27 + $0x7e8] sm:$0xff] }
 0x1e3   : > { %2204 = vmatpush.msrb.mxu3 %v1393_v1  ;;  %v985_v56 = vld [vmem:[%s3761_s27 + $0x1260] sm:$0xff]  ;;  %2146 = vmatpush.msrb.mxu0 %v993_v51  ;;  %v770_v30 = vld [vmem:[%s3761_s27 + $0xba8] sm:$0xff] }
 0x1e4   : > { %v1121_v35 = vld [vmem:[%s3761_s27 + $0x16a0] sm:$0xff]  ;;  %2165 = vmatpush.msrb.mxu1 %v1129_v31  ;;  %2186 = vmatpush.msrb.mxu2 %v1249_v33  ;;  %v906_v1 = vld [vmem:[%s3761_s27 + $0xfe8] sm:$0xff] }
 0x1e5   : > { %v1241_v58 = vld [vmem:[%s3761_s27 + $0x1a60] sm:$0xff]  ;;  %2205 = vmatpush.msrb.mxu3 %v1385_v34  ;;  %2147 = vmatpush.msrb.mxu0 %v985_v56  ;;  %v4522_v31 = vld [vmem:[%s3779_s30 + $0x8] sm:$0xff] }
 0x1e6   : > { %v1377_v36 = vld [vmem:[%s3761_s27 + $0x1ea0] sm:$0xff]  ;;  %2166 = vmatpush.msrb.mxu1 %v1121_v35  ;;  %2187 = vmatpush.msrb.mxu2 %v1241_v58  ;;  %v506_v33 = vld [vmem:[%s3761_s27 + $0x368] sm:$0xff] }
 0x1e7   : > { %v977_v37 = vld [vmem:[%s3761_s27 + $0x1220] sm:$0xff]  ;;  %2206 = vmatpush.msrb.mxu3 %v1377_v36  ;;  %2117 = vmatmul.f32.vlgmr.msra.gmra.mxu2 %v4502_v18  ;;  %v642_v34 = vld [vmem:[%s3761_s27 + $0x7a8] sm:$0xff] }
 0x1e8   : > { %v1113_v38 = vld [vmem:[%s3761_s27 + $0x1660] sm:$0xff]  ;;  %2148 = vmatpush.msrb.mxu0 %v977_v37  ;;  %2137 = vmatmul.f32.vlgmr.msra.gmra.mxu3 %v4514_v27  ;;  %v762_v58 = vld [vmem:[%s3761_s27 + $0xb68] sm:$0xff] }
 0x1e9   : > { %v1233_v15 = vld [vmem:[%s3761_s27 + $0x1a20] sm:$0xff]  ;;  %2167 = vmatpush.msrb.mxu1 %v1113_v38  ;;  %v898_v36 = vld [vmem:[%s3761_s27 + $0xfa8] sm:$0xff] }
 0x1ea   : > { %v1369_v2 = vld [vmem:[%s3761_s27 + $0x1e60] sm:$0xff]  ;;  %2188 = vmatpush.msrb.mxu2 %v1233_v15  ;;  %2097 = vmatmul.f32.vlgmr.msra.gmra.mxu1 %v4522_v31  ;;  %v498_v37 = vld [vmem:[%s3761_s27 + $0x328] sm:$0xff] }
 0x1eb   : > { %v969_v40 = vld [vmem:[%s3761_s27 + $0x11e0] sm:$0xff]  ;;  %2207 = vmatpush.msrb.mxu3 %v1369_v2  ;;  %v1798_v9 = vpop.f32.mrf.mxu2  ;;  %v634_v15 = vld [vmem:[%s3761_s27 + $0x768] sm:$0xff] }
 0x1ec   : > { %v1105_v41 = vld [vmem:[%s3761_s27 + $0x1620] sm:$0xff]  ;;  %2149 = vmatpush.msrb.mxu0 %v969_v40  ;;  %v1799_v32 = vadd.f32 %v1798_v9, %v1779_v29  ;;  %v754_v2 = vld [vmem:[%s3761_s27 + $0xb28] sm:$0xff]  ;;  %v383_v40 = vld [vmem:[#allocation2 + $0x18] sm:$0xff] }
 0x1ed   : > { %v1225_v20 = vld [vmem:[%s3761_s27 + $0x19e0] sm:$0xff]  ;;  %2168 = vmatpush.msrb.mxu1 %v1105_v41  ;;  %v850_v29 = vld [vmem:[%s3761_s27 + $0xe28] sm:$0xff] }
 0x1ee   : > { %v1361_v42 = vld [vmem:[%s3761_s27 + $0x1e20] sm:$0xff]  ;;  %2189 = vmatpush.msrb.mxu2 %v1225_v20  ;;  %v1819_v17 = vadd.f32 %v1818_v6, %v1799_v32  ;;  %v890_v20 = vld [vmem:[%s3761_s27 + $0xf68] sm:$0xff] }
 0x1ef   : > { %v961_v21 = vld [vmem:[%s3761_s27 + $0x11a0] sm:$0xff]  ;;  %2208 = vmatpush.msrb.mxu3 %v1361_v42  ;;  %v450_v9 = vld [vmem:[%s3761_s27 + $0x1a8] sm:$0xff] }
 0x1f0   : > { %v1097_v43 = vld [vmem:[%s3761_s27 + $0x15e0] sm:$0xff]  ;;  %2150 = vmatpush.msrb.mxu0 %v961_v21  ;;  %v1839_v59 = vadd.f32 %v1838_v23, %v1819_v17  ;;  %v1858_v51 = vpop.f32.mrf.mxu1  ;;  %v4534_v21 = vld [vmem:[%s3779_s30 + $0x30] sm:$0xff]  ;;  %v442_v32 = vld [vmem:[%s3761_s27 + $0x168] sm:$0xff] }
 0x1f1   : > { %v1217_v44 = vld [vmem:[%s3761_s27 + $0x19a0] sm:$0xff]  ;;  %2169 = vmatpush.msrb.mxu1 %v1097_v43  ;;  %v490_v43 = vld [vmem:[%s3761_s27 + $0x2e8] sm:$0xff] }
 0x1f2   : > { %v1353_v45 = vld [vmem:[%s3761_s27 + $0x1de0] sm:$0xff]  ;;  %2190 = vmatpush.msrb.mxu2 %v1217_v44  ;;  %v1859_v56 = vadd.f32 %v1858_v51, %v1839_v59  ;;  %v626_v44 = vld [vmem:[%s3761_s27 + $0x728] sm:$0xff] }
 0x1f3   : > { %v953_v46 = vld [vmem:[%s3761_s27 + $0x1160] sm:$0xff]  ;;  %2209 = vmatpush.msrb.mxu3 %v1353_v45  ;;  %v1878_v35 = vpop.f32.mrf.mxu2  ;;  %v746_v45 = vld [vmem:[%s3761_s27 + $0xae8] sm:$0xff] }
 0x1f4   : > { %v1089_v26 = vld [vmem:[%s3761_s27 + $0x15a0] sm:$0xff]  ;;  %2151 = vmatpush.msrb.mxu0 %v953_v46  ;;  %v1879_v38 = vadd.f32 %v1878_v35, %v1859_v56  ;;  %v1898_v41 = vpop.f32.mrf.mxu3  ;;  %v834_v6 = vld [vmem:[%s3761_s27 + $0xda8] sm:$0xff] }
 0x1f5   : > { %v1209_v47 = vld [vmem:[%s3761_s27 + $0x1960] sm:$0xff]  ;;  %2170 = vmatpush.msrb.mxu1 %v1089_v26  ;;  %v570_v17 = vld [vmem:[%s3761_s27 + $0x568] sm:$0xff] }
 0x1f6   : > { %v1345_v48 = vld [vmem:[%s3761_s27 + $0x1da0] sm:$0xff]  ;;  %2191 = vmatpush.msrb.mxu2 %v1209_v47  ;;  %v1899_v42 = vadd.f32 %v1898_v41, %v1879_v38  ;;  %v882_v47 = vld [vmem:[%s3761_s27 + $0xf28] sm:$0xff] }
 0x1f7   : > { %v945_v49 = vld [vmem:[%s3761_s27 + $0x1120] sm:$0xff]  ;;  %2210 = vmatpush.msrb.mxu3 %v1345_v48  ;;  %v4546_v48 = vld [vmem:[%s3779_s30 + $0x38] sm:$0xff]  ;;  %v562_v23 = vld [vmem:[%s3761_s27 + $0x528] sm:$0xff] }
 0x1f8   : > { %v1081_v50 = vld [vmem:[%s3761_s27 + $0x1560] sm:$0xff]  ;;  %2152 = vmatpush.msrb.mxu0 %v945_v49  ;;  %v2703_v46 = vadd.f32 %v1899_v42, %v383_v40  ;;  %v482_v49 = vld [vmem:[%s3761_s27 + $0x2a8] sm:$0xff] }
 0x1f9   : > { %v1201_v52 = vld [vmem:[%s3761_s27 + $0x1920] sm:$0xff]  ;;  %2171 = vmatpush.msrb.mxu1 %v1081_v50  ;;  %v618_v50 = vld [vmem:[%s3761_s27 + $0x6e8] sm:$0xff] }
 0x1fa   : > { %v1337_v53 = vld [vmem:[%s3761_s27 + $0x1d60] sm:$0xff]  ;;  %2192 = vmatpush.msrb.mxu2 %v1201_v52  ;;  %2711 = vst [vmem:[#allocation2 + $0x18] sm:$0xff] %v2703_v46  ;;  %v738_v52 = vld [vmem:[%s3761_s27 + $0xaa8] sm:$0xff] }
 0x1fb   : > { %v937_v54 = vld [vmem:[%s3761_s27 + $0x10e0] sm:$0xff]  ;;  %2211 = vmatpush.msrb.mxu3 %v1337_v53  ;;  %v874_v53 = vld [vmem:[%s3761_s27 + $0xee8] sm:$0xff] }
 0x1fc   : > { %v1073_v55 = vld [vmem:[%s3761_s27 + $0x1520] sm:$0xff]  ;;  %2153 = vmatpush.msrb.mxu0 %v937_v54  ;;  %v4554_v54 = vld [vmem:[%s3779_s30 + $0x28] sm:$0xff] }
 0x1fd   : > { %v1193_v60 = vld [vmem:[%s3761_s27 + $0x18e0] sm:$0xff]  ;;  %2172 = vmatpush.msrb.mxu1 %v1073_v55  ;;  %v474_v55 = vld [vmem:[%s3761_s27 + $0x268] sm:$0xff] }
 0x1fe   : > { %v1329_v61 = vld [vmem:[%s3761_s27 + $0x1d20] sm:$0xff]  ;;  %2193 = vmatpush.msrb.mxu2 %v1193_v60  ;;  %v730_v60 = vld [vmem:[%s3761_s27 + $0xa68] sm:$0xff] }
 0x1ff   : > { %v929_v62 = vld [vmem:[%s3761_s27 + $0x10a0] sm:$0xff]  ;;  %2212 = vmatpush.msrb.mxu3 %v1329_v61  ;;  %v866_v61 = vld [vmem:[%s3761_s27 + $0xea8] sm:$0xff] }
 0x200   : > { %v1065_v63 = vld [vmem:[%s3761_s27 + $0x14e0] sm:$0xff]  ;;  %2154 = vmatpush.msrb.mxu0 %v929_v62  ;;  %v466_v62 = vld [vmem:[%s3761_s27 + $0x228] sm:$0xff] }
 0x201   : > { %v1185_v3 = vld [vmem:[%s3761_s27 + $0x18a0] sm:$0xff]  ;;  %2173 = vmatpush.msrb.mxu1 %v1065_v63  ;;  %v602_v63 = vld [vmem:[%s3761_s27 + $0x668] sm:$0xff] }
 0x202   : > { %v1321_v4 = vld [vmem:[%s3761_s27 + $0x1ce0] sm:$0xff]  ;;  %2194 = vmatpush.msrb.mxu2 %v1185_v3  ;;  %v722_v3 = vld [vmem:[%s3761_s27 + $0xa28] sm:$0xff] }
 0x203   : > { %v921_v7 = vld [vmem:[%s3761_s27 + $0x1060] sm:$0xff]  ;;  %2213 = vmatpush.msrb.mxu3 %v1321_v4  ;;  %v858_v4 = vld [vmem:[%s3761_s27 + $0xe68] sm:$0xff] }
 0x204   : > { %v1057_v8 = vld [vmem:[%s3761_s27 + $0x14a0] sm:$0xff]  ;;  %2155 = vmatpush.msrb.mxu0 %v921_v7  ;;  %v594_v7 = vld [vmem:[%s3761_s27 + $0x628] sm:$0xff] }
 0x205   : > { %v1177_v10 = vld [vmem:[%s3761_s27 + $0x1860] sm:$0xff]  ;;  %2174 = vmatpush.msrb.mxu1 %v1057_v8  ;;  %v714_v8 = vld [vmem:[%s3761_s27 + $0x9e8] sm:$0xff] }
 0x206   : > { %v1313_v11 = vld [vmem:[%s3761_s27 + $0x1ca0] sm:$0xff]  ;;  %2195 = vmatpush.msrb.mxu2 %v1177_v10  ;;  %v586_v10 = vld [vmem:[%s3761_s27 + $0x5e8] sm:$0xff] }
 0x207   : > { %v913_v12 = vld [vmem:[%s3761_s27 + $0x1020] sm:$0xff]  ;;  %2214 = vmatpush.msrb.mxu3 %v1313_v11  ;;  %v706_v11 = vld [vmem:[%s3761_s27 + $0x9a8] sm:$0xff] }
 0x208   : > { %v1049_v13 = vld [vmem:[%s3761_s27 + $0x1460] sm:$0xff]  ;;  %2156 = vmatpush.msrb.mxu0 %v913_v12  ;;  %v842_v12 = vld [vmem:[%s3761_s27 + $0xde8] sm:$0xff] }
 0x209   : > { %v1169_v14 = vld [vmem:[%s3761_s27 + $0x1820] sm:$0xff]  ;;  %2175 = vmatpush.msrb.mxu1 %v1049_v13  ;;  %v578_v13 = vld [vmem:[%s3761_s27 + $0x5a8] sm:$0xff] }
 0x20a   : > { %v1305_v16 = vld [vmem:[%s3761_s27 + $0x1c60] sm:$0xff]  ;;  %2196 = vmatpush.msrb.mxu2 %v1169_v14  ;;  %v698_v14 = vld [vmem:[%s3761_s27 + $0x968] sm:$0xff] }
 0x20b   : > { %v1041_v22 = vld [vmem:[%s3761_s27 + $0x1420] sm:$0xff]  ;;  %2215 = vmatpush.msrb.mxu3 %v1305_v16  ;;  %2197 = vmatmul.f32.vlgmr.msrb.gmra.mxu2 %v4534_v21  ;;  %v434_v16 = vld [vmem:[%s3761_s27 + $0x128] sm:$0xff] }
 0x20c   : > { %v4509_v24 = vld [vmem:[%s3779_s30] sm:$0xff]  ;;  %2261 = vmatpush.msra.mxu2 %v778_v39  ;;  %2176 = vmatpush.msrb.mxu1 %v1041_v22  ;;  %v826_v39 = vld [vmem:[%s3761_s27 + $0xd68] sm:$0xff] }
 0x20d   : > { %2077 = vmatmul.f32.vlgmr.msra.gmra.mxu0 %v4509_v24  ;;  %v1297_v25 = vld [vmem:[%s3761_s27 + $0x1c20] sm:$0xff]  ;;  %2177 = vmatmul.f32.vlgmr.msrb.gmra.mxu1 %v4554_v54  ;;  %v426_v22 = vld [vmem:[%s3761_s27 + $0xe8] sm:$0xff] }
 0x20e   : > { %2221 = vmatpush.msra.mxu0 %v522_v19  ;;  %2216 = vmatpush.msrb.mxu3 %v1297_v25  ;;  %v4541_v26 = vld [vmem:[%s3779_s30 + $0x20] sm:$0xff]  ;;  %v690_v19 = vld [vmem:[%s3761_s27 + $0x928] sm:$0xff] }
 0x20f   : > { %2241 = vmatpush.msra.mxu1 %v650_v0  ;;  %2262 = vmatpush.msra.mxu2 %v770_v30  ;;  %v682_v25 = vld [vmem:[%s3761_s27 + $0x8e8] sm:$0xff] }
 0x210   : > { %2222 = vmatpush.msra.mxu0 %v514_v28  ;;  %2281 = vmatpush.msra.mxu3 %v906_v1  ;;  %v818_v59 = vld [vmem:[%s3761_s27 + $0xd28] sm:$0xff] }
 0x211   : > { %2242 = vmatpush.msra.mxu1 %v642_v34  ;;  %2263 = vmatpush.msra.mxu2 %v762_v58  ;;  %v418_v28 = vld [vmem:[%s3761_s27 + $0xa8] sm:$0xff] }
 0x212   : > { %2223 = vmatpush.msra.mxu0 %v506_v33  ;;  %2282 = vmatpush.msra.mxu3 %v898_v36  ;;  %v554_v0 = vld [vmem:[%s3761_s27 + $0x4e8] sm:$0xff] }
 0x213   : > { %2243 = vmatpush.msra.mxu1 %v634_v15  ;;  %2264 = vmatpush.msra.mxu2 %v754_v2  ;;  %v674_v30 = vld [vmem:[%s3761_s27 + $0x8a8] sm:$0xff] }
 0x214   : > { %2224 = vmatpush.msra.mxu0 %v498_v37  ;;  %2283 = vmatpush.msra.mxu3 %v890_v20  ;;  %v810_v1 = vld [vmem:[%s3761_s27 + $0xce8] sm:$0xff] }
 0x215   : > { %2157 = vmatmul.f32.vlgmr.msrb.gmra.mxu0 %v4541_v26  ;;  %2217 = vmatmul.f32.vlgmr.msrb.gmra.mxu3 %v4546_v48  ;;  %v410_v51 = vld [vmem:[%s3761_s27 + $0x68] sm:$0xff] }
 0x216   : > { %2225 = vmatpush.msra.mxu0 %v490_v43  ;;  %2244 = vmatpush.msra.mxu1 %v626_v44  ;;  %v546_v33 = vld [vmem:[%s3761_s27 + $0x4a8] sm:$0xff] }
 0x217   : > { %2265 = vmatpush.msra.mxu2 %v746_v45  ;;  %2284 = vmatpush.msra.mxu3 %v882_v47  ;;  %v666_v34 = vld [vmem:[%s3761_s27 + $0x868] sm:$0xff] }
 0x218   : > { %2226 = vmatpush.msra.mxu0 %v482_v49  ;;  %2245 = vmatpush.msra.mxu1 %v618_v50  ;;  %v802_v56 = vld [vmem:[%s3761_s27 + $0xca8] sm:$0xff] }
 0x219   : > { %2266 = vmatpush.msra.mxu2 %v738_v52  ;;  %2285 = vmatpush.msra.mxu3 %v874_v53  ;;  %v402_v35 = vld [vmem:[%s3761_s27 + $0x28] sm:$0xff] }
 0x21a   : > { %2227 = vmatpush.msra.mxu0 %v474_v55  ;;  %2246 = vmatpush.msra.mxu1 %v610_v57  ;;  %v538_v58 = vld [vmem:[%s3761_s27 + $0x468] sm:$0xff] }
 0x21b   : > { %2267 = vmatpush.msra.mxu2 %v730_v60  ;;  %2286 = vmatpush.msra.mxu3 %v866_v61  ;;  %v658_v36 = vld [vmem:[%s3761_s27 + $0x828] sm:$0xff] }
 0x21c   : > { %2228 = vmatpush.msra.mxu0 %v466_v62  ;;  %2247 = vmatpush.msra.mxu1 %v602_v63  ;;  %v794_v37 = vld [vmem:[%s3761_s27 + $0xc68] sm:$0xff] }
 0x21d   : > { %2268 = vmatpush.msra.mxu2 %v722_v3  ;;  %2287 = vmatpush.msra.mxu3 %v858_v4  ;;  %v1034_v38 = vld [vmem:[%s3761_s27 + $0x13e8] sm:$0xff] }
 0x21e   : > { %2229 = vmatpush.msra.mxu0 %v458_v5  ;;  %2248 = vmatpush.msra.mxu1 %v594_v7  ;;  %v1290_v15 = vld [vmem:[%s3761_s27 + $0x1be8] sm:$0xff] }
 0x21f   : > { %2269 = vmatpush.msra.mxu2 %v714_v8  ;;  %2288 = vmatpush.msra.mxu3 %v850_v29  ;;  %v530_v2 = vld [vmem:[%s3761_s27 + $0x428] sm:$0xff] }
 0x220   : > { %2230 = vmatpush.msra.mxu0 %v450_v9  ;;  %2249 = vmatpush.msra.mxu1 %v586_v10  ;;  %v786_v40 = vld [vmem:[%s3761_s27 + $0xc28] sm:$0xff] }
 0x221   : > { %2270 = vmatpush.msra.mxu2 %v706_v11  ;;  %2289 = vmatpush.msra.mxu3 %v842_v12  ;;  %v1026_v41 = vld [vmem:[%s3761_s27 + $0x13a8] sm:$0xff] }
 0x222   : > { %2231 = vmatpush.msra.mxu0 %v442_v32  ;;  %2250 = vmatpush.msra.mxu1 %v578_v13  ;;  %v1162_v20 = vld [vmem:[%s3761_s27 + $0x17e8] sm:$0xff] }
 0x223   : > { %2271 = vmatpush.msra.mxu2 %v698_v14  ;;  %2290 = vmatpush.msra.mxu3 %v834_v6  ;;  %v1282_v42 = vld [vmem:[%s3761_s27 + $0x1ba8] sm:$0xff] }
 0x224   : > { %2232 = vmatpush.msra.mxu0 %v434_v16  ;;  %2251 = vmatpush.msra.mxu1 %v570_v17  ;;  %v1418_v43 = vld [vmem:[%s3761_s27 + $0x1fe8] sm:$0xff] }
 0x225   : > { %2272 = vmatpush.msra.mxu2 %v690_v19  ;;  %2291 = vmatpush.msra.mxu3 %v826_v39  ;;  %v1018_v44 = vld [vmem:[%s3761_s27 + $0x1368] sm:$0xff] }
 0x226   : > { %2233 = vmatpush.msra.mxu0 %v426_v22  ;;  %2252 = vmatpush.msra.mxu1 %v562_v23  ;;  %v1154_v45 = vld [vmem:[%s3761_s27 + $0x17a8] sm:$0xff] }
 0x227   : > { %2273 = vmatpush.msra.mxu2 %v682_v25  ;;  %2292 = vmatpush.msra.mxu3 %v818_v59  ;;  %v1274_v46 = vld [vmem:[%s3761_s27 + $0x1b68] sm:$0xff] }
 0x228   : > { %2234 = vmatpush.msra.mxu0 %v418_v28  ;;  %2253 = vmatpush.msra.mxu1 %v554_v0  ;;  %v1410_v47 = vld [vmem:[%s3761_s27 + $0x1fa8] sm:$0xff] }
 0x229   : > { %2274 = vmatpush.msra.mxu2 %v674_v30  ;;  %2293 = vmatpush.msra.mxu3 %v810_v1  ;;  %v1010_v49 = vld [vmem:[%s3761_s27 + $0x1328] sm:$0xff] }
 0x22a   : > { %2235 = vmatpush.msra.mxu0 %v410_v51  ;;  %2254 = vmatpush.msra.mxu1 %v546_v33  ;;  %v1146_v50 = vld [vmem:[%s3761_s27 + $0x1768] sm:$0xff] }
 0x22b   : > { %2275 = vmatpush.msra.mxu2 %v666_v34  ;;  %2294 = vmatpush.msra.mxu3 %v802_v56  ;;  %v1266_v52 = vld [vmem:[%s3761_s27 + $0x1b28] sm:$0xff]  ;;  %v1918_v34 = vpop.f32.mrf.mxu0 }
 0x22c   : > { %2236 = vmatpush.msra.mxu0 %v402_v35  ;;  %2255 = vmatpush.msra.mxu1 %v538_v58  ;;  %v1402_v53 = vld [vmem:[%s3761_s27 + $0x1f68] sm:$0xff] }
 0x22d   : > { %2276 = vmatpush.msra.mxu2 %v658_v36  ;;  %2295 = vmatpush.msra.mxu3 %v794_v37  ;;  %v1002_v55 = vld [vmem:[%s3761_s27 + $0x12e8] sm:$0xff] }
 0x22e   : > { %2301 = vmatpush.msrb.mxu0 %v1034_v38  ;;  %2256 = vmatpush.msra.mxu1 %v530_v2  ;;  %v1138_v57 = vld [vmem:[%s3761_s27 + $0x1728] sm:$0xff] }
 0x22f   : > { %2341 = vmatpush.msrb.mxu2 %v1290_v15  ;;  %2296 = vmatpush.msra.mxu3 %v786_v40  ;;  %v1258_v60 = vld [vmem:[%s3761_s27 + $0x1ae8] sm:$0xff]  ;;  %v1938_v15 = vpop.f32.mrf.mxu1 }
 0x230   : > { %2302 = vmatpush.msrb.mxu0 %v1026_v41  ;;  %2321 = vmatpush.msrb.mxu1 %v1162_v20  ;;  %v1394_v61 = vld [vmem:[%s3761_s27 + $0x1f28] sm:$0xff]  ;;  %v1939_v41 = vadd.f32 %v1938_v15, %v1918_v34  ;;  %v1958_v20 = vpop.f32.mrf.mxu2  ;;  %v595_v34 = vld [vmem:[%s3761_s27 + $0x630] sm:$0xff] }
 0x231   : > { %2342 = vmatpush.msrb.mxu2 %v1282_v42  ;;  %2361 = vmatpush.msrb.mxu3 %v1418_v43  ;;  %v994_v62 = vld [vmem:[%s3761_s27 + $0x12a8] sm:$0xff]  ;;  %v443_v15 = vld [vmem:[%s3761_s27 + $0x170] sm:$0xff] }
 0x232   : > { %2303 = vmatpush.msrb.mxu0 %v1018_v44  ;;  %2322 = vmatpush.msrb.mxu1 %v1154_v45  ;;  %v1130_v63 = vld [vmem:[%s3761_s27 + $0x16e8] sm:$0xff]  ;;  %v1959_v45 = vadd.f32 %v1958_v20, %v1939_v41  ;;  %v835_v41 = vld [vmem:[%s3761_s27 + $0xdb0] sm:$0xff] }
 0x233   : > { %2343 = vmatpush.msrb.mxu2 %v1274_v46  ;;  %2362 = vmatpush.msrb.mxu3 %v1410_v47  ;;  %v1250_v3 = vld [vmem:[%s3761_s27 + $0x1aa8] sm:$0xff]  ;;  %v435_v20 = vld [vmem:[%s3761_s27 + $0x130] sm:$0xff] }
 0x234   : > { %2304 = vmatpush.msrb.mxu0 %v1010_v49  ;;  %2323 = vmatpush.msrb.mxu1 %v1146_v50  ;;  %v1386_v4 = vld [vmem:[%s3761_s27 + $0x1ee8] sm:$0xff]  ;;  %v1978_v49 = vpop.f32.mrf.mxu3 }
 0x235   : > { %2344 = vmatpush.msrb.mxu2 %v1266_v52  ;;  %2363 = vmatpush.msrb.mxu3 %v1402_v53  ;;  %v986_v5 = vld [vmem:[%s3761_s27 + $0x1268] sm:$0xff]  ;;  %v1979_v52 = vadd.f32 %v1978_v49, %v1959_v45  ;;  %v523_v53 = vld [vmem:[%s3761_s27 + $0x3f0] sm:$0xff] }
 0x236   : > { %2305 = vmatpush.msrb.mxu0 %v1002_v55  ;;  %2324 = vmatpush.msrb.mxu1 %v1138_v57  ;;  %v1122_v7 = vld [vmem:[%s3761_s27 + $0x16a8] sm:$0xff]  ;;  %v779_v55 = vld [vmem:[%s3761_s27 + $0xbf0] sm:$0xff] }
 0x237   : > { %2345 = vmatpush.msrb.mxu2 %v1258_v60  ;;  %2364 = vmatpush.msrb.mxu3 %v1394_v61  ;;  %v1242_v8 = vld [vmem:[%s3761_s27 + $0x1a68] sm:$0xff]  ;;  %v1998_v60 = vpop.f32.mrf.mxu0  ;;  %v427_v45 = vld [vmem:[%s3761_s27 + $0xf0] sm:$0xff] }
 0x238   : > { %2306 = vmatpush.msrb.mxu0 %v994_v62  ;;  %2325 = vmatpush.msrb.mxu1 %v1130_v63  ;;  %v1378_v29 = vld [vmem:[%s3761_s27 + $0x1ea8] sm:$0xff]  ;;  %v1999_v62 = vadd.f32 %v1998_v60, %v1979_v52  ;;  %v651_v63 = vld [vmem:[%s3761_s27 + $0x7f0] sm:$0xff] }
 0x239   : > { %2346 = vmatpush.msrb.mxu2 %v1250_v3  ;;  %2365 = vmatpush.msrb.mxu3 %v1386_v4  ;;  %v978_v9 = vld [vmem:[%s3761_s27 + $0x1228] sm:$0xff]  ;;  %v771_v3 = vld [vmem:[%s3761_s27 + $0xbb0] sm:$0xff] }
 0x23a   : > { %v1114_v10 = vld [vmem:[%s3761_s27 + $0x1668] sm:$0xff]  ;;  %2307 = vmatpush.msrb.mxu0 %v986_v5  ;;  %2326 = vmatpush.msrb.mxu1 %v1122_v7  ;;  %v907_v4 = vld [vmem:[%s3761_s27 + $0xff0] sm:$0xff] }
 0x23b   : > { %v1234_v11 = vld [vmem:[%s3761_s27 + $0x1a28] sm:$0xff]  ;;  %2347 = vmatpush.msrb.mxu2 %v1242_v8  ;;  %2366 = vmatpush.msrb.mxu3 %v1378_v29  ;;  %v643_v7 = vld [vmem:[%s3761_s27 + $0x7b0] sm:$0xff] }
 0x23c   : > { %v1370_v12 = vld [vmem:[%s3761_s27 + $0x1e68] sm:$0xff]  ;;  %2308 = vmatpush.msrb.mxu0 %v978_v9  ;;  %2327 = vmatpush.msrb.mxu1 %v1114_v10  ;;  %v763_v29 = vld [vmem:[%s3761_s27 + $0xb70] sm:$0xff] }
 0x23d   : > { %v970_v32 = vld [vmem:[%s3761_s27 + $0x11e8] sm:$0xff]  ;;  %2348 = vmatpush.msrb.mxu2 %v1234_v11  ;;  %2367 = vmatpush.msrb.mxu3 %v1370_v12  ;;  %v899_v9 = vld [vmem:[%s3761_s27 + $0xfb0] sm:$0xff] }
 0x23e   : > { %v1106_v13 = vld [vmem:[%s3761_s27 + $0x1628] sm:$0xff]  ;;  %2309 = vmatpush.msrb.mxu0 %v970_v32  ;;  %2277 = vmatmul.f32.vlgmr.msra.gmra.mxu2 %v4502_v18  ;;  %v515_v18 = vld [vmem:[%s3761_s27 + $0x3b0] sm:$0xff] }
 0x23f   : > { %v1226_v14 = vld [vmem:[%s3761_s27 + $0x19e8] sm:$0xff]  ;;  %2328 = vmatpush.msrb.mxu1 %v1106_v13  ;;  %2237 = vmatmul.f32.vlgmr.msra.gmra.mxu0 %v4509_v24  ;;  %v507_v24 = vld [vmem:[%s3761_s27 + $0x370] sm:$0xff] }
 0x240   : > { %v1362_v6 = vld [vmem:[%s3761_s27 + $0x1e28] sm:$0xff]  ;;  %2349 = vmatpush.msrb.mxu2 %v1226_v14  ;;  %2297 = vmatmul.f32.vlgmr.msra.gmra.mxu3 %v4514_v27  ;;  %v2018_v5 = vpop.f32.mrf.mxu1  ;;  %v2038_v27 = vpop.f32.mrf.mxu2  ;;  %v499_v10 = vld [vmem:[%s3761_s27 + $0x330] sm:$0xff] }
 0x241   : > { %v962_v16 = vld [vmem:[%s3761_s27 + $0x11a8] sm:$0xff]  ;;  %2368 = vmatpush.msrb.mxu3 %v1362_v6  ;;  %2257 = vmatmul.f32.vlgmr.msra.gmra.mxu1 %v4522_v31  ;;  %v2019_v8 = vadd.f32 %v2018_v5, %v1999_v62  ;;  %v635_v31 = vld [vmem:[%s3761_s27 + $0x770] sm:$0xff] }
 0x242   : > { %v1098_v17 = vld [vmem:[%s3761_s27 + $0x15e8] sm:$0xff]  ;;  %2310 = vmatpush.msrb.mxu0 %v962_v16  ;;  %v755_v12 = vld [vmem:[%s3761_s27 + $0xb30] sm:$0xff] }
 0x243   : > { %v1218_v19 = vld [vmem:[%s3761_s27 + $0x19a8] sm:$0xff]  ;;  %2329 = vmatpush.msrb.mxu1 %v1098_v17  ;;  %v2039_v11 = vadd.f32 %v2038_v27, %v2019_v8  ;;  %v384_v32 = vld [vmem:[#allocation2 + $0x10] sm:$0xff] }
 0x244   : > { %v1354_v39 = vld [vmem:[%s3761_s27 + $0x1de8] sm:$0xff]  ;;  %2350 = vmatpush.msrb.mxu2 %v1218_v19  ;;  %v2058_v13 = vpop.f32.mrf.mxu3  ;;  %v891_v14 = vld [vmem:[%s3761_s27 + $0xf70] sm:$0xff] }
 0x245   : > { %v954_v22 = vld [vmem:[%s3761_s27 + $0x1168] sm:$0xff]  ;;  %2369 = vmatpush.msrb.mxu3 %v1354_v39  ;;  %v2059_v6 = vadd.f32 %v2058_v13, %v2039_v11  ;;  %v491_v16 = vld [vmem:[%s3761_s27 + $0x2f0] sm:$0xff] }
 0x246   : > { %v1090_v23 = vld [vmem:[%s3761_s27 + $0x15a8] sm:$0xff]  ;;  %2311 = vmatpush.msrb.mxu0 %v954_v22  ;;  %v627_v17 = vld [vmem:[%s3761_s27 + $0x730] sm:$0xff] }
 0x247   : > { %v1210_v25 = vld [vmem:[%s3761_s27 + $0x1968] sm:$0xff]  ;;  %2330 = vmatpush.msrb.mxu1 %v1090_v23  ;;  %v747_v19 = vld [vmem:[%s3761_s27 + $0xaf0] sm:$0xff]  ;;  %v2704_v39 = vadd.f32 %v2059_v6, %v384_v32 }
 0x248   : > { %v1346_v59 = vld [vmem:[%s3761_s27 + $0x1da8] sm:$0xff]  ;;  %2351 = vmatpush.msrb.mxu2 %v1210_v25  ;;  %v883_v22 = vld [vmem:[%s3761_s27 + $0xf30] sm:$0xff] }
 0x249   : > { %v946_v28 = vld [vmem:[%s3761_s27 + $0x1128] sm:$0xff]  ;;  %2370 = vmatpush.msrb.mxu3 %v1346_v59  ;;  %v619_v23 = vld [vmem:[%s3761_s27 + $0x6f0] sm:$0xff]  ;;  %2712 = vst [vmem:[#allocation2 + $0x10] sm:$0xff] %v2704_v39 }
 0x24a   : > { %v1082_v0 = vld [vmem:[%s3761_s27 + $0x1568] sm:$0xff]  ;;  %2312 = vmatpush.msrb.mxu0 %v946_v28  ;;  %v739_v25 = vld [vmem:[%s3761_s27 + $0xab0] sm:$0xff] }
 0x24b   : > { %v1202_v30 = vld [vmem:[%s3761_s27 + $0x1928] sm:$0xff]  ;;  %2331 = vmatpush.msrb.mxu1 %v1082_v0  ;;  %v875_v59 = vld [vmem:[%s3761_s27 + $0xef0] sm:$0xff] }
 0x24c   : > { %v1338_v1 = vld [vmem:[%s3761_s27 + $0x1d68] sm:$0xff]  ;;  %2352 = vmatpush.msrb.mxu2 %v1202_v30  ;;  %v611_v28 = vld [vmem:[%s3761_s27 + $0x6b0] sm:$0xff] }
 0x24d   : > { %v938_v51 = vld [vmem:[%s3761_s27 + $0x10e8] sm:$0xff]  ;;  %2371 = vmatpush.msrb.mxu3 %v1338_v1  ;;  %v867_v0 = vld [vmem:[%s3761_s27 + $0xeb0] sm:$0xff] }
 0x24e   : > { %v1074_v33 = vld [vmem:[%s3761_s27 + $0x1528] sm:$0xff]  ;;  %2313 = vmatpush.msrb.mxu0 %v938_v51  ;;  %v467_v30 = vld [vmem:[%s3761_s27 + $0x230] sm:$0xff] }
 0x24f   : > { %v1194_v56 = vld [vmem:[%s3761_s27 + $0x18e8] sm:$0xff]  ;;  %2332 = vmatpush.msrb.mxu1 %v1074_v33  ;;  %v603_v1 = vld [vmem:[%s3761_s27 + $0x670] sm:$0xff] }
 0x250   : > { %v1330_v35 = vld [vmem:[%s3761_s27 + $0x1d28] sm:$0xff]  ;;  %2353 = vmatpush.msrb.mxu2 %v1194_v56  ;;  %v723_v51 = vld [vmem:[%s3761_s27 + $0xa30] sm:$0xff] }
 0x251   : > { %v930_v58 = vld [vmem:[%s3761_s27 + $0x10a8] sm:$0xff]  ;;  %2372 = vmatpush.msrb.mxu3 %v1330_v35  ;;  %v459_v33 = vld [vmem:[%s3761_s27 + $0x1f0] sm:$0xff] }
 0x252   : > { %v1066_v36 = vld [vmem:[%s3761_s27 + $0x14e8] sm:$0xff]  ;;  %2314 = vmatpush.msrb.mxu0 %v930_v58  ;;  %v715_v56 = vld [vmem:[%s3761_s27 + $0x9f0] sm:$0xff] }
 0x253   : > { %v1186_v37 = vld [vmem:[%s3761_s27 + $0x18a8] sm:$0xff]  ;;  %2333 = vmatpush.msrb.mxu1 %v1066_v36  ;;  %v851_v35 = vld [vmem:[%s3761_s27 + $0xe30] sm:$0xff] }
 0x254   : > { %v1322_v38 = vld [vmem:[%s3761_s27 + $0x1ce8] sm:$0xff]  ;;  %2354 = vmatpush.msrb.mxu2 %v1186_v37  ;;  %v451_v58 = vld [vmem:[%s3761_s27 + $0x1b0] sm:$0xff] }
 0x255   : > { %v922_v2 = vld [vmem:[%s3761_s27 + $0x1068] sm:$0xff]  ;;  %2373 = vmatpush.msrb.mxu3 %v1322_v38  ;;  %v587_v36 = vld [vmem:[%s3761_s27 + $0x5f0] sm:$0xff] }
 0x256   : > { %v1058_v40 = vld [vmem:[%s3761_s27 + $0x14a8] sm:$0xff]  ;;  %2315 = vmatpush.msrb.mxu0 %v922_v2  ;;  %v707_v37 = vld [vmem:[%s3761_s27 + $0x9b0] sm:$0xff] }
 0x257   : > { %v1178_v42 = vld [vmem:[%s3761_s27 + $0x1868] sm:$0xff]  ;;  %2334 = vmatpush.msrb.mxu1 %v1058_v40  ;;  %v843_v38 = vld [vmem:[%s3761_s27 + $0xdf0] sm:$0xff] }
 0x258   : > { %v1314_v43 = vld [vmem:[%s3761_s27 + $0x1ca8] sm:$0xff]  ;;  %2355 = vmatpush.msrb.mxu2 %v1178_v42  ;;  %v579_v2 = vld [vmem:[%s3761_s27 + $0x5b0] sm:$0xff] }
 0x259   : > { %v914_v44 = vld [vmem:[%s3761_s27 + $0x1028] sm:$0xff]  ;;  %2374 = vmatpush.msrb.mxu3 %v1314_v43  ;;  %v699_v40 = vld [vmem:[%s3761_s27 + $0x970] sm:$0xff] }
 0x25a   : > { %v1050_v46 = vld [vmem:[%s3761_s27 + $0x1468] sm:$0xff]  ;;  %2316 = vmatpush.msrb.mxu0 %v914_v44  ;;  %v571_v42 = vld [vmem:[%s3761_s27 + $0x570] sm:$0xff] }
 0x25b   : > { %v1170_v47 = vld [vmem:[%s3761_s27 + $0x1828] sm:$0xff]  ;;  %2335 = vmatpush.msrb.mxu1 %v1050_v46  ;;  %2317 = vmatmul.f32.vlgmr.msrb.gmra.mxu0 %v4541_v26  ;;  %v475_v26 = vld [vmem:[%s3761_s27 + $0x270] sm:$0xff] }
 0x25c   : > { %v1306_v50 = vld [vmem:[%s3761_s27 + $0x1c68] sm:$0xff]  ;;  %2356 = vmatpush.msrb.mxu2 %v1170_v47  ;;  %2381 = vmatpush.msra.mxu0 %v523_v53  ;;  %v691_v43 = vld [vmem:[%s3761_s27 + $0x930] sm:$0xff] }
 0x25d   : > { %v1042_v57 = vld [vmem:[%s3761_s27 + $0x1428] sm:$0xff]  ;;  %2375 = vmatpush.msrb.mxu3 %v1306_v50  ;;  %2357 = vmatmul.f32.vlgmr.msrb.gmra.mxu2 %v4534_v21  ;;  %v483_v21 = vld [vmem:[%s3761_s27 + $0x2b0] sm:$0xff] }
 0x25e   : > { %v1298_v61 = vld [vmem:[%s3761_s27 + $0x1c28] sm:$0xff]  ;;  %2421 = vmatpush.msra.mxu2 %v779_v55  ;;  %2336 = vmatpush.msrb.mxu1 %v1042_v57  ;;  %v827_v44 = vld [vmem:[%s3761_s27 + $0xd70] sm:$0xff] }
 0x25f   : > { %2376 = vmatpush.msrb.mxu3 %v1298_v61  ;;  %2382 = vmatpush.msra.mxu0 %v515_v18  ;;  %v563_v46 = vld [vmem:[%s3761_s27 + $0x530] sm:$0xff] }
 0x260   : > { %2401 = vmatpush.msra.mxu1 %v651_v63  ;;  %2422 = vmatpush.msra.mxu2 %v771_v3  ;;  %v683_v47 = vld [vmem:[%s3761_s27 + $0x8f0] sm:$0xff] }
 0x261   : > { %2441 = vmatpush.msra.mxu3 %v907_v4  ;;  %2383 = vmatpush.msra.mxu0 %v507_v24  ;;  %v819_v49 = vld [vmem:[%s3761_s27 + $0xd30] sm:$0xff] }
 0x262   : > { %2402 = vmatpush.msra.mxu1 %v643_v7  ;;  %2423 = vmatpush.msra.mxu2 %v763_v29  ;;  %v419_v50 = vld [vmem:[%s3761_s27 + $0xb0] sm:$0xff] }
 0x263   : > { %2442 = vmatpush.msra.mxu3 %v899_v9  ;;  %2384 = vmatpush.msra.mxu0 %v499_v10  ;;  %v555_v52 = vld [vmem:[%s3761_s27 + $0x4f0] sm:$0xff] }
 0x264   : > { %2403 = vmatpush.msra.mxu1 %v635_v31  ;;  %2424 = vmatpush.msra.mxu2 %v755_v12  ;;  %v675_v53 = vld [vmem:[%s3761_s27 + $0x8b0] sm:$0xff] }
 0x265   : > { %2443 = vmatpush.msra.mxu3 %v891_v14  ;;  %2385 = vmatpush.msra.mxu0 %v491_v16  ;;  %v811_v55 = vld [vmem:[%s3761_s27 + $0xcf0] sm:$0xff] }
 0x266   : > { %2377 = vmatmul.f32.vlgmr.msrb.gmra.mxu3 %v4546_v48  ;;  %2404 = vmatpush.msra.mxu1 %v627_v17  ;;  %v731_v48 = vld [vmem:[%s3761_s27 + $0xa70] sm:$0xff] }
 0x267   : > { %2425 = vmatpush.msra.mxu2 %v747_v19  ;;  %2444 = vmatpush.msra.mxu3 %v883_v22  ;;  %v411_v57 = vld [vmem:[%s3761_s27 + $0x70] sm:$0xff] }
 0x268   : > { %2337 = vmatmul.f32.vlgmr.msrb.gmra.mxu1 %v4554_v54  ;;  %2386 = vmatpush.msra.mxu0 %v483_v21  ;;  %v859_v54 = vld [vmem:[%s3761_s27 + $0xe70] sm:$0xff] }
 0x269   : > { %2405 = vmatpush.msra.mxu1 %v619_v23  ;;  %2426 = vmatpush.msra.mxu2 %v739_v25  ;;  %v547_v60 = vld [vmem:[%s3761_s27 + $0x4b0] sm:$0xff] }
 0x26a   : > { %2445 = vmatpush.msra.mxu3 %v875_v59  ;;  %2387 = vmatpush.msra.mxu0 %v475_v26  ;;  %v667_v61 = vld [vmem:[%s3761_s27 + $0x870] sm:$0xff] }
 0x26b   : > { %2406 = vmatpush.msra.mxu1 %v611_v28  ;;  %2427 = vmatpush.msra.mxu2 %v731_v48  ;;  %v803_v62 = vld [vmem:[%s3761_s27 + $0xcb0] sm:$0xff] }
 0x26c   : > { %2446 = vmatpush.msra.mxu3 %v867_v0  ;;  %2388 = vmatpush.msra.mxu0 %v467_v30  ;;  %v403_v18 = vld [vmem:[%s3761_s27 + $0x30] sm:$0xff] }
 0x26d   : > { %2407 = vmatpush.msra.mxu1 %v603_v1  ;;  %2428 = vmatpush.msra.mxu2 %v723_v51  ;;  %v539_v63 = vld [vmem:[%s3761_s27 + $0x470] sm:$0xff] }
 0x26e   : > { %2447 = vmatpush.msra.mxu3 %v859_v54  ;;  %2389 = vmatpush.msra.mxu0 %v459_v33  ;;  %v659_v3 = vld [vmem:[%s3761_s27 + $0x830] sm:$0xff] }
 0x26f   : > { %2408 = vmatpush.msra.mxu1 %v595_v34  ;;  %2429 = vmatpush.msra.mxu2 %v715_v56  ;;  %v795_v4 = vld [vmem:[%s3761_s27 + $0xc70] sm:$0xff] }
 0x270   : > { %2448 = vmatpush.msra.mxu3 %v851_v35  ;;  %2390 = vmatpush.msra.mxu0 %v451_v58  ;;  %v1035_v5 = vld [vmem:[%s3761_s27 + $0x13f0] sm:$0xff] }
 0x271   : > { %2409 = vmatpush.msra.mxu1 %v587_v36  ;;  %2430 = vmatpush.msra.mxu2 %v707_v37  ;;  %v1291_v24 = vld [vmem:[%s3761_s27 + $0x1bf0] sm:$0xff] }
 0x272   : > { %2449 = vmatpush.msra.mxu3 %v843_v38  ;;  %2391 = vmatpush.msra.mxu0 %v443_v15  ;;  %v531_v7 = vld [vmem:[%s3761_s27 + $0x430] sm:$0xff] }
 0x273   : > { %2410 = vmatpush.msra.mxu1 %v579_v2  ;;  %2431 = vmatpush.msra.mxu2 %v699_v40  ;;  %v787_v8 = vld [vmem:[%s3761_s27 + $0xc30] sm:$0xff] }
 0x274   : > { %2450 = vmatpush.msra.mxu3 %v835_v41  ;;  %2392 = vmatpush.msra.mxu0 %v435_v20  ;;  %v1027_v27 = vld [vmem:[%s3761_s27 + $0x13b0] sm:$0xff] }
 0x275   : > { %2411 = vmatpush.msra.mxu1 %v571_v42  ;;  %2432 = vmatpush.msra.mxu2 %v691_v43  ;;  %v1163_v29 = vld [vmem:[%s3761_s27 + $0x17f0] sm:$0xff] }
 0x276   : > { %2451 = vmatpush.msra.mxu3 %v827_v44  ;;  %2393 = vmatpush.msra.mxu0 %v427_v45  ;;  %v1283_v9 = vld [vmem:[%s3761_s27 + $0x1bb0] sm:$0xff] }
 0x277   : > { %2412 = vmatpush.msra.mxu1 %v563_v46  ;;  %2433 = vmatpush.msra.mxu2 %v683_v47  ;;  %v1419_v10 = vld [vmem:[%s3761_s27 + $0x1ff0] sm:$0xff] }
 0x278   : > { %2452 = vmatpush.msra.mxu3 %v819_v49  ;;  %2394 = vmatpush.msra.mxu0 %v419_v50  ;;  %v1019_v11 = vld [vmem:[%s3761_s27 + $0x1370] sm:$0xff] }
 0x279   : > { %2413 = vmatpush.msra.mxu1 %v555_v52  ;;  %2434 = vmatpush.msra.mxu2 %v675_v53  ;;  %v1155_v31 = vld [vmem:[%s3761_s27 + $0x17b0] sm:$0xff] }
 0x27a   : > { %2453 = vmatpush.msra.mxu3 %v811_v55  ;;  %2395 = vmatpush.msra.mxu0 %v411_v57  ;;  %v1275_v12 = vld [vmem:[%s3761_s27 + $0x1b70] sm:$0xff] }
 0x27b   : > { %2414 = vmatpush.msra.mxu1 %v547_v60  ;;  %2435 = vmatpush.msra.mxu2 %v667_v61  ;;  %v1411_v32 = vld [vmem:[%s3761_s27 + $0x1fb0] sm:$0xff]  ;;  %v2098_v60 = vpop.f32.mrf.mxu1 }
 0x27c   : > { %2454 = vmatpush.msra.mxu3 %v803_v62  ;;  %2396 = vmatpush.msra.mxu0 %v403_v18  ;;  %v1011_v13 = vld [vmem:[%s3761_s27 + $0x1330] sm:$0xff] }
 0x27d   : > { %2415 = vmatpush.msra.mxu1 %v539_v63  ;;  %2436 = vmatpush.msra.mxu2 %v659_v3  ;;  %v1147_v14 = vld [vmem:[%s3761_s27 + $0x1770] sm:$0xff]  ;;  %v2118_v63 = vpop.f32.mrf.mxu2 }
 0x27e   : > { %2455 = vmatpush.msra.mxu3 %v795_v4  ;;  %2461 = vmatpush.msrb.mxu0 %v1035_v5  ;;  %v1267_v6 = vld [vmem:[%s3761_s27 + $0x1b30] sm:$0xff] }
 0x27f   : > { %2501 = vmatpush.msrb.mxu2 %v1291_v24  ;;  %2416 = vmatpush.msra.mxu1 %v531_v7  ;;  %v1403_v16 = vld [vmem:[%s3761_s27 + $0x1f70] sm:$0xff] }
 0x280   : > { %2456 = vmatpush.msra.mxu3 %v787_v8  ;;  %2462 = vmatpush.msrb.mxu0 %v1027_v27  ;;  %v1003_v17 = vld [vmem:[%s3761_s27 + $0x12f0] sm:$0xff]  ;;  %v2138_v27 = vpop.f32.mrf.mxu3 }
 0x281   : > { %2481 = vmatpush.msrb.mxu1 %v1163_v29  ;;  %2502 = vmatpush.msrb.mxu2 %v1283_v9  ;;  %v1139_v19 = vld [vmem:[%s3761_s27 + $0x1730] sm:$0xff] }
 0x282   : > { %2521 = vmatpush.msrb.mxu3 %v1419_v10  ;;  %2463 = vmatpush.msrb.mxu0 %v1019_v11  ;;  %v1259_v39 = vld [vmem:[%s3761_s27 + $0x1af0] sm:$0xff]  ;;  %v524_v11 = vld [vmem:[%s3761_s27 + $0x3f8] sm:$0xff] }
 0x283   : > { %2482 = vmatpush.msrb.mxu1 %v1155_v31  ;;  %2503 = vmatpush.msrb.mxu2 %v1275_v12  ;;  %v1395_v22 = vld [vmem:[%s3761_s27 + $0x1f30] sm:$0xff]  ;;  %v780_v31 = vld [vmem:[%s3761_s27 + $0xbf8] sm:$0xff] }
 0x284   : > { %2522 = vmatpush.msrb.mxu3 %v1411_v32  ;;  %2464 = vmatpush.msrb.mxu0 %v1011_v13  ;;  %v995_v21 = vld [vmem:[%s3761_s27 + $0x12b0] sm:$0xff]  ;;  %v4805_v13 = vld [vmem:[%s3779_s30] sm:$0xff] }
 0x285   : > { %2483 = vmatpush.msrb.mxu1 %v1147_v14  ;;  %2504 = vmatpush.msrb.mxu2 %v1267_v6  ;;  %v1131_v23 = vld [vmem:[%s3761_s27 + $0x16f0] sm:$0xff] }
 0x286   : > { %2523 = vmatpush.msrb.mxu3 %v1403_v16  ;;  %2465 = vmatpush.msrb.mxu0 %v1003_v17  ;;  %v1251_v25 = vld [vmem:[%s3761_s27 + $0x1ab0] sm:$0xff]  ;;  %v4810_v16 = vld [vmem:[%s3779_s30 + $0x18] sm:$0xff] }
 0x287   : > { %2484 = vmatpush.msrb.mxu1 %v1139_v19  ;;  %v1387_v59 = vld [vmem:[%s3761_s27 + $0x1ef0] sm:$0xff]  ;;  %2505 = vmatpush.msrb.mxu2 %v1259_v39  ;;  %v516_v17 = vld [vmem:[%s3761_s27 + $0x3b8] sm:$0xff] }
 0x288   : > { %2524 = vmatpush.msrb.mxu3 %v1395_v22  ;;  %v987_v26 = vld [vmem:[%s3761_s27 + $0x1270] sm:$0xff]  ;;  %2466 = vmatpush.msrb.mxu0 %v995_v21  ;;  %v652_v19 = vld [vmem:[%s3761_s27 + $0x7f8] sm:$0xff] }
 0x289   : > { %v1123_v28 = vld [vmem:[%s3761_s27 + $0x16b0] sm:$0xff]  ;;  %2485 = vmatpush.msrb.mxu1 %v1131_v23  ;;  %2506 = vmatpush.msrb.mxu2 %v1251_v25  ;;  %v772_v39 = vld [vmem:[%s3761_s27 + $0xbb8] sm:$0xff]  ;;  %v4818_v23 = vld [vmem:[%s3779_s30 + $0x8] sm:$0xff] }
 0x28a   : > { %v1243_v48 = vld [vmem:[%s3761_s27 + $0x1a70] sm:$0xff]  ;;  %2525 = vmatpush.msrb.mxu3 %v1387_v59  ;;  %2467 = vmatpush.msrb.mxu0 %v987_v26  ;;  %v2078_v47 = vpop.f32.mrf.mxu0  ;;  %v908_v22 = vld [vmem:[%s3761_s27 + $0xff8] sm:$0xff]  ;;  %v2178_v21 = vpop.f32.mrf.mxu1 }
 0x28b   : > { %v1379_v0 = vld [vmem:[%s3761_s27 + $0x1eb0] sm:$0xff]  ;;  %2486 = vmatpush.msrb.mxu1 %v1123_v28  ;;  %2507 = vmatpush.msrb.mxu2 %v1243_v48  ;;  %v2099_v18 = vadd.f32 %v2098_v60, %v2078_v47  ;;  %v508_v25 = vld [vmem:[%s3761_s27 + $0x378] sm:$0xff] }
 0x28c   : > { %v979_v30 = vld [vmem:[%s3761_s27 + $0x1230] sm:$0xff]  ;;  %2526 = vmatpush.msrb.mxu3 %v1379_v0  ;;  %2397 = vmatmul.f32.vlgmr.msra.gmra.mxu0 %v4805_v13  ;;  %v644_v59 = vld [vmem:[%s3761_s27 + $0x7b8] sm:$0xff] }
 0x28d   : > { %v1115_v1 = vld [vmem:[%s3761_s27 + $0x1670] sm:$0xff]  ;;  %2468 = vmatpush.msrb.mxu0 %v979_v30  ;;  %v2119_v24 = vadd.f32 %v2118_v63, %v2099_v18  ;;  %2457 = vmatmul.f32.vlgmr.msra.gmra.mxu3 %v4810_v16  ;;  %v764_v48 = vld [vmem:[%s3761_s27 + $0xb78] sm:$0xff] }
 0x28e   : > { %v1235_v51 = vld [vmem:[%s3761_s27 + $0x1a30] sm:$0xff]  ;;  %2487 = vmatpush.msrb.mxu1 %v1115_v1  ;;  %v2198_v28 = vpop.f32.mrf.mxu2  ;;  %v900_v0 = vld [vmem:[%s3761_s27 + $0xfb8] sm:$0xff] }
 0x28f   : > { %v1371_v54 = vld [vmem:[%s3761_s27 + $0x1e70] sm:$0xff]  ;;  %2508 = vmatpush.msrb.mxu2 %v1235_v51  ;;  %v2139_v9 = vadd.f32 %v2138_v27, %v2119_v24  ;;  %2417 = vmatmul.f32.vlgmr.msra.gmra.mxu1 %v4818_v23  ;;  %v500_v30 = vld [vmem:[%s3761_s27 + $0x338] sm:$0xff] }
 0x290   : > { %v971_v33 = vld [vmem:[%s3761_s27 + $0x11f0] sm:$0xff]  ;;  %2527 = vmatpush.msrb.mxu3 %v1371_v54  ;;  %v636_v51 = vld [vmem:[%s3761_s27 + $0x778] sm:$0xff] }
 0x291   : > { %v1107_v34 = vld [vmem:[%s3761_s27 + $0x1630] sm:$0xff]  ;;  %2469 = vmatpush.msrb.mxu0 %v971_v33  ;;  %v756_v54 = vld [vmem:[%s3761_s27 + $0xb38] sm:$0xff]  ;;  %v385_v33 = vld [vmem:[#allocation2 + $0x8] sm:$0xff] }
 0x292   : > { %v1227_v56 = vld [vmem:[%s3761_s27 + $0x19f0] sm:$0xff]  ;;  %2488 = vmatpush.msrb.mxu1 %v1107_v34  ;;  %v2158_v32 = vpop.f32.mrf.mxu0  ;;  %v612_v47 = vld [vmem:[%s3761_s27 + $0x6b8] sm:$0xff] }
 0x293   : > { %v1363_v35 = vld [vmem:[%s3761_s27 + $0x1e30] sm:$0xff]  ;;  %2509 = vmatpush.msrb.mxu2 %v1227_v56  ;;  %v2159_v6 = vadd.f32 %v2158_v32, %v2139_v9  ;;  %v892_v56 = vld [vmem:[%s3761_s27 + $0xf78] sm:$0xff] }
 0x294   : > { %v963_v58 = vld [vmem:[%s3761_s27 + $0x11b0] sm:$0xff]  ;;  %2528 = vmatpush.msrb.mxu3 %v1363_v35  ;;  %v460_v60 = vld [vmem:[%s3761_s27 + $0x1f8] sm:$0xff] }
 0x295   : > { %v1099_v36 = vld [vmem:[%s3761_s27 + $0x15f0] sm:$0xff]  ;;  %2470 = vmatpush.msrb.mxu0 %v963_v58  ;;  %v2179_v26 = vadd.f32 %v2178_v21, %v2159_v6  ;;  %v852_v18 = vld [vmem:[%s3761_s27 + $0xe38] sm:$0xff] }
 0x296   : > { %v1219_v37 = vld [vmem:[%s3761_s27 + $0x19b0] sm:$0xff]  ;;  %2489 = vmatpush.msrb.mxu1 %v1099_v36  ;;  %v492_v36 = vld [vmem:[%s3761_s27 + $0x2f8] sm:$0xff] }
 0x297   : > { %v1355_v38 = vld [vmem:[%s3761_s27 + $0x1df0] sm:$0xff]  ;;  %2510 = vmatpush.msrb.mxu2 %v1219_v37  ;;  %v2199_v1 = vadd.f32 %v2198_v28, %v2179_v26  ;;  %v628_v37 = vld [vmem:[%s3761_s27 + $0x738] sm:$0xff] }
 0x298   : > { %v955_v15 = vld [vmem:[%s3761_s27 + $0x1170] sm:$0xff]  ;;  %2529 = vmatpush.msrb.mxu3 %v1355_v38  ;;  %v2218_v34 = vpop.f32.mrf.mxu3  ;;  %v748_v38 = vld [vmem:[%s3761_s27 + $0xaf8] sm:$0xff] }
 0x299   : > { %v1091_v2 = vld [vmem:[%s3761_s27 + $0x15b0] sm:$0xff]  ;;  %2471 = vmatpush.msrb.mxu0 %v955_v15  ;;  %v2219_v35 = vadd.f32 %v2218_v34, %v2199_v1  ;;  %v452_v63 = vld [vmem:[%s3761_s27 + $0x1b8] sm:$0xff] }
 0x29a   : > { %v1211_v40 = vld [vmem:[%s3761_s27 + $0x1970] sm:$0xff]  ;;  %2490 = vmatpush.msrb.mxu1 %v1091_v2  ;;  %v4837_v2 = vld [vmem:[%s3779_s30 + $0x20] sm:$0xff]  ;;  %v444_v24 = vld [vmem:[%s3761_s27 + $0x178] sm:$0xff] }
 0x29b   : > { %v1347_v41 = vld [vmem:[%s3761_s27 + $0x1db0] sm:$0xff]  ;;  %2511 = vmatpush.msrb.mxu2 %v1211_v40  ;;  %v2705_v15 = vadd.f32 %v2219_v35, %v385_v33  ;;  %v884_v40 = vld [vmem:[%s3761_s27 + $0xf38] sm:$0xff] }
 0x29c   : > { %v947_v20 = vld [vmem:[%s3761_s27 + $0x1130] sm:$0xff]  ;;  %2530 = vmatpush.msrb.mxu3 %v1347_v41  ;;  %v4842_v41 = vld [vmem:[%s3779_s30 + $0x38] sm:$0xff] }
 0x29d   : > { %v1083_v42 = vld [vmem:[%s3761_s27 + $0x1570] sm:$0xff]  ;;  %2472 = vmatpush.msrb.mxu0 %v947_v20  ;;  %v484_v20 = vld [vmem:[%s3761_s27 + $0x2b8] sm:$0xff]  ;;  %2713 = vst [vmem:[#allocation2 + $0x8] sm:$0xff] %v2705_v15 }
 0x29e   : > { %v1203_v43 = vld [vmem:[%s3761_s27 + $0x1930] sm:$0xff]  ;;  %2491 = vmatpush.msrb.mxu1 %v1083_v42  ;;  %v620_v42 = vld [vmem:[%s3761_s27 + $0x6f8] sm:$0xff] }
 0x29f   : > { %v1339_v44 = vld [vmem:[%s3761_s27 + $0x1d70] sm:$0xff]  ;;  %2512 = vmatpush.msrb.mxu2 %v1203_v43  ;;  %v740_v43 = vld [vmem:[%s3761_s27 + $0xab8] sm:$0xff] }
 0x2a0   : > { %v939_v45 = vld [vmem:[%s3761_s27 + $0x10f0] sm:$0xff]  ;;  %2531 = vmatpush.msrb.mxu3 %v1339_v44  ;;  %v876_v44 = vld [vmem:[%s3761_s27 + $0xef8] sm:$0xff] }
 0x2a1   : > { %v1075_v46 = vld [vmem:[%s3761_s27 + $0x1530] sm:$0xff]  ;;  %2473 = vmatpush.msrb.mxu0 %v939_v45  ;;  %v4850_v45 = vld [vmem:[%s3779_s30 + $0x28] sm:$0xff]  ;;  %v836_v27 = vld [vmem:[%s3761_s27 + $0xdb8] sm:$0xff] }
 0x2a2   : > { %v1195_v49 = vld [vmem:[%s3761_s27 + $0x18f0] sm:$0xff]  ;;  %2492 = vmatpush.msrb.mxu1 %v1075_v46  ;;  %v476_v46 = vld [vmem:[%s3761_s27 + $0x278] sm:$0xff] }
 0x2a3   : > { %v1331_v50 = vld [vmem:[%s3761_s27 + $0x1d30] sm:$0xff]  ;;  %2513 = vmatpush.msrb.mxu2 %v1195_v49  ;;  %v732_v49 = vld [vmem:[%s3761_s27 + $0xa78] sm:$0xff] }
 0x2a4   : > { %v931_v52 = vld [vmem:[%s3761_s27 + $0x10b0] sm:$0xff]  ;;  %2532 = vmatpush.msrb.mxu3 %v1331_v50  ;;  %v868_v50 = vld [vmem:[%s3761_s27 + $0xeb8] sm:$0xff] }
 0x2a5   : > { %v1067_v53 = vld [vmem:[%s3761_s27 + $0x14f0] sm:$0xff]  ;;  %2474 = vmatpush.msrb.mxu0 %v931_v52  ;;  %v468_v52 = vld [vmem:[%s3761_s27 + $0x238] sm:$0xff] }
 0x2a6   : > { %v1187_v55 = vld [vmem:[%s3761_s27 + $0x18b0] sm:$0xff]  ;;  %2493 = vmatpush.msrb.mxu1 %v1067_v53  ;;  %v604_v53 = vld [vmem:[%s3761_s27 + $0x678] sm:$0xff] }
 0x2a7   : > { %v1323_v57 = vld [vmem:[%s3761_s27 + $0x1cf0] sm:$0xff]  ;;  %2514 = vmatpush.msrb.mxu2 %v1187_v55  ;;  %v724_v55 = vld [vmem:[%s3761_s27 + $0xa38] sm:$0xff] }
 0x2a8   : > { %v923_v61 = vld [vmem:[%s3761_s27 + $0x1070] sm:$0xff]  ;;  %2533 = vmatpush.msrb.mxu3 %v1323_v57  ;;  %v860_v57 = vld [vmem:[%s3761_s27 + $0xe78] sm:$0xff] }
 0x2a9   : > { %v1059_v62 = vld [vmem:[%s3761_s27 + $0x14b0] sm:$0xff]  ;;  %2475 = vmatpush.msrb.mxu0 %v923_v61  ;;  %v596_v61 = vld [vmem:[%s3761_s27 + $0x638] sm:$0xff] }
 0x2aa   : > { %v1179_v3 = vld [vmem:[%s3761_s27 + $0x1870] sm:$0xff]  ;;  %2494 = vmatpush.msrb.mxu1 %v1059_v62  ;;  %v716_v62 = vld [vmem:[%s3761_s27 + $0x9f8] sm:$0xff] }
 0x2ab   : > { %v1315_v4 = vld [vmem:[%s3761_s27 + $0x1cb0] sm:$0xff]  ;;  %2515 = vmatpush.msrb.mxu2 %v1179_v3  ;;  %v588_v3 = vld [vmem:[%s3761_s27 + $0x5f8] sm:$0xff] }
 0x2ac   : > { %v915_v5 = vld [vmem:[%s3761_s27 + $0x1030] sm:$0xff]  ;;  %2534 = vmatpush.msrb.mxu3 %v1315_v4  ;;  %v708_v4 = vld [vmem:[%s3761_s27 + $0x9b8] sm:$0xff] }
 0x2ad   : > { %v1051_v7 = vld [vmem:[%s3761_s27 + $0x1470] sm:$0xff]  ;;  %2476 = vmatpush.msrb.mxu0 %v915_v5  ;;  %v844_v5 = vld [vmem:[%s3761_s27 + $0xdf8] sm:$0xff] }
 0x2ae   : > { %v1171_v8 = vld [vmem:[%s3761_s27 + $0x1830] sm:$0xff]  ;;  %2495 = vmatpush.msrb.mxu1 %v1051_v7  ;;  %2477 = vmatmul.f32.vlgmr.msrb.gmra.mxu0 %v4837_v2  ;;  %v580_v7 = vld [vmem:[%s3761_s27 + $0x5b8] sm:$0xff] }
 0x2af   : > { %v1307_v29 = vld [vmem:[%s3761_s27 + $0x1c70] sm:$0xff]  ;;  %2516 = vmatpush.msrb.mxu2 %v1171_v8  ;;  %2541 = vmatpush.msra.mxu0 %v524_v11  ;;  %v700_v8 = vld [vmem:[%s3761_s27 + $0x978] sm:$0xff] }
 0x2b0   : > { %v4798_v10 = vld [vmem:[%s3779_s30 + $0x10] sm:$0xff]  ;;  %2535 = vmatpush.msrb.mxu3 %v1307_v29  ;;  %v436_v29 = vld [vmem:[%s3761_s27 + $0x138] sm:$0xff] }
 0x2b1   : > { %2437 = vmatmul.f32.vlgmr.msra.gmra.mxu2 %v4798_v10  ;;  %v1043_v12 = vld [vmem:[%s3761_s27 + $0x1430] sm:$0xff]  ;;  %2542 = vmatpush.msra.mxu0 %v516_v17  ;;  %v572_v9 = vld [vmem:[%s3761_s27 + $0x578] sm:$0xff] }
 0x2b2   : > { %v1299_v14 = vld [vmem:[%s3761_s27 + $0x1c30] sm:$0xff]  ;;  %2581 = vmatpush.msra.mxu2 %v780_v31  ;;  %2496 = vmatpush.msrb.mxu1 %v1043_v12  ;;  %v692_v11 = vld [vmem:[%s3761_s27 + $0x938] sm:$0xff] }
 0x2b3   : > { %2536 = vmatpush.msrb.mxu3 %v1299_v14  ;;  %2543 = vmatpush.msra.mxu0 %v508_v25  ;;  %v4830_v58 = vld [vmem:[%s3779_s30 + $0x30] sm:$0xff]  ;;  %v828_v31 = vld [vmem:[%s3761_s27 + $0xd78] sm:$0xff] }
 0x2b4   : > { %2561 = vmatpush.msra.mxu1 %v652_v19  ;;  %2582 = vmatpush.msra.mxu2 %v772_v39  ;;  %v428_v12 = vld [vmem:[%s3761_s27 + $0xf8] sm:$0xff] }
 0x2b5   : > { %2601 = vmatpush.msra.mxu3 %v908_v22  ;;  %2544 = vmatpush.msra.mxu0 %v500_v30  ;;  %v564_v32 = vld [vmem:[%s3761_s27 + $0x538] sm:$0xff] }
 0x2b6   : > { %2562 = vmatpush.msra.mxu1 %v644_v59  ;;  %2583 = vmatpush.msra.mxu2 %v764_v48  ;;  %v684_v14 = vld [vmem:[%s3761_s27 + $0x8f8] sm:$0xff] }
 0x2b7   : > { %2602 = vmatpush.msra.mxu3 %v900_v0  ;;  %2545 = vmatpush.msra.mxu0 %v492_v36  ;;  %v820_v6 = vld [vmem:[%s3761_s27 + $0xd38] sm:$0xff] }
 0x2b8   : > { %2563 = vmatpush.msra.mxu1 %v636_v51  ;;  %2584 = vmatpush.msra.mxu2 %v756_v54  ;;  %v420_v17 = vld [vmem:[%s3761_s27 + $0xb8] sm:$0xff] }
 0x2b9   : > { %2517 = vmatmul.f32.vlgmr.msrb.gmra.mxu2 %v4830_v58  ;;  %2603 = vmatpush.msra.mxu3 %v892_v56  ;;  %v556_v19 = vld [vmem:[%s3761_s27 + $0x4f8] sm:$0xff] }
 0x2ba   : > { %2537 = vmatmul.f32.vlgmr.msrb.gmra.mxu3 %v4842_v41  ;;  %2564 = vmatpush.msra.mxu1 %v628_v37  ;;  %v676_v39 = vld [vmem:[%s3761_s27 + $0x8b8] sm:$0xff] }
 0x2bb   : > { %2585 = vmatpush.msra.mxu2 %v748_v38  ;;  %2604 = vmatpush.msra.mxu3 %v884_v40  ;;  %v812_v22 = vld [vmem:[%s3761_s27 + $0xcf8] sm:$0xff] }
 0x2bc   : > { %2497 = vmatmul.f32.vlgmr.msrb.gmra.mxu1 %v4850_v45  ;;  %2546 = vmatpush.msra.mxu0 %v484_v20  ;;  %v412_v21 = vld [vmem:[%s3761_s27 + $0x78] sm:$0xff] }
 0x2bd   : > { %2565 = vmatpush.msra.mxu1 %v620_v42  ;;  %2586 = vmatpush.msra.mxu2 %v740_v43  ;;  %v548_v25 = vld [vmem:[%s3761_s27 + $0x4b8] sm:$0xff] }
 0x2be   : > { %2605 = vmatpush.msra.mxu3 %v876_v44  ;;  %2547 = vmatpush.msra.mxu0 %v476_v46  ;;  %v668_v59 = vld [vmem:[%s3761_s27 + $0x878] sm:$0xff] }
 0x2bf   : > { %2566 = vmatpush.msra.mxu1 %v612_v47  ;;  %2587 = vmatpush.msra.mxu2 %v732_v49  ;;  %v804_v26 = vld [vmem:[%s3761_s27 + $0xcb8] sm:$0xff] }
 0x2c0   : > { %2606 = vmatpush.msra.mxu3 %v868_v50  ;;  %2548 = vmatpush.msra.mxu0 %v468_v52  ;;  %v404_v28 = vld [vmem:[%s3761_s27 + $0x38] sm:$0xff] }
 0x2c1   : > { %2567 = vmatpush.msra.mxu1 %v604_v53  ;;  %2588 = vmatpush.msra.mxu2 %v724_v55  ;;  %v540_v48 = vld [vmem:[%s3761_s27 + $0x478] sm:$0xff] }
 0x2c2   : > { %2607 = vmatpush.msra.mxu3 %v860_v57  ;;  %2549 = vmatpush.msra.mxu0 %v460_v60  ;;  %v660_v0 = vld [vmem:[%s3761_s27 + $0x838] sm:$0xff] }
 0x2c3   : > { %2568 = vmatpush.msra.mxu1 %v596_v61  ;;  %2589 = vmatpush.msra.mxu2 %v716_v62  ;;  %v796_v30 = vld [vmem:[%s3761_s27 + $0xc78] sm:$0xff] }
 0x2c4   : > { %2608 = vmatpush.msra.mxu3 %v852_v18  ;;  %2550 = vmatpush.msra.mxu0 %v452_v63  ;;  %v1036_v1 = vld [vmem:[%s3761_s27 + $0x13f8] sm:$0xff] }
 0x2c5   : > { %2569 = vmatpush.msra.mxu1 %v588_v3  ;;  %2590 = vmatpush.msra.mxu2 %v708_v4  ;;  %v1292_v51 = vld [vmem:[%s3761_s27 + $0x1bf8] sm:$0xff] }
 0x2c6   : > { %2609 = vmatpush.msra.mxu3 %v844_v5  ;;  %2551 = vmatpush.msra.mxu0 %v444_v24  ;;  %v532_v54 = vld [vmem:[%s3761_s27 + $0x438] sm:$0xff] }
 0x2c7   : > { %2570 = vmatpush.msra.mxu1 %v580_v7  ;;  %2591 = vmatpush.msra.mxu2 %v700_v8  ;;  %v788_v33 = vld [vmem:[%s3761_s27 + $0xc38] sm:$0xff] }
 0x2c8   : > { %2610 = vmatpush.msra.mxu3 %v836_v27  ;;  %2552 = vmatpush.msra.mxu0 %v436_v29  ;;  %v1028_v34 = vld [vmem:[%s3761_s27 + $0x13b8] sm:$0xff] }
 0x2c9   : > { %2571 = vmatpush.msra.mxu1 %v572_v9  ;;  %2592 = vmatpush.msra.mxu2 %v692_v11  ;;  %v1164_v56 = vld [vmem:[%s3761_s27 + $0x17f8] sm:$0xff] }
 0x2ca   : > { %2611 = vmatpush.msra.mxu3 %v828_v31  ;;  %2553 = vmatpush.msra.mxu0 %v428_v12  ;;  %v1284_v35 = vld [vmem:[%s3761_s27 + $0x1bb8] sm:$0xff] }
 0x2cb   : > { %2572 = vmatpush.msra.mxu1 %v564_v32  ;;  %2593 = vmatpush.msra.mxu2 %v684_v14  ;;  %v1420_v36 = vld [vmem:[%s3761_s27 + $0x1ff8] sm:$0xff] }
 0x2cc   : > { %2612 = vmatpush.msra.mxu3 %v820_v6  ;;  %2554 = vmatpush.msra.mxu0 %v420_v17  ;;  %v1020_v37 = vld [vmem:[%s3761_s27 + $0x1378] sm:$0xff] }
 0x2cd   : > { %2573 = vmatpush.msra.mxu1 %v556_v19  ;;  %2594 = vmatpush.msra.mxu2 %v676_v39  ;;  %v1156_v38 = vld [vmem:[%s3761_s27 + $0x17b8] sm:$0xff] }
 0x2ce   : > { %2613 = vmatpush.msra.mxu3 %v812_v22  ;;  %2555 = vmatpush.msra.mxu0 %v412_v21  ;;  %v1276_v15 = vld [vmem:[%s3761_s27 + $0x1b78] sm:$0xff]  ;;  %v2238_v21 = vpop.f32.mrf.mxu0 }
 0x2cf   : > { %2574 = vmatpush.msra.mxu1 %v548_v25  ;;  %2595 = vmatpush.msra.mxu2 %v668_v59  ;;  %v1412_v40 = vld [vmem:[%s3761_s27 + $0x1fb8] sm:$0xff] }
 0x2d0   : > { %2614 = vmatpush.msra.mxu3 %v804_v26  ;;  %2556 = vmatpush.msra.mxu0 %v404_v28  ;;  %v1012_v20 = vld [vmem:[%s3761_s27 + $0x1338] sm:$0xff] }
 0x2d1   : > { %2575 = vmatpush.msra.mxu1 %v540_v48  ;;  %2596 = vmatpush.msra.mxu2 %v660_v0  ;;  %v1148_v42 = vld [vmem:[%s3761_s27 + $0x1778] sm:$0xff]  ;;  %v2258_v48 = vpop.f32.mrf.mxu1 }
 0x2d2   : > { %2615 = vmatpush.msra.mxu3 %v796_v30  ;;  %2621 = vmatpush.msrb.mxu0 %v1036_v1  ;;  %v1268_v43 = vld [vmem:[%s3761_s27 + $0x1b38] sm:$0xff]  ;;  %v2259_v30 = vadd.f32 %v2258_v48, %v2238_v21  ;;  %v2278_v1 = vpop.f32.mrf.mxu2 }
 0x2d3   : > { %2661 = vmatpush.msrb.mxu2 %v1292_v51  ;;  %2576 = vmatpush.msra.mxu1 %v532_v54  ;;  %v1404_v44 = vld [vmem:[%s3761_s27 + $0x1f78] sm:$0xff] }
 0x2d4   : > { %2616 = vmatpush.msra.mxu3 %v788_v33  ;;  %2622 = vmatpush.msrb.mxu0 %v1028_v34  ;;  %v1004_v46 = vld [vmem:[%s3761_s27 + $0x12f8] sm:$0xff]  ;;  %v2279_v33 = vadd.f32 %v2278_v1, %v2259_v30 }
 0x2d5   : > { %2641 = vmatpush.msrb.mxu1 %v1164_v56  ;;  %2662 = vmatpush.msrb.mxu2 %v1284_v35  ;;  %v1140_v47 = vld [vmem:[%s3761_s27 + $0x1738] sm:$0xff]  ;;  %v2298_v35 = vpop.f32.mrf.mxu3 }
 0x2d6   : > { %2681 = vmatpush.msrb.mxu3 %v1420_v36  ;;  %2623 = vmatpush.msrb.mxu0 %v1020_v37  ;;  %v1260_v49 = vld [vmem:[%s3761_s27 + $0x1af8] sm:$0xff] }
 0x2d7   : > { %2642 = vmatpush.msrb.mxu1 %v1156_v38  ;;  %2663 = vmatpush.msrb.mxu2 %v1276_v15  ;;  %v1396_v50 = vld [vmem:[%s3761_s27 + $0x1f38] sm:$0xff]  ;;  %v2299_v38 = vadd.f32 %v2298_v35, %v2279_v33 }
 0x2d8   : > { %2682 = vmatpush.msrb.mxu3 %v1412_v40  ;;  %2624 = vmatpush.msrb.mxu0 %v1012_v20  ;;  %v996_v52 = vld [vmem:[%s3761_s27 + $0x12b8] sm:$0xff]  ;;  %v2318_v40 = vpop.f32.mrf.mxu0 }
 0x2d9   : > { %2643 = vmatpush.msrb.mxu1 %v1148_v42  ;;  %2664 = vmatpush.msrb.mxu2 %v1268_v43  ;;  %v1132_v53 = vld [vmem:[%s3761_s27 + $0x16f8] sm:$0xff]  ;;  %v2319_v43 = vadd.f32 %v2318_v40, %v2299_v38 }
 0x2da   : > { %2683 = vmatpush.msrb.mxu3 %v1404_v44  ;;  %2625 = vmatpush.msrb.mxu0 %v1004_v46  ;;  %v1252_v55 = vld [vmem:[%s3761_s27 + $0x1ab8] sm:$0xff] }
 0x2db   : > { %2644 = vmatpush.msrb.mxu1 %v1140_v47  ;;  %v1388_v57 = vld [vmem:[%s3761_s27 + $0x1ef8] sm:$0xff]  ;;  %2665 = vmatpush.msrb.mxu2 %v1260_v49 }
 0x2dc   : > { %2684 = vmatpush.msrb.mxu3 %v1396_v50  ;;  %v988_v60 = vld [vmem:[%s3761_s27 + $0x1278] sm:$0xff]  ;;  %2626 = vmatpush.msrb.mxu0 %v996_v52  ;;  %v386_v50 = vld [vmem:[#allocation2 + $0x20] sm:$0xff] }
 0x2dd   : > { %v1124_v61 = vld [vmem:[%s3761_s27 + $0x16b8] sm:$0xff]  ;;  %2645 = vmatpush.msrb.mxu1 %v1132_v53  ;;  %2666 = vmatpush.msrb.mxu2 %v1252_v55 }
 0x2de   : > { %v1244_v62 = vld [vmem:[%s3761_s27 + $0x1a78] sm:$0xff]  ;;  %2685 = vmatpush.msrb.mxu3 %v1388_v57  ;;  %2627 = vmatpush.msrb.mxu0 %v988_v60 }
 0x2df   : > { %v1380_v18 = vld [vmem:[%s3761_s27 + $0x1eb8] sm:$0xff]  ;;  %2646 = vmatpush.msrb.mxu1 %v1124_v61  ;;  %2667 = vmatpush.msrb.mxu2 %v1244_v62 }
 0x2e0   : > { %v980_v63 = vld [vmem:[%s3761_s27 + $0x1238] sm:$0xff]  ;;  %2686 = vmatpush.msrb.mxu3 %v1380_v18  ;;  %2597 = vmatmul.f32.vlgmr.msra.gmra.mxu2 %v4798_v10  ;;  %v2358_v47 = vpop.f32.mrf.mxu2 }
 0x2e1   : > { %v1116_v3 = vld [vmem:[%s3761_s27 + $0x1678] sm:$0xff]  ;;  %2628 = vmatpush.msrb.mxu0 %v980_v63  ;;  %2617 = vmatmul.f32.vlgmr.msra.gmra.mxu3 %v4810_v16 }
 0x2e2   : > { %v1236_v4 = vld [vmem:[%s3761_s27 + $0x1a38] sm:$0xff]  ;;  %2647 = vmatpush.msrb.mxu1 %v1116_v3  ;;  %2557 = vmatmul.f32.vlgmr.msra.gmra.mxu0 %v4805_v13 }
 0x2e3   : > { %v1372_v5 = vld [vmem:[%s3761_s27 + $0x1e78] sm:$0xff]  ;;  %2668 = vmatpush.msrb.mxu2 %v1236_v4  ;;  %2577 = vmatmul.f32.vlgmr.msra.gmra.mxu1 %v4818_v23 }
 0x2e4   : > { %v972_v24 = vld [vmem:[%s3761_s27 + $0x11f8] sm:$0xff]  ;;  %2687 = vmatpush.msrb.mxu3 %v1372_v5 }
 0x2e5   : > { %v1108_v7 = vld [vmem:[%s3761_s27 + $0x1638] sm:$0xff]  ;;  %2629 = vmatpush.msrb.mxu0 %v972_v24  ;;  %v2338_v44 = vpop.f32.mrf.mxu1 }
 0x2e6   : > { %v1228_v8 = vld [vmem:[%s3761_s27 + $0x19f8] sm:$0xff]  ;;  %2648 = vmatpush.msrb.mxu1 %v1108_v7  ;;  %v2339_v46 = vadd.f32 %v2338_v44, %v2319_v43 }
 0x2e7   : > { %v1364_v27 = vld [vmem:[%s3761_s27 + $0x1e38] sm:$0xff]  ;;  %2669 = vmatpush.msrb.mxu2 %v1228_v8 }
 0x2e8   : > { %v964_v29 = vld [vmem:[%s3761_s27 + $0x11b8] sm:$0xff]  ;;  %2688 = vmatpush.msrb.mxu3 %v1364_v27  ;;  %v2359_v49 = vadd.f32 %v2358_v47, %v2339_v46 }
 0x2e9   : > { %v1100_v9 = vld [vmem:[%s3761_s27 + $0x15f8] sm:$0xff]  ;;  %2630 = vmatpush.msrb.mxu0 %v964_v29  ;;  %v2378_v52 = vpop.f32.mrf.mxu3 }
 0x2ea   : > { %v1220_v11 = vld [vmem:[%s3761_s27 + $0x19b8] sm:$0xff]  ;;  %2649 = vmatpush.msrb.mxu1 %v1100_v9  ;;  %v2379_v53 = vadd.f32 %v2378_v52, %v2359_v49 }
 0x2eb   : > { %v1356_v31 = vld [vmem:[%s3761_s27 + $0x1df8] sm:$0xff]  ;;  %2670 = vmatpush.msrb.mxu2 %v1220_v11 }
 0x2ec   : > { %v956_v12 = vld [vmem:[%s3761_s27 + $0x1178] sm:$0xff]  ;;  %2689 = vmatpush.msrb.mxu3 %v1356_v31  ;;  %v2706_v55 = vadd.f32 %v2379_v53, %v386_v50 }
 0x2ed   : > { %v1092_v32 = vld [vmem:[%s3761_s27 + $0x15b8] sm:$0xff]  ;;  %2631 = vmatpush.msrb.mxu0 %v956_v12 }
 0x2ee   : > { %v1212_v14 = vld [vmem:[%s3761_s27 + $0x1978] sm:$0xff]  ;;  %2650 = vmatpush.msrb.mxu1 %v1092_v32  ;;  %2714 = vst [vmem:[#allocation2 + $0x20] sm:$0xff] %v2706_v55 }
 0x2ef   : > { %v1348_v6 = vld [vmem:[%s3761_s27 + $0x1db8] sm:$0xff]  ;;  %2671 = vmatpush.msrb.mxu2 %v1212_v14 }
 0x2f0   : > { %v948_v17 = vld [vmem:[%s3761_s27 + $0x1138] sm:$0xff]  ;;  %2690 = vmatpush.msrb.mxu3 %v1348_v6 }
 0x2f1   : > { %v1084_v19 = vld [vmem:[%s3761_s27 + $0x1578] sm:$0xff]  ;;  %2632 = vmatpush.msrb.mxu0 %v948_v17 }
 0x2f2   : > { %v1204_v39 = vld [vmem:[%s3761_s27 + $0x1938] sm:$0xff]  ;;  %2651 = vmatpush.msrb.mxu1 %v1084_v19 }
 0x2f3   : > { %v1340_v22 = vld [vmem:[%s3761_s27 + $0x1d78] sm:$0xff]  ;;  %2672 = vmatpush.msrb.mxu2 %v1204_v39 }
 0x2f4   : > { %v940_v25 = vld [vmem:[%s3761_s27 + $0x10f8] sm:$0xff]  ;;  %2691 = vmatpush.msrb.mxu3 %v1340_v22 }
 0x2f5   : > { %v1076_v59 = vld [vmem:[%s3761_s27 + $0x1538] sm:$0xff]  ;;  %2633 = vmatpush.msrb.mxu0 %v940_v25 }
 0x2f6   : > { %v1196_v26 = vld [vmem:[%s3761_s27 + $0x18f8] sm:$0xff]  ;;  %2652 = vmatpush.msrb.mxu1 %v1076_v59 }
 0x2f7   : > { %v1332_v28 = vld [vmem:[%s3761_s27 + $0x1d38] sm:$0xff]  ;;  %2673 = vmatpush.msrb.mxu2 %v1196_v26 }
 0x2f8   : > { %v932_v10 = vld [vmem:[%s3761_s27 + $0x10b8] sm:$0xff]  ;;  %2692 = vmatpush.msrb.mxu3 %v1332_v28 }
 0x2f9   : > { %v1068_v0 = vld [vmem:[%s3761_s27 + $0x14f8] sm:$0xff]  ;;  %2634 = vmatpush.msrb.mxu0 %v932_v10 }
 0x2fa   : > { %v1188_v51 = vld [vmem:[%s3761_s27 + $0x18b8] sm:$0xff]  ;;  %2653 = vmatpush.msrb.mxu1 %v1068_v0 }
 0x2fb   : > { %v1324_v54 = vld [vmem:[%s3761_s27 + $0x1cf8] sm:$0xff]  ;;  %2674 = vmatpush.msrb.mxu2 %v1188_v51 }
 0x2fc   : > { %v924_v13 = vld [vmem:[%s3761_s27 + $0x1078] sm:$0xff]  ;;  %2693 = vmatpush.msrb.mxu3 %v1324_v54 }
 0x2fd   : > { %v1060_v16 = vld [vmem:[%s3761_s27 + $0x14b8] sm:$0xff]  ;;  %2635 = vmatpush.msrb.mxu0 %v924_v13 }
 0x2fe   : > { %v1180_v34 = vld [vmem:[%s3761_s27 + $0x1878] sm:$0xff]  ;;  %2654 = vmatpush.msrb.mxu1 %v1060_v16 }
 0x2ff   : > { %v1316_v56 = vld [vmem:[%s3761_s27 + $0x1cb8] sm:$0xff]  ;;  %2675 = vmatpush.msrb.mxu2 %v1180_v34 }
 0x300   : > { %v916_v36 = vld [vmem:[%s3761_s27 + $0x1038] sm:$0xff]  ;;  %2694 = vmatpush.msrb.mxu3 %v1316_v56 }
 0x301   : > { %v1052_v37 = vld [vmem:[%s3761_s27 + $0x1478] sm:$0xff]  ;;  %2636 = vmatpush.msrb.mxu0 %v916_v36 }
 0x302   : > { %v1172_v23 = vld [vmem:[%s3761_s27 + $0x1838] sm:$0xff]  ;;  %2655 = vmatpush.msrb.mxu1 %v1052_v37  ;;  %2637 = vmatmul.f32.vlgmr.msrb.gmra.mxu0 %v4837_v2 }
 0x303   : > { %v1308_v15 = vld [vmem:[%s3761_s27 + $0x1c78] sm:$0xff]  ;;  %2676 = vmatpush.msrb.mxu2 %v1172_v23 }
 0x304   : > { %v1044_v20 = vld [vmem:[%s3761_s27 + $0x1438] sm:$0xff]  ;;  %2695 = vmatpush.msrb.mxu3 %v1308_v15  ;;  %2677 = vmatmul.f32.vlgmr.msrb.gmra.mxu2 %v4830_v58 }
 0x305   : > { %v1300_v42 = vld [vmem:[%s3761_s27 + $0x1c38] sm:$0xff]  ;;  %2656 = vmatpush.msrb.mxu1 %v1044_v20 }
 0x306   : > { %2696 = vmatpush.msrb.mxu3 %v1300_v42  ;;  %2657 = vmatmul.f32.vlgmr.msrb.gmra.mxu1 %v4850_v45  ;;  %v388_v25 = vld [vmem:[#allocation2 + $0x38] sm:$0xff] }
 0x307   : > { %2697 = vmatmul.f32.vlgmr.msrb.gmra.mxu3 %v4842_v41  ;;  %v387_v41 = vld [vmem:[#allocation2 + $0x28] sm:$0xff] }
 0x309   : > { %v2398_v57 = vpop.f32.mrf.mxu0 }
 0x30c   : > { %v2418_v60 = vpop.f32.mrf.mxu1 }
 0x30d   : > { %v2419_v2 = vadd.f32 %v2418_v60, %v2398_v57 }
 0x310   : > { %v2458_v62 = vpop.f32.mrf.mxu3 }
 0x32b   : > { %v2478_v63 = vpop.f32.mrf.mxu0 }
 0x334   : > { %v2438_v61 = vpop.f32.mrf.mxu2 }
 0x335   : > { %v2439_v58 = vadd.f32 %v2438_v61, %v2419_v2 }
 0x337   : > { %v2459_v18 = vadd.f32 %v2458_v62, %v2439_v58 }
 0x339   : > { %v2479_v3 = vadd.f32 %v2478_v63, %v2459_v18  ;;  %v2498_v4 = vpop.f32.mrf.mxu1 }
 0x33b   : > { %v2499_v5 = vadd.f32 %v2498_v4, %v2479_v3 }
 0x33c   : > { %v2518_v45 = vpop.f32.mrf.mxu2 }
 0x33d   : > { %v2519_v24 = vadd.f32 %v2518_v45, %v2499_v5  ;;  %v2538_v7 = vpop.f32.mrf.mxu3 }
 0x33f   : > { %v2539_v8 = vadd.f32 %v2538_v7, %v2519_v24 }
 0x341   : > { %v2707_v27 = vadd.f32 %v2539_v8, %v387_v41 }
 0x343   : > { %2715 = vst [vmem:[#allocation2 + $0x28] sm:$0xff] %v2707_v27 }
 0x35f   : > { %v2558_v29 = vpop.f32.mrf.mxu0 }
 0x360   : > { %v2578_v9 = vpop.f32.mrf.mxu1 }
 0x361   : > { %v2579_v11 = vadd.f32 %v2578_v9, %v2558_v29 }
 0x363   : > { %v2598_v31 = vpop.f32.mrf.mxu2 }
 0x364   : > { %v2599_v12 = vadd.f32 %v2598_v31, %v2579_v11  ;;  %v2618_v32 = vpop.f32.mrf.mxu3 }
 0x366   : > { %v2619_v14 = vadd.f32 %v2618_v32, %v2599_v12 }
 0x37f   : > { %v2638_v6 = vpop.f32.mrf.mxu0 }
 0x380   : > { %v2639_v17 = vadd.f32 %v2638_v6, %v2619_v14 }
 0x383   : > { %v2658_v19 = vpop.f32.mrf.mxu1 }
 0x384   : > { %v2659_v39 = vadd.f32 %v2658_v19, %v2639_v17 }
 0x387   : > { %v2678_v22 = vpop.f32.mrf.mxu2 }
 0x388   : > { %v2679_v21 = vadd.f32 %v2678_v22, %v2659_v39 }
 0x38a   : > { %v2698_v59 = vpop.f32.mrf.mxu3 }
 0x38b   : > { %v2699_v26 = vadd.f32 %v2698_v59, %v2679_v21  ;;  %2720 = sbr.rel (%p3262_p1) target bundleno = 1379 (0x563), region = 76 }
 0x38d   : > { %v2708_v28 = vadd.f32 %v2699_v26, %v388_v25 }
 0x38f   : > { %2716 = vst [vmem:[#allocation2 + $0x38] sm:$0xff] %v2708_v28 }
 0x390   : > { %v2862_v48 = vld [vmem:[%s5407_s5 + $0x178] sm:$0xff]  ;;  %v2861_v0 = vld [vmem:[%s5407_s5 + $0x170] sm:$0xff]  ;;  %v2860_v54 = vld [vmem:[%s5407_s5 + $0x168] sm:$0xff]  ;;  %vm3107_vm0 = vcmask 326656  }
 0x391   : > { %v2830_v10 = vld [vmem:[%s5407_s5 + $0x78] sm:$0xff]  ;;  %2987 = vmatpush.msra.mxu2 %v2862_v48  ;;  %v2829_v1 = vld [vmem:[%s5407_s5 + $0x70] sm:$0xff]  ;;  %v2828_v16 = vld [vmem:[%s5407_s5 + $0x68] sm:$0xff] }
 0x392   : > { %2947 = vmatpush.msra.mxu0 %v2830_v10  ;;  %v2878_v30 = vld [vmem:[%s5407_s5 + $0x1f8] sm:$0xff]  ;;  %v2877_v13 = vld [vmem:[%s5407_s5 + $0x1f0] sm:$0xff]  ;;  %v2876_v34 = vld [vmem:[%s5407_s5 + $0x1e8] sm:$0xff] }
 0x393   : > { %v2846_v51 = vld [vmem:[%s5407_s5 + $0xf8] sm:$0xff]  ;;  %3007 = vmatpush.msra.mxu3 %v2878_v30  ;;  %2988 = vmatpush.msra.mxu2 %v2861_v0  ;;  %v2845_v33 = vld [vmem:[%s5407_s5 + $0xf0] sm:$0xff]  ;;  %v2859_v56 = vld [vmem:[%s5407_s5 + $0x160] sm:$0xff] }
 0x394   : > { %2967 = vmatpush.msra.mxu1 %v2846_v51  ;;  %2948 = vmatpush.msra.mxu0 %v2829_v1  ;;  %v2827_v35 = vld [vmem:[%s5407_s5 + $0x60] sm:$0xff]  ;;  %v2844_v36 = vld [vmem:[%s5407_s5 + $0xe8] sm:$0xff]  ;;  %v2858_v23 = vld [vmem:[%s5407_s5 + $0x158] sm:$0xff] }
 0x395   : > { %3008 = vmatpush.msra.mxu3 %v2877_v13  ;;  %2989 = vmatpush.msra.mxu2 %v2860_v54  ;;  %v2875_v37 = vld [vmem:[%s5407_s5 + $0x1e0] sm:$0xff]  ;;  %v2826_v15 = vld [vmem:[%s5407_s5 + $0x58] sm:$0xff]  ;;  %v2857_v42 = vld [vmem:[%s5407_s5 + $0x150] sm:$0xff] }
 0x396   : > { %2968 = vmatpush.msra.mxu1 %v2845_v33  ;;  %2949 = vmatpush.msra.mxu0 %v2828_v16  ;;  %v2843_v38 = vld [vmem:[%s5407_s5 + $0xe0] sm:$0xff]  ;;  %v2874_v40 = vld [vmem:[%s5407_s5 + $0x1d8] sm:$0xff]  ;;  %v2825_v43 = vld [vmem:[%s5407_s5 + $0x50] sm:$0xff] }
 0x397   : > { %3009 = vmatpush.msra.mxu3 %v2876_v34  ;;  %2990 = vmatpush.msra.mxu2 %v2859_v56  ;;  %v2842_v20 = vld [vmem:[%s5407_s5 + $0xd8] sm:$0xff]  ;;  %v2873_v44 = vld [vmem:[%s5407_s5 + $0x1d0] sm:$0xff]  ;;  %v2856_v47 = vld [vmem:[%s5407_s5 + $0x148] sm:$0xff] }
 0x398   : > { %2969 = vmatpush.msra.mxu1 %v2844_v36  ;;  %2950 = vmatpush.msra.mxu0 %v2827_v35  ;;  %v2841_v46 = vld [vmem:[%s5407_s5 + $0xd0] sm:$0xff]  ;;  %v2824_v49 = vld [vmem:[%s5407_s5 + $0x48] sm:$0xff]  ;;  %v2855_v53 = vld [vmem:[%s5407_s5 + $0x140] sm:$0xff] }
 0x399   : > { %3010 = vmatpush.msra.mxu3 %v2875_v37  ;;  %2991 = vmatpush.msra.mxu2 %v2858_v23  ;;  %v2872_v50 = vld [vmem:[%s5407_s5 + $0x1c8] sm:$0xff]  ;;  %v2823_v55 = vld [vmem:[%s5407_s5 + $0x40] sm:$0xff]  ;;  %v2854_v2 = vld [vmem:[%s5407_s5 + $0x138] sm:$0xff] }
 0x39a   : > { %2970 = vmatpush.msra.mxu1 %v2843_v38  ;;  %2951 = vmatpush.msra.mxu0 %v2826_v15  ;;  %v2840_v52 = vld [vmem:[%s5407_s5 + $0xc8] sm:$0xff]  ;;  %v2871_v57 = vld [vmem:[%s5407_s5 + $0x1c0] sm:$0xff]  ;;  %v2822_v61 = vld [vmem:[%s5407_s5 + $0x38] sm:$0xff] }
 0x39b   : > { %3011 = vmatpush.msra.mxu3 %v2874_v40  ;;  %2992 = vmatpush.msra.mxu2 %v2857_v42  ;;  %v2839_v60 = vld [vmem:[%s5407_s5 + $0xc0] sm:$0xff]  ;;  %v2870_v58 = vld [vmem:[%s5407_s5 + $0x1b8] sm:$0xff]  ;;  %v2853_v18 = vld [vmem:[%s5407_s5 + $0x130] sm:$0xff] }
 0x39c   : > { %2971 = vmatpush.msra.mxu1 %v2842_v20  ;;  %2952 = vmatpush.msra.mxu0 %v2825_v43  ;;  %v2838_v62 = vld [vmem:[%s5407_s5 + $0xb8] sm:$0xff]  ;;  %v2821_v63 = vld [vmem:[%s5407_s5 + $0x30] sm:$0xff]  ;;  %v2852_v5 = vld [vmem:[%s5407_s5 + $0x128] sm:$0xff] }
 0x39d   : > { %3012 = vmatpush.msra.mxu3 %v2873_v44  ;;  %2993 = vmatpush.msra.mxu2 %v2856_v47  ;;  %v2869_v3 = vld [vmem:[%s5407_s5 + $0x1b0] sm:$0xff]  ;;  %v2820_v45 = vld [vmem:[%s5407_s5 + $0x28] sm:$0xff]  ;;  %v2851_v7 = vld [vmem:[%s5407_s5 + $0x120] sm:$0xff] }
 0x39e   : > { %2972 = vmatpush.msra.mxu1 %v2841_v46  ;;  %2953 = vmatpush.msra.mxu0 %v2824_v49  ;;  %v2837_v4 = vld [vmem:[%s5407_s5 + $0xb0] sm:$0xff]  ;;  %v2868_v24 = vld [vmem:[%s5407_s5 + $0x1a8] sm:$0xff]  ;;  %v2819_v8 = vld [vmem:[%s5407_s5 + $0x20] sm:$0xff] }
 0x39f   : > { %3013 = vmatpush.msra.mxu3 %v2872_v50  ;;  %2994 = vmatpush.msra.mxu2 %v2855_v53  ;;  %v2836_v41 = vld [vmem:[%s5407_s5 + $0xa8] sm:$0xff]  ;;  %v2867_v27 = vld [vmem:[%s5407_s5 + $0x1a0] sm:$0xff]  ;;  %v2850_v9 = vld [vmem:[%s5407_s5 + $0x118] sm:$0xff] }
 0x3a0   : > { %2973 = vmatpush.msra.mxu1 %v2840_v52  ;;  %2954 = vmatpush.msra.mxu0 %v2823_v55  ;;  %v2835_v29 = vld [vmem:[%s5407_s5 + $0xa0] sm:$0xff]  ;;  %v2818_v11 = vld [vmem:[%s5407_s5 + $0x18] sm:$0xff]  ;;  %v2849_v32 = vld [vmem:[%s5407_s5 + $0x110] sm:$0xff] }
 0x3a1   : > { %3014 = vmatpush.msra.mxu3 %v2871_v57  ;;  %2995 = vmatpush.msra.mxu2 %v2854_v2  ;;  %v2866_v31 = vld [vmem:[%s5407_s5 + $0x198] sm:$0xff]  ;;  %v2817_v14 = vld [vmem:[%s5407_s5 + $0x10] sm:$0xff]  ;;  %v2848_v19 = vld [vmem:[%s5407_s5 + $0x108] sm:$0xff] }
 0x3a2   : > { %2974 = vmatpush.msra.mxu1 %v2839_v60  ;;  %2955 = vmatpush.msra.mxu0 %v2822_v61  ;;  %v2834_v12 = vld [vmem:[%s5407_s5 + $0x98] sm:$0xff]  ;;  %v2865_v6 = vld [vmem:[%s5407_s5 + $0x190] sm:$0xff]  ;;  %v2816_v39 = vld [vmem:[%s5407_s5 + $0x8] sm:$0xff] }
 0x3a3   : > { %3015 = vmatpush.msra.mxu3 %v2870_v58  ;;  %2996 = vmatpush.msra.mxu2 %v2853_v18  ;;  %v2833_v17 = vld [vmem:[%s5407_s5 + $0x90] sm:$0xff]  ;;  %v2864_v22 = vld [vmem:[%s5407_s5 + $0x188] sm:$0xff]  ;;  %v2847_v25 = vld [vmem:[%s5407_s5 + $0x100] sm:$0xff] }
 0x3a4   : > { %2975 = vmatpush.msra.mxu1 %v2838_v62  ;;  %2956 = vmatpush.msra.mxu0 %v2821_v63  ;;  %v2832_v21 = vld [vmem:[%s5407_s5 + $0x88] sm:$0xff]  ;;  %v2815_v59 = vld [vmem:[%s5407_s5] sm:$0xff]  ;;  %v2926_v26 = vld [vmem:[%s5407_s5 + $0x378] sm:$0xff] }
 0x3a5   : > { %3016 = vmatpush.msra.mxu3 %v2869_v3  ;;  %2997 = vmatpush.msra.mxu2 %v2852_v5  ;;  %v2863_v28 = vld [vmem:[%s5407_s5 + $0x180] sm:$0xff]  ;;  %v2894_v48 = vld [vmem:[%s5407_s5 + $0x278] sm:$0xff]  ;;  %v2925_v0 = vld [vmem:[%s5407_s5 + $0x370] sm:$0xff] }
 0x3a6   : > { %2976 = vmatpush.msra.mxu1 %v2837_v4  ;;  %2957 = vmatpush.msra.mxu0 %v2820_v45  ;;  %v2942_v10 = vld [vmem:[%s5407_s5 + $0x3f8] sm:$0xff]  ;;  %v2831_v30 = vld [vmem:[%s5407_s5 + $0x80] sm:$0xff]  ;;  %v2893_v1 = vld [vmem:[%s5407_s5 + $0x270] sm:$0xff] }
 0x3a7   : > { %3017 = vmatpush.msra.mxu3 %v2868_v24  ;;  %2998 = vmatpush.msra.mxu2 %v2851_v7  ;;  %v2910_v51 = vld [vmem:[%s5407_s5 + $0x2f8] sm:$0xff]  ;;  %v2924_v54 = vld [vmem:[%s5407_s5 + $0x368] sm:$0xff]  ;;  %v2941_v13 = vld [vmem:[%s5407_s5 + $0x3f0] sm:$0xff] }
 0x3a8   : > { %2977 = vmatpush.msra.mxu1 %v2836_v41  ;;  %2958 = vmatpush.msra.mxu0 %v2819_v8  ;;  %v2892_v16 = vld [vmem:[%s5407_s5 + $0x268] sm:$0xff]  ;;  %v2909_v33 = vld [vmem:[%s5407_s5 + $0x2f0] sm:$0xff]  ;;  %v2923_v34 = vld [vmem:[%s5407_s5 + $0x360] sm:$0xff] }
 0x3a9   : > { %3018 = vmatpush.msra.mxu3 %v2867_v27  ;;  %2999 = vmatpush.msra.mxu2 %v2850_v9  ;;  %v2940_v56 = vld [vmem:[%s5407_s5 + $0x3e8] sm:$0xff]  ;;  %v2891_v35 = vld [vmem:[%s5407_s5 + $0x260] sm:$0xff]  ;;  %v2723_v37 = vld [vmem:[#allocation2 + $0x18] sm:$0xff] }
 0x3aa   : > { %2978 = vmatpush.msra.mxu1 %v2835_v29  ;;  %2959 = vmatpush.msra.mxu0 %v2818_v11  ;;  %v2908_v36 = vld [vmem:[%s5407_s5 + $0x2e8] sm:$0xff]  ;;  %v5202_v38 = vld [vmem:[#allocation6] sm:$0xff]  ;;  %v2922_v15 = vld [vmem:[%s5407_s5 + $0x358] sm:$0xff] }
 0x3ab   : > { %3019 = vmatpush.msra.mxu3 %v2866_v31  ;;  %3000 = vmatpush.msra.mxu2 %v2849_v32  ;;  %v5204_v23 = vld [vmem:[#allocation8] sm:$0xff]  ;;  %v2939_v40 = vld [vmem:[%s5407_s5 + $0x3e0] sm:$0xff]  ;;  %v2733_v20 = vperm.slane %v5202_v38, 2  ;;  %v2731_v42 = vperm.slane %v5202_v38, 0  ;;  %v2890_v43 = vld [vmem:[%s5407_s5 + $0x258] sm:$0xff]  ;;  %v2734_v55 = vperm.slane %v5202_v38, 3 }
 0x3ac   : > { %2979 = vmatpush.msra.mxu1 %v2834_v12  ;;  %2960 = vmatpush.msra.mxu0 %v2817_v14  ;;  %v2907_v44 = vld [vmem:[%s5407_s5 + $0x2e0] sm:$0xff]  ;;  %v2721_v46 = vld [vmem:[#allocation2 + $0x30] sm:$0xff]  ;;  %v2938_v49 = vld [vmem:[%s5407_s5 + $0x3d8] sm:$0xff]  ;;  %v2759_v52 = vperm.slane %v5204_v23, 2  ;;  %v2732_v61 = vperm.slane %v5202_v38, 1  ;;  %v2757_v63 = vperm.slane %v5204_v23, 0 }
 0x3ad   : > { %3020 = vmatpush.msra.mxu3 %v2865_v6  ;;  %3001 = vmatpush.msra.mxu2 %v2848_v19  ;;  %v2921_v47 = vld [vmem:[%s5407_s5 + $0x350] sm:$0xff]  ;;  %v2749_v50 = vadd.f32 %v2733_v20, %v2723_v37  ;;  %v2906_v60 = vld [vmem:[%s5407_s5 + $0x2d8] sm:$0xff]  ;;  %v2920_v58 = vld [vmem:[%s5407_s5 + $0x348] sm:$0xff]  ;;  %v2747_v18 = vadd.f32 %v2731_v42, %v2721_v46  ;;  %v2760_v24 = vperm.slane %v5204_v23, 3  ;;  %v2758_v31 = vperm.slane %v5204_v23, 1 }
 0x3ae   : > { %2980 = vmatpush.msra.mxu1 %v2833_v17  ;;  %2961 = vmatpush.msra.mxu0 %v2816_v39  ;;  %v2724_v53 = vld [vmem:[#allocation2 + $0x10] sm:$0xff]  ;;  %v2722_v3 = vld [vmem:[#allocation2] sm:$0xff]  ;;  %v2888_v4 = vld [vmem:[%s5407_s5 + $0x248] sm:$0xff]  ;;  %v2737_v19 = vperm.slane %v5202_v38, 6  ;;  %v2761_v20 = vperm.slane %v5204_v23, 4 }
 0x3af   : > { %3021 = vmatpush.msra.mxu3 %v2864_v22  ;;  %3002 = vmatpush.msra.mxu2 %v2847_v25  ;;  %v2889_v57 = vld [vmem:[%s5407_s5 + $0x250] sm:$0xff]  ;;  %v2750_v45 = vadd.f32 %v2734_v55, %v2724_v53  ;;  %v2919_v41 = vld [vmem:[%s5407_s5 + $0x340] sm:$0xff]  ;;  %v2936_v7 = vld [vmem:[%s5407_s5 + $0x3c8] sm:$0xff]  ;;  %v2775_v8 = vmul.f32 %v2759_v52, %v2749_v50  ;;  %v2748_v11 = vadd.f32 %v2732_v61, %v2722_v3 }
 0x3b0   : > { %2981 = vmatpush.msra.mxu1 %v2832_v21  ;;  %2962 = vmatpush.msra.mxu0 %v2815_v59  ;;  %v5234_v2 = vld [vmem:[#allocation9] sm:$0xff]  ;;  %v2887_v29 = vld [vmem:[%s5407_s5 + $0x240] sm:$0xff]  ;;  %v2904_v9 = vld [vmem:[%s5407_s5 + $0x2c8] sm:$0xff]  ;;  %v2773_v6 = vmul.f32 %v2757_v63, %v2747_v18 }
 0x3b1   : > { %3067 = vmatpush.msrb.mxu2 %v2926_v26  ;;  %3022 = vmatpush.msra.mxu3 %v2863_v28  ;;  %v2937_v62 = vld [vmem:[%s5407_s5 + $0x3d0] sm:$0xff]  ;;  %v2785_v27 = vperm.slane %v5234_v2, 2  ;;  %v2918_v12 = vld [vmem:[%s5407_s5 + $0x338] sm:$0xff]  ;;  %v2935_v32 = vld [vmem:[%s5407_s5 + $0x3c0] sm:$0xff]  ;;  %v2783_v17 = vperm.slane %v5234_v2, 0  ;;  %v2776_v22 = vmul.f32 %v2760_v24, %v2750_v45  ;;  %v2786_v21 = vperm.slane %v5234_v2, 3 }
 0x3b2   : > { %3027 = vmatpush.msrb.mxu0 %v2894_v48  ;;  %2982 = vmatpush.msra.mxu1 %v2831_v30  ;;  %v2905_v5 = vld [vmem:[%s5407_s5 + $0x2d0] sm:$0xff]  ;;  %v2886_v14 = vld [vmem:[%s5407_s5 + $0x238] sm:$0xff]  ;;  %v2903_v39 = vld [vmem:[%s5407_s5 + $0x2c0] sm:$0xff]  ;;  %v2789_v53 = vperm.slane %v5234_v2, 6  ;;  %v2790_v24 = vperm.slane %v5234_v2, 7 }
 0x3b3   : > { %3087 = vmatpush.msrb.mxu3 %v2942_v10  ;;  %3068 = vmatpush.msrb.mxu2 %v2925_v0  ;;  %v2727_v25 = vld [vmem:[#allocation2 + $0x28] sm:$0xff]  ;;  %v2917_v59 = vld [vmem:[%s5407_s5 + $0x330] sm:$0xff]  ;;  %v2934_v26 = vld [vmem:[%s5407_s5 + $0x3b8] sm:$0xff]  ;;  %v2801_v48 = vadd.f32 %v2785_v27, %v2775_v8  ;;  %v2735_v10 = vperm.slane %v5202_v38, 4  ;;  %v2738_v0 = vperm.slane %v5202_v38, 7 }
 0x3b4   : > { %3028 = vmatpush.msrb.mxu0 %v2893_v1  ;;  %3047 = vmatpush.msrb.mxu1 %v2910_v51  ;;  %v2885_v28 = vld [vmem:[%s5407_s5 + $0x230] sm:$0xff]  ;;  %v2902_v30 = vld [vmem:[%s5407_s5 + $0x2b8] sm:$0xff]  ;;  %v2774_v1 = vmul.f32 %v2758_v31, %v2748_v11  ;;  %v2784_v51 = vperm.slane %v5234_v2, 1  ;;  %v2884_v37 = vld [vmem:[%s5407_s5 + $0x228] sm:$0xff] }
 0x3b5   : > { %3069 = vmatpush.msrb.mxu2 %v2924_v54  ;;  %3088 = vmatpush.msrb.mxu3 %v2941_v13  ;;  %v2725_v54 = vld [vmem:[#allocation2 + $0x8] sm:$0xff]  ;;  %v2728_v13 = vld [vmem:[#allocation2 + $0x38] sm:$0xff]  ;;  %v2726_v42 = vld [vmem:[#allocation2 + $0x20] sm:$0xff] }
 0x3b6   : > { %3029 = vmatpush.msrb.mxu0 %v2892_v16  ;;  %3048 = vmatpush.msrb.mxu1 %v2909_v33  ;;  %v2916_v16 = vld [vmem:[%s5407_s5 + $0x328] sm:$0xff]  ;;  %v2933_v33 = vld [vmem:[%s5407_s5 + $0x3b0] sm:$0xff]  ;;  %v2751_v46 = vadd.f32 %v2735_v10, %v2725_v54  ;;  %v2883_v50 = vld [vmem:[%s5407_s5 + $0x220] sm:$0xff]  ;;  %v2800_v52 = vadd.f32 %v2784_v51, %v2774_v1 }
 0x3b7   : > { %3070 = vmatpush.msrb.mxu2 %v2923_v34  ;;  %3089 = vmatpush.msrb.mxu3 %v2940_v56  ;;  %v2799_v34 = vadd.f32 %v2783_v17, %v2773_v6  ;;  %v2753_v56 = vadd.f32 %v2737_v19, %v2727_v25  ;;  %v2900_v55 = vld [vmem:[%s5407_s5 + $0x2a8] sm:$0xff]  ;;  %v2931_v18 = vld [vmem:[%s5407_s5 + $0x3a0] sm:$0xff]  ;;  %v2882_v3 = vld [vmem:[%s5407_s5 + $0x218] sm:$0xff] }
 0x3b8   : > { %3030 = vmatpush.msrb.mxu0 %v2891_v35  ;;  %3049 = vmatpush.msrb.mxu1 %v2908_v36  ;;  %v2763_v35 = vperm.slane %v5204_v23, 6  ;;  %v2736_v36 = vperm.slane %v5202_v38, 5  ;;  %v2915_v38 = vld [vmem:[%s5407_s5 + $0x320] sm:$0xff]  ;;  %v2930_v8 = vld [vmem:[%s5407_s5 + $0x398] sm:$0xff]  ;;  %v2881_v11 = vld [vmem:[%s5407_s5 + $0x210] sm:$0xff] }
 0x3b9   : > { %3071 = vmatpush.msrb.mxu2 %v2922_v15  ;;  %3090 = vmatpush.msrb.mxu3 %v2939_v40  ;;  %v2901_v15 = vld [vmem:[%s5407_s5 + $0x2b0] sm:$0xff]  ;;  %v2802_v40 = vadd.f32 %v2786_v21, %v2776_v22  ;;  %v2898_v31 = vld [vmem:[%s5407_s5 + $0x298] sm:$0xff]  ;;  %v2880_v6 = vld [vmem:[%s5407_s5 + $0x208] sm:$0xff] }
 0x3ba   : > { %3031 = vmatpush.msrb.mxu0 %v2890_v43  ;;  %3050 = vmatpush.msrb.mxu1 %v2907_v44  ;;  %v2932_v43 = vld [vmem:[%s5407_s5 + $0x3a8] sm:$0xff]  ;;  %v2809_v44 = vmax.f32 %v2801_v48, 0.0  ;;  %v2779_v61 = vmul.f32 %v2763_v35, %v2753_v56  ;;  %v2897_v17 = vld [vmem:[%s5407_s5 + $0x290] sm:$0xff]  ;;  %v2911_v19 = vld [vmem:[%s5407_s5 + $0x300] sm:$0xff] }
 0x3bb   : > { %3072 = vmatpush.msrb.mxu2 %v2921_v47  ;;  %3091 = vmatpush.msrb.mxu3 %v2938_v49  ;;  %v2754_v47 = vadd.f32 %v2738_v0, %v2728_v13  ;;  %v2764_v49 = vperm.slane %v5204_v23, 7  ;;  %v2810_v63 = vmax.f32 %v2802_v40, 0.0  ;;  %v2879_v25 = vld [vmem:[%s5407_s5 + $0x200] sm:$0xff] }
 0x3bc   : > { %3032 = vmatpush.msrb.mxu0 %v2889_v57  ;;  %3051 = vmatpush.msrb.mxu1 %v2906_v60  ;;  %v2914_v57 = vld [vmem:[%s5407_s5 + $0x318] sm:$0xff]  ;;  %v2807_v60 = vmax.f32 %v2799_v34, 0.0  ;;  %v2805_v27 = vadd.f32 %v2789_v53, %v2779_v61  ;;  %v2895_v10 = vld [vmem:[%s5407_s5 + $0x280] sm:$0xff] }
 0x3bd   : > { %3073 = vmatpush.msrb.mxu2 %v2920_v58  ;;  %3092 = vmatpush.msrb.mxu3 %v2937_v62  ;;  %v2752_v58 = vadd.f32 %v2736_v36, %v2726_v42  ;;  %v2762_v62 = vperm.slane %v5204_v23, 5  ;;  %v2780_v45 = vmul.f32 %v2764_v49, %v2754_v47  ;;  %v2899_v23 = vld [vmem:[%s5407_s5 + $0x2a0] sm:$0xff] }
 0x3be   : > { %3033 = vmatpush.msrb.mxu0 %v2888_v4  ;;  %3052 = vmatpush.msrb.mxu1 %v2905_v5  ;;  %v2777_v4 = vmul.f32 %v2761_v20, %v2751_v46  ;;  %v2787_v5 = vperm.slane %v5234_v2, 4  ;;  %v2813_v22 = vmax.f32 %v2805_v27, 0.0 }
 0x3bf   : > { %3074 = vmatpush.msrb.mxu2 %v2919_v41  ;;  %3093 = vmatpush.msrb.mxu3 %v2936_v7  ;;  %v2913_v41 = vld [vmem:[%s5407_s5 + $0x310] sm:$0xff]  ;;  %v2808_v7 = vmax.f32 %v2800_v52, 0.0 }
 0x3c0   : > { %3034 = vmatpush.msrb.mxu0 %v2887_v29  ;;  %3053 = vmatpush.msrb.mxu1 %v2904_v9  ;;  %v2778_v29 = vmul.f32 %v2762_v62, %v2752_v58  ;;  %v2788_v9 = vperm.slane %v5234_v2, 5  ;;  %v2929_v2 = vld [vmem:[%s5407_s5 + $0x390] sm:$0xff] }
 0x3c1   : > { %3075 = vmatpush.msrb.mxu2 %v2918_v12  ;;  %3094 = vmatpush.msrb.mxu3 %v2935_v32  ;;  %v2912_v12 = vld [vmem:[%s5407_s5 + $0x308] sm:$0xff]  ;;  %v2803_v32 = vadd.f32 %v2787_v5, %v2777_v4 }
 0x3c2   : > { %3035 = vmatpush.msrb.mxu0 %v2886_v14  ;;  %3054 = vmatpush.msrb.mxu1 %v2903_v39  ;;  %v2806_v14 = vadd.f32 %v2790_v24, %v2780_v45  ;;  %v2928_v39 = vld [vmem:[%s5407_s5 + $0x388] sm:$0xff]  ;;  %v2804_v21 = vadd.f32 %v2788_v9, %v2778_v29 }
 0x3c3   : > { %3076 = vmatpush.msrb.mxu2 %v2917_v59  ;;  %3095 = vmatpush.msrb.mxu3 %v2934_v26  ;;  %v2896_v59 = vld [vmem:[%s5407_s5 + $0x288] sm:$0xff]  ;;  %v2927_v26 = vld [vmem:[%s5407_s5 + $0x380] sm:$0xff] }
 0x3c4   : > { %3036 = vmatpush.msrb.mxu0 %v2885_v28  ;;  %3055 = vmatpush.msrb.mxu1 %v2902_v30  ;;  %v2811_v28 = vmax.f32 %v2803_v32, 0.0  ;;  %v2814_v48 = vmax.f32 %v2806_v14, 0.0  ;;  %v2812_v0 = vmax.f32 %v2804_v21, 0.0  ;;  %v3383_v30 = vld [vmem:[#allocation11] ss:$0 sm:$0xff] }
 0x3c5   : > { %3077 = vmatpush.msrb.mxu2 %v2916_v16  ;;  %3096 = vmatpush.msrb.mxu3 %v2933_v33 }
 0x3c6   : > { %3037 = vmatpush.msrb.mxu0 %v2884_v37  ;;  %3056 = vmatpush.msrb.mxu1 %v2901_v15 }
 0x3c7   : > { %3078 = vmatpush.msrb.mxu2 %v2915_v38  ;;  %3097 = vmatpush.msrb.mxu3 %v2932_v43 }
 0x3c8   : > { %3003 = vmatmul.f32.vlgmr.msra.gmra.mxu2 %v2809_v44  ;;  %3038 = vmatpush.msrb.mxu0 %v2883_v50 }
 0x3c9   : > { %3057 = vmatpush.msrb.mxu1 %v2900_v55  ;;  %3079 = vmatpush.msrb.mxu2 %v2914_v57 }
 0x3ca   : > { %3098 = vmatpush.msrb.mxu3 %v2931_v18  ;;  %2963 = vmatmul.f32.vlgmr.msra.gmra.mxu0 %v2807_v60 }
 0x3cb   : > { %3023 = vmatmul.f32.vlgmr.msra.gmra.mxu3 %v2810_v63  ;;  %3039 = vmatpush.msrb.mxu0 %v2882_v3 }
 0x3cc   : > { %3058 = vmatpush.msrb.mxu1 %v2899_v23  ;;  %3080 = vmatpush.msrb.mxu2 %v2913_v41 }
 0x3cd   : > { %3099 = vmatpush.msrb.mxu3 %v2930_v8  ;;  %2983 = vmatmul.f32.vlgmr.msra.gmra.mxu1 %v2808_v7 }
 0x3ce   : > { %3040 = vmatpush.msrb.mxu0 %v2881_v11  ;;  %3059 = vmatpush.msrb.mxu1 %v2898_v31 }
 0x3cf   : > { %3081 = vmatpush.msrb.mxu2 %v2912_v12  ;;  %3100 = vmatpush.msrb.mxu3 %v2929_v2 }
 0x3d0   : > { %3041 = vmatpush.msrb.mxu0 %v2880_v6  ;;  %3060 = vmatpush.msrb.mxu1 %v2897_v17 }
 0x3d1   : > { %3082 = vmatpush.msrb.mxu2 %v2911_v19  ;;  %3101 = vmatpush.msrb.mxu3 %v2928_v39 }
 0x3d2   : > { %3083 = vmatmul.f32.vlgmr.msrb.gmra.mxu2 %v2813_v22  ;;  %3042 = vmatpush.msrb.mxu0 %v2879_v25 }
 0x3d3   : > { %3061 = vmatpush.msrb.mxu1 %v2896_v59  ;;  %3102 = vmatpush.msrb.mxu3 %v2927_v26 }
 0x3d4   : > { %3043 = vmatmul.f32.vlgmr.msrb.gmra.mxu0 %v2811_v28  ;;  %3103 = vmatmul.f32.vlgmr.msrb.gmra.mxu3 %v2814_v48 }
 0x3d5   : > { %3062 = vmatpush.msrb.mxu1 %v2895_v10 }
 0x3d6   : > { %3063 = vmatmul.f32.vlgmr.msrb.gmra.mxu1 %v2812_v0 }
 0x447   : > { %v2964_v1 = vpop.f32.mrf.mxu0 }
 0x448   : > { %v2965_v51 = vadd.f32 %v3383_v30, %v2964_v1 }
 0x44a   : > { %v2984_v54 = vpop.f32.mrf.mxu1 }
 0x44b   : > { %v2985_v13 = vadd.f32 %v2984_v54, %v2965_v51  ;;  %v3004_v16 = vpop.f32.mrf.mxu2 }
 0x44d   : > { %v3005_v33 = vadd.f32 %v3004_v16, %v2985_v13 }
 0x44e   : > { %v3024_v34 = vpop.f32.mrf.mxu3 }
 0x44f   : > { %v3025_v56 = vadd.f32 %v3024_v34, %v3005_v33 }
 0x451   : > { %v3044_v35 = vpop.f32.mrf.mxu0 }
 0x452   : > { %v3045_v36 = vadd.f32 %v3044_v35, %v3025_v56 }
 0x453   : > { %v3064_v37 = vpop.f32.mrf.mxu1 }
 0x454   : > { %v3065_v15 = vadd.f32 %v3064_v37, %v3045_v36 }
 0x455   : > { %v3084_v40 = vpop.f32.mrf.mxu2 }
 0x456   : > { %v3085_v20 = vadd.f32 %v3084_v40, %v3065_v15 }
 0x457   : > { %v3104_v42 = vpop.f32.mrf.mxu3 }
 0x458   : > { %v3105_v38 = vadd.f32 %v3104_v42, %v3085_v20 }
 0x45a   : > { %v3108_v43 = vsel %vm3107_vm0, %v3105_v38, -inf }
 0x45b   : > { %3109 = vmax.xlane.f32.xlu0 %v3108_v43 }
 0x4ce   : > { %v3110_v44 = vpop.xlane.xlu0 %3109 }
 0x4cf   : > { %v3111_v46 = vsub.f32 %v3105_v38, %v3110_v44 }
 0x4d1   : > { %v3112_v47 = vmul.f32 1.442695, %v3111_v46 }
 0x4d3   : > { %3384 = vpow2.f32 %v3112_v47 }
 0x4d9   : > { %v3385_v49 = vpop.eup %3384 }
 0x4da   : > { %v3114_v50 = vsel %vm3107_vm0, %v3385_v49, 0.0 }
 0x4db   : > { %3115 = vadd.xlane.f32.xlu0 %v3114_v50 }
 0x54e   : > { %v3116_v52 = vpop.xlane.xlu0 %3115 }
 0x54f   : > { %3386 = vrcp.f32 %v3116_v52  ;;  %v3128_v60 = vand.u32 2147483648, %v3116_v52  ;;  %v3126_v58 = vand.u32 2147483647, %v3116_v52  ;;  %vm3122_vm2 = vweird.f32 %v3116_v52 }
 0x551   : > { %v3129_v18 = vor.u32 1.1754944e-38, %v3128_v60  ;;  %vm3127_vm4 = vcmp.eq.f32.partialorder %v3126_v58, 8.507059e+37 }
 0x555   : > { %v3387_v53 = vpop.eup %3386 }
 0x556   : > { %v3118_v55 = vmul.f32 %v3387_v53, %v3116_v52  ;;  %vm3123_vm1 = vweird.f32 %v3387_v53 }
 0x557   : > { %vm3124_vm3 = vmor %vm3122_vm2, %vm3123_vm1 }
 0x558   : > { %v3119_v57 = vsub.f32 1.0, %v3118_v55 }
 0x55a   : > { %v3120_v61 = vmul.f32 %v3387_v53, %v3119_v57 }
 0x55c   : > { %v3121_v62 = vadd.f32 %v3387_v53, %v3120_v61 }
 0x55e   : > { %v3125_v63 = vsel %vm3124_vm3, %v3387_v53, %v3121_v62 }
 0x55f   : > { %v3130_v3 = vsel %vm3127_vm4, %v3129_v18, %v3125_v63 }
 0x560   : > { %v3131_v4 = vmul.f32 %v3385_v49, %v3130_v3 }
 0x562   : > { %3132 = vst.msk [vmem:[#allocation12] sm:$0xff] %vm3107_vm0, %v3131_v4 }
 0x563 PF: > { %p3317_p4 = scmp.eq.s32.totalorder %s3681_s28, 1  ;;  %s3621_s14 = smov [#allocation12]  }
 0x564   : > { %s3139_s18 = sshll.u32 %s3621_s14, 4  ;;  %s3141_s20 = sshll.u32 %s5409_s7, 4  ;;  %s3140_s18 = int_to_ptr.vmem [resolvable:$true] %s3139_s18  ;;  %s3142_s20 = int_to_ptr.hbm [resolvable:$true] %s3141_s20 }
 0x565   : > { %3288 = dma.vmem_to_hbm [thread:$0]  (%p3317_p4), %s3140_s18, 128, %s3142_s20, [#allocation5]  }
 0x566   : > { %3595 = dma.done.wait (%p3317_p4), [#allocation5], 128  }
 0x567   : > { %3597 = vsyncadd (%p3317_p4), [#allocation5], 4294967168 }
 0x568 PF: > { %p20_p5 = scmp.ge.s32.totalorder %s3727_s12, 4   ;;  %s5414_s24 = smov %s3604_s25 }
 0x569   : > { %s5415_s25 = smov %s3608_s26  ;;  %s5416_s26 = smov %s3738_s17 }
 0x56a   : > { %s5417_s27 = smov %s3727_s12  ;;  %22 = sbr.rel (!%p20_p5) target bundleno = 6 (0x6), region = 112 }
 0x56f   :  { %3155 = vsyncpa [#allocation4], 1 }
 0x570   :  { %3157 = vsyncpa [#allocation4 + $0x1], 1 }
 0x571   :  { %3158 = vsyncpa [#allocation7], 1 }
 0x572   :  { %3159 = vsyncpa [#allocation10], 1 }
 0x573   :  { %3160 = vsyncpa [#allocation5], 1 }
 0x574   :  { %3162 = vsyncpa [#allocation5 + $0x1], 1 }

</bundles_post_ra>
